<compile_context>
chip_gen: v7x
topology: tpu7x:2x2x1
jax: 0.10.0
libtpu: 0.0.40
codegen_flags: <defaults>
</compile_context>

<pallas_src>
import functools

import jax
import jax.numpy as jnp
from jax.experimental import pallas as pl
from jax.experimental.pallas import tpu as pltpu


# ----------------------------- helpers -----------------------------

def _round_up(x, m):
    return (x + m - 1) // m * m


def _pick_tile_k(k, cap=2048):
    if k <= cap:
        return k
    for d in range(cap - cap % 128, 127, -128):
        if k % d == 0:
            return d
    return k


# ----------------------------- GEMM + bias + activation kernel -----------------------------

def _gemm_bias_act_kernel(x_ref, w_ref, b_ref, o_ref, *, activation):
    k = pl.program_id(2)

    @pl.when(k == 0)
    def _():
        o_ref[...] = jnp.zeros_like(o_ref)

    # bf16 x bf16 -> f32 accumulate, directly into the resident output block.
    o_ref[...] += jnp.dot(x_ref[...], w_ref[...],
                          preferred_element_type=jnp.float32)

    @pl.when(k == pl.num_programs(2) - 1)
    def _():
        y = o_ref[...] + b_ref[...]
        if activation == "relu":
            y = jnp.maximum(y, 0.0)
        o_ref[...] = y


def matmul_bias_act(x, w, b, activation="none"):
    """y = act(x @ w + b); x:(M,K), w:(K,N), b:(N,).  Returns f32 (M,N)."""
    m, k = x.shape
    k2, n = w.shape
    assert k == k2

    x = x.astype(jnp.bfloat16)
    w = w.astype(jnp.bfloat16)

    # Lane-dense K: conv1 has K = 9 which wastes 119/128 lanes -> zero-pad to 128.
    if k < 128:
        x = jnp.pad(x, ((0, 0), (0, 128 - k)))
        w = jnp.pad(w, ((0, 128 - k), (0, 0)))
        k = 128

    # M tiling: pad rows to a multiple of tm so large GEMMs pipeline/double-buffer.
    tm = m if m <= 512 else 512
    m_pad = m if m <= 512 else _round_up(m, tm)
    if m_pad != m:
        x = jnp.pad(x, ((0, m_pad - m), (0, 0)))

    tn = 128 if (n >= 256 and n % 128 == 0) else n
    tk = _pick_tile_k(k)
    grid = (m_pad // tm, n // tn, k // tk)

    kernel = functools.partial(_gemm_bias_act_kernel, activation=activation)
    out = pl.pallas_call(
        kernel,
        out_shape=jax.ShapeDtypeStruct((m_pad, n), jnp.float32),
        grid=grid,
        in_specs=[
            pl.BlockSpec((tm, tk), lambda i, j, kk: (i, kk)),
            pl.BlockSpec((tk, tn), lambda i, j, kk: (kk, j)),
            pl.BlockSpec((1, tn), lambda i, j, kk: (0, j)),
        ],
        out_specs=pl.BlockSpec((tm, tn), lambda i, j, kk: (i, j)),
        compiler_params=pltpu.CompilerParams(
            dimension_semantics=("parallel", "parallel", "arbitrary")),
    )(x, w, b.reshape(1, n).astype(jnp.float32))

    return out[:m] if m_pad != m else out


# ----------------------------- MaxPool 2x2 kernel -----------------------------

def _maxpool_kernel(x_ref, o_ref, *, c):
    # x_ref: (1, hp, 2, wp, 2*c)   o_ref: (1, hp, wp, c)
    m = jnp.maximum(x_ref[0, :, 0, :, :], x_ref[0, :, 1, :, :])   # rows pair-max
    o_ref[0] = jnp.maximum(m[:, :, :c], m[:, :, c:])              # cols pair-max


def maxpool2x2(x):
    """x: (B, H, W, C) NHWC -> (B, H//2, W//2, C); floor behavior like nn.MaxPool2d."""
    bsz, h, w, c = x.shape
    hp, wp = h // 2, w // 2
    # row-major compatible reshape: adjacent W pairs land on adjacent lane groups.
    x = x[:, :2 * hp, :2 * wp, :].reshape(bsz, hp, 2, wp, 2 * c)
    return pl.pallas_call(
        functools.partial(_maxpool_kernel, c=c),
        out_shape=jax.ShapeDtypeStruct((bsz, hp, wp, c), x.dtype),
        grid=(bsz,),
        in_specs=[pl.BlockSpec((1, hp, 2, wp, 2 * c), lambda b: (b, 0, 0, 0, 0))],
        out_specs=pl.BlockSpec((1, hp, wp, c), lambda b: (b, 0, 0, 0)),
        compiler_params=pltpu.CompilerParams(dimension_semantics=("parallel",)),
    )(x)


# ----------------------------- fused MLP tail: fc2 -> ReLU -> fc3 -> log_softmax -----------------------------

def _mlp_tail_kernel(h_ref, w2_ref, b2_ref, w3_ref, b3_ref, o_ref):
    h = jnp.maximum(
        jnp.dot(h_ref[...], w2_ref[...], preferred_element_type=jnp.float32)
        + b2_ref[...], 0.0)
    y = jnp.dot(h.astype(w3_ref.dtype), w3_ref[...],
                preferred_element_type=jnp.float32) + b3_ref[...]
    y = y - jnp.max(y, axis=-1, keepdims=True)
    o_ref[...] = y - jnp.log(jnp.sum(jnp.exp(y), axis=-1, keepdims=True))


def mlp_tail(h, w2, b2, w3, b3):
    bsz = h.shape[0]
    nc = w3.shape[1]
    return pl.pallas_call(
        _mlp_tail_kernel,
        out_shape=jax.ShapeDtypeStruct((bsz, nc), jnp.float32),
    )(h.astype(jnp.bfloat16),
      w2.astype(jnp.bfloat16), b2.reshape(1, -1).astype(jnp.float32),
      w3.astype(jnp.bfloat16), b3.reshape(1, -1).astype(jnp.float32))


# ----------------------------- conv block (im2col glue + GEMM + pool kernels) -----------------------------

def _im2col(x, kh, kw):
    """x: (B, H, W, C) -> patches (B*Ho*Wo, kh*kw*C) with (kh, kw, c) column order."""
    bsz, h, w, c = x.shape
    ho, wo = h - kh + 1, w - kw + 1
    cols = [x[:, i:i + ho, j:j + wo, :] for i in range(kh) for j in range(kw)]
    patches = jnp.concatenate(cols, axis=-1)
    return patches.reshape(bsz * ho * wo, kh * kw * c), ho, wo


def conv_block(x, w, b):
    """ConvBlock: conv3x3 (valid) -> ReLU -> maxpool2x2. x NHWC, w (KH,KW,Cin,Cout)."""
    bsz = x.shape[0]
    kh, kw, _, cout = w.shape
    patches, ho, wo = _im2col(x, kh, kw)
    y = matmul_bias_act(patches, w.reshape(-1, cout), b, activation="relu")
    y = y.reshape(bsz, ho, wo, cout)
    return maxpool2x2(y)


# ----------------------------- full network -----------------------------

def cnn_forward(x_nchw, params):
    # x_nchw: (B, 1, H, W)  (PyTorch layout) -> NHWC for conv compute
    x = jnp.transpose(x_nchw, (0, 2, 3, 1)).astype(jnp.float32)
    x = conv_block(x, params["conv1_w"], params["conv1_b"])   # (B, 31, 31, 64)
    x = conv_block(x, params["conv2_w"], params["conv2_b"])   # (B, 14, 14, 128)
    x = conv_block(x, params["conv3_w"], params["conv3_b"])   # (B, 6, 6, 256)
    bsz = x.shape[0]
    # NHWC flatten; fc1_w rows were permuted at init so this matches PyTorch's
    # x.view(B, -1) @ fc1 semantics without a runtime transpose.
    feat = x.reshape(bsz, -1)                                  # (B, 9216)
    h = matmul_bias_act(feat, params["fc1_w"], params["fc1_b"], activation="relu")
    return mlp_tail(h, params["fc2_w"], params["fc2_b"],
                    params["fc3_w"], params["fc3_b"])


def init_params(key, num_classes):
    ks = jax.random.split(key, 12)

    def conv_w(k, khw, cin, cout):
        s = 1.0 / (khw * khw * cin) ** 0.5
        return jax.random.uniform(k, (khw, khw, cin, cout), jnp.float32, -s, s)

    def lin_w(k, fin, fout):
        s = 1.0 / fin ** 0.5
        return jax.random.uniform(k, (fin, fout), jnp.float32, -s, s)

    def bias(k, n, fan_in):
        s = 1.0 / fan_in ** 0.5
        return jax.random.uniform(k, (n,), jnp.float32, -s, s)

    # fc1 rows in PyTorch NCHW-flatten order (c*36 + h*6 + w) ...
    fc1_w_pt = lin_w(ks[6], 9216, 512)
    # ... permuted ONCE at init so the GEMM consumes NHWC-flattened features (h*6*256 + w*256 + c)
    fc1_w = fc1_w_pt.reshape(256, 6, 6, 512).transpose(1, 2, 0, 3).reshape(9216, 512)

    return {
        "conv1_w": conv_w(ks[0], 3, 1, 64),    "conv1_b": bias(ks[1], 64, 9),
        "conv2_w": conv_w(ks[2], 3, 64, 128),  "conv2_b": bias(ks[3], 128, 576),
        "conv3_w": conv_w(ks[4], 3, 128, 256), "conv3_b": bias(ks[5], 256, 1152),
        "fc1_w": fc1_w,                        "fc1_b": bias(ks[7], 512, 9216),
        "fc2_w": lin_w(ks[8], 512, 256),       "fc2_b": bias(ks[9], 256, 512),
        "fc3_w": lin_w(ks[10], 256, num_classes),
        "fc3_b": bias(ks[11], num_classes, 256),
    }


if __name__ == "__main__":
    num_classes = 10
    key = jax.random.PRNGKey(0)
    pkey, xkey = jax.random.split(key)
    params = init_params(pkey, num_classes)
    # 64x64 input gives 6x6x256 = 9216 features, matching the hard-coded Linear(9216, 512)
    x = jax.random.normal(xkey, (2, 1, 64, 64), jnp.float32)   # NCHW like PyTorch
    out = jax.block_until_ready(jax.jit(cnn_forward)(x, params))
    assert out.shape == (2, num_classes)
    assert bool(jnp.all(jnp.isfinite(out)))
    # log-softmax rows should exponentiate-sum to ~1
    assert bool(jnp.allclose(jnp.sum(jnp.exp(out), axis=1), 1.0, atol=1e-3))
    print("KERNEL_OK")
</pallas_src>

<mosaic_0001>
module attributes {stable_mosaic.version = 11 : i64} {
  func.func @_gemm_bias_act_kernel(%arg0: i32, %arg1: i32, %arg2: i32, %arg3: memref<512x128xbf16, #tpu.memory_space<vmem>>, %arg4: memref<128x64xbf16, #tpu.memory_space<vmem>>, %arg5: memref<1x64xf32, #tpu.memory_space<vmem>>, %arg6: memref<512x64xf32, #tpu.memory_space<vmem>>) attributes {dimension_semantics = [#tpu.dimension_semantics<parallel>, #tpu.dimension_semantics<parallel>, #tpu.dimension_semantics<arbitrary>], iteration_bounds = array<i64: 16, 1, 1>, scalar_prefetch = 0 : i64, scratch_operands = 0 : i64, tpu.core_type = #tpu.core_type<tc>, window_params = [{transform_indices = @transform_0, window_bounds = array<i64: 512, 128>}, {transform_indices = @transform_1, window_bounds = array<i64: 128, 64>}, {transform_indices = @transform_2, window_bounds = array<i64: 1, 64>}, {transform_indices = @transform_3, window_bounds = array<i64: 512, 64>}]} {
    %c0_i32 = arith.constant 0 : i32
    %0 = arith.cmpi eq, %arg2, %c0_i32 : i32
    %1 = arith.extui %0 : i1 to i32
    %c0_i32_0 = arith.constant 0 : i32
    %2 = arith.cmpi ne, %1, %c0_i32_0 : i32
    scf.if %2 {
      %cst_10 = arith.constant 0.000000e+00 : f32
      %12 = vector.broadcast %cst_10 : f32 to vector<512x64xf32>
      %c0_11 = arith.constant 0 : index
      %c0_12 = arith.constant 0 : index
      %13 = vector.load %arg6[%c0_11, %c0_12] : memref<512x64xf32, #tpu.memory_space<vmem>>, vector<512x64xf32>
      tpu.vector_store %arg6[%c0_11, %c0_12], %12 {strides = array<i32>} : memref<512x64xf32, #tpu.memory_space<vmem>>, vector<512x64xf32>,
    } else {
    }
    %c0 = arith.constant 0 : index
    %c0_1 = arith.constant 0 : index
    %3 = vector.load %arg6[%c0, %c0_1] : memref<512x64xf32, #tpu.memory_space<vmem>>, vector<512x64xf32>
    %c0_2 = arith.constant 0 : index
    %c0_3 = arith.constant 0 : index
    %4 = vector.load %arg3[%c0_2, %c0_3] : memref<512x128xbf16, #tpu.memory_space<vmem>>, vector<512x128xbf16>
    %c0_4 = arith.constant 0 : index
    %c0_5 = arith.constant 0 : index
    %5 = vector.load %arg4[%c0_4, %c0_5] : memref<128x64xbf16, #tpu.memory_space<vmem>>, vector<128x64xbf16>
    %cst = arith.constant dense<0.000000e+00> : vector<512x64xf32>
    %6 = tpu.matmul %4, %5, %cst {dimension_numbers = #tpu.dot_dimension_numbers<[1], [0], [0], [1], [0, 0, 1, 1], [], []>} : vector<512x128xbf16>, vector<128x64xbf16>, vector<512x64xf32> -> vector<512x64xf32>
    %7 = arith.addf %3, %6 : vector<512x64xf32>
    %c0_6 = arith.constant 0 : index
    %c0_7 = arith.constant 0 : index
    %8 = vector.load %arg6[%c0_6, %c0_7] : memref<512x64xf32, #tpu.memory_space<vmem>>, vector<512x64xf32>
    tpu.vector_store %arg6[%c0_6, %c0_7], %7 {strides = array<i32>} : memref<512x64xf32, #tpu.memory_space<vmem>>, vector<512x64xf32>,
    %c0_i32_8 = arith.constant 0 : i32
    %9 = arith.cmpi eq, %arg2, %c0_i32_8 : i32
    %10 = arith.extui %9 : i1 to i32
    %c0_i32_9 = arith.constant 0 : i32
    %11 = arith.cmpi ne, %10, %c0_i32_9 : i32
    scf.if %11 {
      %c0_10 = arith.constant 0 : index
      %c0_11 = arith.constant 0 : index
      %12 = vector.load %arg6[%c0_10, %c0_11] : memref<512x64xf32, #tpu.memory_space<vmem>>, vector<512x64xf32>
      %c0_12 = arith.constant 0 : index
      %c0_13 = arith.constant 0 : index
      %13 = vector.load %arg5[%c0_12, %c0_13] : memref<1x64xf32, #tpu.memory_space<vmem>>, vector<1x64xf32>
      %14 = vector.broadcast %13 : vector<1x64xf32> to vector<512x64xf32>
      %15 = arith.addf %12, %14 : vector<512x64xf32>
      %cst_14 = arith.constant 0.000000e+00 : f32
      %16 = vector.broadcast %cst_14 : f32 to vector<512x64xf32>
      %17 = arith.maximumf %15, %16 : vector<512x64xf32>
      %c0_15 = arith.constant 0 : index
      %c0_16 = arith.constant 0 : index
      %18 = vector.load %arg6[%c0_15, %c0_16] : memref<512x64xf32, #tpu.memory_space<vmem>>, vector<512x64xf32>
      tpu.vector_store %arg6[%c0_15, %c0_16], %17 {strides = array<i32>} : memref<512x64xf32, #tpu.memory_space<vmem>>, vector<512x64xf32>,
    } else {
    }
    return
  }
  func.func @transform_0(%arg0: i32, %arg1: i32, %arg2: i32) -> (i32, i32) {
    %c0_i32 = arith.constant 0 : i32
    return %arg0, %arg2 : i32, i32
  }
  func.func @transform_1(%arg0: i32, %arg1: i32, %arg2: i32) -> (i32, i32) {
    %c0_i32 = arith.constant 0 : i32
    return %arg2, %arg1 : i32, i32
  }
  func.func @transform_2(%arg0: i32, %arg1: i32, %arg2: i32) -> (i32, i32) {
    %c0_i32 = arith.constant 0 : i32
    %c0_i32_0 = arith.constant 0 : i32
    return %c0_i32, %arg1 : i32, i32
  }
  func.func @transform_3(%arg0: i32, %arg1: i32, %arg2: i32) -> (i32, i32) {
    %c0_i32 = arith.constant 0 : i32
    return %arg0, %arg1 : i32, i32
  }
}

module attributes {stable_mosaic.version = 11 : i64} {
  func.func @_maxpool_kernel(%arg0: i32, %arg1: memref<1x31x2x31x128xf32, #tpu.memory_space<vmem>>, %arg2: memref<1x31x31x64xf32, #tpu.memory_space<vmem>>) attributes {dimension_semantics = [#tpu.dimension_semantics<parallel>], iteration_bounds = array<i64: 2>, scalar_prefetch = 0 : i64, scratch_operands = 0 : i64, tpu.core_type = #tpu.core_type<tc>, window_params = [{transform_indices = @transform_0, window_bounds = array<i64: 1, 31, 2, 31, 128>}, {transform_indices = @transform_1, window_bounds = array<i64: 1, 31, 31, 64>}]} {
    %c0 = arith.constant 0 : index
    %c0_0 = arith.constant 0 : index
    %c0_1 = arith.constant 0 : index
    %c0_2 = arith.constant 0 : index
    %c0_3 = arith.constant 0 : index
    %0 = vector.load %arg1[%c0, %c0_0, %c0_1, %c0_2, %c0_3] : memref<1x31x2x31x128xf32, #tpu.memory_space<vmem>>, vector<1x31x1x31x128xf32>
    %1 = vector.shape_cast %0 : vector<1x31x1x31x128xf32> to vector<31x31x128xf32>
    %c0_4 = arith.constant 0 : index
    %c0_5 = arith.constant 0 : index
    %c1 = arith.constant 1 : index
    %c0_6 = arith.constant 0 : index
    %c0_7 = arith.constant 0 : index
    %2 = vector.load %arg1[%c0_4, %c0_5, %c1, %c0_6, %c0_7] : memref<1x31x2x31x128xf32, #tpu.memory_space<vmem>>, vector<1x31x1x31x128xf32>
    %3 = vector.shape_cast %2 : vector<1x31x1x31x128xf32> to vector<31x31x128xf32>
    %4 = arith.maximumf %1, %3 : vector<31x31x128xf32>
    %5 = vector.extract_strided_slice %4 {offsets = [0, 0, 0], sizes = [31, 31, 64], strides = [1, 1, 1]} : vector<31x31x128xf32> to vector<31x31x64xf32>
    %6 = vector.extract_strided_slice %4 {offsets = [0, 0, 64], sizes = [31, 31, 64], strides = [1, 1, 1]} : vector<31x31x128xf32> to vector<31x31x64xf32>
    %7 = arith.maximumf %5, %6 : vector<31x31x64xf32>
    %c0_8 = arith.constant 0 : index
    %c0_9 = arith.constant 0 : index
    %c0_10 = arith.constant 0 : index
    %c0_11 = arith.constant 0 : index
    %8 = vector.load %arg2[%c0_8, %c0_9, %c0_10, %c0_11] : memref<1x31x31x64xf32, #tpu.memory_space<vmem>>, vector<1x31x31x64xf32>
    %9 = vector.shape_cast %8 : vector<1x31x31x64xf32> to vector<31x31x64xf32>
    %10 = vector.shape_cast %7 : vector<31x31x64xf32> to vector<1x31x31x64xf32>
    tpu.vector_store %arg2[%c0_8, %c0_9, %c0_10, %c0_11], %10 {strides = array<i32>} : memref<1x31x31x64xf32, #tpu.memory_space<vmem>>, vector<1x31x31x64xf32>,
    return
  }
  func.func @transform_0(%arg0: i32) -> (i32, i32, i32, i32, i32) {
    %c0_i32 = arith.constant 0 : i32
    %c0_i32_0 = arith.constant 0 : i32
    %c0_i32_1 = arith.constant 0 : i32
    %c0_i32_2 = arith.constant 0 : i32
    %c0_i32_3 = arith.constant 0 : i32
    return %arg0, %c0_i32, %c0_i32_0, %c0_i32_1, %c0_i32_2 : i32, i32, i32, i32, i32
  }
  func.func @transform_1(%arg0: i32) -> (i32, i32, i32, i32) {
    %c0_i32 = arith.constant 0 : i32
    %c0_i32_0 = arith.constant 0 : i32
    %c0_i32_1 = arith.constant 0 : i32
    %c0_i32_2 = arith.constant 0 : i32
    return %arg0, %c0_i32, %c0_i32_0, %c0_i32_1 : i32, i32, i32, i32
  }
}

module attributes {stable_mosaic.version = 11 : i64} {
  func.func @_gemm_bias_act_kernel(%arg0: i32, %arg1: i32, %arg2: i32, %arg3: memref<512x576xbf16, #tpu.memory_space<vmem>>, %arg4: memref<576x128xbf16, #tpu.memory_space<vmem>>, %arg5: memref<1x128xf32, #tpu.memory_space<vmem>>, %arg6: memref<512x128xf32, #tpu.memory_space<vmem>>) attributes {dimension_semantics = [#tpu.dimension_semantics<parallel>, #tpu.dimension_semantics<parallel>, #tpu.dimension_semantics<arbitrary>], iteration_bounds = array<i64: 4, 1, 1>, scalar_prefetch = 0 : i64, scratch_operands = 0 : i64, tpu.core_type = #tpu.core_type<tc>, window_params = [{transform_indices = @transform_0, window_bounds = array<i64: 512, 576>}, {transform_indices = @transform_1, window_bounds = array<i64: 576, 128>}, {transform_indices = @transform_2, window_bounds = array<i64: 1, 128>}, {transform_indices = @transform_3, window_bounds = array<i64: 512, 128>}]} {
    %c0_i32 = arith.constant 0 : i32
    %0 = arith.cmpi eq, %arg2, %c0_i32 : i32
    %1 = arith.extui %0 : i1 to i32
    %c0_i32_0 = arith.constant 0 : i32
    %2 = arith.cmpi ne, %1, %c0_i32_0 : i32
    scf.if %2 {
      %cst_10 = arith.constant 0.000000e+00 : f32
      %12 = vector.broadcast %cst_10 : f32 to vector<512x128xf32>
      %c0_11 = arith.constant 0 : index
      %c0_12 = arith.constant 0 : index
      %13 = vector.load %arg6[%c0_11, %c0_12] : memref<512x128xf32, #tpu.memory_space<vmem>>, vector<512x128xf32>
      tpu.vector_store %arg6[%c0_11, %c0_12], %12 {strides = array<i32>} : memref<512x128xf32, #tpu.memory_space<vmem>>, vector<512x128xf32>,
    } else {
    }
    %c0 = arith.constant 0 : index
    %c0_1 = arith.constant 0 : index
    %3 = vector.load %arg6[%c0, %c0_1] : memref<512x128xf32, #tpu.memory_space<vmem>>, vector<512x128xf32>
    %c0_2 = arith.constant 0 : index
    %c0_3 = arith.constant 0 : index
    %4 = vector.load %arg3[%c0_2, %c0_3] : memref<512x576xbf16, #tpu.memory_space<vmem>>, vector<512x576xbf16>
    %c0_4 = arith.constant 0 : index
    %c0_5 = arith.constant 0 : index
    %5 = vector.load %arg4[%c0_4, %c0_5] : memref<576x128xbf16, #tpu.memory_space<vmem>>, vector<576x128xbf16>
    %cst = arith.constant dense<0.000000e+00> : vector<512x128xf32>
    %6 = tpu.matmul %4, %5, %cst {dimension_numbers = #tpu.dot_dimension_numbers<[1], [0], [0], [1], [0, 0, 1, 1], [], []>} : vector<512x576xbf16>, vector<576x128xbf16>, vector<512x128xf32> -> vector<512x128xf32>
    %7 = arith.addf %3, %6 : vector<512x128xf32>
    %c0_6 = arith.constant 0 : index
    %c0_7 = arith.constant 0 : index
    %8 = vector.load %arg6[%c0_6, %c0_7] : memref<512x128xf32, #tpu.memory_space<vmem>>, vector<512x128xf32>
    tpu.vector_store %arg6[%c0_6, %c0_7], %7 {strides = array<i32>} : memref<512x128xf32, #tpu.memory_space<vmem>>, vector<512x128xf32>,
    %c0_i32_8 = arith.constant 0 : i32
    %9 = arith.cmpi eq, %arg2, %c0_i32_8 : i32
    %10 = arith.extui %9 : i1 to i32
    %c0_i32_9 = arith.constant 0 : i32
    %11 = arith.cmpi ne, %10, %c0_i32_9 : i32
    scf.if %11 {
      %c0_10 = arith.constant 0 : index
      %c0_11 = arith.constant 0 : index
      %12 = vector.load %arg6[%c0_10, %c0_11] : memref<512x128xf32, #tpu.memory_space<vmem>>, vector<512x128xf32>
      %c0_12 = arith.constant 0 : index
      %c0_13 = arith.constant 0 : index
      %13 = vector.load %arg5[%c0_12, %c0_13] : memref<1x128xf32, #tpu.memory_space<vmem>>, vector<1x128xf32>
      %14 = vector.broadcast %13 : vector<1x128xf32> to vector<512x128xf32>
      %15 = arith.addf %12, %14 : vector<512x128xf32>
      %cst_14 = arith.constant 0.000000e+00 : f32
      %16 = vector.broadcast %cst_14 : f32 to vector<512x128xf32>
      %17 = arith.maximumf %15, %16 : vector<512x128xf32>
      %c0_15 = arith.constant 0 : index
      %c0_16 = arith.constant 0 : index
      %18 = vector.load %arg6[%c0_15, %c0_16] : memref<512x128xf32, #tpu.memory_space<vmem>>, vector<512x128xf32>
      tpu.vector_store %arg6[%c0_15, %c0_16], %17 {strides = array<i32>} : memref<512x128xf32, #tpu.memory_space<vmem>>, vector<512x128xf32>,
    } else {
    }
    return
  }
  func.func @transform_0(%arg0: i32, %arg1: i32, %arg2: i32) -> (i32, i32) {
    %c0_i32 = arith.constant 0 : i32
    return %arg0, %arg2 : i32, i32
  }
  func.func @transform_1(%arg0: i32, %arg1: i32, %arg2: i32) -> (i32, i32) {
    %c0_i32 = arith.constant 0 : i32
    return %arg2, %arg1 : i32, i32
  }
  func.func @transform_2(%arg0: i32, %arg1: i32, %arg2: i32) -> (i32, i32) {
    %c0_i32 = arith.constant 0 : i32
    %c0_i32_0 = arith.constant 0 : i32
    return %c0_i32, %arg1 : i32, i32
  }
  func.func @transform_3(%arg0: i32, %arg1: i32, %arg2: i32) -> (i32, i32) {
    %c0_i32 = arith.constant 0 : i32
    return %arg0, %arg1 : i32, i32
  }
}

module attributes {stable_mosaic.version = 11 : i64} {
  func.func @_maxpool_kernel(%arg0: i32, %arg1: memref<1x14x2x14x256xf32, #tpu.memory_space<vmem>>, %arg2: memref<1x14x14x128xf32, #tpu.memory_space<vmem>>) attributes {dimension_semantics = [#tpu.dimension_semantics<parallel>], iteration_bounds = array<i64: 2>, scalar_prefetch = 0 : i64, scratch_operands = 0 : i64, tpu.core_type = #tpu.core_type<tc>, window_params = [{transform_indices = @transform_0, window_bounds = array<i64: 1, 14, 2, 14, 256>}, {transform_indices = @transform_1, window_bounds = array<i64: 1, 14, 14, 128>}]} {
    %c0 = arith.constant 0 : index
    %c0_0 = arith.constant 0 : index
    %c0_1 = arith.constant 0 : index
    %c0_2 = arith.constant 0 : index
    %c0_3 = arith.constant 0 : index
    %0 = vector.load %arg1[%c0, %c0_0, %c0_1, %c0_2, %c0_3] : memref<1x14x2x14x256xf32, #tpu.memory_space<vmem>>, vector<1x14x1x14x256xf32>
    %1 = vector.shape_cast %0 : vector<1x14x1x14x256xf32> to vector<14x14x256xf32>
    %c0_4 = arith.constant 0 : index
    %c0_5 = arith.constant 0 : index
    %c1 = arith.constant 1 : index
    %c0_6 = arith.constant 0 : index
    %c0_7 = arith.constant 0 : index
    %2 = vector.load %arg1[%c0_4, %c0_5, %c1, %c0_6, %c0_7] : memref<1x14x2x14x256xf32, #tpu.memory_space<vmem>>, vector<1x14x1x14x256xf32>
    %3 = vector.shape_cast %2 : vector<1x14x1x14x256xf32> to vector<14x14x256xf32>
    %4 = arith.maximumf %1, %3 : vector<14x14x256xf32>
    %5 = vector.extract_strided_slice %4 {offsets = [0, 0, 0], sizes = [14, 14, 128], strides = [1, 1, 1]} : vector<14x14x256xf32> to vector<14x14x128xf32>
    %6 = vector.extract_strided_slice %4 {offsets = [0, 0, 128], sizes = [14, 14, 128], strides = [1, 1, 1]} : vector<14x14x256xf32> to vector<14x14x128xf32>
    %7 = arith.maximumf %5, %6 : vector<14x14x128xf32>
    %c0_8 = arith.constant 0 : index
    %c0_9 = arith.constant 0 : index
    %c0_10 = arith.constant 0 : index
    %c0_11 = arith.constant 0 : index
    %8 = vector.load %arg2[%c0_8, %c0_9, %c0_10, %c0_11] : memref<1x14x14x128xf32, #tpu.memory_space<vmem>>, vector<1x14x14x128xf32>
    %9 = vector.shape_cast %8 : vector<1x14x14x128xf32> to vector<14x14x128xf32>
    %10 = vector.shape_cast %7 : vector<14x14x128xf32> to vector<1x14x14x128xf32>
    tpu.vector_store %arg2[%c0_8, %c0_9, %c0_10, %c0_11], %10 {strides = array<i32>} : memref<1x14x14x128xf32, #tpu.memory_space<vmem>>, vector<1x14x14x128xf32>,
    return
  }
  func.func @transform_0(%arg0: i32) -> (i32, i32, i32, i32, i32) {
    %c0_i32 = arith.constant 0 : i32
    %c0_i32_0 = arith.constant 0 : i32
    %c0_i32_1 = arith.constant 0 : i32
    %c0_i32_2 = arith.constant 0 : i32
    %c0_i32_3 = arith.constant 0 : i32
    return %arg0, %c0_i32, %c0_i32_0, %c0_i32_1, %c0_i32_2 : i32, i32, i32, i32, i32
  }
  func.func @transform_1(%arg0: i32) -> (i32, i32, i32, i32) {
    %c0_i32 = arith.constant 0 : i32
    %c0_i32_0 = arith.constant 0 : i32
    %c0_i32_1 = arith.constant 0 : i32
    %c0_i32_2 = arith.constant 0 : i32
    return %arg0, %c0_i32, %c0_i32_0, %c0_i32_1 : i32, i32, i32, i32
  }
}

module attributes {stable_mosaic.version = 11 : i64} {
  func.func @_gemm_bias_act_kernel(%arg0: i32, %arg1: i32, %arg2: i32, %arg3: memref<288x1152xbf16, #tpu.memory_space<vmem>>, %arg4: memref<1152x128xbf16, #tpu.memory_space<vmem>>, %arg5: memref<1x128xf32, #tpu.memory_space<vmem>>, %arg6: memref<288x128xf32, #tpu.memory_space<vmem>>) attributes {dimension_semantics = [#tpu.dimension_semantics<parallel>, #tpu.dimension_semantics<parallel>, #tpu.dimension_semantics<arbitrary>], iteration_bounds = array<i64: 1, 2, 1>, scalar_prefetch = 0 : i64, scratch_operands = 0 : i64, tpu.core_type = #tpu.core_type<tc>, window_params = [{transform_indices = @transform_0, window_bounds = array<i64: 288, 1152>}, {transform_indices = @transform_1, window_bounds = array<i64: 1152, 128>}, {transform_indices = @transform_2, window_bounds = array<i64: 1, 128>}, {transform_indices = @transform_3, window_bounds = array<i64: 288, 128>}]} {
    %c0_i32 = arith.constant 0 : i32
    %0 = arith.cmpi eq, %arg2, %c0_i32 : i32
    %1 = arith.extui %0 : i1 to i32
    %c0_i32_0 = arith.constant 0 : i32
    %2 = arith.cmpi ne, %1, %c0_i32_0 : i32
    scf.if %2 {
      %cst_10 = arith.constant 0.000000e+00 : f32
      %12 = vector.broadcast %cst_10 : f32 to vector<288x128xf32>
      %c0_11 = arith.constant 0 : index
      %c0_12 = arith.constant 0 : index
      %13 = vector.load %arg6[%c0_11, %c0_12] : memref<288x128xf32, #tpu.memory_space<vmem>>, vector<288x128xf32>
      tpu.vector_store %arg6[%c0_11, %c0_12], %12 {strides = array<i32>} : memref<288x128xf32, #tpu.memory_space<vmem>>, vector<288x128xf32>,
    } else {
    }
    %c0 = arith.constant 0 : index
    %c0_1 = arith.constant 0 : index
    %3 = vector.load %arg6[%c0, %c0_1] : memref<288x128xf32, #tpu.memory_space<vmem>>, vector<288x128xf32>
    %c0_2 = arith.constant 0 : index
    %c0_3 = arith.constant 0 : index
    %4 = vector.load %arg3[%c0_2, %c0_3] : memref<288x1152xbf16, #tpu.memory_space<vmem>>, vector<288x1152xbf16>
    %c0_4 = arith.constant 0 : index
    %c0_5 = arith.constant 0 : index
    %5 = vector.load %arg4[%c0_4, %c0_5] : memref<1152x128xbf16, #tpu.memory_space<vmem>>, vector<1152x128xbf16>
    %cst = arith.constant dense<0.000000e+00> : vector<288x128xf32>
    %6 = tpu.matmul %4, %5, %cst {dimension_numbers = #tpu.dot_dimension_numbers<[1], [0], [0], [1], [0, 0, 1, 1], [], []>} : vector<288x1152xbf16>, vector<1152x128xbf16>, vector<288x128xf32> -> vector<288x128xf32>
    %7 = arith.addf %3, %6 : vector<288x128xf32>
    %c0_6 = arith.constant 0 : index
    %c0_7 = arith.constant 0 : index
    %8 = vector.load %arg6[%c0_6, %c0_7] : memref<288x128xf32, #tpu.memory_space<vmem>>, vector<288x128xf32>
    tpu.vector_store %arg6[%c0_6, %c0_7], %7 {strides = array<i32>} : memref<288x128xf32, #tpu.memory_space<vmem>>, vector<288x128xf32>,
    %c0_i32_8 = arith.constant 0 : i32
    %9 = arith.cmpi eq, %arg2, %c0_i32_8 : i32
    %10 = arith.extui %9 : i1 to i32
    %c0_i32_9 = arith.constant 0 : i32
    %11 = arith.cmpi ne, %10, %c0_i32_9 : i32
    scf.if %11 {
      %c0_10 = arith.constant 0 : index
      %c0_11 = arith.constant 0 : index
      %12 = vector.load %arg6[%c0_10, %c0_11] : memref<288x128xf32, #tpu.memory_space<vmem>>, vector<288x128xf32>
      %c0_12 = arith.constant 0 : index
      %c0_13 = arith.constant 0 : index
      %13 = vector.load %arg5[%c0_12, %c0_13] : memref<1x128xf32, #tpu.memory_space<vmem>>, vector<1x128xf32>
      %14 = vector.broadcast %13 : vector<1x128xf32> to vector<288x128xf32>
      %15 = arith.addf %12, %14 : vector<288x128xf32>
      %cst_14 = arith.constant 0.000000e+00 : f32
      %16 = vector.broadcast %cst_14 : f32 to vector<288x128xf32>
      %17 = arith.maximumf %15, %16 : vector<288x128xf32>
      %c0_15 = arith.constant 0 : index
      %c0_16 = arith.constant 0 : index
      %18 = vector.load %arg6[%c0_15, %c0_16] : memref<288x128xf32, #tpu.memory_space<vmem>>, vector<288x128xf32>
      tpu.vector_store %arg6[%c0_15, %c0_16], %17 {strides = array<i32>} : memref<288x128xf32, #tpu.memory_space<vmem>>, vector<288x128xf32>,
    } else {
    }
    return
  }
  func.func @transform_0(%arg0: i32, %arg1: i32, %arg2: i32) -> (i32, i32) {
    %c0_i32 = arith.constant 0 : i32
    return %arg0, %arg2 : i32, i32
  }
  func.func @transform_1(%arg0: i32, %arg1: i32, %arg2: i32) -> (i32, i32) {
    %c0_i32 = arith.constant 0 : i32
    return %arg2, %arg1 : i32, i32
  }
  func.func @transform_2(%arg0: i32, %arg1: i32, %arg2: i32) -> (i32, i32) {
    %c0_i32 = arith.constant 0 : i32
    %c0_i32_0 = arith.constant 0 : i32
    return %c0_i32, %arg1 : i32, i32
  }
  func.func @transform_3(%arg0: i32, %arg1: i32, %arg2: i32) -> (i32, i32) {
    %c0_i32 = arith.constant 0 : i32
    return %arg0, %arg1 : i32, i32
  }
}

module attributes {stable_mosaic.version = 11 : i64} {
  func.func @_maxpool_kernel(%arg0: i32, %arg1: memref<1x6x2x6x512xf32, #tpu.memory_space<vmem>>, %arg2: memref<1x6x6x256xf32, #tpu.memory_space<vmem>>) attributes {dimension_semantics = [#tpu.dimension_semantics<parallel>], iteration_bounds = array<i64: 2>, scalar_prefetch = 0 : i64, scratch_operands = 0 : i64, tpu.core_type = #tpu.core_type<tc>, window_params = [{transform_indices = @transform_0, window_bounds = array<i64: 1, 6, 2, 6, 512>}, {transform_indices = @transform_1, window_bounds = array<i64: 1, 6, 6, 256>}]} {
    %c0 = arith.constant 0 : index
    %c0_0 = arith.constant 0 : index
    %c0_1 = arith.constant 0 : index
    %c0_2 = arith.constant 0 : index
    %c0_3 = arith.constant 0 : index
    %0 = vector.load %arg1[%c0, %c0_0, %c0_1, %c0_2, %c0_3] : memref<1x6x2x6x512xf32, #tpu.memory_space<vmem>>, vector<1x6x1x6x512xf32>
    %1 = vector.shape_cast %0 : vector<1x6x1x6x512xf32> to vector<6x6x512xf32>
    %c0_4 = arith.constant 0 : index
    %c0_5 = arith.constant 0 : index
    %c1 = arith.constant 1 : index
    %c0_6 = arith.constant 0 : index
    %c0_7 = arith.constant 0 : index
    %2 = vector.load %arg1[%c0_4, %c0_5, %c1, %c0_6, %c0_7] : memref<1x6x2x6x512xf32, #tpu.memory_space<vmem>>, vector<1x6x1x6x512xf32>
    %3 = vector.shape_cast %2 : vector<1x6x1x6x512xf32> to vector<6x6x512xf32>
    %4 = arith.maximumf %1, %3 : vector<6x6x512xf32>
    %5 = vector.extract_strided_slice %4 {offsets = [0, 0, 0], sizes = [6, 6, 256], strides = [1, 1, 1]} : vector<6x6x512xf32> to vector<6x6x256xf32>
    %6 = vector.extract_strided_slice %4 {offsets = [0, 0, 256], sizes = [6, 6, 256], strides = [1, 1, 1]} : vector<6x6x512xf32> to vector<6x6x256xf32>
    %7 = arith.maximumf %5, %6 : vector<6x6x256xf32>
    %c0_8 = arith.constant 0 : index
    %c0_9 = arith.constant 0 : index
    %c0_10 = arith.constant 0 : index
    %c0_11 = arith.constant 0 : index
    %8 = vector.load %arg2[%c0_8, %c0_9, %c0_10, %c0_11] : memref<1x6x6x256xf32, #tpu.memory_space<vmem>>, vector<1x6x6x256xf32>
    %9 = vector.shape_cast %8 : vector<1x6x6x256xf32> to vector<6x6x256xf32>
    %10 = vector.shape_cast %7 : vector<6x6x256xf32> to vector<1x6x6x256xf32>
    tpu.vector_store %arg2[%c0_8, %c0_9, %c0_10, %c0_11], %10 {strides = array<i32>} : memref<1x6x6x256xf32, #tpu.memory_space<vmem>>, vector<1x6x6x256xf32>,
    return
  }
  func.func @transform_0(%arg0: i32) -> (i32, i32, i32, i32, i32) {
    %c0_i32 = arith.constant 0 : i32
    %c0_i32_0 = arith.constant 0 : i32
    %c0_i32_1 = arith.constant 0 : i32
    %c0_i32_2 = arith.constant 0 : i32
    %c0_i32_3 = arith.constant 0 : i32
    return %arg0, %c0_i32, %c0_i32_0, %c0_i32_1, %c0_i32_2 : i32, i32, i32, i32, i32
  }
  func.func @transform_1(%arg0: i32) -> (i32, i32, i32, i32) {
    %c0_i32 = arith.constant 0 : i32
    %c0_i32_0 = arith.constant 0 : i32
    %c0_i32_1 = arith.constant 0 : i32
    %c0_i32_2 = arith.constant 0 : i32
    return %arg0, %c0_i32, %c0_i32_0, %c0_i32_1 : i32, i32, i32, i32
  }
}

module attributes {stable_mosaic.version = 11 : i64} {
  func.func @_gemm_bias_act_kernel(%arg0: i32, %arg1: i32, %arg2: i32, %arg3: memref<2x1536xbf16, #tpu.memory_space<vmem>>, %arg4: memref<1536x128xbf16, #tpu.memory_space<vmem>>, %arg5: memref<1x128xf32, #tpu.memory_space<vmem>>, %arg6: memref<2x128xf32, #tpu.memory_space<vmem>>) attributes {dimension_semantics = [#tpu.dimension_semantics<parallel>, #tpu.dimension_semantics<parallel>, #tpu.dimension_semantics<arbitrary>], iteration_bounds = array<i64: 1, 4, 6>, scalar_prefetch = 0 : i64, scratch_operands = 0 : i64, tpu.core_type = #tpu.core_type<tc>, window_params = [{transform_indices = @transform_0, window_bounds = array<i64: 2, 1536>}, {transform_indices = @transform_1, window_bounds = array<i64: 1536, 128>}, {transform_indices = @transform_2, window_bounds = array<i64: 1, 128>}, {transform_indices = @transform_3, window_bounds = array<i64: 2, 128>}]} {
    %c0_i32 = arith.constant 0 : i32
    %0 = arith.cmpi eq, %arg2, %c0_i32 : i32
    %1 = arith.extui %0 : i1 to i32
    %c0_i32_0 = arith.constant 0 : i32
    %2 = arith.cmpi ne, %1, %c0_i32_0 : i32
    scf.if %2 {
      %cst_9 = arith.constant 0.000000e+00 : f32
      %12 = vector.broadcast %cst_9 : f32 to vector<2x128xf32>
      %c0_10 = arith.constant 0 : index
      %c0_11 = arith.constant 0 : index
      %13 = vector.load %arg6[%c0_10, %c0_11] : memref<2x128xf32, #tpu.memory_space<vmem>>, vector<2x128xf32>
      tpu.vector_store %arg6[%c0_10, %c0_11], %12 {strides = array<i32>} : memref<2x128xf32, #tpu.memory_space<vmem>>, vector<2x128xf32>,
    } else {
    }
    %c0 = arith.constant 0 : index
    %c0_1 = arith.constant 0 : index
    %3 = vector.load %arg6[%c0, %c0_1] : memref<2x128xf32, #tpu.memory_space<vmem>>, vector<2x128xf32>
    %c0_2 = arith.constant 0 : index
    %c0_3 = arith.constant 0 : index
    %4 = vector.load %arg3[%c0_2, %c0_3] : memref<2x1536xbf16, #tpu.memory_space<vmem>>, vector<2x1536xbf16>
    %c0_4 = arith.constant 0 : index
    %c0_5 = arith.constant 0 : index
    %5 = vector.load %arg4[%c0_4, %c0_5] : memref<1536x128xbf16, #tpu.memory_space<vmem>>, vector<1536x128xbf16>
    %cst = arith.constant dense<0.000000e+00> : vector<2x128xf32>
    %6 = tpu.matmul %4, %5, %cst {dimension_numbers = #tpu.dot_dimension_numbers<[1], [0], [0], [1], [0, 0, 1, 1], [], []>} : vector<2x1536xbf16>, vector<1536x128xbf16>, vector<2x128xf32> -> vector<2x128xf32>
    %7 = arith.addf %3, %6 : vector<2x128xf32>
    %c0_6 = arith.constant 0 : index
    %c0_7 = arith.constant 0 : index
    %8 = vector.load %arg6[%c0_6, %c0_7] : memref<2x128xf32, #tpu.memory_space<vmem>>, vector<2x128xf32>
    tpu.vector_store %arg6[%c0_6, %c0_7], %7 {strides = array<i32>} : memref<2x128xf32, #tpu.memory_space<vmem>>, vector<2x128xf32>,
    %c5_i32 = arith.constant 5 : i32
    %9 = arith.cmpi eq, %arg2, %c5_i32 : i32
    %10 = arith.extui %9 : i1 to i32
    %c0_i32_8 = arith.constant 0 : i32
    %11 = arith.cmpi ne, %10, %c0_i32_8 : i32
    scf.if %11 {
      %c0_9 = arith.constant 0 : index
      %c0_10 = arith.constant 0 : index
      %12 = vector.load %arg6[%c0_9, %c0_10] : memref<2x128xf32, #tpu.memory_space<vmem>>, vector<2x128xf32>
      %c0_11 = arith.constant 0 : index
      %c0_12 = arith.constant 0 : index
      %13 = vector.load %arg5[%c0_11, %c0_12] : memref<1x128xf32, #tpu.memory_space<vmem>>, vector<1x128xf32>
      %14 = vector.broadcast %13 : vector<1x128xf32> to vector<2x128xf32>
      %15 = arith.addf %12, %14 : vector<2x128xf32>
      %cst_13 = arith.constant 0.000000e+00 : f32
      %16 = vector.broadcast %cst_13 : f32 to vector<2x128xf32>
      %17 = arith.maximumf %15, %16 : vector<2x128xf32>
      %c0_14 = arith.constant 0 : index
      %c0_15 = arith.constant 0 : index
      %18 = vector.load %arg6[%c0_14, %c0_15] : memref<2x128xf32, #tpu.memory_space<vmem>>, vector<2x128xf32>
      tpu.vector_store %arg6[%c0_14, %c0_15], %17 {strides = array<i32>} : memref<2x128xf32, #tpu.memory_space<vmem>>, vector<2x128xf32>,
    } else {
    }
    return
  }
  func.func @transform_0(%arg0: i32, %arg1: i32, %arg2: i32) -> (i32, i32) {
    %c0_i32 = arith.constant 0 : i32
    return %arg0, %arg2 : i32, i32
  }
  func.func @transform_1(%arg0: i32, %arg1: i32, %arg2: i32) -> (i32, i32) {
    %c0_i32 = arith.constant 0 : i32
    return %arg2, %arg1 : i32, i32
  }
  func.func @transform_2(%arg0: i32, %arg1: i32, %arg2: i32) -> (i32, i32) {
    %c0_i32 = arith.constant 0 : i32
    %c0_i32_0 = arith.constant 0 : i32
    return %c0_i32, %arg1 : i32, i32
  }
  func.func @transform_3(%arg0: i32, %arg1: i32, %arg2: i32) -> (i32, i32) {
    %c0_i32 = arith.constant 0 : i32
    return %arg0, %arg1 : i32, i32
  }
}

module attributes {stable_mosaic.version = 11 : i64} {
  func.func @_mlp_tail_kernel(%arg0: memref<2x512xbf16, #tpu.memory_space<vmem>>, %arg1: memref<512x256xbf16, #tpu.memory_space<vmem>>, %arg2: memref<1x256xf32, #tpu.memory_space<vmem>>, %arg3: memref<256x10xbf16, #tpu.memory_space<vmem>>, %arg4: memref<1x10xf32, #tpu.memory_space<vmem>>, %arg5: memref<2x10xf32, #tpu.memory_space<vmem>>) attributes {dimension_semantics = [], scalar_prefetch = 0 : i64, scratch_operands = 0 : i64, tpu.core_type = #tpu.core_type<tc>} {
    %c0 = arith.constant 0 : index
    %c0_0 = arith.constant 0 : index
    %0 = vector.load %arg0[%c0, %c0_0] : memref<2x512xbf16, #tpu.memory_space<vmem>>, vector<2x512xbf16>
    %c0_1 = arith.constant 0 : index
    %c0_2 = arith.constant 0 : index
    %1 = vector.load %arg1[%c0_1, %c0_2] : memref<512x256xbf16, #tpu.memory_space<vmem>>, vector<512x256xbf16>
    %cst = arith.constant dense<0.000000e+00> : vector<2x256xf32>
    %2 = tpu.matmul %0, %1, %cst {dimension_numbers = #tpu.dot_dimension_numbers<[1], [0], [0], [1], [0, 0, 1, 1], [], []>} : vector<2x512xbf16>, vector<512x256xbf16>, vector<2x256xf32> -> vector<2x256xf32>
    %c0_3 = arith.constant 0 : index
    %c0_4 = arith.constant 0 : index
    %3 = vector.load %arg2[%c0_3, %c0_4] : memref<1x256xf32, #tpu.memory_space<vmem>>, vector<1x256xf32>
    %4 = vector.broadcast %3 : vector<1x256xf32> to vector<2x256xf32>
    %5 = arith.addf %2, %4 : vector<2x256xf32>
    %cst_5 = arith.constant 0.000000e+00 : f32
    %6 = vector.broadcast %cst_5 : f32 to vector<2x256xf32>
    %7 = arith.maximumf %5, %6 : vector<2x256xf32>
    %8 = arith.truncf %7 : vector<2x256xf32> to vector<2x256xbf16>
    %c0_6 = arith.constant 0 : index
    %c0_7 = arith.constant 0 : index
    %9 = vector.load %arg3[%c0_6, %c0_7] : memref<256x10xbf16, #tpu.memory_space<vmem>>, vector<256x10xbf16>
    %cst_8 = arith.constant dense<0.000000e+00> : vector<2x10xf32>
    %10 = tpu.matmul %8, %9, %cst_8 {dimension_numbers = #tpu.dot_dimension_numbers<[1], [0], [0], [1], [0, 0, 1, 1], [], []>} : vector<2x256xbf16>, vector<256x10xbf16>, vector<2x10xf32> -> vector<2x10xf32>
    %c0_9 = arith.constant 0 : index
    %c0_10 = arith.constant 0 : index
    %11 = vector.load %arg4[%c0_9, %c0_10] : memref<1x10xf32, #tpu.memory_space<vmem>>, vector<1x10xf32>
    %12 = vector.broadcast %11 : vector<1x10xf32> to vector<2x10xf32>
    %13 = arith.addf %10, %12 : vector<2x10xf32>
    %cst_11 = arith.constant dense<0xFF800000> : vector<2xf32>
    %14 = vector.multi_reduction <maximumf>, %13, %cst_11 [1] : vector<2x10xf32> to vector<2xf32>
    %15 = vector.shape_cast %14 : vector<2xf32> to vector<2x1xf32>
    %16 = vector.broadcast %15 : vector<2x1xf32> to vector<2x10xf32>
    %17 = arith.subf %13, %16 : vector<2x10xf32>
    %18 = math.exp %17 : vector<2x10xf32>
    %cst_12 = arith.constant dense<0.000000e+00> : vector<2xf32>
    %19 = vector.multi_reduction <add>, %18, %cst_12 [1] : vector<2x10xf32> to vector<2xf32>
    %20 = vector.shape_cast %19 : vector<2xf32> to vector<2x1xf32>
    %21 = math.log %20 : vector<2x1xf32>
    %22 = vector.broadcast %21 : vector<2x1xf32> to vector<2x10xf32>
    %23 = arith.subf %17, %22 : vector<2x10xf32>
    %c0_13 = arith.constant 0 : index
    %c0_14 = arith.constant 0 : index
    %24 = vector.load %arg5[%c0_13, %c0_14] : memref<2x10xf32, #tpu.memory_space<vmem>>, vector<2x10xf32>
    tpu.vector_store %arg5[%c0_13, %c0_14], %23 {strides = array<i32>} : memref<2x10xf32, #tpu.memory_space<vmem>>, vector<2x10xf32>,
    return
  }
}

</mosaic_0001>

<bundles_post_ra>
// kernel: cnn_forward.8
= control target key start
LH: loop header
LB: loop body
LE: loop exit
PB: predicated region body
PF: predicated region fallthrough
CT: control target
= control target key end

     0   :  { %s1808_s12 = smov 0   ;;  %s1810_s13 = smov 0   ;;  %s2561_s0 = inlined_call_operand.vmem [shape: bf16[8192,128], index: 0, kind: input, shape index: {}]   ;;  %s2562_s1 = inlined_call_operand.vmem [shape: bf16[128,64], index: 1, kind: input, shape index: {}]   ;;  %s2563_s2 = inlined_call_operand.vmem [shape: f32[1,64], index: 2, kind: input, shape index: {}]   ;;  %s2564_s3 = inlined_call_operand.vmem [shape: f32[8192,64], index: 3, kind: output, shape index: {}]  }
   0x1   :  { %s1812_s14 = smov 0  }
   0x2 LB: > { %s32_s15 = sadd.s32 1, %s1781_s13  ;;  %p1514_p0 = scmp.ge.s32.totalorder %s1785_s14, 1  ;;  %s1785_s14 = sphi %s1812_s14, %s13_s14   ;;  %s1781_s13 = sphi %s1810_s13, %s2566_s13   ;;  %s1777_s12 = sphi %s1808_s12, %s2565_s12  }
   0x3   : > { %p34_p1 = scmp.ge.s32.totalorder %s32_s15, 16  ;;  %p188_p2 = scmp.lt.s32.totalorder %s1785_s14, 17 }
   0x5   : > { %s2568_s15 = smov (%p34_p1, %s32_s15), 0  ;;  %p189_p3 = pnand %p1514_p0, %p188_p2 }
   0x6   : > { %v1723_v0 = vld [vmem:[%s2562_s1] sm:$0xff] (!%p189_p3)   ;;  %s1515_s18 = sshll.u32 (!%p189_p3), %s1777_s12, 6  ;;  %v1724_v1 = vld [vmem:[%s2562_s1 + $0x8] sm:$0xff] (!%p189_p3)   ;;  %v1835_v2 = vld [vmem:[%s2562_s1 + $0x10] sm:$0xff] (!%p189_p3)   ;;  %vm264_vm0 = vcmask (!%p189_p3), 523264   ;;  %v1787_v5 = vmov (!%p189_p3), 0.0  }
   0x7   : > { %192 = sbr.rel (%p189_p3) target bundleno = 328 (0x148), region = 32  ;;  %p230_p4 = scmp.lt.s32.totalorder (!%p189_p3), %s1515_s18, 1023  ;;  %1602 = vmatprep.subr.bf16.mxu0 (!%p189_p3), %v1723_v0  ;;  %1682 = vmatprep.subr.bf16.mxu1 (!%p189_p3), %v1723_v0  ;;  %v1845_v3 = vld [vmem:[%s2562_s1 + $0x18] sm:$0xff] (!%p189_p3)   ;;  %v1727_v7 = vld [vmem:[%s2562_s1 + $0x20] sm:$0xff] (!%p189_p3)   ;;  %v1728_v8 = vld [vmem:[%s2562_s1 + $0x28] sm:$0xff] (!%p189_p3)  }
   0x8   : > { %1603 = vmatpush3.bf16.msra.mxu0 (!%p189_p3), %v1723_v0  ;;  %1690 = vmatpush3.bf16.msra.mxu1 (!%p189_p3), %v1723_v0  ;;  %v1729_v9 = vld [vmem:[%s2562_s1 + $0x30] sm:$0xff] (!%p189_p3)   ;;  %v1730_v10 = vld [vmem:[%s2562_s1 + $0x38] sm:$0xff] (!%p189_p3)  }
   0x9   : > { %1604 = vmatprep.subr.bf16.mxu0 (!%p189_p3), %v1724_v1  ;;  %1683 = vmatprep.subr.bf16.mxu1 (!%p189_p3), %v1724_v1 }
   0xc   : > { %1605 = vmatpush3.bf16.msra.mxu0 (!%p189_p3), %v1724_v1  ;;  %1691 = vmatpush3.bf16.msra.mxu1 (!%p189_p3), %v1724_v1 }
   0xd   : > { %1606 = vmatprep.subr.bf16.mxu0 (!%p189_p3), %v1835_v2  ;;  %1684 = vmatprep.subr.bf16.mxu1 (!%p189_p3), %v1835_v2 }
   0xe   : > { %s2570_s18 = smov (!%p230_p4, %s1515_s18), 1023 }
   0xf   : > { %s1516_s23 = sshll.u32 %s2570_s18, 2  ;;  %s1518_s27 = sshll.u32 %s2570_s18, 3 }
  0x10   : > { %s1840_s26 = scalar_lea.vmem %s2561_s0, %s1516_s23  ;;  %s1850_s5 = scalar_lea.vmem %s2564_s3, %s1518_s27  ;;  %1607 = vmatpush3.bf16.msra.mxu0 %v1835_v2  ;;  %1692 = vmatpush3.bf16.msra.mxu1 %v1835_v2 }
  0x11   : > { %v1855_v4 = vld [vmem:[%s1840_s26] sm:$0xff]   ;;  %267 = vst.msk [vmem:[%s1850_s5 + $0x10] sm:$0xff] %vm264_vm0, %v1787_v5  ;;  %265 = vst.msk [vmem:[%s1850_s5] sm:$0xff] %vm264_vm0, %v1787_v5  ;;  %1608 = vmatprep.subr.bf16.mxu0 %v1845_v3  ;;  %1685 = vmatprep.subr.bf16.mxu1 %v1845_v3  ;;  %v1733_v11 = vld [vmem:[%s1840_s26 + $0x8] sm:$0xff]  }
  0x12   : > { %266 = vst.msk [vmem:[%s1850_s5 + $0x8] sm:$0xff] %vm264_vm0, %v1787_v5  ;;  %268 = vst.msk [vmem:[%s1850_s5 + $0x18] sm:$0xff] %vm264_vm0, %v1787_v5  ;;  %v1732_v6 = vld [vmem:[%s1840_s26 + $0x80] sm:$0xff]   ;;  %1618 = vmatprep.mubr.bf16.mxu0 %v1855_v4  ;;  %v1734_v12 = vld [vmem:[%s1840_s26 + $0x88] sm:$0xff]  }
  0x13   : > { %269 = vst.msk [vmem:[%s1850_s5 + $0x20] sm:$0xff] %vm264_vm0, %v1787_v5  ;;  %270 = vst.msk [vmem:[%s1850_s5 + $0x28] sm:$0xff] %vm264_vm0, %v1787_v5  ;;  %1650 = vmatprep.mubr.bf16.mxu1 %v1732_v6  ;;  %v1735_v13 = vld [vmem:[%s1840_s26 + $0x10] sm:$0xff]   ;;  %v1737_v15 = vld [vmem:[%s1840_s26 + $0x18] sm:$0xff]  }
  0x14   : > { %271 = vst.msk [vmem:[%s1850_s5 + $0x30] sm:$0xff] %vm264_vm0, %v1787_v5  ;;  %272 = vst.msk [vmem:[%s1850_s5 + $0x38] sm:$0xff] %vm264_vm0, %v1787_v5  ;;  %1609 = vmatpush3.bf16.msra.mxu0 %v1845_v3  ;;  %1693 = vmatpush3.bf16.msra.mxu1 %v1845_v3  ;;  %v1736_v14 = vld [vmem:[%s1840_s26 + $0x90] sm:$0xff]   ;;  %v1738_v16 = vld [vmem:[%s1840_s26 + $0x98] sm:$0xff]  }
  0x15   : > { %273 = vst.msk [vmem:[%s1850_s5 + $0x40] sm:$0xff] %vm264_vm0, %v1787_v5  ;;  %274 = vst.msk [vmem:[%s1850_s5 + $0x48] sm:$0xff] %vm264_vm0, %v1787_v5  ;;  %1610 = vmatprep.subr.bf16.mxu0 %v1727_v7  ;;  %1686 = vmatprep.subr.bf16.mxu1 %v1727_v7  ;;  %v1739_v17 = vld [vmem:[%s1840_s26 + $0x20] sm:$0xff]   ;;  %v1741_v19 = vld [vmem:[%s1840_s26 + $0x28] sm:$0xff]  }
  0x16   : > { %275 = vst.msk [vmem:[%s1850_s5 + $0x50] sm:$0xff] %vm264_vm0, %v1787_v5  ;;  %276 = vst.msk [vmem:[%s1850_s5 + $0x58] sm:$0xff] %vm264_vm0, %v1787_v5  ;;  %v1740_v18 = vld [vmem:[%s1840_s26 + $0xa0] sm:$0xff]   ;;  %v1742_v20 = vld [vmem:[%s1840_s26 + $0xa8] sm:$0xff]  }
  0x17   : > { %277 = vst.msk [vmem:[%s1850_s5 + $0x60] sm:$0xff] %vm264_vm0, %v1787_v5  ;;  %278 = vst.msk [vmem:[%s1850_s5 + $0x68] sm:$0xff] %vm264_vm0, %v1787_v5  ;;  %v1743_v21 = vld [vmem:[%s1840_s26 + $0x30] sm:$0xff]   ;;  %v1745_v23 = vld [vmem:[%s1840_s26 + $0x38] sm:$0xff]  }
  0x18   : > { %279 = vst.msk [vmem:[%s1850_s5 + $0x70] sm:$0xff] %vm264_vm0, %v1787_v5  ;;  %280 = vst.msk [vmem:[%s1850_s5 + $0x78] sm:$0xff] %vm264_vm0, %v1787_v5  ;;  %1611 = vmatpush3.bf16.msra.mxu0 %v1727_v7  ;;  %1694 = vmatpush3.bf16.msra.mxu1 %v1727_v7  ;;  %v1744_v22 = vld [vmem:[%s1840_s26 + $0xb0] sm:$0xff]   ;;  %v1746_v24 = vld [vmem:[%s1840_s26 + $0xb8] sm:$0xff]  }
  0x19   : > { %281 = vst.msk [vmem:[%s1850_s5 + $0x80] sm:$0xff] %vm264_vm0, %v1787_v5  ;;  %282 = vst.msk [vmem:[%s1850_s5 + $0x88] sm:$0xff] %vm264_vm0, %v1787_v5  ;;  %1612 = vmatprep.subr.bf16.mxu0 %v1728_v8  ;;  %1687 = vmatprep.subr.bf16.mxu1 %v1728_v8  ;;  %v1747_v25 = vld [vmem:[%s1840_s26 + $0x40] sm:$0xff]   ;;  %v1749_v27 = vld [vmem:[%s1840_s26 + $0x48] sm:$0xff]  }
  0x1a   : > { %283 = vst.msk [vmem:[%s1850_s5 + $0x90] sm:$0xff] %vm264_vm0, %v1787_v5  ;;  %284 = vst.msk [vmem:[%s1850_s5 + $0x98] sm:$0xff] %vm264_vm0, %v1787_v5  ;;  %v1748_v26 = vld [vmem:[%s1840_s26 + $0xc0] sm:$0xff]   ;;  %v1750_v28 = vld [vmem:[%s1840_s26 + $0xc8] sm:$0xff]  }
  0x1b   : > { %285 = vst.msk [vmem:[%s1850_s5 + $0xa0] sm:$0xff] %vm264_vm0, %v1787_v5  ;;  %286 = vst.msk [vmem:[%s1850_s5 + $0xa8] sm:$0xff] %vm264_vm0, %v1787_v5  ;;  %v1751_v29 = vld [vmem:[%s1840_s26 + $0x50] sm:$0xff]   ;;  %v1753_v31 = vld [vmem:[%s1840_s26 + $0x58] sm:$0xff]  }
  0x1c   : > { %287 = vst.msk [vmem:[%s1850_s5 + $0xb0] sm:$0xff] %vm264_vm0, %v1787_v5  ;;  %288 = vst.msk [vmem:[%s1850_s5 + $0xb8] sm:$0xff] %vm264_vm0, %v1787_v5  ;;  %1613 = vmatpush3.bf16.msra.mxu0 %v1728_v8  ;;  %1695 = vmatpush3.bf16.msra.mxu1 %v1728_v8  ;;  %v1752_v30 = vld [vmem:[%s1840_s26 + $0xd0] sm:$0xff]   ;;  %v1754_v32 = vld [vmem:[%s1840_s26 + $0xd8] sm:$0xff]  }
  0x1d   : > { %289 = vst.msk [vmem:[%s1850_s5 + $0xc0] sm:$0xff] %vm264_vm0, %v1787_v5  ;;  %290 = vst.msk [vmem:[%s1850_s5 + $0xc8] sm:$0xff] %vm264_vm0, %v1787_v5  ;;  %1614 = vmatprep.subr.bf16.mxu0 %v1729_v9  ;;  %1688 = vmatprep.subr.bf16.mxu1 %v1729_v9  ;;  %v1755_v33 = vld [vmem:[%s1840_s26 + $0x60] sm:$0xff]   ;;  %v1757_v35 = vld [vmem:[%s1840_s26 + $0x68] sm:$0xff]  }
  0x1e   : > { %291 = vst.msk [vmem:[%s1850_s5 + $0xd0] sm:$0xff] %vm264_vm0, %v1787_v5  ;;  %292 = vst.msk [vmem:[%s1850_s5 + $0xd8] sm:$0xff] %vm264_vm0, %v1787_v5  ;;  %v1756_v34 = vld [vmem:[%s1840_s26 + $0xe0] sm:$0xff]   ;;  %v1758_v36 = vld [vmem:[%s1840_s26 + $0xe8] sm:$0xff]  }
  0x1f   : > { %293 = vst.msk [vmem:[%s1850_s5 + $0xe0] sm:$0xff] %vm264_vm0, %v1787_v5  ;;  %294 = vst.msk [vmem:[%s1850_s5 + $0xe8] sm:$0xff] %vm264_vm0, %v1787_v5  ;;  %v1759_v37 = vld [vmem:[%s1840_s26 + $0x70] sm:$0xff]   ;;  %v1761_v39 = vld [vmem:[%s1840_s26 + $0x78] sm:$0xff]  }
  0x20   : > { %295 = vst.msk [vmem:[%s1850_s5 + $0xf0] sm:$0xff] %vm264_vm0, %v1787_v5  ;;  %296 = vst.msk [vmem:[%s1850_s5 + $0xf8] sm:$0xff] %vm264_vm0, %v1787_v5  ;;  %1615 = vmatpush3.bf16.msra.mxu0 %v1729_v9  ;;  %1696 = vmatpush3.bf16.msra.mxu1 %v1729_v9  ;;  %v1760_v38 = vld [vmem:[%s1840_s26 + $0xf0] sm:$0xff]   ;;  %v1762_v40 = vld [vmem:[%s1840_s26 + $0xf8] sm:$0xff]  }
  0x21   : > { %297 = vst.msk [vmem:[%s1850_s5 + $0x100] sm:$0xff] %vm264_vm0, %v1787_v5  ;;  %298 = vst.msk [vmem:[%s1850_s5 + $0x108] sm:$0xff] %vm264_vm0, %v1787_v5  ;;  %1616 = vmatprep.subr.bf16.mxu0 %v1730_v10  ;;  %1689 = vmatprep.subr.bf16.mxu1 %v1730_v10  ;;  %v331_v41 = vld [vmem:[%s1850_s5 + $0x10] sm:$0xff]  ;;  %v329_v43 = vld [vmem:[%s1850_s5] sm:$0xff] }
  0x22   : > { %299 = vst.msk [vmem:[%s1850_s5 + $0x110] sm:$0xff] %vm264_vm0, %v1787_v5  ;;  %300 = vst.msk [vmem:[%s1850_s5 + $0x118] sm:$0xff] %vm264_vm0, %v1787_v5  ;;  %v332_v47 = vld [vmem:[%s1850_s5 + $0x18] sm:$0xff]  ;;  %v330_v53 = vld [vmem:[%s1850_s5 + $0x8] sm:$0xff] }
  0x23   : > { %301 = vst.msk [vmem:[%s1850_s5 + $0x120] sm:$0xff] %vm264_vm0, %v1787_v5  ;;  %302 = vst.msk [vmem:[%s1850_s5 + $0x128] sm:$0xff] %vm264_vm0, %v1787_v5  ;;  %v335_v1 = vld [vmem:[%s1850_s5 + $0x30] sm:$0xff]  ;;  %v333_v3 = vld [vmem:[%s1850_s5 + $0x20] sm:$0xff] }
  0x24   : > { %303 = vst.msk [vmem:[%s1850_s5 + $0x130] sm:$0xff] %vm264_vm0, %v1787_v5  ;;  %304 = vst.msk [vmem:[%s1850_s5 + $0x138] sm:$0xff] %vm264_vm0, %v1787_v5  ;;  %1617 = vmatpush3.bf16.msra.mxu0 %v1730_v10  ;;  %1697 = vmatpush3.bf16.msra.mxu1 %v1730_v10  ;;  %v336_v8 = vld [vmem:[%s1850_s5 + $0x38] sm:$0xff] }
  0x25   : > { %305 = vst.msk [vmem:[%s1850_s5 + $0x140] sm:$0xff] %vm264_vm0, %v1787_v5  ;;  %306 = vst.msk [vmem:[%s1850_s5 + $0x148] sm:$0xff] %vm264_vm0, %v1787_v5 }
  0x26   : > { %307 = vst.msk [vmem:[%s1850_s5 + $0x150] sm:$0xff] %vm264_vm0, %v1787_v5  ;;  %308 = vst.msk [vmem:[%s1850_s5 + $0x158] sm:$0xff] %vm264_vm0, %v1787_v5 }
  0x27   : > { %309 = vst.msk [vmem:[%s1850_s5 + $0x160] sm:$0xff] %vm264_vm0, %v1787_v5  ;;  %310 = vst.msk [vmem:[%s1850_s5 + $0x168] sm:$0xff] %vm264_vm0, %v1787_v5  ;;  %1619 = vmatmul.mubr.bf16.vlgmr.msra.gmra.mrb[0].mxu0 %v1733_v11  ;;  %1651 = vmatmul.mubr.bf16.vlgmr.msra.gmra.mrb[0].mxu1 %v1734_v12 }
  0x28   : > { %311 = vst.msk [vmem:[%s1850_s5 + $0x170] sm:$0xff] %vm264_vm0, %v1787_v5  ;;  %312 = vst.msk [vmem:[%s1850_s5 + $0x178] sm:$0xff] %vm264_vm0, %v1787_v5  ;;  %1622 = vmatprep.mubr.bf16.mxu0 %v1735_v13  ;;  %1654 = vmatprep.mubr.bf16.mxu1 %v1736_v14  ;;  %v361_v44 = vld [vmem:[%s1850_s5 + $0x100] sm:$0xff]  ;;  %v362_v54 = vld [vmem:[%s1850_s5 + $0x108] sm:$0xff] }
  0x29   : > { %313 = vst.msk [vmem:[%s1850_s5 + $0x180] sm:$0xff] %vm264_vm0, %v1787_v5  ;;  %314 = vst.msk [vmem:[%s1850_s5 + $0x188] sm:$0xff] %vm264_vm0, %v1787_v5  ;;  %v363_v42 = vld [vmem:[%s1850_s5 + $0x110] sm:$0xff]  ;;  %v364_v48 = vld [vmem:[%s1850_s5 + $0x118] sm:$0xff] }
  0x2a   : > { %315 = vst.msk [vmem:[%s1850_s5 + $0x190] sm:$0xff] %vm264_vm0, %v1787_v5  ;;  %316 = vst.msk [vmem:[%s1850_s5 + $0x198] sm:$0xff] %vm264_vm0, %v1787_v5  ;;  %v365_v4 = vld [vmem:[%s1850_s5 + $0x120] sm:$0xff]  ;;  %v334_v14 = vld [vmem:[%s1850_s5 + $0x28] sm:$0xff] }
  0x2b   : > { %317 = vst.msk [vmem:[%s1850_s5 + $0x1a0] sm:$0xff] %vm264_vm0, %v1787_v5  ;;  %318 = vst.msk [vmem:[%s1850_s5 + $0x1a8] sm:$0xff] %vm264_vm0, %v1787_v5  ;;  %v367_v2 = vld [vmem:[%s1850_s5 + $0x130] sm:$0xff]  ;;  %v368_v9 = vld [vmem:[%s1850_s5 + $0x138] sm:$0xff] }
  0x2c   : > { %319 = vst.msk [vmem:[%s1850_s5 + $0x1b0] sm:$0xff] %vm264_vm0, %v1787_v5  ;;  %320 = vst.msk [vmem:[%s1850_s5 + $0x1b8] sm:$0xff] %vm264_vm0, %v1787_v5 }
  0x2d   : > { %321 = vst.msk [vmem:[%s1850_s5 + $0x1c0] sm:$0xff] %vm264_vm0, %v1787_v5  ;;  %322 = vst.msk [vmem:[%s1850_s5 + $0x1c8] sm:$0xff] %vm264_vm0, %v1787_v5 }
  0x2e   : > { %323 = vst.msk [vmem:[%s1850_s5 + $0x1d0] sm:$0xff] %vm264_vm0, %v1787_v5  ;;  %324 = vst.msk [vmem:[%s1850_s5 + $0x1d8] sm:$0xff] %vm264_vm0, %v1787_v5 }
  0x2f   : > { %325 = vst.msk [vmem:[%s1850_s5 + $0x1e0] sm:$0xff] %vm264_vm0, %v1787_v5  ;;  %326 = vst.msk [vmem:[%s1850_s5 + $0x1e8] sm:$0xff] %vm264_vm0, %v1787_v5  ;;  %1623 = vmatmul.mubr.bf16.gmra.mrb[4].mxu0 %v1737_v15  ;;  %1655 = vmatmul.mubr.bf16.gmra.mrb[4].mxu1 %v1738_v16  ;;  %v366_v15 = vld [vmem:[%s1850_s5 + $0x128] sm:$0xff] }
  0x30   : > { %327 = vst.msk [vmem:[%s1850_s5 + $0x1f0] sm:$0xff] %vm264_vm0, %v1787_v5  ;;  %328 = vst.msk [vmem:[%s1850_s5 + $0x1f8] sm:$0xff] %vm264_vm0, %v1787_v5  ;;  %1626 = vmatprep.mubr.bf16.mxu0 %v1739_v17  ;;  %1658 = vmatprep.mubr.bf16.mxu1 %v1740_v18  ;;  %v2130_v5 = vld [vmem:[%s2563_s2] ss:$0 sm:$0xff] }
  0x37   : > { %1627 = vmatmul.mubr.bf16.gmra.mrb[8].mxu0 %v1741_v19  ;;  %1659 = vmatmul.mubr.bf16.gmra.mrb[8].mxu1 %v1742_v20 }
  0x38   : > { %1630 = vmatprep.mubr.bf16.mxu0 %v1743_v21  ;;  %1662 = vmatprep.mubr.bf16.mxu1 %v1744_v22 }
  0x3f   : > { %1631 = vmatmul.mubr.bf16.gmra.mrb[12].mxu0 %v1745_v23  ;;  %1663 = vmatmul.mubr.bf16.gmra.mrb[12].mxu1 %v1746_v24 }
  0x40   : > { %1634 = vmatprep.mubr.bf16.mxu0 %v1747_v25  ;;  %1666 = vmatprep.mubr.bf16.mxu1 %v1748_v26 }
  0x47   : > { %1635 = vmatmul.mubr.bf16.gmra.mrb[16].mxu0 %v1749_v27  ;;  %1667 = vmatmul.mubr.bf16.gmra.mrb[16].mxu1 %v1750_v28 }
  0x48   : > { %1638 = vmatprep.mubr.bf16.mxu0 %v1751_v29  ;;  %1670 = vmatprep.mubr.bf16.mxu1 %v1752_v30 }
  0x4f   : > { %1639 = vmatmul.mubr.bf16.gmra.mrb[20].mxu0 %v1753_v31  ;;  %1671 = vmatmul.mubr.bf16.gmra.mrb[20].mxu1 %v1754_v32 }
  0x50   : > { %1642 = vmatprep.mubr.bf16.mxu0 %v1755_v33  ;;  %1674 = vmatprep.mubr.bf16.mxu1 %v1756_v34 }
  0x57   : > { %1643 = vmatmul.mubr.bf16.gmra.mrb[24].mxu0 %v1757_v35  ;;  %1675 = vmatmul.mubr.bf16.gmra.mrb[24].mxu1 %v1758_v36 }
  0x58   : > { %1646 = vmatprep.mubr.bf16.mxu0 %v1759_v37  ;;  %1678 = vmatprep.mubr.bf16.mxu1 %v1760_v38 }
  0x5f   : > { %1647 = vmatmul.mubr.bf16.gmra.mrb[28].mxu0 %v1761_v39  ;;  %1679 = vmatmul.mubr.bf16.gmra.mrb[28].mxu1 %v1762_v40 }
  0xfa   : > { %v1620_v45 = vpop.f32.mrb[0].mxu0  ;;  %v1652_v46 = vpop.f32.mrb[0].mxu1 }
  0xfb   : > { %v1004_v49 = vadd.f32 %v1620_v45, %v331_v41  ;;  %v1036_v50 = vadd.f32 %v1652_v46, %v363_v42  ;;  %v747_v51 = vpop.f32.mrb[1].mxu0  ;;  %v875_v52 = vpop.f32.mrb[1].mxu1  ;;  %v339_v46 = vld [vmem:[%s1850_s5 + $0x50] sm:$0xff] }
  0xfc   : > { %v1002_v55 = vadd.f32 %v747_v51, %v329_v43  ;;  %v1034_v56 = vadd.f32 %v875_v52, %v361_v44  ;;  %v1621_v57 = vpop.f32.mrb[2].mxu0  ;;  %v1653_v58 = vpop.f32.mrb[2].mxu1  ;;  %v369_v51 = vld [vmem:[%s1850_s5 + $0x140] sm:$0xff] }
  0xfd   : > { %1069 = vst.msk [vmem:[%s1850_s5 + $0x10] sm:$0xff] %vm264_vm0, %v1004_v49  ;;  %1101 = vst.msk [vmem:[%s1850_s5 + $0x110] sm:$0xff] %vm264_vm0, %v1036_v50  ;;  %v1005_v59 = vadd.f32 %v1621_v57, %v332_v47  ;;  %v1037_v60 = vadd.f32 %v1653_v58, %v364_v48  ;;  %v750_v61 = vpop.f32.mrb[3].mxu0  ;;  %v878_v62 = vpop.f32.mrb[3].mxu1  ;;  %v371_v47 = vld [vmem:[%s1850_s5 + $0x150] sm:$0xff]  ;;  %v337_v50 = vld [vmem:[%s1850_s5 + $0x40] sm:$0xff] }
  0xfe   : > { %1067 = vst.msk [vmem:[%s1850_s5] sm:$0xff] %vm264_vm0, %v1002_v55  ;;  %1099 = vst.msk [vmem:[%s1850_s5 + $0x100] sm:$0xff] %vm264_vm0, %v1034_v56  ;;  %v1003_v63 = vadd.f32 %v750_v61, %v330_v53  ;;  %v1035_v0 = vadd.f32 %v878_v62, %v362_v54  ;;  %v340_v56 = vld [vmem:[%s1850_s5 + $0x58] sm:$0xff]  ;;  %v338_v62 = vld [vmem:[%s1850_s5 + $0x48] sm:$0xff] }
  0xff   : > { %1070 = vst.msk [vmem:[%s1850_s5 + $0x18] sm:$0xff] %vm264_vm0, %v1005_v59  ;;  %1102 = vst.msk [vmem:[%s1850_s5 + $0x118] sm:$0xff] %vm264_vm0, %v1037_v60  ;;  %v372_v57 = vld [vmem:[%s1850_s5 + $0x158] sm:$0xff] }
 0x100   : > { %1068 = vst.msk [vmem:[%s1850_s5 + $0x8] sm:$0xff] %vm264_vm0, %v1003_v63  ;;  %1100 = vst.msk [vmem:[%s1850_s5 + $0x108] sm:$0xff] %vm264_vm0, %v1035_v0  ;;  %v370_v63 = vld [vmem:[%s1850_s5 + $0x148] sm:$0xff] }
 0x102   : > { %v1624_v6 = vpop.f32.mrb[4].mxu0  ;;  %v1656_v7 = vpop.f32.mrb[4].mxu1 }
 0x103   : > { %v1008_v10 = vadd.f32 %v1624_v6, %v335_v1  ;;  %v1040_v11 = vadd.f32 %v1656_v7, %v367_v2  ;;  %v763_v12 = vpop.f32.mrb[5].mxu0  ;;  %v891_v13 = vpop.f32.mrb[5].mxu1 }
 0x104   : > { %v1136_v16 = vld [vmem:[%s1850_s5 + $0x10] sm:$0xff]  ;;  %v1006_v18 = vadd.f32 %v763_v12, %v333_v3  ;;  %v1038_v19 = vadd.f32 %v891_v13, %v365_v4  ;;  %v1625_v20 = vpop.f32.mrb[6].mxu0  ;;  %v1657_v21 = vpop.f32.mrb[6].mxu1 }
 0x105   : > { %v1168_v17 = vld [vmem:[%s1850_s5 + $0x110] sm:$0xff]  ;;  %v1207_v22 = vadd.f32 %v2130_v5, %v1136_v16  ;;  %v1134_v24 = vld [vmem:[%s1850_s5] sm:$0xff]  ;;  %1073 = vst.msk [vmem:[%s1850_s5 + $0x30] sm:$0xff] %vm264_vm0, %v1008_v10  ;;  %1105 = vst.msk [vmem:[%s1850_s5 + $0x130] sm:$0xff] %vm264_vm0, %v1040_v11  ;;  %v1009_v26 = vadd.f32 %v1625_v20, %v336_v8  ;;  %v1041_v27 = vadd.f32 %v1657_v21, %v368_v9  ;;  %v766_v28 = vpop.f32.mrb[7].mxu0  ;;  %v894_v29 = vpop.f32.mrb[7].mxu1 }
 0x106   : > { %v1239_v23 = vadd.f32 %v2130_v5, %v1168_v17  ;;  %v1166_v25 = vld [vmem:[%s1850_s5 + $0x100] sm:$0xff]  ;;  %v1205_v30 = vadd.f32 %v2130_v5, %v1134_v24  ;;  %v1137_v32 = vld [vmem:[%s1850_s5 + $0x18] sm:$0xff]  ;;  %1071 = vst.msk [vmem:[%s1850_s5 + $0x20] sm:$0xff] %vm264_vm0, %v1006_v18  ;;  %1103 = vst.msk [vmem:[%s1850_s5 + $0x120] sm:$0xff] %vm264_vm0, %v1038_v19  ;;  %v1007_v34 = vadd.f32 %v766_v28, %v334_v14 }
 0x107   : > { %v1237_v31 = vadd.f32 %v2130_v5, %v1166_v25  ;;  %v1169_v33 = vld [vmem:[%s1850_s5 + $0x118] sm:$0xff]  ;;  %v1039_v35 = vadd.f32 %v894_v29, %v366_v15  ;;  %v1271_v36 = vmax.f32 %v1207_v22, 0.0  ;;  %v1208_v38 = vadd.f32 %v2130_v5, %v1137_v32  ;;  %v1135_v40 = vld [vmem:[%s1850_s5 + $0x8] sm:$0xff]  ;;  %1074 = vst.msk [vmem:[%s1850_s5 + $0x38] sm:$0xff] %vm264_vm0, %v1009_v26  ;;  %1106 = vst.msk [vmem:[%s1850_s5 + $0x138] sm:$0xff] %vm264_vm0, %v1041_v27 }
 0x108   : > { %v1303_v37 = vmax.f32 %v1239_v23, 0.0  ;;  %v1240_v39 = vadd.f32 %v2130_v5, %v1169_v33  ;;  %v1167_v41 = vld [vmem:[%s1850_s5 + $0x108] sm:$0xff]  ;;  %v1269_v42 = vmax.f32 %v1205_v30, 0.0  ;;  %v1206_v44 = vadd.f32 %v2130_v5, %v1135_v40  ;;  %1072 = vst.msk [vmem:[%s1850_s5 + $0x28] sm:$0xff] %vm264_vm0, %v1007_v34  ;;  %v375_v32 = vld [vmem:[%s1850_s5 + $0x170] sm:$0xff] }
 0x109   : > { %v1301_v43 = vmax.f32 %v1237_v31, 0.0  ;;  %v1238_v45 = vadd.f32 %v2130_v5, %v1167_v41  ;;  %1104 = vst.msk [vmem:[%s1850_s5 + $0x128] sm:$0xff] %vm264_vm0, %v1039_v35  ;;  %1335 = vst.msk [vmem:[%s1850_s5 + $0x10] sm:$0xff] %vm264_vm0, %v1271_v36  ;;  %v1272_v48 = vmax.f32 %v1208_v38, 0.0  ;;  %v343_v31 = vld [vmem:[%s1850_s5 + $0x70] sm:$0xff]  ;;  %v341_v35 = vld [vmem:[%s1850_s5 + $0x60] sm:$0xff] }
 0x10a   : > { %1367 = vst.msk [vmem:[%s1850_s5 + $0x110] sm:$0xff] %vm264_vm0, %v1303_v37  ;;  %v1304_v49 = vmax.f32 %v1240_v39, 0.0  ;;  %1333 = vst.msk [vmem:[%s1850_s5] sm:$0xff] %vm264_vm0, %v1269_v42  ;;  %v1270_v52 = vmax.f32 %v1206_v44, 0.0  ;;  %v1628_v54 = vpop.f32.mrb[8].mxu0  ;;  %v1660_v55 = vpop.f32.mrb[8].mxu1 }
 0x10b   : > { %1365 = vst.msk [vmem:[%s1850_s5 + $0x100] sm:$0xff] %vm264_vm0, %v1301_v43  ;;  %v1302_v53 = vmax.f32 %v1238_v45, 0.0  ;;  %1336 = vst.msk [vmem:[%s1850_s5 + $0x18] sm:$0xff] %vm264_vm0, %v1272_v48  ;;  %v1012_v58 = vadd.f32 %v1628_v54, %v339_v46  ;;  %v1044_v59 = vadd.f32 %v1660_v55, %v371_v47  ;;  %v779_v60 = vpop.f32.mrb[9].mxu0  ;;  %v907_v61 = vpop.f32.mrb[9].mxu1  ;;  %v373_v36 = vld [vmem:[%s1850_s5 + $0x160] sm:$0xff] }
 0x10c   : > { %1368 = vst.msk [vmem:[%s1850_s5 + $0x118] sm:$0xff] %vm264_vm0, %v1304_v49  ;;  %1334 = vst.msk [vmem:[%s1850_s5 + $0x8] sm:$0xff] %vm264_vm0, %v1270_v52  ;;  %v1140_v0 = vld [vmem:[%s1850_s5 + $0x30] sm:$0xff]  ;;  %v1010_v2 = vadd.f32 %v779_v60, %v337_v50  ;;  %v1042_v3 = vadd.f32 %v907_v61, %v369_v51  ;;  %v1629_v4 = vpop.f32.mrb[10].mxu0  ;;  %v1661_v6 = vpop.f32.mrb[10].mxu1  ;;  %v344_v41 = vld [vmem:[%s1850_s5 + $0x78] sm:$0xff] }
 0x10d   : > { %1366 = vst.msk [vmem:[%s1850_s5 + $0x108] sm:$0xff] %vm264_vm0, %v1302_v53  ;;  %v1172_v1 = vld [vmem:[%s1850_s5 + $0x130] sm:$0xff]  ;;  %v1211_v7 = vadd.f32 %v2130_v5, %v1140_v0  ;;  %v1138_v9 = vld [vmem:[%s1850_s5 + $0x20] sm:$0xff]  ;;  %1077 = vst.msk [vmem:[%s1850_s5 + $0x50] sm:$0xff] %vm264_vm0, %v1012_v58  ;;  %v1013_v11 = vadd.f32 %v1629_v4, %v340_v56  ;;  %v1045_v12 = vadd.f32 %v1661_v6, %v372_v57  ;;  %v782_v13 = vpop.f32.mrb[11].mxu0  ;;  %v910_v14 = vpop.f32.mrb[11].mxu1 }
 0x10e   : > { %v1243_v8 = vadd.f32 %v2130_v5, %v1172_v1  ;;  %v1170_v10 = vld [vmem:[%s1850_s5 + $0x120] sm:$0xff]  ;;  %1109 = vst.msk [vmem:[%s1850_s5 + $0x150] sm:$0xff] %vm264_vm0, %v1044_v59  ;;  %v1209_v15 = vadd.f32 %v2130_v5, %v1138_v9  ;;  %v1141_v17 = vld [vmem:[%s1850_s5 + $0x38] sm:$0xff]  ;;  %1075 = vst.msk [vmem:[%s1850_s5 + $0x40] sm:$0xff] %vm264_vm0, %v1010_v2  ;;  %v1011_v19 = vadd.f32 %v782_v13, %v338_v62 }
 0x10f   : > { %v1241_v16 = vadd.f32 %v2130_v5, %v1170_v10  ;;  %v1173_v18 = vld [vmem:[%s1850_s5 + $0x138] sm:$0xff]  ;;  %1107 = vst.msk [vmem:[%s1850_s5 + $0x140] sm:$0xff] %vm264_vm0, %v1042_v3  ;;  %v1043_v20 = vadd.f32 %v910_v14, %v370_v63  ;;  %v1275_v21 = vmax.f32 %v1211_v7, 0.0  ;;  %v1212_v23 = vadd.f32 %v2130_v5, %v1141_v17  ;;  %v1139_v25 = vld [vmem:[%s1850_s5 + $0x28] sm:$0xff]  ;;  %1078 = vst.msk [vmem:[%s1850_s5 + $0x58] sm:$0xff] %vm264_vm0, %v1013_v11 }
 0x110   : > { %v1307_v22 = vmax.f32 %v1243_v8, 0.0  ;;  %v1244_v24 = vadd.f32 %v2130_v5, %v1173_v18  ;;  %v1171_v26 = vld [vmem:[%s1850_s5 + $0x128] sm:$0xff]  ;;  %1110 = vst.msk [vmem:[%s1850_s5 + $0x158] sm:$0xff] %vm264_vm0, %v1045_v12  ;;  %v1273_v27 = vmax.f32 %v1209_v15, 0.0  ;;  %v1210_v29 = vadd.f32 %v2130_v5, %v1139_v25  ;;  %1076 = vst.msk [vmem:[%s1850_s5 + $0x48] sm:$0xff] %vm264_vm0, %v1011_v19  ;;  %v376_v42 = vld [vmem:[%s1850_s5 + $0x178] sm:$0xff] }
 0x111   : > { %v1305_v28 = vmax.f32 %v1241_v16, 0.0  ;;  %v1242_v30 = vadd.f32 %v2130_v5, %v1171_v26  ;;  %1108 = vst.msk [vmem:[%s1850_s5 + $0x148] sm:$0xff] %vm264_vm0, %v1043_v20  ;;  %1339 = vst.msk [vmem:[%s1850_s5 + $0x30] sm:$0xff] %vm264_vm0, %v1275_v21  ;;  %v1276_v33 = vmax.f32 %v1212_v23, 0.0  ;;  %v342_v47 = vld [vmem:[%s1850_s5 + $0x68] sm:$0xff]  ;;  %v347_v16 = vld [vmem:[%s1850_s5 + $0x90] sm:$0xff] }
 0x112   : > { %1371 = vst.msk [vmem:[%s1850_s5 + $0x130] sm:$0xff] %vm264_vm0, %v1307_v22  ;;  %v1308_v34 = vmax.f32 %v1244_v24, 0.0  ;;  %1337 = vst.msk [vmem:[%s1850_s5 + $0x20] sm:$0xff] %vm264_vm0, %v1273_v27  ;;  %v1274_v37 = vmax.f32 %v1210_v29, 0.0  ;;  %v1632_v39 = vpop.f32.mrb[12].mxu0  ;;  %v1664_v40 = vpop.f32.mrb[12].mxu1 }
 0x113   : > { %1369 = vst.msk [vmem:[%s1850_s5 + $0x120] sm:$0xff] %vm264_vm0, %v1305_v28  ;;  %v1306_v38 = vmax.f32 %v1242_v30, 0.0  ;;  %1340 = vst.msk [vmem:[%s1850_s5 + $0x38] sm:$0xff] %vm264_vm0, %v1276_v33  ;;  %v1016_v43 = vadd.f32 %v1632_v39, %v343_v31  ;;  %v1048_v44 = vadd.f32 %v1664_v40, %v375_v32  ;;  %v795_v45 = vpop.f32.mrb[13].mxu0  ;;  %v923_v46 = vpop.f32.mrb[13].mxu1  ;;  %v374_v48 = vld [vmem:[%s1850_s5 + $0x168] sm:$0xff] }
 0x114   : > { %1372 = vst.msk [vmem:[%s1850_s5 + $0x138] sm:$0xff] %vm264_vm0, %v1308_v34  ;;  %1338 = vst.msk [vmem:[%s1850_s5 + $0x28] sm:$0xff] %vm264_vm0, %v1274_v37  ;;  %v1144_v49 = vld [vmem:[%s1850_s5 + $0x50] sm:$0xff]  ;;  %v1014_v51 = vadd.f32 %v795_v45, %v341_v35  ;;  %v1046_v52 = vadd.f32 %v923_v46, %v373_v36  ;;  %v1633_v53 = vpop.f32.mrb[14].mxu0  ;;  %v1665_v54 = vpop.f32.mrb[14].mxu1  ;;  %v345_v20 = vld [vmem:[%s1850_s5 + $0x80] sm:$0xff] }
 0x115   : > { %1370 = vst.msk [vmem:[%s1850_s5 + $0x128] sm:$0xff] %vm264_vm0, %v1306_v38  ;;  %v1176_v50 = vld [vmem:[%s1850_s5 + $0x150] sm:$0xff]  ;;  %v1215_v55 = vadd.f32 %v2130_v5, %v1144_v49  ;;  %v1142_v57 = vld [vmem:[%s1850_s5 + $0x40] sm:$0xff]  ;;  %1081 = vst.msk [vmem:[%s1850_s5 + $0x70] sm:$0xff] %vm264_vm0, %v1016_v43  ;;  %v1017_v59 = vadd.f32 %v1633_v53, %v344_v41  ;;  %v1049_v60 = vadd.f32 %v1665_v54, %v376_v42  ;;  %v798_v61 = vpop.f32.mrb[15].mxu0  ;;  %v926_v62 = vpop.f32.mrb[15].mxu1 }
 0x116   : > { %v1247_v56 = vadd.f32 %v2130_v5, %v1176_v50  ;;  %v1174_v58 = vld [vmem:[%s1850_s5 + $0x140] sm:$0xff]  ;;  %1113 = vst.msk [vmem:[%s1850_s5 + $0x170] sm:$0xff] %vm264_vm0, %v1048_v44  ;;  %v1213_v63 = vadd.f32 %v2130_v5, %v1142_v57  ;;  %v1145_v1 = vld [vmem:[%s1850_s5 + $0x58] sm:$0xff]  ;;  %1079 = vst.msk [vmem:[%s1850_s5 + $0x60] sm:$0xff] %vm264_vm0, %v1014_v51  ;;  %v1015_v3 = vadd.f32 %v798_v61, %v342_v47 }
 0x117   : > { %v1245_v0 = vadd.f32 %v2130_v5, %v1174_v58  ;;  %v1177_v2 = vld [vmem:[%s1850_s5 + $0x158] sm:$0xff]  ;;  %1111 = vst.msk [vmem:[%s1850_s5 + $0x160] sm:$0xff] %vm264_vm0, %v1046_v52  ;;  %v1047_v4 = vadd.f32 %v926_v62, %v374_v48  ;;  %v1279_v6 = vmax.f32 %v1215_v55, 0.0  ;;  %v1216_v8 = vadd.f32 %v2130_v5, %v1145_v1  ;;  %v1143_v10 = vld [vmem:[%s1850_s5 + $0x48] sm:$0xff]  ;;  %1082 = vst.msk [vmem:[%s1850_s5 + $0x78] sm:$0xff] %vm264_vm0, %v1017_v59 }
 0x118   : > { %v1311_v7 = vmax.f32 %v1247_v56, 0.0  ;;  %v1248_v9 = vadd.f32 %v2130_v5, %v1177_v2  ;;  %v1175_v11 = vld [vmem:[%s1850_s5 + $0x148] sm:$0xff]  ;;  %1114 = vst.msk [vmem:[%s1850_s5 + $0x178] sm:$0xff] %vm264_vm0, %v1049_v60  ;;  %v1277_v12 = vmax.f32 %v1213_v63, 0.0  ;;  %v1214_v14 = vadd.f32 %v2130_v5, %v1143_v10  ;;  %1080 = vst.msk [vmem:[%s1850_s5 + $0x68] sm:$0xff] %vm264_vm0, %v1015_v3  ;;  %v379_v17 = vld [vmem:[%s1850_s5 + $0x190] sm:$0xff] }
 0x119   : > { %v1309_v13 = vmax.f32 %v1245_v0, 0.0  ;;  %v1246_v15 = vadd.f32 %v2130_v5, %v1175_v11  ;;  %1112 = vst.msk [vmem:[%s1850_s5 + $0x168] sm:$0xff] %vm264_vm0, %v1047_v4  ;;  %1343 = vst.msk [vmem:[%s1850_s5 + $0x50] sm:$0xff] %vm264_vm0, %v1279_v6  ;;  %v1280_v18 = vmax.f32 %v1216_v8, 0.0  ;;  %v377_v21 = vld [vmem:[%s1850_s5 + $0x180] sm:$0xff]  ;;  %v348_v26 = vld [vmem:[%s1850_s5 + $0x98] sm:$0xff] }
 0x11a   : > { %1375 = vst.msk [vmem:[%s1850_s5 + $0x150] sm:$0xff] %vm264_vm0, %v1311_v7  ;;  %v1312_v19 = vmax.f32 %v1248_v9, 0.0  ;;  %1341 = vst.msk [vmem:[%s1850_s5 + $0x40] sm:$0xff] %vm264_vm0, %v1277_v12  ;;  %v1278_v22 = vmax.f32 %v1214_v14, 0.0  ;;  %v1636_v24 = vpop.f32.mrb[16].mxu0  ;;  %v1668_v25 = vpop.f32.mrb[16].mxu1 }
 0x11b   : > { %1373 = vst.msk [vmem:[%s1850_s5 + $0x140] sm:$0xff] %vm264_vm0, %v1309_v13  ;;  %v1310_v23 = vmax.f32 %v1246_v15, 0.0  ;;  %v380_v27 = vld [vmem:[%s1850_s5 + $0x198] sm:$0xff]  ;;  %1344 = vst.msk [vmem:[%s1850_s5 + $0x58] sm:$0xff] %vm264_vm0, %v1280_v18  ;;  %v1020_v28 = vadd.f32 %v1636_v24, %v347_v16  ;;  %v1052_v29 = vadd.f32 %v1668_v25, %v379_v17  ;;  %v811_v30 = vpop.f32.mrb[17].mxu0  ;;  %v939_v31 = vpop.f32.mrb[17].mxu1 }
 0x11c   : > { %1376 = vst.msk [vmem:[%s1850_s5 + $0x158] sm:$0xff] %vm264_vm0, %v1312_v19  ;;  %v346_v32 = vld [vmem:[%s1850_s5 + $0x88] sm:$0xff]  ;;  %1342 = vst.msk [vmem:[%s1850_s5 + $0x48] sm:$0xff] %vm264_vm0, %v1278_v22  ;;  %v1148_v34 = vld [vmem:[%s1850_s5 + $0x70] sm:$0xff]  ;;  %v1018_v36 = vadd.f32 %v811_v30, %v345_v20  ;;  %v1050_v37 = vadd.f32 %v939_v31, %v377_v21  ;;  %v1637_v38 = vpop.f32.mrb[18].mxu0  ;;  %v1669_v39 = vpop.f32.mrb[18].mxu1 }
 0x11d   : > { %v378_v33 = vld [vmem:[%s1850_s5 + $0x188] sm:$0xff]  ;;  %1374 = vst.msk [vmem:[%s1850_s5 + $0x148] sm:$0xff] %vm264_vm0, %v1310_v23  ;;  %v1180_v35 = vld [vmem:[%s1850_s5 + $0x170] sm:$0xff]  ;;  %v1219_v40 = vadd.f32 %v2130_v5, %v1148_v34  ;;  %v1146_v42 = vld [vmem:[%s1850_s5 + $0x60] sm:$0xff]  ;;  %v1021_v44 = vadd.f32 %v1637_v38, %v348_v26  ;;  %v1053_v45 = vadd.f32 %v1669_v39, %v380_v27  ;;  %v814_v46 = vpop.f32.mrb[19].mxu0  ;;  %v942_v47 = vpop.f32.mrb[19].mxu1 }
 0x11e   : > { %v1251_v41 = vadd.f32 %v2130_v5, %v1180_v35  ;;  %v1178_v43 = vld [vmem:[%s1850_s5 + $0x160] sm:$0xff]  ;;  %1085 = vst.msk [vmem:[%s1850_s5 + $0x90] sm:$0xff] %vm264_vm0, %v1020_v28  ;;  %1117 = vst.msk [vmem:[%s1850_s5 + $0x190] sm:$0xff] %vm264_vm0, %v1052_v29  ;;  %v1217_v48 = vadd.f32 %v2130_v5, %v1146_v42  ;;  %v1149_v50 = vld [vmem:[%s1850_s5 + $0x78] sm:$0xff]  ;;  %v1019_v52 = vadd.f32 %v814_v46, %v346_v32 }
 0x11f   : > { %v1249_v49 = vadd.f32 %v2130_v5, %v1178_v43  ;;  %v1181_v51 = vld [vmem:[%s1850_s5 + $0x178] sm:$0xff]  ;;  %1083 = vst.msk [vmem:[%s1850_s5 + $0x80] sm:$0xff] %vm264_vm0, %v1018_v36  ;;  %1115 = vst.msk [vmem:[%s1850_s5 + $0x180] sm:$0xff] %vm264_vm0, %v1050_v37  ;;  %v1051_v53 = vadd.f32 %v942_v47, %v378_v33  ;;  %v1283_v54 = vmax.f32 %v1219_v40, 0.0  ;;  %v1220_v56 = vadd.f32 %v2130_v5, %v1149_v50  ;;  %v1147_v58 = vld [vmem:[%s1850_s5 + $0x68] sm:$0xff] }
 0x120   : > { %v1315_v55 = vmax.f32 %v1251_v41, 0.0  ;;  %v1252_v57 = vadd.f32 %v2130_v5, %v1181_v51  ;;  %v1179_v59 = vld [vmem:[%s1850_s5 + $0x168] sm:$0xff]  ;;  %1086 = vst.msk [vmem:[%s1850_s5 + $0x98] sm:$0xff] %vm264_vm0, %v1021_v44  ;;  %1118 = vst.msk [vmem:[%s1850_s5 + $0x198] sm:$0xff] %vm264_vm0, %v1053_v45  ;;  %v1281_v60 = vmax.f32 %v1217_v48, 0.0  ;;  %v1218_v62 = vadd.f32 %v2130_v5, %v1147_v58  ;;  %v351_v0 = vld [vmem:[%s1850_s5 + $0xb0] sm:$0xff] }
 0x121   : > { %v1313_v61 = vmax.f32 %v1249_v49, 0.0  ;;  %v1250_v63 = vadd.f32 %v2130_v5, %v1179_v59  ;;  %1084 = vst.msk [vmem:[%s1850_s5 + $0x88] sm:$0xff] %vm264_vm0, %v1019_v52  ;;  %1116 = vst.msk [vmem:[%s1850_s5 + $0x188] sm:$0xff] %vm264_vm0, %v1051_v53  ;;  %v383_v1 = vld [vmem:[%s1850_s5 + $0x1b0] sm:$0xff]  ;;  %v1284_v2 = vmax.f32 %v1220_v56, 0.0  ;;  %v349_v4 = vld [vmem:[%s1850_s5 + $0xa0] sm:$0xff] }
 0x122   : > { %1347 = vst.msk [vmem:[%s1850_s5 + $0x70] sm:$0xff] %vm264_vm0, %v1283_v54  ;;  %1379 = vst.msk [vmem:[%s1850_s5 + $0x170] sm:$0xff] %vm264_vm0, %v1315_v55  ;;  %v1316_v3 = vmax.f32 %v1252_v57, 0.0  ;;  %v381_v6 = vld [vmem:[%s1850_s5 + $0x1a0] sm:$0xff]  ;;  %v1282_v7 = vmax.f32 %v1218_v62, 0.0  ;;  %v1640_v9 = vpop.f32.mrb[20].mxu0 }
 0x123   : > { %1345 = vst.msk [vmem:[%s1850_s5 + $0x60] sm:$0xff] %vm264_vm0, %v1281_v60  ;;  %1377 = vst.msk [vmem:[%s1850_s5 + $0x160] sm:$0xff] %vm264_vm0, %v1313_v61  ;;  %v1314_v8 = vmax.f32 %v1250_v63, 0.0  ;;  %v1672_v10 = vpop.f32.mrb[20].mxu1  ;;  %v352_v11 = vld [vmem:[%s1850_s5 + $0xb8] sm:$0xff]  ;;  %v1024_v13 = vadd.f32 %v1640_v9, %v351_v0  ;;  %v827_v15 = vpop.f32.mrb[21].mxu0 }
 0x124   : > { %v384_v12 = vld [vmem:[%s1850_s5 + $0x1b8] sm:$0xff]  ;;  %1348 = vst.msk [vmem:[%s1850_s5 + $0x78] sm:$0xff] %vm264_vm0, %v1284_v2  ;;  %1380 = vst.msk [vmem:[%s1850_s5 + $0x178] sm:$0xff] %vm264_vm0, %v1316_v3  ;;  %v1056_v14 = vadd.f32 %v1672_v10, %v383_v1  ;;  %v955_v16 = vpop.f32.mrb[21].mxu1  ;;  %v350_v17 = vld [vmem:[%s1850_s5 + $0xa8] sm:$0xff]  ;;  %v1022_v21 = vadd.f32 %v827_v15, %v349_v4  ;;  %v1641_v23 = vpop.f32.mrb[22].mxu0 }
 0x125   : > { %v382_v18 = vld [vmem:[%s1850_s5 + $0x1a8] sm:$0xff]  ;;  %1346 = vst.msk [vmem:[%s1850_s5 + $0x68] sm:$0xff] %vm264_vm0, %v1282_v7  ;;  %1378 = vst.msk [vmem:[%s1850_s5 + $0x168] sm:$0xff] %vm264_vm0, %v1314_v8  ;;  %v1152_v19 = vld [vmem:[%s1850_s5 + $0x90] sm:$0xff]  ;;  %v1054_v22 = vadd.f32 %v955_v16, %v381_v6  ;;  %v1673_v24 = vpop.f32.mrb[22].mxu1  ;;  %v1025_v29 = vadd.f32 %v1641_v23, %v352_v11  ;;  %v830_v31 = vpop.f32.mrb[23].mxu0 }
 0x126   : > { %v1184_v20 = vld [vmem:[%s1850_s5 + $0x190] sm:$0xff]  ;;  %v1223_v25 = vadd.f32 %v2130_v5, %v1152_v19  ;;  %v1150_v27 = vld [vmem:[%s1850_s5 + $0x80] sm:$0xff]  ;;  %1089 = vst.msk [vmem:[%s1850_s5 + $0xb0] sm:$0xff] %vm264_vm0, %v1024_v13  ;;  %1121 = vst.msk [vmem:[%s1850_s5 + $0x1b0] sm:$0xff] %vm264_vm0, %v1056_v14  ;;  %v1057_v30 = vadd.f32 %v1673_v24, %v384_v12  ;;  %v958_v32 = vpop.f32.mrb[23].mxu1  ;;  %v1023_v37 = vadd.f32 %v830_v31, %v350_v17 }
 0x127   : > { %v1255_v26 = vadd.f32 %v2130_v5, %v1184_v20  ;;  %v1182_v28 = vld [vmem:[%s1850_s5 + $0x180] sm:$0xff]  ;;  %v1221_v33 = vadd.f32 %v2130_v5, %v1150_v27  ;;  %v1153_v35 = vld [vmem:[%s1850_s5 + $0x98] sm:$0xff]  ;;  %1087 = vst.msk [vmem:[%s1850_s5 + $0xa0] sm:$0xff] %vm264_vm0, %v1022_v21  ;;  %1119 = vst.msk [vmem:[%s1850_s5 + $0x1a0] sm:$0xff] %vm264_vm0, %v1054_v22  ;;  %v1055_v38 = vadd.f32 %v958_v32, %v382_v18 }
 0x128   : > { %v1253_v34 = vadd.f32 %v2130_v5, %v1182_v28  ;;  %v1185_v36 = vld [vmem:[%s1850_s5 + $0x198] sm:$0xff]  ;;  %v1287_v39 = vmax.f32 %v1223_v25, 0.0  ;;  %v1224_v41 = vadd.f32 %v2130_v5, %v1153_v35  ;;  %v1151_v43 = vld [vmem:[%s1850_s5 + $0x88] sm:$0xff]  ;;  %1090 = vst.msk [vmem:[%s1850_s5 + $0xb8] sm:$0xff] %vm264_vm0, %v1025_v29  ;;  %1122 = vst.msk [vmem:[%s1850_s5 + $0x1b8] sm:$0xff] %vm264_vm0, %v1057_v30 }
 0x129   : > { %v1319_v40 = vmax.f32 %v1255_v26, 0.0  ;;  %v1256_v42 = vadd.f32 %v2130_v5, %v1185_v36  ;;  %v1183_v44 = vld [vmem:[%s1850_s5 + $0x188] sm:$0xff]  ;;  %v1285_v45 = vmax.f32 %v1221_v33, 0.0  ;;  %v1222_v47 = vadd.f32 %v2130_v5, %v1151_v43  ;;  %1088 = vst.msk [vmem:[%s1850_s5 + $0xa8] sm:$0xff] %vm264_vm0, %v1023_v37  ;;  %1120 = vst.msk [vmem:[%s1850_s5 + $0x1a8] sm:$0xff] %vm264_vm0, %v1055_v38  ;;  %v355_v49 = vld [vmem:[%s1850_s5 + $0xd0] sm:$0xff] }
 0x12a   : > { %v1317_v46 = vmax.f32 %v1253_v34, 0.0  ;;  %v1254_v48 = vadd.f32 %v2130_v5, %v1183_v44  ;;  %v387_v50 = vld [vmem:[%s1850_s5 + $0x1d0] sm:$0xff]  ;;  %1351 = vst.msk [vmem:[%s1850_s5 + $0x90] sm:$0xff] %vm264_vm0, %v1287_v39  ;;  %v1288_v51 = vmax.f32 %v1224_v41, 0.0  ;;  %v353_v53 = vld [vmem:[%s1850_s5 + $0xc0] sm:$0xff]  ;;  %v1644_v57 = vpop.f32.mrb[24].mxu0 }
 0x12b   : > { %1383 = vst.msk [vmem:[%s1850_s5 + $0x190] sm:$0xff] %vm264_vm0, %v1319_v40  ;;  %v1320_v52 = vmax.f32 %v1256_v42, 0.0  ;;  %v385_v54 = vld [vmem:[%s1850_s5 + $0x1c0] sm:$0xff]  ;;  %1349 = vst.msk [vmem:[%s1850_s5 + $0x80] sm:$0xff] %vm264_vm0, %v1285_v45  ;;  %v1286_v55 = vmax.f32 %v1222_v47, 0.0  ;;  %v1676_v58 = vpop.f32.mrb[24].mxu1  ;;  %v1028_v61 = vadd.f32 %v1644_v57, %v355_v49 }
 0x12c   : > { %1381 = vst.msk [vmem:[%s1850_s5 + $0x180] sm:$0xff] %vm264_vm0, %v1317_v46  ;;  %v1318_v56 = vmax.f32 %v1254_v48, 0.0  ;;  %v356_v59 = vld [vmem:[%s1850_s5 + $0xd8] sm:$0xff]  ;;  %1352 = vst.msk [vmem:[%s1850_s5 + $0x98] sm:$0xff] %vm264_vm0, %v1288_v51  ;;  %v1060_v62 = vadd.f32 %v1676_v58, %v387_v50  ;;  %v843_v63 = vpop.f32.mrb[25].mxu0  ;;  %v971_v0 = vpop.f32.mrb[25].mxu1 }
 0x12d   : > { %v388_v60 = vld [vmem:[%s1850_s5 + $0x1d8] sm:$0xff]  ;;  %1384 = vst.msk [vmem:[%s1850_s5 + $0x198] sm:$0xff] %vm264_vm0, %v1320_v52  ;;  %v354_v1 = vld [vmem:[%s1850_s5 + $0xc8] sm:$0xff]  ;;  %1350 = vst.msk [vmem:[%s1850_s5 + $0x88] sm:$0xff] %vm264_vm0, %v1286_v55  ;;  %v1026_v6 = vadd.f32 %v843_v63, %v353_v53  ;;  %v1058_v7 = vadd.f32 %v971_v0, %v385_v54  ;;  %v1645_v8 = vpop.f32.mrb[26].mxu0  ;;  %v1677_v9 = vpop.f32.mrb[26].mxu1 }
 0x12e   : > { %v386_v2 = vld [vmem:[%s1850_s5 + $0x1c8] sm:$0xff]  ;;  %1382 = vst.msk [vmem:[%s1850_s5 + $0x188] sm:$0xff] %vm264_vm0, %v1318_v56  ;;  %v1156_v3 = vld [vmem:[%s1850_s5 + $0xb0] sm:$0xff]  ;;  %v1154_v12 = vld [vmem:[%s1850_s5 + $0xa0] sm:$0xff]  ;;  %v1029_v14 = vadd.f32 %v1645_v8, %v356_v59  ;;  %v1061_v15 = vadd.f32 %v1677_v9, %v388_v60  ;;  %v846_v16 = vpop.f32.mrb[27].mxu0  ;;  %v974_v17 = vpop.f32.mrb[27].mxu1 }
 0x12f   : > { %v1188_v4 = vld [vmem:[%s1850_s5 + $0x1b0] sm:$0xff]  ;;  %v1227_v10 = vadd.f32 %v2130_v5, %v1156_v3  ;;  %v1186_v13 = vld [vmem:[%s1850_s5 + $0x1a0] sm:$0xff]  ;;  %1093 = vst.msk [vmem:[%s1850_s5 + $0xd0] sm:$0xff] %vm264_vm0, %v1028_v61  ;;  %1125 = vst.msk [vmem:[%s1850_s5 + $0x1d0] sm:$0xff] %vm264_vm0, %v1060_v62  ;;  %v1225_v18 = vadd.f32 %v2130_v5, %v1154_v12  ;;  %v1027_v22 = vadd.f32 %v846_v16, %v354_v1 }
 0x130   : > { %v1259_v11 = vadd.f32 %v2130_v5, %v1188_v4  ;;  %v1257_v19 = vadd.f32 %v2130_v5, %v1186_v13  ;;  %v1157_v20 = vld [vmem:[%s1850_s5 + $0xb8] sm:$0xff]  ;;  %1091 = vst.msk [vmem:[%s1850_s5 + $0xc0] sm:$0xff] %vm264_vm0, %v1026_v6  ;;  %1123 = vst.msk [vmem:[%s1850_s5 + $0x1c0] sm:$0xff] %vm264_vm0, %v1058_v7  ;;  %v1059_v23 = vadd.f32 %v974_v17, %v386_v2  ;;  %v1155_v28 = vld [vmem:[%s1850_s5 + $0xa8] sm:$0xff] }
 0x131   : > { %v1189_v21 = vld [vmem:[%s1850_s5 + $0x1b8] sm:$0xff]  ;;  %v1291_v24 = vmax.f32 %v1227_v10, 0.0  ;;  %v1228_v26 = vadd.f32 %v2130_v5, %v1157_v20  ;;  %v1187_v29 = vld [vmem:[%s1850_s5 + $0x1a8] sm:$0xff]  ;;  %1094 = vst.msk [vmem:[%s1850_s5 + $0xd8] sm:$0xff] %vm264_vm0, %v1029_v14  ;;  %1126 = vst.msk [vmem:[%s1850_s5 + $0x1d8] sm:$0xff] %vm264_vm0, %v1061_v15  ;;  %v1289_v30 = vmax.f32 %v1225_v18, 0.0  ;;  %v1226_v32 = vadd.f32 %v2130_v5, %v1155_v28 }
 0x132   : > { %v1323_v25 = vmax.f32 %v1259_v11, 0.0  ;;  %v1260_v27 = vadd.f32 %v2130_v5, %v1189_v21  ;;  %v1321_v31 = vmax.f32 %v1257_v19, 0.0  ;;  %v1258_v33 = vadd.f32 %v2130_v5, %v1187_v29  ;;  %1092 = vst.msk [vmem:[%s1850_s5 + $0xc8] sm:$0xff] %vm264_vm0, %v1027_v22  ;;  %1124 = vst.msk [vmem:[%s1850_s5 + $0x1c8] sm:$0xff] %vm264_vm0, %v1059_v23  ;;  %v359_v34 = vld [vmem:[%s1850_s5 + $0xf0] sm:$0xff]  ;;  %v357_v38 = vld [vmem:[%s1850_s5 + $0xe0] sm:$0xff] }
 0x133   : > { %v391_v35 = vld [vmem:[%s1850_s5 + $0x1f0] sm:$0xff]  ;;  %1355 = vst.msk [vmem:[%s1850_s5 + $0xb0] sm:$0xff] %vm264_vm0, %v1291_v24  ;;  %v1292_v36 = vmax.f32 %v1228_v26, 0.0  ;;  %v389_v39 = vld [vmem:[%s1850_s5 + $0x1e0] sm:$0xff]  ;;  %1353 = vst.msk [vmem:[%s1850_s5 + $0xa0] sm:$0xff] %vm264_vm0, %v1289_v30  ;;  %v1290_v40 = vmax.f32 %v1226_v32, 0.0 }
 0x134   : > { %1387 = vst.msk [vmem:[%s1850_s5 + $0x1b0] sm:$0xff] %vm264_vm0, %v1323_v25  ;;  %v1324_v37 = vmax.f32 %v1260_v27, 0.0  ;;  %1385 = vst.msk [vmem:[%s1850_s5 + $0x1a0] sm:$0xff] %vm264_vm0, %v1321_v31  ;;  %v1322_v41 = vmax.f32 %v1258_v33, 0.0  ;;  %v1648_v42 = vpop.f32.mrb[28].mxu0  ;;  %v1680_v43 = vpop.f32.mrb[28].mxu1 }
 0x135   : > { %v360_v44 = vld [vmem:[%s1850_s5 + $0xf8] sm:$0xff]  ;;  %1356 = vst.msk [vmem:[%s1850_s5 + $0xb8] sm:$0xff] %vm264_vm0, %v1292_v36  ;;  %v1032_v46 = vadd.f32 %v1648_v42, %v359_v34  ;;  %v1064_v47 = vadd.f32 %v1680_v43, %v391_v35  ;;  %v859_v48 = vpop.f32.mrb[29].mxu0  ;;  %v987_v49 = vpop.f32.mrb[29].mxu1  ;;  %v358_v50 = vld [vmem:[%s1850_s5 + $0xe8] sm:$0xff]  ;;  %1354 = vst.msk [vmem:[%s1850_s5 + $0xa8] sm:$0xff] %vm264_vm0, %v1290_v40 }
 0x136   : > { %v392_v45 = vld [vmem:[%s1850_s5 + $0x1f8] sm:$0xff]  ;;  %1388 = vst.msk [vmem:[%s1850_s5 + $0x1b8] sm:$0xff] %vm264_vm0, %v1324_v37  ;;  %v390_v51 = vld [vmem:[%s1850_s5 + $0x1e8] sm:$0xff]  ;;  %1386 = vst.msk [vmem:[%s1850_s5 + $0x1a8] sm:$0xff] %vm264_vm0, %v1322_v41  ;;  %v1030_v54 = vadd.f32 %v859_v48, %v357_v38  ;;  %v1062_v55 = vadd.f32 %v987_v49, %v389_v39  ;;  %v1649_v56 = vpop.f32.mrb[30].mxu0  ;;  %v1681_v57 = vpop.f32.mrb[30].mxu1 }
 0x137   : > { %v1160_v52 = vld [vmem:[%s1850_s5 + $0xd0] sm:$0xff]  ;;  %v1158_v60 = vld [vmem:[%s1850_s5 + $0xc0] sm:$0xff]  ;;  %1097 = vst.msk [vmem:[%s1850_s5 + $0xf0] sm:$0xff] %vm264_vm0, %v1032_v46  ;;  %1129 = vst.msk [vmem:[%s1850_s5 + $0x1f0] sm:$0xff] %vm264_vm0, %v1064_v47  ;;  %v1033_v62 = vadd.f32 %v1649_v56, %v360_v44  ;;  %v1065_v63 = vadd.f32 %v1681_v57, %v392_v45  ;;  %v862_v0 = vpop.f32.mrb[31].mxu0  ;;  %v990_v1 = vpop.f32.mrb[31].mxu1 }
 0x138   : > { %v1192_v53 = vld [vmem:[%s1850_s5 + $0x1d0] sm:$0xff]  ;;  %v1231_v58 = vadd.f32 %v2130_v5, %v1160_v52  ;;  %v1190_v61 = vld [vmem:[%s1850_s5 + $0x1c0] sm:$0xff]  ;;  %v1229_v2 = vadd.f32 %v2130_v5, %v1158_v60  ;;  %v1161_v4 = vld [vmem:[%s1850_s5 + $0xd8] sm:$0xff]  ;;  %1095 = vst.msk [vmem:[%s1850_s5 + $0xe0] sm:$0xff] %vm264_vm0, %v1030_v54  ;;  %v1031_v7 = vadd.f32 %v862_v0, %v358_v50  ;;  %v1063_v8 = vadd.f32 %v990_v1, %v390_v51 }
 0x139   : > { %v1263_v59 = vadd.f32 %v2130_v5, %v1192_v53  ;;  %v1261_v3 = vadd.f32 %v2130_v5, %v1190_v61  ;;  %v1193_v6 = vld [vmem:[%s1850_s5 + $0x1d8] sm:$0xff]  ;;  %1127 = vst.msk [vmem:[%s1850_s5 + $0x1e0] sm:$0xff] %vm264_vm0, %v1062_v55  ;;  %v1232_v11 = vadd.f32 %v2130_v5, %v1161_v4  ;;  %v1159_v13 = vld [vmem:[%s1850_s5 + $0xc8] sm:$0xff]  ;;  %1098 = vst.msk [vmem:[%s1850_s5 + $0xf8] sm:$0xff] %vm264_vm0, %v1033_v62 }
 0x13a   : > { %v1295_v9 = vmax.f32 %v1231_v58, 0.0  ;;  %v1264_v12 = vadd.f32 %v2130_v5, %v1193_v6  ;;  %v1191_v14 = vld [vmem:[%s1850_s5 + $0x1c8] sm:$0xff]  ;;  %1130 = vst.msk [vmem:[%s1850_s5 + $0x1f8] sm:$0xff] %vm264_vm0, %v1065_v63  ;;  %v1293_v15 = vmax.f32 %v1229_v2, 0.0  ;;  %v1230_v17 = vadd.f32 %v2130_v5, %v1159_v13  ;;  %1096 = vst.msk [vmem:[%s1850_s5 + $0xe8] sm:$0xff] %vm264_vm0, %v1031_v7 }
 0x13b   : > { %v1327_v10 = vmax.f32 %v1263_v59, 0.0  ;;  %v1325_v16 = vmax.f32 %v1261_v3, 0.0  ;;  %v1262_v18 = vadd.f32 %v2130_v5, %v1191_v14  ;;  %1128 = vst.msk [vmem:[%s1850_s5 + $0x1e8] sm:$0xff] %vm264_vm0, %v1063_v8  ;;  %v1296_v19 = vmax.f32 %v1232_v11, 0.0 }
 0x13c   : > { %1359 = vst.msk [vmem:[%s1850_s5 + $0xd0] sm:$0xff] %vm264_vm0, %v1295_v9  ;;  %v1328_v20 = vmax.f32 %v1264_v12, 0.0  ;;  %1357 = vst.msk [vmem:[%s1850_s5 + $0xc0] sm:$0xff] %vm264_vm0, %v1293_v15  ;;  %v1294_v21 = vmax.f32 %v1230_v17, 0.0 }
 0x13d   : > { %1391 = vst.msk [vmem:[%s1850_s5 + $0x1d0] sm:$0xff] %vm264_vm0, %v1327_v10  ;;  %1389 = vst.msk [vmem:[%s1850_s5 + $0x1c0] sm:$0xff] %vm264_vm0, %v1325_v16  ;;  %v1326_v22 = vmax.f32 %v1262_v18, 0.0 }
 0x13e   : > { %1360 = vst.msk [vmem:[%s1850_s5 + $0xd8] sm:$0xff] %vm264_vm0, %v1296_v19  ;;  %1392 = vst.msk [vmem:[%s1850_s5 + $0x1d8] sm:$0xff] %vm264_vm0, %v1328_v20  ;;  %v1164_v23 = vld [vmem:[%s1850_s5 + $0xf0] sm:$0xff] }
 0x13f   : > { %1358 = vst.msk [vmem:[%s1850_s5 + $0xc8] sm:$0xff] %vm264_vm0, %v1294_v21  ;;  %1390 = vst.msk [vmem:[%s1850_s5 + $0x1c8] sm:$0xff] %vm264_vm0, %v1326_v22  ;;  %v1196_v24 = vld [vmem:[%s1850_s5 + $0x1f0] sm:$0xff]  ;;  %v1235_v25 = vadd.f32 %v2130_v5, %v1164_v23  ;;  %v1162_v27 = vld [vmem:[%s1850_s5 + $0xe0] sm:$0xff] }
 0x140   : > { %v1267_v26 = vadd.f32 %v2130_v5, %v1196_v24  ;;  %v1194_v28 = vld [vmem:[%s1850_s5 + $0x1e0] sm:$0xff]  ;;  %v1233_v29 = vadd.f32 %v2130_v5, %v1162_v27  ;;  %v1165_v31 = vld [vmem:[%s1850_s5 + $0xf8] sm:$0xff] }
 0x141   : > { %v1265_v30 = vadd.f32 %v2130_v5, %v1194_v28  ;;  %v1197_v32 = vld [vmem:[%s1850_s5 + $0x1f8] sm:$0xff]  ;;  %v1299_v33 = vmax.f32 %v1235_v25, 0.0  ;;  %v1236_v35 = vadd.f32 %v2130_v5, %v1165_v31  ;;  %v1163_v37 = vld [vmem:[%s1850_s5 + $0xe8] sm:$0xff] }
 0x142   : > { %v1331_v34 = vmax.f32 %v1267_v26, 0.0  ;;  %v1268_v36 = vadd.f32 %v2130_v5, %v1197_v32  ;;  %v1195_v38 = vld [vmem:[%s1850_s5 + $0x1e8] sm:$0xff]  ;;  %v1297_v39 = vmax.f32 %v1233_v29, 0.0  ;;  %v1234_v41 = vadd.f32 %v2130_v5, %v1163_v37 }
 0x143   : > { %v1329_v40 = vmax.f32 %v1265_v30, 0.0  ;;  %v1266_v42 = vadd.f32 %v2130_v5, %v1195_v38  ;;  %1363 = vst.msk [vmem:[%s1850_s5 + $0xf0] sm:$0xff] %vm264_vm0, %v1299_v33  ;;  %v1300_v43 = vmax.f32 %v1236_v35, 0.0 }
 0x144   : > { %1395 = vst.msk [vmem:[%s1850_s5 + $0x1f0] sm:$0xff] %vm264_vm0, %v1331_v34  ;;  %v1332_v44 = vmax.f32 %v1268_v36, 0.0  ;;  %1361 = vst.msk [vmem:[%s1850_s5 + $0xe0] sm:$0xff] %vm264_vm0, %v1297_v39  ;;  %v1298_v45 = vmax.f32 %v1234_v41, 0.0 }
 0x145   : > { %1393 = vst.msk [vmem:[%s1850_s5 + $0x1e0] sm:$0xff] %vm264_vm0, %v1329_v40  ;;  %v1330_v46 = vmax.f32 %v1266_v42, 0.0  ;;  %1364 = vst.msk [vmem:[%s1850_s5 + $0xf8] sm:$0xff] %vm264_vm0, %v1300_v43 }
 0x146   : > { %1396 = vst.msk [vmem:[%s1850_s5 + $0x1f8] sm:$0xff] %vm264_vm0, %v1332_v44  ;;  %1362 = vst.msk [vmem:[%s1850_s5 + $0xe8] sm:$0xff] %vm264_vm0, %v1298_v45 }
 0x147   : > { %1394 = vst.msk [vmem:[%s1850_s5 + $0x1e8] sm:$0xff] %vm264_vm0, %v1330_v46 }
 0x148 PF: > { %s13_s14 = sadd.s32 1, %s1785_s14   ;;  %s2565_s12 = smov %s1781_s13 }
 0x149   : > { %p10_p5 = scmp.ge.s32.totalorder %s13_s14, 18   ;;  %s2566_s13 = smov %s2568_s15 }
 0x14b   :  { %12 = sbr.rel (!%p10_p5) target bundleno = 2 (0x2), region = 76 }

// kernel: cnn_forward.9
= control target key start
LH: loop header
LB: loop body
LE: loop exit
PB: predicated region body
PF: predicated region fallthrough
CT: control target
= control target key end

     0   :  { %s1454_s6 = smov 0   ;;  %s2595_s0 = inlined_call_operand.vmem [shape: f32[2,31,2,31,128], index: 0, kind: input, shape index: {}]   ;;  %s2596_s1 = inlined_call_operand.vmem [shape: f32[2,31,31,64], index: 1, kind: output, shape index: {}]  }
   0x1 LB: > { %s1291_s7 = sadd.s32 4294967295, %s1441_s6   ;;  %p1295_p0 = scmp.ge.s32.totalorder %s1441_s6, 1  ;;  %s1441_s6 = sphi %s1454_s6, %s11_s6  }
   0x2   : > { %p87_p1 = scmp.lt.s32.totalorder %s1441_s6, 3 }
   0x4   : > { %p88_p2 = pnand %p1295_p0, %p87_p1 }
   0x6   : > { %91 = sbr.rel (%p88_p2) target bundleno = 386 (0x182), region = 24 }
   0xd   : > { %p107_p3 = scmp.lt.s32.totalorder %s1291_s7, 1  ;;  %s1443_s12 = smov 64   ;;  %vm1110_vm0 = vcmask 523264   ;;  %vm1114_vm1 = vcmask 522240  }
   0xf   : > { %s2643_s7 = smov (!%p107_p3, %s1291_s7), 1 }
  0x10   : > { %s1424_s8 = smul.u32 1984, %s2643_s7 }
  0x11   : > { %s1425_s13 = smul.u32 992, %s2643_s7 }
  0x12   : > { %s1468_s11 = scalar_lea.vmem %s2595_s0, %s1424_s8 }
  0x13   : > { %v119_v0 = vld [vmem:[%s1468_s11 + $0x10] sm:$0xff]  ;;  %v117_v2 = vld [vmem:[%s1468_s11] sm:$0xff]  ;;  %v120_v5 = vld [vmem:[%s1468_s11 + $0x18] sm:$0x7f]  ;;  %s1832_s16 = scalar_lea.vmem %s2596_s1, %s1425_s13 }
  0x14   : > { %v1300_v1 = vld [vmem:[%s1468_s11 + $0x30] sm:$0xff]  ;;  %v1298_v4 = vld [vmem:[%s1468_s11 + $0x20] sm:$0xff]  ;;  %v1301_v6 = vld [vmem:[%s1468_s11 + $0x38] sm:$0x7f] }
  0x15   : > { %v1473_v3 = vmax.f32 %v119_v0, %v1300_v1  ;;  %v1478_v7 = vmax.f32 %v117_v2, %v1298_v4  ;;  %v118_v8 = vld [vmem:[%s1468_s11 + $0x8] sm:$0xff]  ;;  %v1484_v10 = vmax.f32 %v120_v5, %v1301_v6  ;;  %v121_v14 = vld [vmem:[%s1468_s11 + $0x40] sm:$0xff]  ;;  %v124_v18 = vld [vmem:[%s1468_s11 + $0x58] sm:$0x7f] }
  0x16   : > { %v1299_v9 = vld [vmem:[%s1468_s11 + $0x28] sm:$0xff]  ;;  %v1302_v15 = vld [vmem:[%s1468_s11 + $0x60] sm:$0xff]  ;;  %v1305_v19 = vld [vmem:[%s1468_s11 + $0x78] sm:$0x7f] }
  0x17   : > { %618 = vrot.lane.b32.xlu1 %v1473_v3, %s1443_s12  ;;  %614 = vrot.lane.b32.xlu0 %v1478_v7, %s1443_s12  ;;  %v1488_v11 = vmax.f32 %v118_v8, %v1299_v9  ;;  %v122_v12 = vld [vmem:[%s1468_s11 + $0x48] sm:$0xff]  ;;  %v1500_v17 = vmax.f32 %v121_v14, %v1302_v15  ;;  %v123_v20 = vld [vmem:[%s1468_s11 + $0x50] sm:$0xff]  ;;  %v1508_v22 = vmax.f32 %v124_v18, %v1305_v19 }
  0x18   : > { %v1303_v13 = vld [vmem:[%s1468_s11 + $0x68] sm:$0xff]  ;;  %v1304_v21 = vld [vmem:[%s1468_s11 + $0x70] sm:$0xff]  ;;  %v125_v26 = vld [vmem:[%s1468_s11 + $0x80] sm:$0xff] }
  0x19   : > { %v1496_v16 = vmax.f32 %v122_v12, %v1303_v13  ;;  %v1512_v23 = vmax.f32 %v123_v20, %v1304_v21  ;;  %v126_v24 = vld [vmem:[%s1468_s11 + $0x88] sm:$0xff]  ;;  %v1306_v27 = vld [vmem:[%s1468_s11 + $0xa0] sm:$0xff]  ;;  %v128_v30 = vld [vmem:[%s1468_s11 + $0x98] sm:$0x7f] }
  0x1a   : > { %v1307_v25 = vld [vmem:[%s1468_s11 + $0xa8] sm:$0xff]  ;;  %v1524_v29 = vmax.f32 %v125_v26, %v1306_v27  ;;  %v1309_v31 = vld [vmem:[%s1468_s11 + $0xb8] sm:$0x7f]  ;;  %v127_v32 = vld [vmem:[%s1468_s11 + $0x90] sm:$0xff] }
  0x1b   : > { %620 = vrot.lane.b32.xlu1 %v1484_v10, %s1443_s12  ;;  %616 = vrot.lane.b32.xlu0 %v1488_v11, %s1443_s12  ;;  %v1520_v28 = vmax.f32 %v126_v24, %v1307_v25  ;;  %v1308_v33 = vld [vmem:[%s1468_s11 + $0xb0] sm:$0xff]  ;;  %v1532_v34 = vmax.f32 %v128_v30, %v1309_v31  ;;  %v130_v36 = vld [vmem:[%s1468_s11 + $0xc8] sm:$0xff] }
  0x1c   : > { %v1536_v35 = vmax.f32 %v127_v32, %v1308_v33  ;;  %v1311_v37 = vld [vmem:[%s1468_s11 + $0xe8] sm:$0xff]  ;;  %v129_v38 = vld [vmem:[%s1468_s11 + $0xc0] sm:$0xff]  ;;  %v132_v42 = vld [vmem:[%s1468_s11 + $0xd8] sm:$0x7f] }
  0x1d   : > { %v1310_v39 = vld [vmem:[%s1468_s11 + $0xe0] sm:$0xff]  ;;  %v1544_v40 = vmax.f32 %v130_v36, %v1311_v37  ;;  %v1313_v43 = vld [vmem:[%s1468_s11 + $0xf8] sm:$0x7f]  ;;  %v131_v44 = vld [vmem:[%s1468_s11 + $0xd0] sm:$0xff] }
  0x1e   : > { %v1548_v41 = vmax.f32 %v129_v38, %v1310_v39  ;;  %v1312_v45 = vld [vmem:[%s1468_s11 + $0xf0] sm:$0xff]  ;;  %v1556_v46 = vmax.f32 %v132_v42, %v1313_v43  ;;  %v134_v48 = vld [vmem:[%s1468_s11 + $0x108] sm:$0xff]  ;;  %v133_v50 = vld [vmem:[%s1468_s11 + $0x100] sm:$0xff] }
  0x1f   : > { %624 = vrot.lane.b32.xlu1 %v1496_v16, %s1443_s12  ;;  %622 = vrot.lane.b32.xlu0 %v1500_v17, %s1443_s12  ;;  %v1560_v47 = vmax.f32 %v131_v44, %v1312_v45  ;;  %v1315_v49 = vld [vmem:[%s1468_s11 + $0x128] sm:$0xff]  ;;  %v1314_v51 = vld [vmem:[%s1468_s11 + $0x120] sm:$0xff] }
  0x20   : > { %v1568_v52 = vmax.f32 %v134_v48, %v1315_v49  ;;  %v1572_v53 = vmax.f32 %v133_v50, %v1314_v51  ;;  %v136_v54 = vld [vmem:[%s1468_s11 + $0x118] sm:$0x7f]  ;;  %v135_v56 = vld [vmem:[%s1468_s11 + $0x110] sm:$0xff]  ;;  %v138_v60 = vld [vmem:[%s1468_s11 + $0x148] sm:$0xff] }
  0x21   : > { %v1317_v55 = vld [vmem:[%s1468_s11 + $0x138] sm:$0x7f]  ;;  %v1316_v57 = vld [vmem:[%s1468_s11 + $0x130] sm:$0xff]  ;;  %v1319_v61 = vld [vmem:[%s1468_s11 + $0x168] sm:$0xff] }
  0x22   : > { %v1580_v58 = vmax.f32 %v136_v54, %v1317_v55  ;;  %v1584_v59 = vmax.f32 %v135_v56, %v1316_v57  ;;  %v137_v62 = vld [vmem:[%s1468_s11 + $0x140] sm:$0xff]  ;;  %v1592_v0 = vmax.f32 %v138_v60, %v1319_v61  ;;  %v140_v2 = vld [vmem:[%s1468_s11 + $0x158] sm:$0x7f]  ;;  %v139_v5 = vld [vmem:[%s1468_s11 + $0x150] sm:$0xff] }
  0x23   : > { %628 = vrot.lane.b32.xlu1 %v1508_v22, %s1443_s12  ;;  %626 = vrot.lane.b32.xlu0 %v1512_v23, %s1443_s12  ;;  %v1318_v63 = vld [vmem:[%s1468_s11 + $0x160] sm:$0xff]  ;;  %v1321_v4 = vld [vmem:[%s1468_s11 + $0x178] sm:$0x7f] }
  0x24   : > { %v1596_v1 = vmax.f32 %v137_v62, %v1318_v63  ;;  %v1320_v6 = vld [vmem:[%s1468_s11 + $0x170] sm:$0xff]  ;;  %v1604_v8 = vmax.f32 %v140_v2, %v1321_v4  ;;  %v142_v12 = vld [vmem:[%s1468_s11 + $0x188] sm:$0xff]  ;;  %v141_v14 = vld [vmem:[%s1468_s11 + $0x180] sm:$0xff] }
  0x25   : > { %v1608_v9 = vmax.f32 %v139_v5, %v1320_v6  ;;  %v1323_v13 = vld [vmem:[%s1468_s11 + $0x1a8] sm:$0xff]  ;;  %v1322_v15 = vld [vmem:[%s1468_s11 + $0x1a0] sm:$0xff]  ;;  %v144_v20 = vld [vmem:[%s1468_s11 + $0x198] sm:$0x7f] }
  0x26   : > { %v1616_v18 = vmax.f32 %v142_v12, %v1323_v13  ;;  %v1620_v19 = vmax.f32 %v141_v14, %v1322_v15  ;;  %v1325_v21 = vld [vmem:[%s1468_s11 + $0x1b8] sm:$0x7f]  ;;  %v143_v24 = vld [vmem:[%s1468_s11 + $0x190] sm:$0xff]  ;;  %v146_v30 = vld [vmem:[%s1468_s11 + $0x1c8] sm:$0xff] }
  0x27   : > { %632 = vrot.lane.b32.xlu1 %v1520_v28, %s1443_s12  ;;  %630 = vrot.lane.b32.xlu0 %v1524_v29, %s1443_s12  ;;  %v1324_v25 = vld [vmem:[%s1468_s11 + $0x1b0] sm:$0xff]  ;;  %v1628_v26 = vmax.f32 %v144_v20, %v1325_v21  ;;  %v1327_v31 = vld [vmem:[%s1468_s11 + $0x1e8] sm:$0xff] }
  0x28   : > { %v1632_v27 = vmax.f32 %v143_v24, %v1324_v25  ;;  %v145_v32 = vld [vmem:[%s1468_s11 + $0x1c0] sm:$0xff]  ;;  %v1640_v36 = vmax.f32 %v146_v30, %v1327_v31  ;;  %v148_v38 = vld [vmem:[%s1468_s11 + $0x1d8] sm:$0x7f]  ;;  %v147_v42 = vld [vmem:[%s1468_s11 + $0x1d0] sm:$0xff] }
  0x29   : > { %v1326_v33 = vld [vmem:[%s1468_s11 + $0x1e0] sm:$0xff]  ;;  %v1329_v39 = vld [vmem:[%s1468_s11 + $0x1f8] sm:$0x7f]  ;;  %v1328_v43 = vld [vmem:[%s1468_s11 + $0x1f0] sm:$0xff] }
  0x2a   : > { %v1644_v37 = vmax.f32 %v145_v32, %v1326_v33  ;;  %v1652_v44 = vmax.f32 %v148_v38, %v1329_v39  ;;  %v1656_v45 = vmax.f32 %v147_v42, %v1328_v43  ;;  %v150_v48 = vld [vmem:[%s1468_s11 + $0x208] sm:$0xff]  ;;  %v149_v50 = vld [vmem:[%s1468_s11 + $0x200] sm:$0xff]  ;;  %v152_v56 = vld [vmem:[%s1468_s11 + $0x218] sm:$0x7f] }
  0x2b   : > { %636 = vrot.lane.b32.xlu1 %v1532_v34, %s1443_s12  ;;  %634 = vrot.lane.b32.xlu0 %v1536_v35, %s1443_s12  ;;  %v1331_v49 = vld [vmem:[%s1468_s11 + $0x228] sm:$0xff]  ;;  %v1330_v51 = vld [vmem:[%s1468_s11 + $0x220] sm:$0xff] }
  0x2c   : > { %v1664_v54 = vmax.f32 %v150_v48, %v1331_v49  ;;  %v1668_v55 = vmax.f32 %v149_v50, %v1330_v51  ;;  %v1333_v57 = vld [vmem:[%s1468_s11 + $0x238] sm:$0x7f]  ;;  %v151_v60 = vld [vmem:[%s1468_s11 + $0x210] sm:$0xff]  ;;  %v154_v2 = vld [vmem:[%s1468_s11 + $0x248] sm:$0xff] }
  0x2d   : > { %v1332_v61 = vld [vmem:[%s1468_s11 + $0x230] sm:$0xff]  ;;  %v1676_v62 = vmax.f32 %v152_v56, %v1333_v57  ;;  %v1335_v4 = vld [vmem:[%s1468_s11 + $0x268] sm:$0xff]  ;;  %v153_v5 = vld [vmem:[%s1468_s11 + $0x240] sm:$0xff] }
  0x2e   : > { %v1680_v63 = vmax.f32 %v151_v60, %v1332_v61  ;;  %v1334_v6 = vld [vmem:[%s1468_s11 + $0x260] sm:$0xff]  ;;  %v1688_v12 = vmax.f32 %v154_v2, %v1335_v4  ;;  %v156_v14 = vld [vmem:[%s1468_s11 + $0x258] sm:$0x7f]  ;;  %v155_v20 = vld [vmem:[%s1468_s11 + $0x250] sm:$0xff] }
  0x2f   : > { %640 = vrot.lane.b32.xlu1 %v1544_v40, %s1443_s12  ;;  %638 = vrot.lane.b32.xlu0 %v1548_v41, %s1443_s12  ;;  %v1692_v13 = vmax.f32 %v153_v5, %v1334_v6  ;;  %v1337_v15 = vld [vmem:[%s1468_s11 + $0x278] sm:$0x7f]  ;;  %v1336_v21 = vld [vmem:[%s1468_s11 + $0x270] sm:$0xff] }
  0x30   : > { %v1700_v24 = vmax.f32 %v156_v14, %v1337_v15  ;;  %v1704_v25 = vmax.f32 %v155_v20, %v1336_v21  ;;  %v158_v30 = vld [vmem:[%s1468_s11 + $0x288] sm:$0xff]  ;;  %v157_v32 = vld [vmem:[%s1468_s11 + $0x280] sm:$0xff]  ;;  %v160_v42 = vld [vmem:[%s1468_s11 + $0x298] sm:$0x7f] }
  0x31   : > { %v1339_v31 = vld [vmem:[%s1468_s11 + $0x2a8] sm:$0xff]  ;;  %v1338_v33 = vld [vmem:[%s1468_s11 + $0x2a0] sm:$0xff]  ;;  %v1341_v43 = vld [vmem:[%s1468_s11 + $0x2b8] sm:$0x7f] }
  0x32   : > { %v1712_v38 = vmax.f32 %v158_v30, %v1339_v31  ;;  %v1716_v39 = vmax.f32 %v157_v32, %v1338_v33  ;;  %v159_v48 = vld [vmem:[%s1468_s11 + $0x290] sm:$0xff]  ;;  %v1724_v50 = vmax.f32 %v160_v42, %v1341_v43  ;;  %v162_v56 = vld [vmem:[%s1468_s11 + $0x2c8] sm:$0xff]  ;;  %v161_v60 = vld [vmem:[%s1468_s11 + $0x2c0] sm:$0xff] }
  0x33   : > { %644 = vrot.lane.b32.xlu1 %v1556_v46, %s1443_s12  ;;  %642 = vrot.lane.b32.xlu0 %v1560_v47, %s1443_s12  ;;  %v1340_v49 = vld [vmem:[%s1468_s11 + $0x2b0] sm:$0xff]  ;;  %v1343_v57 = vld [vmem:[%s1468_s11 + $0x2e8] sm:$0xff] }
  0x34   : > { %v1728_v51 = vmax.f32 %v159_v48, %v1340_v49  ;;  %v1342_v61 = vld [vmem:[%s1468_s11 + $0x2e0] sm:$0xff]  ;;  %v1736_v2 = vmax.f32 %v162_v56, %v1343_v57  ;;  %v164_v5 = vld [vmem:[%s1468_s11 + $0x2d8] sm:$0x7f]  ;;  %v163_v14 = vld [vmem:[%s1468_s11 + $0x2d0] sm:$0xff] }
  0x35   : > { %v1740_v4 = vmax.f32 %v161_v60, %v1342_v61  ;;  %v1345_v6 = vld [vmem:[%s1468_s11 + $0x2f8] sm:$0x7f]  ;;  %v1344_v15 = vld [vmem:[%s1468_s11 + $0x2f0] sm:$0xff]  ;;  %v166_v30 = vld [vmem:[%s1468_s11 + $0x308] sm:$0xff] }
  0x36   : > { %v1748_v20 = vmax.f32 %v164_v5, %v1345_v6  ;;  %v1752_v21 = vmax.f32 %v163_v14, %v1344_v15  ;;  %v1347_v31 = vld [vmem:[%s1468_s11 + $0x328] sm:$0xff]  ;;  %v165_v32 = vld [vmem:[%s1468_s11 + $0x300] sm:$0xff]  ;;  %v168_v48 = vld [vmem:[%s1468_s11 + $0x318] sm:$0x7f] }
  0x37   : > { %648 = vrot.lane.b32.xlu1 %v1568_v52, %s1443_s12  ;;  %646 = vrot.lane.b32.xlu0 %v1572_v53, %s1443_s12  ;;  %v1346_v33 = vld [vmem:[%s1468_s11 + $0x320] sm:$0xff]  ;;  %v1760_v42 = vmax.f32 %v166_v30, %v1347_v31  ;;  %v1349_v49 = vld [vmem:[%s1468_s11 + $0x338] sm:$0x7f] }
  0x38   : > { %v1764_v43 = vmax.f32 %v165_v32, %v1346_v33  ;;  %v167_v56 = vld [vmem:[%s1468_s11 + $0x310] sm:$0xff]  ;;  %v1772_v60 = vmax.f32 %v168_v48, %v1349_v49  ;;  %v170_v5 = vld [vmem:[%s1468_s11 + $0x348] sm:$0xff]  ;;  %v169_v14 = vld [vmem:[%s1468_s11 + $0x340] sm:$0xff] }
  0x39   : > { %v1348_v57 = vld [vmem:[%s1468_s11 + $0x330] sm:$0xff]  ;;  %v1351_v6 = vld [vmem:[%s1468_s11 + $0x368] sm:$0xff]  ;;  %v1350_v15 = vld [vmem:[%s1468_s11 + $0x360] sm:$0xff] }
  0x3a   : > { %v1776_v61 = vmax.f32 %v167_v56, %v1348_v57  ;;  %v1784_v30 = vmax.f32 %v170_v5, %v1351_v6  ;;  %v1788_v31 = vmax.f32 %v169_v14, %v1350_v15  ;;  %v172_v32 = vld [vmem:[%s1468_s11 + $0x358] sm:$0x7f]  ;;  %v171_v48 = vld [vmem:[%s1468_s11 + $0x350] sm:$0xff]  ;;  %v174_v5 = vld [vmem:[%s1468_s11 + $0x388] sm:$0xff] }
  0x3b   : > { %652 = vrot.lane.b32.xlu1 %v1580_v58, %s1443_s12  ;;  %650 = vrot.lane.b32.xlu0 %v1584_v59, %s1443_s12  ;;  %v1353_v33 = vld [vmem:[%s1468_s11 + $0x378] sm:$0x7f]  ;;  %v1352_v49 = vld [vmem:[%s1468_s11 + $0x370] sm:$0xff] }
  0x3c   : > { %2612 = vst [vmem:[#allocation2_spill] sm:$0xff] %v1776_v61  ;;  %2613 = vst [vmem:[#allocation3_spill] sm:$0xff] %v1784_v30  ;;  %v1796_v56 = vmax.f32 %v172_v32, %v1353_v33  ;;  %v1800_v57 = vmax.f32 %v171_v48, %v1352_v49  ;;  %v1355_v6 = vld [vmem:[%s1468_s11 + $0x3a8] sm:$0xff]  ;;  %v173_v14 = vld [vmem:[%s1468_s11 + $0x380] sm:$0xff] }
  0x3d   : > { %2614 = vst [vmem:[#allocation4_spill] sm:$0xff] %v1788_v31  ;;  %v1354_v15 = vld [vmem:[%s1468_s11 + $0x3a0] sm:$0xff]  ;;  %v176_v33 = vld [vmem:[%s1468_s11 + $0x398] sm:$0x7f]  ;;  %v175_v49 = vld [vmem:[%s1468_s11 + $0x390] sm:$0xff] }
  0x3e   : > { %2615 = vst [vmem:[#allocation5_spill] sm:$0xff] %v1796_v56  ;;  %2616 = vst [vmem:[#allocation6_spill] sm:$0xff] %v1800_v57  ;;  %v1812_v32 = vmax.f32 %v173_v14, %v1354_v15  ;;  %v1357_v48 = vld [vmem:[%s1468_s11 + $0x3b8] sm:$0x7f]  ;;  %v1359_v14 = vld [vmem:[%s1468_s11 + $0x3e8] sm:$0xff] }
  0x3f   : > { %656 = vrot.lane.b32.xlu1 %v1592_v0, %s1443_s12  ;;  %654 = vrot.lane.b32.xlu0 %v1596_v1, %s1443_s12 }
  0x40   : > { %2618 = vst [vmem:[#allocation8_spill] sm:$0xff] %v1812_v32 }
  0x43   : > { %660 = vrot.lane.b32.xlu1 %v1604_v8, %s1443_s12  ;;  %658 = vrot.lane.b32.xlu0 %v1608_v9, %s1443_s12 }
  0x47   : > { %664 = vrot.lane.b32.xlu1 %v1616_v18, %s1443_s12  ;;  %662 = vrot.lane.b32.xlu0 %v1620_v19, %s1443_s12 }
  0x4b   : > { %668 = vrot.lane.b32.xlu1 %v1628_v26, %s1443_s12  ;;  %666 = vrot.lane.b32.xlu0 %v1632_v27, %s1443_s12 }
  0x4f   : > { %672 = vrot.lane.b32.xlu1 %v1640_v36, %s1443_s12  ;;  %670 = vrot.lane.b32.xlu0 %v1644_v37, %s1443_s12 }
  0x53   : > { %676 = vrot.lane.b32.xlu1 %v1652_v44, %s1443_s12  ;;  %674 = vrot.lane.b32.xlu0 %v1656_v45, %s1443_s12 }
  0x57   : > { %680 = vrot.lane.b32.xlu1 %v1664_v54, %s1443_s12  ;;  %678 = vrot.lane.b32.xlu0 %v1668_v55, %s1443_s12 }
  0x5b   : > { %684 = vrot.lane.b32.xlu1 %v1676_v62, %s1443_s12  ;;  %682 = vrot.lane.b32.xlu0 %v1680_v63, %s1443_s12 }
  0x5f   : > { %688 = vrot.lane.b32.xlu1 %v1688_v12, %s1443_s12  ;;  %686 = vrot.lane.b32.xlu0 %v1692_v13, %s1443_s12 }
  0x63   : > { %692 = vrot.lane.b32.xlu1 %v1700_v24, %s1443_s12  ;;  %690 = vrot.lane.b32.xlu0 %v1704_v25, %s1443_s12 }
  0x67   : > { %696 = vrot.lane.b32.xlu1 %v1712_v38, %s1443_s12  ;;  %694 = vrot.lane.b32.xlu0 %v1716_v39, %s1443_s12 }
  0x6b   : > { %700 = vrot.lane.b32.xlu1 %v1724_v50, %s1443_s12  ;;  %698 = vrot.lane.b32.xlu0 %v1728_v51, %s1443_s12 }
  0x6f   : > { %704 = vrot.lane.b32.xlu1 %v1736_v2, %s1443_s12  ;;  %702 = vrot.lane.b32.xlu0 %v1740_v4, %s1443_s12 }
  0x73   : > { %708 = vrot.lane.b32.xlu1 %v1748_v20, %s1443_s12  ;;  %706 = vrot.lane.b32.xlu0 %v1752_v21, %s1443_s12 }
  0x77   : > { %712 = vrot.lane.b32.xlu1 %v1760_v42, %s1443_s12  ;;  %710 = vrot.lane.b32.xlu0 %v1764_v43, %s1443_s12 }
  0x7b   : > { %716 = vrot.lane.b32.xlu1 %v1772_v60, %s1443_s12  ;;  %714 = vrot.lane.b32.xlu0 %v1776_v61, %s1443_s12  ;;  %v1808_v61 = vmax.f32 %v174_v5, %v1355_v6  ;;  %v178_v6 = vld [vmem:[%s1468_s11 + $0x3c8] sm:$0xff] }
  0x7d   : > { %2617 = vst [vmem:[#allocation7_spill] sm:$0xff] %v1808_v61 }
  0x7f   : > { %720 = vrot.lane.b32.xlu1 %v1784_v30, %s1443_s12  ;;  %718 = vrot.lane.b32.xlu0 %v1788_v31, %s1443_s12  ;;  %v1356_v31 = vld [vmem:[%s1468_s11 + $0x3b0] sm:$0xff]  ;;  %v1821_v30 = vmax.f32 %v176_v33, %v1357_v48  ;;  %v177_v33 = vld [vmem:[%s1468_s11 + $0x3c0] sm:$0xff] }
  0x80   : > { %v1825_v5 = vmax.f32 %v175_v49, %v1356_v31  ;;  %v1358_v48 = vld [vmem:[%s1468_s11 + $0x3e0] sm:$0xff] }
  0x83   : > { %724 = vrot.lane.b32.xlu1 %v1796_v56, %s1443_s12  ;;  %722 = vrot.lane.b32.xlu0 %v1800_v57, %s1443_s12  ;;  %v1846_v57 = vmax.f32 %v177_v33, %v1358_v48  ;;  %v180_v56 = vld [vmem:[%s1468_s11 + $0x3d8] sm:$0x7f]  ;;  %v182_v48 = vld [vmem:[%s1468_s11 + $0x408] sm:$0xff] }
  0x87   : > { %728 = vrot.lane.b32.xlu1 %v1808_v61, %s1443_s12  ;;  %726 = vrot.lane.b32.xlu0 %v1812_v32, %s1443_s12  ;;  %v1840_v61 = vmax.f32 %v178_v6, %v1359_v14  ;;  %v179_v6 = vld [vmem:[%s1468_s11 + $0x3d0] sm:$0xff] }
  0x88   : > { %v1360_v14 = vld [vmem:[%s1468_s11 + $0x3f0] sm:$0xff] }
  0x89   : > { %v619_v15 = vpop.permute.xlu1 %618  ;;  %v615_v49 = vpop.permute.xlu0 %614 }
  0x8a   : > { %v988_v31 = vmax.f32 %v1473_v3, %v619_v15  ;;  %v986_v32 = vmax.f32 %v1478_v7, %v615_v49  ;;  %v1361_v3 = vld [vmem:[%s1468_s11 + $0x3f8] sm:$0x7f] }
  0x8b   : > { %732 = vrot.lane.b32.xlu1 %v1821_v30, %s1443_s12  ;;  %730 = vrot.lane.b32.xlu0 %v1825_v5, %s1443_s12  ;;  %v1858_v33 = vmax.f32 %v180_v56, %v1361_v3  ;;  %v1362_v56 = vld [vmem:[%s1468_s11 + $0x420] sm:$0xff] }
  0x8c   : > { %1113 = vst.msk [vmem:[%s1832_s16 + $0x10] sm:$0xff] %vm1110_vm0, %v988_v31  ;;  %1111 = vst.msk [vmem:[%s1832_s16] sm:$0xff] %vm1110_vm0, %v986_v32  ;;  %v1864_v32 = vmax.f32 %v179_v6, %v1360_v14 }
  0x8d   : > { %v621_v7 = vpop.permute.xlu1 %620  ;;  %v617_v31 = vpop.permute.xlu0 %616 }
  0x8e   : > { %v989_v15 = vmax.f32 %v1484_v10, %v621_v7  ;;  %v987_v49 = vmax.f32 %v1488_v11, %v617_v31  ;;  %v1363_v10 = vld [vmem:[%s1468_s11 + $0x428] sm:$0xff]  ;;  %v181_v7 = vld [vmem:[%s1468_s11 + $0x400] sm:$0xff] }
  0x8f   : > { %736 = vrot.lane.b32.xlu1 %v1840_v61, %s1443_s12  ;;  %734 = vrot.lane.b32.xlu0 %v1846_v57, %s1443_s12  ;;  %v1876_v6 = vmax.f32 %v182_v48, %v1363_v10  ;;  %v1882_v14 = vmax.f32 %v181_v7, %v1362_v56  ;;  %v1364_v48 = vld [vmem:[%s1468_s11 + $0x430] sm:$0xff] }
  0x90   : > { %1115 = vst.msk [vmem:[%s1832_s16 + $0x18] sm:$0x7f] %vm1114_vm1, %v989_v15 }
  0x91   : > { %1112 = vst.msk [vmem:[%s1832_s16 + $0x8] sm:$0xff] %vm1110_vm0, %v987_v49  ;;  %v625_v11 = vpop.permute.xlu1 %624  ;;  %v623_v15 = vpop.permute.xlu0 %622  ;;  %v184_v49 = vld [vmem:[%s1468_s11 + $0x418] sm:$0x7f] }
  0x92   : > { %v991_v3 = vmax.f32 %v1496_v16, %v625_v11  ;;  %v990_v31 = vmax.f32 %v1500_v17, %v623_v15  ;;  %v1365_v16 = vld [vmem:[%s1468_s11 + $0x438] sm:$0x7f]  ;;  %v183_v11 = vld [vmem:[%s1468_s11 + $0x410] sm:$0xff] }
  0x93   : > { %740 = vrot.lane.b32.xlu1 %v1858_v33, %s1443_s12  ;;  %738 = vrot.lane.b32.xlu0 %v1864_v32, %s1443_s12  ;;  %v1894_v7 = vmax.f32 %v184_v49, %v1365_v16  ;;  %v1900_v56 = vmax.f32 %v183_v11, %v1364_v48  ;;  %v1366_v49 = vld [vmem:[%s1468_s11 + $0x460] sm:$0xff] }
  0x94   : > { %1117 = vst.msk [vmem:[%s1832_s16 + $0x28] sm:$0xff] %vm1110_vm0, %v991_v3  ;;  %1116 = vst.msk [vmem:[%s1832_s16 + $0x20] sm:$0xff] %vm1110_vm0, %v990_v31  ;;  %v186_v31 = vld [vmem:[%s1468_s11 + $0x448] sm:$0xff] }
  0x95   : > { %v629_v17 = vpop.permute.xlu1 %628  ;;  %v627_v3 = vpop.permute.xlu0 %626 }
  0x96   : > { %v993_v10 = vmax.f32 %v1508_v22, %v629_v17  ;;  %v992_v15 = vmax.f32 %v1512_v23, %v627_v3  ;;  %v1367_v22 = vld [vmem:[%s1468_s11 + $0x468] sm:$0xff]  ;;  %v185_v17 = vld [vmem:[%s1468_s11 + $0x440] sm:$0xff] }
  0x97   : > { %744 = vrot.lane.b32.xlu1 %v1876_v6, %s1443_s12  ;;  %742 = vrot.lane.b32.xlu0 %v1882_v14, %s1443_s12  ;;  %v1912_v11 = vmax.f32 %v186_v31, %v1367_v22  ;;  %v1918_v48 = vmax.f32 %v185_v17, %v1366_v49  ;;  %v1368_v31 = vld [vmem:[%s1468_s11 + $0x470] sm:$0xff] }
  0x98   : > { %1119 = vst.msk [vmem:[%s1832_s16 + $0x38] sm:$0x7f] %vm1114_vm1, %v993_v10 }
  0x99   : > { %1118 = vst.msk [vmem:[%s1832_s16 + $0x30] sm:$0xff] %vm1110_vm0, %v992_v15  ;;  %v633_v23 = vpop.permute.xlu1 %632  ;;  %v631_v10 = vpop.permute.xlu0 %630  ;;  %v188_v15 = vld [vmem:[%s1468_s11 + $0x458] sm:$0x7f] }
  0x9a   : > { %v995_v16 = vmax.f32 %v1520_v28, %v633_v23  ;;  %v994_v3 = vmax.f32 %v1524_v29, %v631_v10  ;;  %v1369_v28 = vld [vmem:[%s1468_s11 + $0x478] sm:$0x7f]  ;;  %v187_v23 = vld [vmem:[%s1468_s11 + $0x450] sm:$0xff] }
  0x9b   : > { %748 = vrot.lane.b32.xlu1 %v1894_v7, %s1443_s12  ;;  %746 = vrot.lane.b32.xlu0 %v1900_v56, %s1443_s12  ;;  %v1930_v17 = vmax.f32 %v188_v15, %v1369_v28  ;;  %v1936_v49 = vmax.f32 %v187_v23, %v1368_v31  ;;  %v1370_v15 = vld [vmem:[%s1468_s11 + $0x4a0] sm:$0xff] }
  0x9c   : > { %1121 = vst.msk [vmem:[%s1832_s16 + $0x48] sm:$0xff] %vm1110_vm0, %v995_v16  ;;  %1120 = vst.msk [vmem:[%s1832_s16 + $0x40] sm:$0xff] %vm1110_vm0, %v994_v3  ;;  %v190_v3 = vld [vmem:[%s1468_s11 + $0x488] sm:$0xff] }
  0x9d   : > { %v637_v29 = vpop.permute.xlu1 %636  ;;  %v635_v16 = vpop.permute.xlu0 %634 }
  0x9e   : > { %v997_v22 = vmax.f32 %v1532_v34, %v637_v29  ;;  %v996_v10 = vmax.f32 %v1536_v35, %v635_v16  ;;  %v1371_v34 = vld [vmem:[%s1468_s11 + $0x4a8] sm:$0xff]  ;;  %v189_v29 = vld [vmem:[%s1468_s11 + $0x480] sm:$0xff] }
  0x9f   : > { %752 = vrot.lane.b32.xlu1 %v1912_v11, %s1443_s12  ;;  %750 = vrot.lane.b32.xlu0 %v1918_v48, %s1443_s12  ;;  %v1948_v23 = vmax.f32 %v190_v3, %v1371_v34  ;;  %v1954_v31 = vmax.f32 %v189_v29, %v1370_v15  ;;  %v1372_v3 = vld [vmem:[%s1468_s11 + $0x4b0] sm:$0xff] }
  0xa0   : > { %1123 = vst.msk [vmem:[%s1832_s16 + $0x58] sm:$0x7f] %vm1114_vm1, %v997_v22 }
  0xa1   : > { %1122 = vst.msk [vmem:[%s1832_s16 + $0x50] sm:$0xff] %vm1110_vm0, %v996_v10  ;;  %v641_v35 = vpop.permute.xlu1 %640  ;;  %v639_v22 = vpop.permute.xlu0 %638  ;;  %v192_v10 = vld [vmem:[%s1468_s11 + $0x498] sm:$0x7f] }
  0xa2   : > { %v999_v28 = vmax.f32 %v1544_v40, %v641_v35  ;;  %v998_v16 = vmax.f32 %v1548_v41, %v639_v22  ;;  %v1373_v40 = vld [vmem:[%s1468_s11 + $0x4b8] sm:$0x7f]  ;;  %v191_v35 = vld [vmem:[%s1468_s11 + $0x490] sm:$0xff] }
  0xa3   : > { %756 = vrot.lane.b32.xlu1 %v1930_v17, %s1443_s12  ;;  %754 = vrot.lane.b32.xlu0 %v1936_v49, %s1443_s12  ;;  %v1966_v29 = vmax.f32 %v192_v10, %v1373_v40  ;;  %v1972_v15 = vmax.f32 %v191_v35, %v1372_v3  ;;  %v1374_v10 = vld [vmem:[%s1468_s11 + $0x4e0] sm:$0xff] }
  0xa4   : > { %1125 = vst.msk [vmem:[%s1832_s16 + $0x68] sm:$0xff] %vm1110_vm0, %v999_v28  ;;  %1124 = vst.msk [vmem:[%s1832_s16 + $0x60] sm:$0xff] %vm1110_vm0, %v998_v16  ;;  %v194_v16 = vld [vmem:[%s1468_s11 + $0x4c8] sm:$0xff] }
  0xa5   : > { %v645_v41 = vpop.permute.xlu1 %644  ;;  %v643_v28 = vpop.permute.xlu0 %642 }
  0xa6   : > { %v1001_v34 = vmax.f32 %v1556_v46, %v645_v41  ;;  %v1000_v22 = vmax.f32 %v1560_v47, %v643_v28  ;;  %v1375_v46 = vld [vmem:[%s1468_s11 + $0x4e8] sm:$0xff]  ;;  %v193_v41 = vld [vmem:[%s1468_s11 + $0x4c0] sm:$0xff] }
  0xa7   : > { %760 = vrot.lane.b32.xlu1 %v1948_v23, %s1443_s12  ;;  %758 = vrot.lane.b32.xlu0 %v1954_v31, %s1443_s12  ;;  %v1984_v35 = vmax.f32 %v194_v16, %v1375_v46  ;;  %v1990_v3 = vmax.f32 %v193_v41, %v1374_v10  ;;  %v1376_v16 = vld [vmem:[%s1468_s11 + $0x4f0] sm:$0xff] }
  0xa8   : > { %1127 = vst.msk [vmem:[%s1832_s16 + $0x78] sm:$0x7f] %vm1114_vm1, %v1001_v34 }
  0xa9   : > { %1126 = vst.msk [vmem:[%s1832_s16 + $0x70] sm:$0xff] %vm1110_vm0, %v1000_v22  ;;  %v649_v47 = vpop.permute.xlu1 %648  ;;  %v647_v34 = vpop.permute.xlu0 %646  ;;  %v196_v22 = vld [vmem:[%s1468_s11 + $0x4d8] sm:$0x7f] }
  0xaa   : > { %v1003_v40 = vmax.f32 %v1568_v52, %v649_v47  ;;  %v1002_v28 = vmax.f32 %v1572_v53, %v647_v34  ;;  %v1377_v52 = vld [vmem:[%s1468_s11 + $0x4f8] sm:$0x7f]  ;;  %v195_v47 = vld [vmem:[%s1468_s11 + $0x4d0] sm:$0xff] }
  0xab   : > { %764 = vrot.lane.b32.xlu1 %v1966_v29, %s1443_s12  ;;  %762 = vrot.lane.b32.xlu0 %v1972_v15, %s1443_s12  ;;  %v2002_v41 = vmax.f32 %v196_v22, %v1377_v52  ;;  %v2008_v10 = vmax.f32 %v195_v47, %v1376_v16  ;;  %v1378_v22 = vld [vmem:[%s1468_s11 + $0x520] sm:$0xff] }
  0xac   : > { %1129 = vst.msk [vmem:[%s1832_s16 + $0x88] sm:$0xff] %vm1110_vm0, %v1003_v40  ;;  %1128 = vst.msk [vmem:[%s1832_s16 + $0x80] sm:$0xff] %vm1110_vm0, %v1002_v28  ;;  %v198_v28 = vld [vmem:[%s1468_s11 + $0x508] sm:$0xff] }
  0xad   : > { %v653_v53 = vpop.permute.xlu1 %652  ;;  %v651_v40 = vpop.permute.xlu0 %650 }
  0xae   : > { %v1005_v46 = vmax.f32 %v1580_v58, %v653_v53  ;;  %v1004_v34 = vmax.f32 %v1584_v59, %v651_v40  ;;  %v1379_v58 = vld [vmem:[%s1468_s11 + $0x528] sm:$0xff]  ;;  %v197_v53 = vld [vmem:[%s1468_s11 + $0x500] sm:$0xff] }
  0xaf   : > { %768 = vrot.lane.b32.xlu1 %v1984_v35, %s1443_s12  ;;  %766 = vrot.lane.b32.xlu0 %v1990_v3, %s1443_s12  ;;  %v2020_v47 = vmax.f32 %v198_v28, %v1379_v58  ;;  %v2026_v16 = vmax.f32 %v197_v53, %v1378_v22  ;;  %v1380_v28 = vld [vmem:[%s1468_s11 + $0x530] sm:$0xff] }
  0xb0   : > { %1131 = vst.msk [vmem:[%s1832_s16 + $0x98] sm:$0x7f] %vm1114_vm1, %v1005_v46 }
  0xb1   : > { %1130 = vst.msk [vmem:[%s1832_s16 + $0x90] sm:$0xff] %vm1110_vm0, %v1004_v34  ;;  %v657_v59 = vpop.permute.xlu1 %656  ;;  %v655_v46 = vpop.permute.xlu0 %654  ;;  %v200_v34 = vld [vmem:[%s1468_s11 + $0x518] sm:$0x7f] }
  0xb2   : > { %v1007_v52 = vmax.f32 %v1592_v0, %v657_v59  ;;  %v1006_v40 = vmax.f32 %v1596_v1, %v655_v46  ;;  %v1381_v0 = vld [vmem:[%s1468_s11 + $0x538] sm:$0x7f]  ;;  %v199_v59 = vld [vmem:[%s1468_s11 + $0x510] sm:$0xff] }
  0xb3   : > { %772 = vrot.lane.b32.xlu1 %v2002_v41, %s1443_s12  ;;  %770 = vrot.lane.b32.xlu0 %v2008_v10, %s1443_s12  ;;  %v2038_v53 = vmax.f32 %v200_v34, %v1381_v0  ;;  %v2044_v22 = vmax.f32 %v199_v59, %v1380_v28  ;;  %v1382_v34 = vld [vmem:[%s1468_s11 + $0x560] sm:$0xff] }
  0xb4   : > { %1133 = vst.msk [vmem:[%s1832_s16 + $0xa8] sm:$0xff] %vm1110_vm0, %v1007_v52  ;;  %1132 = vst.msk [vmem:[%s1832_s16 + $0xa0] sm:$0xff] %vm1110_vm0, %v1006_v40  ;;  %v202_v40 = vld [vmem:[%s1468_s11 + $0x548] sm:$0xff] }
  0xb5   : > { %v661_v1 = vpop.permute.xlu1 %660  ;;  %v659_v52 = vpop.permute.xlu0 %658 }
  0xb6   : > { %v1009_v58 = vmax.f32 %v1604_v8, %v661_v1  ;;  %v1008_v46 = vmax.f32 %v1608_v9, %v659_v52  ;;  %v1383_v8 = vld [vmem:[%s1468_s11 + $0x568] sm:$0xff]  ;;  %v201_v1 = vld [vmem:[%s1468_s11 + $0x540] sm:$0xff] }
  0xb7   : > { %776 = vrot.lane.b32.xlu1 %v2020_v47, %s1443_s12  ;;  %774 = vrot.lane.b32.xlu0 %v2026_v16, %s1443_s12  ;;  %v2056_v59 = vmax.f32 %v202_v40, %v1383_v8  ;;  %v2062_v28 = vmax.f32 %v201_v1, %v1382_v34  ;;  %v1384_v40 = vld [vmem:[%s1468_s11 + $0x570] sm:$0xff] }
  0xb8   : > { %1135 = vst.msk [vmem:[%s1832_s16 + $0xb8] sm:$0x7f] %vm1114_vm1, %v1009_v58 }
  0xb9   : > { %1134 = vst.msk [vmem:[%s1832_s16 + $0xb0] sm:$0xff] %vm1110_vm0, %v1008_v46  ;;  %v665_v9 = vpop.permute.xlu1 %664  ;;  %v663_v58 = vpop.permute.xlu0 %662  ;;  %v204_v46 = vld [vmem:[%s1468_s11 + $0x558] sm:$0x7f] }
  0xba   : > { %v1011_v0 = vmax.f32 %v1616_v18, %v665_v9  ;;  %v1010_v52 = vmax.f32 %v1620_v19, %v663_v58  ;;  %v1385_v18 = vld [vmem:[%s1468_s11 + $0x578] sm:$0x7f]  ;;  %v203_v9 = vld [vmem:[%s1468_s11 + $0x550] sm:$0xff] }
  0xbb   : > { %780 = vrot.lane.b32.xlu1 %v2038_v53, %s1443_s12  ;;  %778 = vrot.lane.b32.xlu0 %v2044_v22, %s1443_s12  ;;  %v2074_v1 = vmax.f32 %v204_v46, %v1385_v18  ;;  %v2080_v34 = vmax.f32 %v203_v9, %v1384_v40  ;;  %v1386_v46 = vld [vmem:[%s1468_s11 + $0x5a0] sm:$0xff] }
  0xbc   : > { %1137 = vst.msk [vmem:[%s1832_s16 + $0xc8] sm:$0xff] %vm1110_vm0, %v1011_v0  ;;  %1136 = vst.msk [vmem:[%s1832_s16 + $0xc0] sm:$0xff] %vm1110_vm0, %v1010_v52  ;;  %v206_v52 = vld [vmem:[%s1468_s11 + $0x588] sm:$0xff] }
  0xbd   : > { %v669_v19 = vpop.permute.xlu1 %668  ;;  %v667_v0 = vpop.permute.xlu0 %666 }
  0xbe   : > { %v1013_v8 = vmax.f32 %v1628_v26, %v669_v19  ;;  %v1012_v58 = vmax.f32 %v1632_v27, %v667_v0  ;;  %v1387_v26 = vld [vmem:[%s1468_s11 + $0x5a8] sm:$0xff]  ;;  %v205_v19 = vld [vmem:[%s1468_s11 + $0x580] sm:$0xff] }
  0xbf   : > { %784 = vrot.lane.b32.xlu1 %v2056_v59, %s1443_s12  ;;  %782 = vrot.lane.b32.xlu0 %v2062_v28, %s1443_s12  ;;  %v2092_v9 = vmax.f32 %v206_v52, %v1387_v26  ;;  %v2098_v40 = vmax.f32 %v205_v19, %v1386_v46  ;;  %v1388_v52 = vld [vmem:[%s1468_s11 + $0x5b0] sm:$0xff] }
  0xc0   : > { %1139 = vst.msk [vmem:[%s1832_s16 + $0xd8] sm:$0x7f] %vm1114_vm1, %v1013_v8 }
  0xc1   : > { %1138 = vst.msk [vmem:[%s1832_s16 + $0xd0] sm:$0xff] %vm1110_vm0, %v1012_v58  ;;  %v673_v27 = vpop.permute.xlu1 %672  ;;  %v671_v8 = vpop.permute.xlu0 %670  ;;  %v208_v58 = vld [vmem:[%s1468_s11 + $0x598] sm:$0x7f] }
  0xc2   : > { %v1015_v18 = vmax.f32 %v1640_v36, %v673_v27  ;;  %v1014_v0 = vmax.f32 %v1644_v37, %v671_v8  ;;  %v1389_v36 = vld [vmem:[%s1468_s11 + $0x5b8] sm:$0x7f]  ;;  %v207_v27 = vld [vmem:[%s1468_s11 + $0x590] sm:$0xff] }
  0xc3   : > { %788 = vrot.lane.b32.xlu1 %v2074_v1, %s1443_s12  ;;  %786 = vrot.lane.b32.xlu0 %v2080_v34, %s1443_s12  ;;  %v2110_v19 = vmax.f32 %v208_v58, %v1389_v36  ;;  %v2116_v46 = vmax.f32 %v207_v27, %v1388_v52  ;;  %v1390_v58 = vld [vmem:[%s1468_s11 + $0x5e0] sm:$0xff] }
  0xc4   : > { %1141 = vst.msk [vmem:[%s1832_s16 + $0xe8] sm:$0xff] %vm1110_vm0, %v1015_v18  ;;  %1140 = vst.msk [vmem:[%s1832_s16 + $0xe0] sm:$0xff] %vm1110_vm0, %v1014_v0  ;;  %v210_v0 = vld [vmem:[%s1468_s11 + $0x5c8] sm:$0xff] }
  0xc5   : > { %v677_v37 = vpop.permute.xlu1 %676  ;;  %v675_v18 = vpop.permute.xlu0 %674 }
  0xc6   : > { %v1017_v26 = vmax.f32 %v1652_v44, %v677_v37  ;;  %v1016_v8 = vmax.f32 %v1656_v45, %v675_v18  ;;  %v1391_v44 = vld [vmem:[%s1468_s11 + $0x5e8] sm:$0xff]  ;;  %v209_v37 = vld [vmem:[%s1468_s11 + $0x5c0] sm:$0xff] }
  0xc7   : > { %792 = vrot.lane.b32.xlu1 %v2092_v9, %s1443_s12  ;;  %790 = vrot.lane.b32.xlu0 %v2098_v40, %s1443_s12  ;;  %v2128_v27 = vmax.f32 %v210_v0, %v1391_v44  ;;  %v2134_v52 = vmax.f32 %v209_v37, %v1390_v58  ;;  %v1392_v0 = vld [vmem:[%s1468_s11 + $0x5f0] sm:$0xff] }
  0xc8   : > { %1143 = vst.msk [vmem:[%s1832_s16 + $0xf8] sm:$0x7f] %vm1114_vm1, %v1017_v26 }
  0xc9   : > { %1142 = vst.msk [vmem:[%s1832_s16 + $0xf0] sm:$0xff] %vm1110_vm0, %v1016_v8  ;;  %v681_v45 = vpop.permute.xlu1 %680  ;;  %v679_v26 = vpop.permute.xlu0 %678  ;;  %v212_v8 = vld [vmem:[%s1468_s11 + $0x5d8] sm:$0x7f] }
  0xca   : > { %v1019_v36 = vmax.f32 %v1664_v54, %v681_v45  ;;  %v1018_v18 = vmax.f32 %v1668_v55, %v679_v26  ;;  %v1393_v54 = vld [vmem:[%s1468_s11 + $0x5f8] sm:$0x7f]  ;;  %v211_v45 = vld [vmem:[%s1468_s11 + $0x5d0] sm:$0xff] }
  0xcb   : > { %796 = vrot.lane.b32.xlu1 %v2110_v19, %s1443_s12  ;;  %794 = vrot.lane.b32.xlu0 %v2116_v46, %s1443_s12  ;;  %v2146_v37 = vmax.f32 %v212_v8, %v1393_v54  ;;  %v2152_v58 = vmax.f32 %v211_v45, %v1392_v0  ;;  %v1394_v8 = vld [vmem:[%s1468_s11 + $0x620] sm:$0xff] }
  0xcc   : > { %1145 = vst.msk [vmem:[%s1832_s16 + $0x108] sm:$0xff] %vm1110_vm0, %v1019_v36  ;;  %1144 = vst.msk [vmem:[%s1832_s16 + $0x100] sm:$0xff] %vm1110_vm0, %v1018_v18  ;;  %v214_v18 = vld [vmem:[%s1468_s11 + $0x608] sm:$0xff] }
  0xcd   : > { %v685_v55 = vpop.permute.xlu1 %684  ;;  %v683_v36 = vpop.permute.xlu0 %682 }
  0xce   : > { %v1021_v44 = vmax.f32 %v1676_v62, %v685_v55  ;;  %v1020_v26 = vmax.f32 %v1680_v63, %v683_v36  ;;  %v1395_v62 = vld [vmem:[%s1468_s11 + $0x628] sm:$0xff]  ;;  %v213_v55 = vld [vmem:[%s1468_s11 + $0x600] sm:$0xff] }
  0xcf   : > { %800 = vrot.lane.b32.xlu1 %v2128_v27, %s1443_s12  ;;  %798 = vrot.lane.b32.xlu0 %v2134_v52, %s1443_s12  ;;  %v2164_v45 = vmax.f32 %v214_v18, %v1395_v62  ;;  %v2170_v0 = vmax.f32 %v213_v55, %v1394_v8  ;;  %v1396_v18 = vld [vmem:[%s1468_s11 + $0x630] sm:$0xff] }
  0xd0   : > { %1147 = vst.msk [vmem:[%s1832_s16 + $0x118] sm:$0x7f] %vm1114_vm1, %v1021_v44 }
  0xd1   : > { %1146 = vst.msk [vmem:[%s1832_s16 + $0x110] sm:$0xff] %vm1110_vm0, %v1020_v26  ;;  %v689_v63 = vpop.permute.xlu1 %688  ;;  %v687_v44 = vpop.permute.xlu0 %686  ;;  %v216_v26 = vld [vmem:[%s1468_s11 + $0x618] sm:$0x7f] }
  0xd2   : > { %v1023_v54 = vmax.f32 %v1688_v12, %v689_v63  ;;  %v1022_v36 = vmax.f32 %v1692_v13, %v687_v44  ;;  %v1397_v12 = vld [vmem:[%s1468_s11 + $0x638] sm:$0x7f]  ;;  %v215_v63 = vld [vmem:[%s1468_s11 + $0x610] sm:$0xff] }
  0xd3   : > { %804 = vrot.lane.b32.xlu1 %v2146_v37, %s1443_s12  ;;  %802 = vrot.lane.b32.xlu0 %v2152_v58, %s1443_s12  ;;  %v2182_v55 = vmax.f32 %v216_v26, %v1397_v12  ;;  %v2188_v8 = vmax.f32 %v215_v63, %v1396_v18  ;;  %v1398_v26 = vld [vmem:[%s1468_s11 + $0x660] sm:$0xff] }
  0xd4   : > { %1149 = vst.msk [vmem:[%s1832_s16 + $0x128] sm:$0xff] %vm1110_vm0, %v1023_v54  ;;  %1148 = vst.msk [vmem:[%s1832_s16 + $0x120] sm:$0xff] %vm1110_vm0, %v1022_v36  ;;  %v218_v36 = vld [vmem:[%s1468_s11 + $0x648] sm:$0xff] }
  0xd5   : > { %v693_v13 = vpop.permute.xlu1 %692  ;;  %v691_v54 = vpop.permute.xlu0 %690 }
  0xd6   : > { %v1025_v62 = vmax.f32 %v1700_v24, %v693_v13  ;;  %v1024_v44 = vmax.f32 %v1704_v25, %v691_v54  ;;  %v1399_v24 = vld [vmem:[%s1468_s11 + $0x668] sm:$0xff]  ;;  %v217_v13 = vld [vmem:[%s1468_s11 + $0x640] sm:$0xff] }
  0xd7   : > { %808 = vrot.lane.b32.xlu1 %v2164_v45, %s1443_s12  ;;  %806 = vrot.lane.b32.xlu0 %v2170_v0, %s1443_s12  ;;  %v2200_v63 = vmax.f32 %v218_v36, %v1399_v24  ;;  %v2206_v18 = vmax.f32 %v217_v13, %v1398_v26  ;;  %v1400_v36 = vld [vmem:[%s1468_s11 + $0x670] sm:$0xff] }
  0xd8   : > { %1151 = vst.msk [vmem:[%s1832_s16 + $0x138] sm:$0x7f] %vm1114_vm1, %v1025_v62 }
  0xd9   : > { %1150 = vst.msk [vmem:[%s1832_s16 + $0x130] sm:$0xff] %vm1110_vm0, %v1024_v44  ;;  %v697_v25 = vpop.permute.xlu1 %696  ;;  %v695_v62 = vpop.permute.xlu0 %694  ;;  %v220_v44 = vld [vmem:[%s1468_s11 + $0x658] sm:$0x7f] }
  0xda   : > { %v1027_v12 = vmax.f32 %v1712_v38, %v697_v25  ;;  %v1026_v54 = vmax.f32 %v1716_v39, %v695_v62  ;;  %v1401_v38 = vld [vmem:[%s1468_s11 + $0x678] sm:$0x7f]  ;;  %v219_v25 = vld [vmem:[%s1468_s11 + $0x650] sm:$0xff] }
  0xdb   : > { %812 = vrot.lane.b32.xlu1 %v2182_v55, %s1443_s12  ;;  %810 = vrot.lane.b32.xlu0 %v2188_v8, %s1443_s12  ;;  %v2218_v13 = vmax.f32 %v220_v44, %v1401_v38  ;;  %v2224_v26 = vmax.f32 %v219_v25, %v1400_v36  ;;  %v1402_v44 = vld [vmem:[%s1468_s11 + $0x6a0] sm:$0xff] }
  0xdc   : > { %1153 = vst.msk [vmem:[%s1832_s16 + $0x148] sm:$0xff] %vm1110_vm0, %v1027_v12  ;;  %1152 = vst.msk [vmem:[%s1832_s16 + $0x140] sm:$0xff] %vm1110_vm0, %v1026_v54  ;;  %v222_v54 = vld [vmem:[%s1468_s11 + $0x688] sm:$0xff] }
  0xdd   : > { %v701_v39 = vpop.permute.xlu1 %700  ;;  %v699_v12 = vpop.permute.xlu0 %698 }
  0xde   : > { %v1029_v24 = vmax.f32 %v1724_v50, %v701_v39  ;;  %v1028_v62 = vmax.f32 %v1728_v51, %v699_v12  ;;  %v1403_v50 = vld [vmem:[%s1468_s11 + $0x6a8] sm:$0xff]  ;;  %v221_v39 = vld [vmem:[%s1468_s11 + $0x680] sm:$0xff] }
  0xdf   : > { %816 = vrot.lane.b32.xlu1 %v2200_v63, %s1443_s12  ;;  %814 = vrot.lane.b32.xlu0 %v2206_v18, %s1443_s12  ;;  %v2236_v25 = vmax.f32 %v222_v54, %v1403_v50  ;;  %v2242_v36 = vmax.f32 %v221_v39, %v1402_v44  ;;  %v1404_v54 = vld [vmem:[%s1468_s11 + $0x6b0] sm:$0xff] }
  0xe0   : > { %1155 = vst.msk [vmem:[%s1832_s16 + $0x158] sm:$0x7f] %vm1114_vm1, %v1029_v24 }
  0xe1   : > { %1154 = vst.msk [vmem:[%s1832_s16 + $0x150] sm:$0xff] %vm1110_vm0, %v1028_v62  ;;  %v705_v51 = vpop.permute.xlu1 %704  ;;  %v703_v24 = vpop.permute.xlu0 %702  ;;  %v224_v62 = vld [vmem:[%s1468_s11 + $0x698] sm:$0x7f] }
  0xe2   : > { %v1031_v38 = vmax.f32 %v1736_v2, %v705_v51  ;;  %v1030_v12 = vmax.f32 %v1740_v4, %v703_v24  ;;  %v1405_v2 = vld [vmem:[%s1468_s11 + $0x6b8] sm:$0x7f]  ;;  %v223_v51 = vld [vmem:[%s1468_s11 + $0x690] sm:$0xff] }
  0xe3   : > { %820 = vrot.lane.b32.xlu1 %v2218_v13, %s1443_s12  ;;  %818 = vrot.lane.b32.xlu0 %v2224_v26, %s1443_s12  ;;  %v2254_v39 = vmax.f32 %v224_v62, %v1405_v2  ;;  %v2260_v44 = vmax.f32 %v223_v51, %v1404_v54  ;;  %v1406_v62 = vld [vmem:[%s1468_s11 + $0x6e0] sm:$0xff] }
  0xe4   : > { %1157 = vst.msk [vmem:[%s1832_s16 + $0x168] sm:$0xff] %vm1110_vm0, %v1031_v38  ;;  %1156 = vst.msk [vmem:[%s1832_s16 + $0x160] sm:$0xff] %vm1110_vm0, %v1030_v12  ;;  %v226_v12 = vld [vmem:[%s1468_s11 + $0x6c8] sm:$0xff] }
  0xe5   : > { %v709_v4 = vpop.permute.xlu1 %708  ;;  %v707_v38 = vpop.permute.xlu0 %706  ;;  %2619 = vst [vmem:[#allocation9_spill] sm:$0xff] %v2254_v39  ;;  %2620 = vst [vmem:[#allocation10_spill] sm:$0xff] %v2260_v44 }
  0xe6   : > { %v1033_v50 = vmax.f32 %v1748_v20, %v709_v4  ;;  %v1032_v24 = vmax.f32 %v1752_v21, %v707_v38  ;;  %v1407_v20 = vld [vmem:[%s1468_s11 + $0x6e8] sm:$0xff]  ;;  %v225_v4 = vld [vmem:[%s1468_s11 + $0x6c0] sm:$0xff] }
  0xe7   : > { %824 = vrot.lane.b32.xlu1 %v2236_v25, %s1443_s12  ;;  %822 = vrot.lane.b32.xlu0 %v2242_v36, %s1443_s12  ;;  %v2272_v51 = vmax.f32 %v226_v12, %v1407_v20  ;;  %v2278_v54 = vmax.f32 %v225_v4, %v1406_v62  ;;  %v1408_v12 = vld [vmem:[%s1468_s11 + $0x6f0] sm:$0xff] }
  0xe8   : > { %1159 = vst.msk [vmem:[%s1832_s16 + $0x178] sm:$0x7f] %vm1114_vm1, %v1033_v50 }
  0xe9   : > { %1158 = vst.msk [vmem:[%s1832_s16 + $0x170] sm:$0xff] %vm1110_vm0, %v1032_v24  ;;  %v713_v21 = vpop.permute.xlu1 %712  ;;  %v711_v50 = vpop.permute.xlu0 %710  ;;  %2621 = vst [vmem:[#allocation11_spill] sm:$0xff] %v2272_v51  ;;  %v228_v24 = vld [vmem:[%s1468_s11 + $0x6d8] sm:$0x7f] }
  0xea   : > { %v1035_v2 = vmax.f32 %v1760_v42, %v713_v21  ;;  %v1034_v38 = vmax.f32 %v1764_v43, %v711_v50  ;;  %2622 = vst [vmem:[#allocation12_spill] sm:$0xff] %v2278_v54  ;;  %v1409_v42 = vld [vmem:[%s1468_s11 + $0x6f8] sm:$0x7f]  ;;  %v227_v21 = vld [vmem:[%s1468_s11 + $0x6d0] sm:$0xff]  ;;  %v2623_v50 = vld [vmem:[#allocation2_spill] sm:$0xff] }
  0xeb   : > { %828 = vrot.lane.b32.xlu1 %v2254_v39, %s1443_s12  ;;  %826 = vrot.lane.b32.xlu0 %v2260_v44, %s1443_s12  ;;  %v2290_v4 = vmax.f32 %v228_v24, %v1409_v42  ;;  %v2296_v62 = vmax.f32 %v227_v21, %v1408_v12  ;;  %v1410_v24 = vld [vmem:[%s1468_s11 + $0x720] sm:$0xff]  ;;  %v2626_v42 = vld [vmem:[#allocation3_spill] sm:$0xff]  ;;  %v232_v12 = vld [vmem:[%s1468_s11 + $0x718] sm:$0x7f] }
  0xec   : > { %1161 = vst.msk [vmem:[%s1832_s16 + $0x188] sm:$0xff] %vm1110_vm0, %v1035_v2  ;;  %1160 = vst.msk [vmem:[%s1832_s16 + $0x180] sm:$0xff] %vm1110_vm0, %v1034_v38  ;;  %v230_v38 = vld [vmem:[%s1468_s11 + $0x708] sm:$0xff] }
  0xed   : > { %v717_v43 = vpop.permute.xlu1 %716  ;;  %v715_v2 = vpop.permute.xlu0 %714  ;;  %2624 = vst [vmem:[#allocation2_spill] sm:$0xff] %v2290_v4  ;;  %2625 = vst [vmem:[#allocation13_spill] sm:$0xff] %v2296_v62 }
  0xee   : > { %v1037_v20 = vmax.f32 %v1772_v60, %v717_v43  ;;  %v1036_v39 = vmax.f32 %v2623_v50, %v715_v2  ;;  %v1411_v60 = vld [vmem:[%s1468_s11 + $0x728] sm:$0xff]  ;;  %v229_v2 = vld [vmem:[%s1468_s11 + $0x700] sm:$0xff] }
  0xef   : > { %832 = vrot.lane.b32.xlu1 %v2272_v51, %s1443_s12  ;;  %830 = vrot.lane.b32.xlu0 %v2278_v54, %s1443_s12  ;;  %v2627_v51 = vld [vmem:[#allocation4_spill] sm:$0xff]  ;;  %v2308_v21 = vmax.f32 %v230_v38, %v1411_v60  ;;  %v2629_v60 = vld [vmem:[#allocation5_spill] sm:$0xff] }
  0xf0   : > { %1163 = vst.msk [vmem:[%s1832_s16 + $0x198] sm:$0x7f] %vm1114_vm1, %v1037_v20  ;;  %v1412_v38 = vld [vmem:[%s1468_s11 + $0x730] sm:$0xff] }
  0xf1   : > { %1162 = vst.msk [vmem:[%s1832_s16 + $0x190] sm:$0xff] %vm1110_vm0, %v1036_v39  ;;  %v721_v43 = vpop.permute.xlu1 %720  ;;  %v719_v20 = vpop.permute.xlu0 %718  ;;  %2628 = vst [vmem:[#allocation3_spill] sm:$0xff] %v2308_v21  ;;  %v2314_v39 = vmax.f32 %v229_v2, %v1410_v24  ;;  %v234_v24 = vld [vmem:[%s1468_s11 + $0x748] sm:$0xff] }
  0xf2   : > { %v1039_v50 = vmax.f32 %v2626_v42, %v721_v43  ;;  %v1038_v44 = vmax.f32 %v2627_v51, %v719_v20  ;;  %v1413_v43 = vld [vmem:[%s1468_s11 + $0x738] sm:$0x7f]  ;;  %v231_v42 = vld [vmem:[%s1468_s11 + $0x710] sm:$0xff] }
  0xf3   : > { %836 = vrot.lane.b32.xlu1 %v2290_v4, %s1443_s12  ;;  %834 = vrot.lane.b32.xlu0 %v2296_v62, %s1443_s12  ;;  %v2630_v4 = vld [vmem:[#allocation6_spill] sm:$0xff]  ;;  %v2326_v2 = vmax.f32 %v232_v12, %v1413_v43  ;;  %v2631_v43 = vld [vmem:[#allocation7_spill] sm:$0xff] }
  0xf4   : > { %1165 = vst.msk [vmem:[%s1832_s16 + $0x1a8] sm:$0xff] %vm1110_vm0, %v1039_v50  ;;  %1164 = vst.msk [vmem:[%s1832_s16 + $0x1a0] sm:$0xff] %vm1110_vm0, %v1038_v44  ;;  %v2332_v44 = vmax.f32 %v231_v42, %v1412_v38  ;;  %v1414_v12 = vld [vmem:[%s1468_s11 + $0x760] sm:$0xff]  ;;  %v236_v38 = vld [vmem:[%s1468_s11 + $0x758] sm:$0x7f] }
  0xf5   : > { %v725_v51 = vpop.permute.xlu1 %724  ;;  %v723_v50 = vpop.permute.xlu0 %722 }
  0xf6   : > { %v1041_v20 = vmax.f32 %v2629_v60, %v725_v51  ;;  %v1040_v54 = vmax.f32 %v2630_v4, %v723_v50  ;;  %v1415_v51 = vld [vmem:[%s1468_s11 + $0x768] sm:$0xff]  ;;  %v233_v60 = vld [vmem:[%s1468_s11 + $0x740] sm:$0xff] }
  0xf7   : > { %840 = vrot.lane.b32.xlu1 %v2308_v21, %s1443_s12  ;;  %838 = vrot.lane.b32.xlu0 %v2314_v39, %s1443_s12  ;;  %v2632_v21 = vld [vmem:[#allocation8_spill] sm:$0xff]  ;;  %v2344_v42 = vmax.f32 %v234_v24, %v1415_v51 }
  0xf8   : > { %1167 = vst.msk [vmem:[%s1832_s16 + $0x1b8] sm:$0x7f] %vm1114_vm1, %v1041_v20  ;;  %v1416_v24 = vld [vmem:[%s1468_s11 + $0x770] sm:$0xff] }
  0xf9   : > { %1166 = vst.msk [vmem:[%s1832_s16 + $0x1b0] sm:$0xff] %vm1110_vm0, %v1040_v54  ;;  %v729_v4 = vpop.permute.xlu1 %728  ;;  %v727_v20 = vpop.permute.xlu0 %726  ;;  %v2350_v54 = vmax.f32 %v233_v60, %v1414_v12  ;;  %v238_v12 = vld [vmem:[%s1468_s11 + $0x788] sm:$0xff] }
  0xfa   : > { %v1043_v50 = vmax.f32 %v2631_v43, %v729_v4  ;;  %v1042_v62 = vmax.f32 %v2632_v21, %v727_v20  ;;  %v1417_v4 = vld [vmem:[%s1468_s11 + $0x778] sm:$0x7f]  ;;  %v235_v43 = vld [vmem:[%s1468_s11 + $0x750] sm:$0xff] }
  0xfb   : > { %844 = vrot.lane.b32.xlu1 %v2326_v2, %s1443_s12  ;;  %842 = vrot.lane.b32.xlu0 %v2332_v44, %s1443_s12  ;;  %2633 = vst [vmem:[#allocation4_spill] sm:$0xff] %v2350_v54  ;;  %v2362_v60 = vmax.f32 %v236_v38, %v1417_v4  ;;  %v1418_v38 = vld [vmem:[%s1468_s11 + $0x7a0] sm:$0xff] }
  0xfc   : > { %1169 = vst.msk [vmem:[%s1832_s16 + $0x1c8] sm:$0xff] %vm1110_vm0, %v1043_v50  ;;  %1168 = vst.msk [vmem:[%s1832_s16 + $0x1c0] sm:$0xff] %vm1110_vm0, %v1042_v62  ;;  %v2368_v62 = vmax.f32 %v235_v43, %v1416_v24 }
  0xfd   : > { %v733_v21 = vpop.permute.xlu1 %732  ;;  %v731_v50 = vpop.permute.xlu0 %730 }
  0xfe   : > { %v1045_v51 = vmax.f32 %v1821_v30, %v733_v21  ;;  %v1044_v20 = vmax.f32 %v1825_v5, %v731_v50  ;;  %v1419_v30 = vld [vmem:[%s1468_s11 + $0x7a8] sm:$0xff]  ;;  %v237_v21 = vld [vmem:[%s1468_s11 + $0x780] sm:$0xff] }
  0xff   : > { %848 = vrot.lane.b32.xlu1 %v2344_v42, %s1443_s12  ;;  %846 = vrot.lane.b32.xlu0 %v2350_v54, %s1443_s12  ;;  %v2380_v43 = vmax.f32 %v238_v12, %v1419_v30  ;;  %v2386_v24 = vmax.f32 %v237_v21, %v1418_v38  ;;  %v1421_v54 = vld [vmem:[%s1468_s11 + $0x7b8] sm:$0x7f] }
 0x100   : > { %1171 = vst.msk [vmem:[%s1832_s16 + $0x1d8] sm:$0x7f] %vm1114_vm1, %v1045_v51 }
 0x101   : > { %1170 = vst.msk [vmem:[%s1832_s16 + $0x1d0] sm:$0xff] %vm1110_vm0, %v1044_v20  ;;  %v737_v5 = vpop.permute.xlu1 %736  ;;  %v735_v51 = vpop.permute.xlu0 %734  ;;  %v240_v20 = vld [vmem:[%s1468_s11 + $0x798] sm:$0x7f] }
 0x102   : > { %v1047_v4 = vmax.f32 %v1840_v61, %v737_v5  ;;  %v1046_v50 = vmax.f32 %v1846_v57, %v735_v51  ;;  %v239_v57 = vld [vmem:[%s1468_s11 + $0x790] sm:$0xff] }
 0x103   : > { %852 = vrot.lane.b32.xlu1 %v2362_v60, %s1443_s12  ;;  %850 = vrot.lane.b32.xlu0 %v2368_v62, %s1443_s12  ;;  %v1420_v5 = vld [vmem:[%s1468_s11 + $0x7b0] sm:$0xff] }
 0x104   : > { %1173 = vst.msk [vmem:[%s1832_s16 + $0x1e8] sm:$0xff] %vm1110_vm0, %v1047_v4  ;;  %1172 = vst.msk [vmem:[%s1832_s16 + $0x1e0] sm:$0xff] %vm1110_vm0, %v1046_v50  ;;  %v2398_v4 = vmax.f32 %v240_v20, %v1421_v54  ;;  %v2404_v21 = vmax.f32 %v239_v57, %v1420_v5 }
 0x105   : > { %v741_v61 = vpop.permute.xlu1 %740  ;;  %v739_v12 = vpop.permute.xlu0 %738 }
 0x106   : > { %v1049_v51 = vmax.f32 %v1858_v33, %v741_v61  ;;  %v1048_v30 = vmax.f32 %v1864_v32, %v739_v12 }
 0x107   : > { %856 = vrot.lane.b32.xlu1 %v2380_v43, %s1443_s12  ;;  %854 = vrot.lane.b32.xlu0 %v2386_v24, %s1443_s12 }
 0x108   : > { %1175 = vst.msk [vmem:[%s1832_s16 + $0x1f8] sm:$0x7f] %vm1114_vm1, %v1049_v51 }
 0x109   : > { %1174 = vst.msk [vmem:[%s1832_s16 + $0x1f0] sm:$0xff] %vm1110_vm0, %v1048_v30  ;;  %v745_v33 = vpop.permute.xlu1 %744  ;;  %v743_v32 = vpop.permute.xlu0 %742 }
 0x10a   : > { %v1051_v38 = vmax.f32 %v1876_v6, %v745_v33  ;;  %v1050_v50 = vmax.f32 %v1882_v14, %v743_v32 }
 0x10b   : > { %860 = vrot.lane.b32.xlu1 %v2398_v4, %s1443_s12  ;;  %858 = vrot.lane.b32.xlu0 %v2404_v21, %s1443_s12 }
 0x10c   : > { %1177 = vst.msk [vmem:[%s1832_s16 + $0x208] sm:$0xff] %vm1110_vm0, %v1051_v38  ;;  %1176 = vst.msk [vmem:[%s1832_s16 + $0x200] sm:$0xff] %vm1110_vm0, %v1050_v50 }
 0x10d   : > { %v749_v54 = vpop.permute.xlu1 %748  ;;  %v747_v6 = vpop.permute.xlu0 %746 }
 0x10e   : > { %v1053_v20 = vmax.f32 %v1894_v7, %v749_v54  ;;  %v1052_v61 = vmax.f32 %v1900_v56, %v747_v6 }
 0x110   : > { %1179 = vst.msk [vmem:[%s1832_s16 + $0x218] sm:$0x7f] %vm1114_vm1, %v1053_v20 }
 0x111   : > { %1178 = vst.msk [vmem:[%s1832_s16 + $0x210] sm:$0xff] %vm1110_vm0, %v1052_v61  ;;  %v753_v14 = vpop.permute.xlu1 %752  ;;  %v751_v5 = vpop.permute.xlu0 %750 }
 0x112   : > { %v1055_v57 = vmax.f32 %v1912_v11, %v753_v14  ;;  %v1054_v51 = vmax.f32 %v1918_v48, %v751_v5 }
 0x114   : > { %1181 = vst.msk [vmem:[%s1832_s16 + $0x228] sm:$0xff] %vm1110_vm0, %v1055_v57  ;;  %1180 = vst.msk [vmem:[%s1832_s16 + $0x220] sm:$0xff] %vm1110_vm0, %v1054_v51 }
 0x115   : > { %v757_v7 = vpop.permute.xlu1 %756  ;;  %v755_v12 = vpop.permute.xlu0 %754 }
 0x116   : > { %v1057_v56 = vmax.f32 %v1930_v17, %v757_v7  ;;  %v1056_v30 = vmax.f32 %v1936_v49, %v755_v12 }
 0x118   : > { %1183 = vst.msk [vmem:[%s1832_s16 + $0x238] sm:$0x7f] %vm1114_vm1, %v1057_v56 }
 0x119   : > { %1182 = vst.msk [vmem:[%s1832_s16 + $0x230] sm:$0xff] %vm1110_vm0, %v1056_v30  ;;  %v761_v11 = vpop.permute.xlu1 %760  ;;  %v759_v33 = vpop.permute.xlu0 %758 }
 0x11a   : > { %v1059_v48 = vmax.f32 %v1948_v23, %v761_v11  ;;  %v1058_v38 = vmax.f32 %v1954_v31, %v759_v33 }
 0x11c   : > { %1185 = vst.msk [vmem:[%s1832_s16 + $0x248] sm:$0xff] %vm1110_vm0, %v1059_v48  ;;  %1184 = vst.msk [vmem:[%s1832_s16 + $0x240] sm:$0xff] %vm1110_vm0, %v1058_v38 }
 0x11d   : > { %v765_v17 = vpop.permute.xlu1 %764  ;;  %v763_v32 = vpop.permute.xlu0 %762 }
 0x11e   : > { %v1061_v49 = vmax.f32 %v1966_v29, %v765_v17  ;;  %v1060_v50 = vmax.f32 %v1972_v15, %v763_v32 }
 0x120   : > { %1187 = vst.msk [vmem:[%s1832_s16 + $0x258] sm:$0x7f] %vm1114_vm1, %v1061_v49 }
 0x121   : > { %1186 = vst.msk [vmem:[%s1832_s16 + $0x250] sm:$0xff] %vm1110_vm0, %v1060_v50  ;;  %v769_v23 = vpop.permute.xlu1 %768  ;;  %v767_v54 = vpop.permute.xlu0 %766 }
 0x122   : > { %v1063_v31 = vmax.f32 %v1984_v35, %v769_v23  ;;  %v1062_v20 = vmax.f32 %v1990_v3, %v767_v54 }
 0x124   : > { %1189 = vst.msk [vmem:[%s1832_s16 + $0x268] sm:$0xff] %vm1110_vm0, %v1063_v31  ;;  %1188 = vst.msk [vmem:[%s1832_s16 + $0x260] sm:$0xff] %vm1110_vm0, %v1062_v20 }
 0x125   : > { %v773_v29 = vpop.permute.xlu1 %772  ;;  %v771_v6 = vpop.permute.xlu0 %770 }
 0x126   : > { %v1065_v15 = vmax.f32 %v2002_v41, %v773_v29  ;;  %v1064_v61 = vmax.f32 %v2008_v10, %v771_v6 }
 0x128   : > { %1191 = vst.msk [vmem:[%s1832_s16 + $0x278] sm:$0x7f] %vm1114_vm1, %v1065_v15 }
 0x129   : > { %1190 = vst.msk [vmem:[%s1832_s16 + $0x270] sm:$0xff] %vm1110_vm0, %v1064_v61  ;;  %v777_v35 = vpop.permute.xlu1 %776  ;;  %v775_v14 = vpop.permute.xlu0 %774 }
 0x12a   : > { %v1067_v3 = vmax.f32 %v2020_v47, %v777_v35  ;;  %v1066_v57 = vmax.f32 %v2026_v16, %v775_v14  ;;  %v2634_v14 = vld [vmem:[#allocation9_spill] sm:$0xff] }
 0x12c   : > { %1193 = vst.msk [vmem:[%s1832_s16 + $0x288] sm:$0xff] %vm1110_vm0, %v1067_v3  ;;  %1192 = vst.msk [vmem:[%s1832_s16 + $0x280] sm:$0xff] %vm1110_vm0, %v1066_v57 }
 0x12d   : > { %v781_v41 = vpop.permute.xlu1 %780  ;;  %v779_v5 = vpop.permute.xlu0 %778 }
 0x12e   : > { %v1069_v10 = vmax.f32 %v2038_v53, %v781_v41  ;;  %v1068_v51 = vmax.f32 %v2044_v22, %v779_v5  ;;  %v2635_v41 = vld [vmem:[#allocation10_spill] sm:$0xff]  ;;  %v2636_v5 = vld [vmem:[#allocation11_spill] sm:$0xff] }
 0x130   : > { %1195 = vst.msk [vmem:[%s1832_s16 + $0x298] sm:$0x7f] %vm1114_vm1, %v1069_v10 }
 0x131   : > { %1194 = vst.msk [vmem:[%s1832_s16 + $0x290] sm:$0xff] %vm1110_vm0, %v1068_v51  ;;  %v785_v47 = vpop.permute.xlu1 %784  ;;  %v783_v7 = vpop.permute.xlu0 %782 }
 0x132   : > { %v1071_v16 = vmax.f32 %v2056_v59, %v785_v47  ;;  %v1070_v56 = vmax.f32 %v2062_v28, %v783_v7  ;;  %v2637_v47 = vld [vmem:[#allocation12_spill] sm:$0xff] }
 0x134   : > { %1197 = vst.msk [vmem:[%s1832_s16 + $0x2a8] sm:$0xff] %vm1110_vm0, %v1071_v16  ;;  %1196 = vst.msk [vmem:[%s1832_s16 + $0x2a0] sm:$0xff] %vm1110_vm0, %v1070_v56  ;;  %v2638_v56 = vld [vmem:[#allocation2_spill] sm:$0xff] }
 0x135   : > { %v789_v53 = vpop.permute.xlu1 %788  ;;  %v787_v12 = vpop.permute.xlu0 %786 }
 0x136   : > { %v1073_v22 = vmax.f32 %v2074_v1, %v789_v53  ;;  %v1072_v30 = vmax.f32 %v2080_v34, %v787_v12  ;;  %v2639_v12 = vld [vmem:[#allocation13_spill] sm:$0xff] }
 0x138   : > { %1199 = vst.msk [vmem:[%s1832_s16 + $0x2b8] sm:$0x7f] %vm1114_vm1, %v1073_v22 }
 0x139   : > { %1198 = vst.msk [vmem:[%s1832_s16 + $0x2b0] sm:$0xff] %vm1110_vm0, %v1072_v30  ;;  %v793_v59 = vpop.permute.xlu1 %792  ;;  %v791_v11 = vpop.permute.xlu0 %790 }
 0x13a   : > { %v1075_v28 = vmax.f32 %v2092_v9, %v793_v59  ;;  %v1074_v48 = vmax.f32 %v2098_v40, %v791_v11 }
 0x13c   : > { %1201 = vst.msk [vmem:[%s1832_s16 + $0x2c8] sm:$0xff] %vm1110_vm0, %v1075_v28  ;;  %1200 = vst.msk [vmem:[%s1832_s16 + $0x2c0] sm:$0xff] %vm1110_vm0, %v1074_v48  ;;  %v2640_v28 = vld [vmem:[#allocation3_spill] sm:$0xff] }
 0x13d   : > { %v797_v1 = vpop.permute.xlu1 %796  ;;  %v795_v33 = vpop.permute.xlu0 %794 }
 0x13e   : > { %v1077_v34 = vmax.f32 %v2110_v19, %v797_v1  ;;  %v1076_v38 = vmax.f32 %v2116_v46, %v795_v33 }
 0x140   : > { %1203 = vst.msk [vmem:[%s1832_s16 + $0x2d8] sm:$0x7f] %vm1114_vm1, %v1077_v34 }
 0x141   : > { %1202 = vst.msk [vmem:[%s1832_s16 + $0x2d0] sm:$0xff] %vm1110_vm0, %v1076_v38  ;;  %v801_v9 = vpop.permute.xlu1 %800  ;;  %v799_v17 = vpop.permute.xlu0 %798 }
 0x142   : > { %v1079_v40 = vmax.f32 %v2128_v27, %v801_v9  ;;  %v1078_v49 = vmax.f32 %v2134_v52, %v799_v17 }
 0x144   : > { %1205 = vst.msk [vmem:[%s1832_s16 + $0x2e8] sm:$0xff] %vm1110_vm0, %v1079_v40  ;;  %1204 = vst.msk [vmem:[%s1832_s16 + $0x2e0] sm:$0xff] %vm1110_vm0, %v1078_v49  ;;  %v2641_v49 = vld [vmem:[#allocation4_spill] sm:$0xff] }
 0x145   : > { %v805_v19 = vpop.permute.xlu1 %804  ;;  %v803_v32 = vpop.permute.xlu0 %802 }
 0x146   : > { %v1081_v46 = vmax.f32 %v2146_v37, %v805_v19  ;;  %v1080_v50 = vmax.f32 %v2152_v58, %v803_v32 }
 0x148   : > { %1207 = vst.msk [vmem:[%s1832_s16 + $0x2f8] sm:$0x7f] %vm1114_vm1, %v1081_v46 }
 0x149   : > { %1206 = vst.msk [vmem:[%s1832_s16 + $0x2f0] sm:$0xff] %vm1110_vm0, %v1080_v50  ;;  %v809_v27 = vpop.permute.xlu1 %808  ;;  %v807_v23 = vpop.permute.xlu0 %806 }
 0x14a   : > { %v1083_v52 = vmax.f32 %v2164_v45, %v809_v27  ;;  %v1082_v31 = vmax.f32 %v2170_v0, %v807_v23 }
 0x14c   : > { %1209 = vst.msk [vmem:[%s1832_s16 + $0x308] sm:$0xff] %vm1110_vm0, %v1083_v52  ;;  %1208 = vst.msk [vmem:[%s1832_s16 + $0x300] sm:$0xff] %vm1110_vm0, %v1082_v31 }
 0x14d   : > { %v813_v37 = vpop.permute.xlu1 %812  ;;  %v811_v54 = vpop.permute.xlu0 %810 }
 0x14e   : > { %v1085_v58 = vmax.f32 %v2182_v55, %v813_v37  ;;  %v1084_v20 = vmax.f32 %v2188_v8, %v811_v54 }
 0x150   : > { %1211 = vst.msk [vmem:[%s1832_s16 + $0x318] sm:$0x7f] %vm1114_vm1, %v1085_v58 }
 0x151   : > { %1210 = vst.msk [vmem:[%s1832_s16 + $0x310] sm:$0xff] %vm1110_vm0, %v1084_v20  ;;  %v817_v45 = vpop.permute.xlu1 %816  ;;  %v815_v29 = vpop.permute.xlu0 %814 }
 0x152   : > { %v1087_v0 = vmax.f32 %v2200_v63, %v817_v45  ;;  %v1086_v15 = vmax.f32 %v2206_v18, %v815_v29 }
 0x154   : > { %1213 = vst.msk [vmem:[%s1832_s16 + $0x328] sm:$0xff] %vm1110_vm0, %v1087_v0  ;;  %1212 = vst.msk [vmem:[%s1832_s16 + $0x320] sm:$0xff] %vm1110_vm0, %v1086_v15 }
 0x155   : > { %v821_v55 = vpop.permute.xlu1 %820  ;;  %v819_v6 = vpop.permute.xlu0 %818 }
 0x156   : > { %v1089_v8 = vmax.f32 %v2218_v13, %v821_v55  ;;  %v1088_v61 = vmax.f32 %v2224_v26, %v819_v6 }
 0x158   : > { %1215 = vst.msk [vmem:[%s1832_s16 + $0x338] sm:$0x7f] %vm1114_vm1, %v1089_v8 }
 0x159   : > { %1214 = vst.msk [vmem:[%s1832_s16 + $0x330] sm:$0xff] %vm1110_vm0, %v1088_v61  ;;  %v825_v63 = vpop.permute.xlu1 %824  ;;  %v823_v35 = vpop.permute.xlu0 %822 }
 0x15a   : > { %v1091_v18 = vmax.f32 %v2236_v25, %v825_v63  ;;  %v1090_v3 = vmax.f32 %v2242_v36, %v823_v35 }
 0x15c   : > { %1217 = vst.msk [vmem:[%s1832_s16 + $0x348] sm:$0xff] %vm1110_vm0, %v1091_v18  ;;  %1216 = vst.msk [vmem:[%s1832_s16 + $0x340] sm:$0xff] %vm1110_vm0, %v1090_v3 }
 0x15d   : > { %v829_v13 = vpop.permute.xlu1 %828  ;;  %v827_v57 = vpop.permute.xlu0 %826 }
 0x15e   : > { %v1093_v26 = vmax.f32 %v2634_v14, %v829_v13  ;;  %v1092_v10 = vmax.f32 %v2635_v41, %v827_v57 }
 0x160   : > { %1219 = vst.msk [vmem:[%s1832_s16 + $0x358] sm:$0x7f] %vm1114_vm1, %v1093_v26 }
 0x161   : > { %1218 = vst.msk [vmem:[%s1832_s16 + $0x350] sm:$0xff] %vm1110_vm0, %v1092_v10  ;;  %v833_v25 = vpop.permute.xlu1 %832  ;;  %v831_v51 = vpop.permute.xlu0 %830 }
 0x162   : > { %v1095_v36 = vmax.f32 %v2636_v5, %v833_v25  ;;  %v1094_v16 = vmax.f32 %v2637_v47, %v831_v51 }
 0x164   : > { %1221 = vst.msk [vmem:[%s1832_s16 + $0x368] sm:$0xff] %vm1110_vm0, %v1095_v36  ;;  %1220 = vst.msk [vmem:[%s1832_s16 + $0x360] sm:$0xff] %vm1110_vm0, %v1094_v16 }
 0x165   : > { %v837_v7 = vpop.permute.xlu1 %836  ;;  %v835_v22 = vpop.permute.xlu0 %834 }
 0x166   : > { %v1097_v53 = vmax.f32 %v2638_v56, %v837_v7  ;;  %v1096_v30 = vmax.f32 %v2639_v12, %v835_v22 }
 0x168   : > { %1223 = vst.msk [vmem:[%s1832_s16 + $0x378] sm:$0x7f] %vm1114_vm1, %v1097_v53 }
 0x169   : > { %1222 = vst.msk [vmem:[%s1832_s16 + $0x370] sm:$0xff] %vm1110_vm0, %v1096_v30  ;;  %v841_v59 = vpop.permute.xlu1 %840  ;;  %v839_v48 = vpop.permute.xlu0 %838 }
 0x16a   : > { %v1099_v11 = vmax.f32 %v2640_v28, %v841_v59  ;;  %v1098_v1 = vmax.f32 %v2314_v39, %v839_v48 }
 0x16c   : > { %1225 = vst.msk [vmem:[%s1832_s16 + $0x388] sm:$0xff] %vm1110_vm0, %v1099_v11  ;;  %1224 = vst.msk [vmem:[%s1832_s16 + $0x380] sm:$0xff] %vm1110_vm0, %v1098_v1 }
 0x16d   : > { %v845_v34 = vpop.permute.xlu1 %844  ;;  %v843_v38 = vpop.permute.xlu0 %842 }
 0x16e   : > { %v1101_v33 = vmax.f32 %v2326_v2, %v845_v34  ;;  %v1100_v9 = vmax.f32 %v2332_v44, %v843_v38 }
 0x170   : > { %1227 = vst.msk [vmem:[%s1832_s16 + $0x398] sm:$0x7f] %vm1114_vm1, %v1101_v33 }
 0x171   : > { %1226 = vst.msk [vmem:[%s1832_s16 + $0x390] sm:$0xff] %vm1110_vm0, %v1100_v9  ;;  %v849_v40 = vpop.permute.xlu1 %848  ;;  %v847_v17 = vpop.permute.xlu0 %846 }
 0x172   : > { %v1103_v39 = vmax.f32 %v2344_v42, %v849_v40  ;;  %v1102_v19 = vmax.f32 %v2641_v49, %v847_v17 }
 0x174   : > { %1229 = vst.msk [vmem:[%s1832_s16 + $0x3a8] sm:$0xff] %vm1110_vm0, %v1103_v39  ;;  %1228 = vst.msk [vmem:[%s1832_s16 + $0x3a0] sm:$0xff] %vm1110_vm0, %v1102_v19 }
 0x175   : > { %v853_v2 = vpop.permute.xlu1 %852  ;;  %v851_v46 = vpop.permute.xlu0 %850 }
 0x176   : > { %v1105_v44 = vmax.f32 %v2362_v60, %v853_v2  ;;  %v1104_v32 = vmax.f32 %v2368_v62, %v851_v46 }
 0x178   : > { %1231 = vst.msk [vmem:[%s1832_s16 + $0x3b8] sm:$0x7f] %vm1114_vm1, %v1105_v44 }
 0x179   : > { %1230 = vst.msk [vmem:[%s1832_s16 + $0x3b0] sm:$0xff] %vm1110_vm0, %v1104_v32  ;;  %v857_v42 = vpop.permute.xlu1 %856  ;;  %v855_v27 = vpop.permute.xlu0 %854 }
 0x17a   : > { %v1107_v50 = vmax.f32 %v2380_v43, %v857_v42  ;;  %v1106_v52 = vmax.f32 %v2386_v24, %v855_v27 }
 0x17c   : > { %1233 = vst.msk [vmem:[%s1832_s16 + $0x3c8] sm:$0xff] %vm1110_vm0, %v1107_v50  ;;  %1232 = vst.msk [vmem:[%s1832_s16 + $0x3c0] sm:$0xff] %vm1110_vm0, %v1106_v52 }
 0x17d   : > { %v861_v23 = vpop.permute.xlu1 %860  ;;  %v859_v31 = vpop.permute.xlu0 %858 }
 0x17e   : > { %v1109_v60 = vmax.f32 %v2398_v4, %v861_v23  ;;  %v1108_v62 = vmax.f32 %v2404_v21, %v859_v31 }
 0x180   : > { %1235 = vst.msk [vmem:[%s1832_s16 + $0x3d8] sm:$0x7f] %vm1114_vm1, %v1109_v60 }
 0x181   : > { %1234 = vst.msk [vmem:[%s1832_s16 + $0x3d0] sm:$0xff] %vm1110_vm0, %v1108_v62 }
 0x182 PF: > { %s11_s6 = sadd.s32 1, %s1441_s6  }
 0x183   : > { %p8_p4 = scmp.ge.s32.totalorder %s11_s6, 4  }
 0x185   :  { %10 = sbr.rel (!%p8_p4) target bundleno = 1 (0x1), region = 55 }

// kernel: cnn_forward.10
= control target key start
LH: loop header
LB: loop body
LE: loop exit
PB: predicated region body
PF: predicated region fallthrough
CT: control target
= control target key end

     0   :  { %s3946_s12 = smov 0   ;;  %s3948_s13 = smov 0   ;;  %s4774_s0 = inlined_call_operand.vmem [shape: bf16[2048,576], index: 0, kind: input, shape index: {}]   ;;  %s4775_s1 = inlined_call_operand.vmem [shape: bf16[576,128], index: 1, kind: input, shape index: {}]   ;;  %s4776_s2 = inlined_call_operand.vmem [shape: f32[1,128], index: 2, kind: input, shape index: {}]   ;;  %s4777_s3 = inlined_call_operand.vmem [shape: f32[2048,128], index: 3, kind: output, shape index: {}]  }
   0x1   :  { %s3950_s14 = smov 0  }
   0x2 LB: > { %s32_s15 = sadd.s32 1, %s3919_s13  ;;  %p3158_p0 = scmp.ge.s32.totalorder %s3923_s14, 1  ;;  %s3923_s14 = sphi %s3950_s14, %s13_s14   ;;  %s3919_s13 = sphi %s3948_s13, %s4805_s13   ;;  %s3915_s12 = sphi %s3946_s12, %s4804_s12  }
   0x3   : > { %p34_p1 = scmp.ge.s32.totalorder %s32_s15, 4  ;;  %p191_p2 = scmp.lt.s32.totalorder %s3923_s14, 5 }
   0x5   : > { %s4807_s15 = smov (%p34_p1, %s32_s15), 0  ;;  %p192_p3 = pnand %p3158_p0, %p191_p2 }
   0x7   : > { %195 = sbr.rel (%p192_p3) target bundleno = 614 (0x266), region = 32 }
   0xe   : > { %v3641_v0 = vld [vmem:[%s4775_s1] sm:$0xff]   ;;  %v3925_v1 = vmov 0   ;;  %s3159_s18 = sshll.u32 %s3915_s12, 6  ;;  %v3642_v2 = vld [vmem:[%s4775_s1 + $0x8] sm:$0xff]   ;;  %v3643_v3 = vld [vmem:[%s4775_s1 + $0x10] sm:$0xff]   ;;  %vm1680_vm0 = vcmask 523264  }
   0xf   : > { %1777 = vmatprep.subr.bf16.mxu0 %v3925_v1  ;;  %3502 = vmatprep.subr.bf16.mxu1 %v3925_v1  ;;  %p236_p4 = scmp.lt.s32.totalorder %s3159_s18, 255  ;;  %v3644_v4 = vld [vmem:[%s4775_s1 + $0x18] sm:$0xff]   ;;  %v3645_v5 = vld [vmem:[%s4775_s1 + $0x20] sm:$0xff]   ;;  %v3646_v7 = vld [vmem:[%s4775_s1 + $0x28] sm:$0xff]  }
  0x10   : > { %1778 = vmatpush1.bf16.msra.mxu0 %v3641_v0  ;;  %3518 = vmatpush1.bf16.msra.mxu1 %v3641_v0  ;;  %v3647_v9 = vld [vmem:[%s4775_s1 + $0x30] sm:$0xff]   ;;  %v3648_v10 = vld [vmem:[%s4775_s1 + $0x38] sm:$0xff]   ;;  %v3649_v11 = vld [vmem:[%s4775_s1 + $0x40] sm:$0xff]  }
  0x11   : > { %1779 = vmatprep.subr.bf16.mxu0 %v3925_v1  ;;  %3503 = vmatprep.subr.bf16.mxu1 %v3925_v1  ;;  %s4809_s18 = smov (!%p236_p4, %s3159_s18), 255  ;;  %v3650_v12 = vld [vmem:[%s4775_s1 + $0x48] sm:$0xff]   ;;  %v3651_v13 = vld [vmem:[%s4775_s1 + $0x50] sm:$0xff]   ;;  %v3652_v14 = vld [vmem:[%s4775_s1 + $0x58] sm:$0xff]  }
  0x12   : > { %s3614_s25 = smul.u32 20, %s4809_s18  ;;  %v3653_v15 = vld [vmem:[%s4775_s1 + $0x60] sm:$0xff]   ;;  %v3654_v16 = vld [vmem:[%s4775_s1 + $0x68] sm:$0xff]   ;;  %v3655_v17 = vld [vmem:[%s4775_s1 + $0x70] sm:$0xff]   ;;  %s3162_s27 = sshll.u32 %s4809_s18, 3 }
  0x13   : > { %v3656_v18 = vld [vmem:[%s4775_s1 + $0x78] sm:$0xff]   ;;  %v3664_v19 = vld [vmem:[%s4775_s1 + $0x100] sm:$0xff]   ;;  %v3713_v25 = vld [vmem:[%s4775_s1 + $0x108] sm:$0xff]   ;;  %s4516_s4 = scalar_lea.vmem %s4777_s3, %s3162_s27 }
  0x14   : > { %1780 = vmatpush1.bf16.msra.mxu0 %v3642_v2  ;;  %3519 = vmatpush1.bf16.msra.mxu1 %v3642_v2  ;;  %s3993_s30 = scalar_lea.vmem %s4774_s0, %s3614_s25  ;;  %v3663_v22 = vld [vmem:[%s4775_s1 + $0x80] sm:$0xff]   ;;  %v3665_v26 = vld [vmem:[%s4775_s1 + $0x88] sm:$0xff]   ;;  %v3672_v29 = vld [vmem:[%s4775_s1 + $0x90] sm:$0xff]  }
  0x15   : > { %1781 = vmatprep.subr.bf16.mxu0 %v3925_v1  ;;  %3504 = vmatprep.subr.bf16.mxu1 %v3925_v1  ;;  %v3659_v6 = vld [vmem:[%s3993_s30 + $0x4] ss:$20 sps:$4 sm:$0xff]   ;;  %v3657_v20 = vld [vmem:[%s3993_s30] ss:$20 sps:$4 sm:$0xff]   ;;  %v3670_v27 = vld [vmem:[%s3993_s30 + $0x28] ss:$20 sps:$4 sm:$0xff]  }
  0x16   : > { %v3662_v8 = vld [vmem:[%s3993_s30 + $0x144] ss:$20 sps:$4 sm:$0xff]   ;;  %1809 = vmatprep.mubr.bf16.mxu0 %v3659_v6  ;;  %v3660_v21 = vld [vmem:[%s3993_s30 + $0x140] ss:$20 sps:$4 sm:$0xff]   ;;  %v3671_v28 = vld [vmem:[%s3993_s30 + $0x168] ss:$20 sps:$4 sm:$0xff]  }
  0x17   : > { %1873 = vmatprep.mubr.bf16.mxu1 %v3662_v8  ;;  %v3666_v23 = vld [vmem:[%s3993_s30 + $0x2c] ss:$20 sps:$4 sm:$0xff]   ;;  %v3753_v30 = vld [vmem:[%s4775_s1 + $0x110] sm:$0xff]   ;;  %v3673_v33 = vld [vmem:[%s4775_s1 + $0x98] sm:$0xff]  }
  0x18   : > { %1782 = vmatpush1.bf16.msra.mxu0 %v3643_v3  ;;  %3520 = vmatpush1.bf16.msra.mxu1 %v3643_v3  ;;  %v3668_v24 = vld [vmem:[%s3993_s30 + $0x16c] ss:$20 sps:$4 sm:$0xff]   ;;  %v3674_v31 = vld [vmem:[%s3993_s30 + $0x54] ss:$20 sps:$4 sm:$0xff]   ;;  %v3678_v34 = vld [vmem:[%s3993_s30 + $0x50] ss:$20 sps:$4 sm:$0xff]  }
  0x19   : > { %1783 = vmatprep.subr.bf16.mxu0 %v3925_v1  ;;  %3505 = vmatprep.subr.bf16.mxu1 %v3925_v1  ;;  %v3676_v32 = vld [vmem:[%s3993_s30 + $0x194] ss:$20 sps:$4 sm:$0xff]   ;;  %v3679_v35 = vld [vmem:[%s3993_s30 + $0x190] ss:$20 sps:$4 sm:$0xff]   ;;  %v3686_v40 = vld [vmem:[%s3993_s30 + $0x78] ss:$20 sps:$4 sm:$0xff]  }
  0x1a   : > { %v3680_v36 = vld [vmem:[%s4775_s1 + $0xa0] sm:$0xff]   ;;  %v3682_v37 = vld [vmem:[%s3993_s30 + $0x7c] ss:$20 sps:$4 sm:$0xff]   ;;  %v3681_v39 = vld [vmem:[%s4775_s1 + $0xa8] sm:$0xff]  }
  0x1b   : > { %v3684_v38 = vld [vmem:[%s3993_s30 + $0x1bc] ss:$20 sps:$4 sm:$0xff]   ;;  %v3687_v41 = vld [vmem:[%s3993_s30 + $0x1b8] ss:$20 sps:$4 sm:$0xff]   ;;  %v3694_v47 = vld [vmem:[%s3993_s30 + $0xa0] ss:$20 sps:$4 sm:$0xff]  }
  0x1c   : > { %1784 = vmatpush1.bf16.msra.mxu0 %v3644_v4  ;;  %3521 = vmatpush1.bf16.msra.mxu1 %v3644_v4  ;;  %v3688_v42 = vld [vmem:[%s4775_s1 + $0xb0] sm:$0xff]   ;;  %v3690_v43 = vld [vmem:[%s3993_s30 + $0xa4] ss:$20 sps:$4 sm:$0xff]   ;;  %v3698_v50 = vld [vmem:[%s3993_s30 + $0xcc] ss:$20 sps:$4 sm:$0xff]  }
  0x1d   : > { %1785 = vmatprep.subr.bf16.mxu0 %v3925_v1  ;;  %3506 = vmatprep.subr.bf16.mxu1 %v3925_v1  ;;  %v3790_v44 = vld [vmem:[%s4775_s1 + $0x118] sm:$0xff]   ;;  %v3695_v48 = vld [vmem:[%s3993_s30 + $0x1e0] ss:$20 sps:$4 sm:$0xff]   ;;  %v3697_v52 = vld [vmem:[%s4775_s1 + $0xc8] sm:$0xff]  }
  0x1e   : > { %v3692_v45 = vld [vmem:[%s3993_s30 + $0x1e4] ss:$20 sps:$4 sm:$0xff]   ;;  %v3700_v51 = vld [vmem:[%s3993_s30 + $0x20c] ss:$20 sps:$4 sm:$0xff]   ;;  %v3702_v53 = vld [vmem:[%s3993_s30 + $0xc8] ss:$20 sps:$4 sm:$0xff]  }
  0x1f   : > { %v3689_v46 = vld [vmem:[%s4775_s1 + $0xb8] sm:$0xff]   ;;  %v3696_v49 = vld [vmem:[%s4775_s1 + $0xc0] sm:$0xff]   ;;  %v3704_v55 = vld [vmem:[%s4775_s1 + $0xd0] sm:$0xff]  }
  0x20   : > { %1786 = vmatpush1.bf16.msra.mxu0 %v3645_v5  ;;  %3522 = vmatpush1.bf16.msra.mxu1 %v3645_v5  ;;  %v3703_v54 = vld [vmem:[%s3993_s30 + $0x208] ss:$20 sps:$4 sm:$0xff]   ;;  %v3710_v59 = vld [vmem:[%s3993_s30 + $0xf0] ss:$20 sps:$4 sm:$0xff]   ;;  %v3719_v2 = vld [vmem:[%s3993_s30 + $0x118] ss:$20 sps:$4 sm:$0xff]  }
  0x21   : > { %1787 = vmatprep.subr.bf16.mxu0 %v3925_v1  ;;  %3507 = vmatprep.subr.bf16.mxu1 %v3925_v1  ;;  %v3706_v56 = vld [vmem:[%s3993_s30 + $0xf4] ss:$20 sps:$4 sm:$0xff]   ;;  %v3705_v58 = vld [vmem:[%s4775_s1 + $0xd8] sm:$0xff]   ;;  %v3711_v60 = vld [vmem:[%s3993_s30 + $0x230] ss:$20 sps:$4 sm:$0xff]  }
  0x22   : > { %v3708_v57 = vld [vmem:[%s3993_s30 + $0x234] ss:$20 sps:$4 sm:$0xff]   ;;  %v3712_v61 = vld [vmem:[%s4775_s1 + $0xe0] sm:$0xff]   ;;  %v3715_v62 = vld [vmem:[%s3993_s30 + $0x11c] ss:$20 sps:$4 sm:$0xff]  }
  0x23   : > { %v3717_v63 = vld [vmem:[%s3993_s30 + $0x25c] ss:$20 sps:$4 sm:$0xff]   ;;  %v3714_v0 = vld [vmem:[%s4775_s1 + $0xe8] sm:$0xff]   ;;  %v3723_v5 = vld [vmem:[%s3993_s30 + $0x284] ss:$20 sps:$4 sm:$0xff]  }
  0x24   : > { %1788 = vmatpush1.bf16.msra.mxu0 %v3646_v7  ;;  %3523 = vmatpush1.bf16.msra.mxu1 %v3646_v7  ;;  %v3720_v3 = vld [vmem:[%s3993_s30 + $0x258] ss:$20 sps:$4 sm:$0xff]   ;;  %v3721_v4 = vld [vmem:[%s4775_s1 + $0xf0] sm:$0xff]   ;;  %v3725_v8 = vld [vmem:[%s3993_s30 + $0x8] ss:$20 sps:$4 sm:$0xff]  }
  0x25   : > { %1789 = vmatprep.subr.bf16.mxu0 %v3925_v1  ;;  %3508 = vmatprep.subr.bf16.mxu1 %v3925_v1  ;;  %v3727_v6 = vld [vmem:[%s3993_s30 + $0xc] ss:$20 sps:$4 sm:$0xff]   ;;  %v3722_v7 = vld [vmem:[%s4775_s1 + $0xf8] sm:$0xff]  }
  0x28   : > { %1790 = vmatpush1.bf16.msra.mxu0 %v3647_v9  ;;  %3524 = vmatpush1.bf16.msra.mxu1 %v3647_v9  ;;  %v3728_v9 = vld [vmem:[%s3993_s30 + $0x280] ss:$20 sps:$4 sm:$0xff]  }
  0x29   : > { %1791 = vmatprep.subr.bf16.mxu0 %v3925_v1  ;;  %3509 = vmatprep.subr.bf16.mxu1 %v3925_v1 }
  0x2c   : > { %1792 = vmatpush1.bf16.msra.mxu0 %v3648_v10  ;;  %3525 = vmatpush1.bf16.msra.mxu1 %v3648_v10  ;;  %v3729_v10 = vld [vmem:[%s3993_s30 + $0x2ac] ss:$20 sps:$4 sm:$0xff]  }
  0x2d   : > { %1793 = vmatprep.subr.bf16.mxu0 %v3925_v1  ;;  %3510 = vmatprep.subr.bf16.mxu1 %v3925_v1 }
  0x30   : > { %1794 = vmatpush1.bf16.msra.mxu0 %v3649_v11  ;;  %3526 = vmatpush1.bf16.msra.mxu1 %v3649_v11  ;;  %v3731_v11 = vld [vmem:[%s3993_s30 + $0x34] ss:$20 sps:$4 sm:$0xff]  }
  0x31   : > { %1795 = vmatprep.subr.bf16.mxu0 %v3925_v1  ;;  %3511 = vmatprep.subr.bf16.mxu1 %v3925_v1 }
  0x34   : > { %1796 = vmatpush1.bf16.msra.mxu0 %v3650_v12  ;;  %3527 = vmatpush1.bf16.msra.mxu1 %v3650_v12  ;;  %v3733_v12 = vld [vmem:[%s3993_s30 + $0x2a8] ss:$20 sps:$4 sm:$0xff]  }
  0x35   : > { %1797 = vmatprep.subr.bf16.mxu0 %v3925_v1  ;;  %3512 = vmatprep.subr.bf16.mxu1 %v3925_v1 }
  0x38   : > { %1798 = vmatpush1.bf16.msra.mxu0 %v3651_v13  ;;  %3528 = vmatpush1.bf16.msra.mxu1 %v3651_v13  ;;  %v3734_v13 = vld [vmem:[%s3993_s30 + $0x30] ss:$20 sps:$4 sm:$0xff]  }
  0x39   : > { %1799 = vmatprep.subr.bf16.mxu0 %v3925_v1  ;;  %3513 = vmatprep.subr.bf16.mxu1 %v3925_v1 }
  0x3c   : > { %1800 = vmatpush1.bf16.msra.mxu0 %v3652_v14  ;;  %3529 = vmatpush1.bf16.msra.mxu1 %v3652_v14  ;;  %v3735_v14 = vld [vmem:[%s3993_s30 + $0x2d4] ss:$20 sps:$4 sm:$0xff]  }
  0x3d   : > { %1801 = vmatprep.subr.bf16.mxu0 %v3925_v1  ;;  %3514 = vmatprep.subr.bf16.mxu1 %v3925_v1 }
  0x40   : > { %1802 = vmatpush1.bf16.msra.mxu0 %v3653_v15  ;;  %3530 = vmatpush1.bf16.msra.mxu1 %v3653_v15  ;;  %v3739_v15 = vld [vmem:[%s3993_s30 + $0x2d0] ss:$20 sps:$4 sm:$0xff]  }
  0x41   : > { %1803 = vmatprep.subr.bf16.mxu0 %v3925_v1  ;;  %3515 = vmatprep.subr.bf16.mxu1 %v3925_v1 }
  0x44   : > { %1804 = vmatpush1.bf16.msra.mxu0 %v3654_v16  ;;  %3531 = vmatpush1.bf16.msra.mxu1 %v3654_v16  ;;  %v3740_v16 = vld [vmem:[%s3993_s30 + $0x58] ss:$20 sps:$4 sm:$0xff]  }
  0x45   : > { %1805 = vmatprep.subr.bf16.mxu0 %v3925_v1  ;;  %3516 = vmatprep.subr.bf16.mxu1 %v3925_v1 }
  0x48   : > { %1806 = vmatpush1.bf16.msra.mxu0 %v3655_v17  ;;  %3532 = vmatpush1.bf16.msra.mxu1 %v3655_v17  ;;  %v3741_v17 = vld [vmem:[%s3993_s30 + $0x2fc] ss:$20 sps:$4 sm:$0xff]  }
  0x49   : > { %1807 = vmatprep.subr.bf16.mxu0 %v3925_v1  ;;  %3517 = vmatprep.subr.bf16.mxu1 %v3925_v1 }
  0x4c   : > { %1808 = vmatpush1.bf16.msra.mxu0 %v3656_v18  ;;  %3533 = vmatpush1.bf16.msra.mxu1 %v3656_v18  ;;  %v3743_v18 = vld [vmem:[%s3993_s30 + $0x84] ss:$20 sps:$4 sm:$0xff]  }
  0x4d   : > { %2066 = vmatprep.subr.bf16.mxu0 %v3925_v1  ;;  %3430 = vmatprep.subr.bf16.mxu1 %v3664_v19 }
  0x4f   : > { %1810 = vmatmul.mubr.bf16.vlgmr.msra.gmra.mrb[0].mxu0 %v3657_v20  ;;  %1874 = vmatmul.mubr.bf16.vlgmr.msra.gmra.mrb[0].mxu1 %v3660_v21  ;;  %v3746_v20 = vld [vmem:[%s3993_s30 + $0x80] ss:$20 sps:$4 sm:$0xff]   ;;  %v3747_v21 = vld [vmem:[%s3993_s30 + $0x324] ss:$20 sps:$4 sm:$0xff]  }
  0x50   : > { %2067 = vmatpush1.bf16.msra.mxu0 %v3663_v22  ;;  %3431 = vmatpush3.bf16.msra.mxu1 %v3664_v19  ;;  %v3745_v19 = vld [vmem:[%s3993_s30 + $0x2f8] ss:$20 sps:$4 sm:$0xff]  }
  0x51   : > { %2068 = vmatprep.subr.bf16.mxu0 %v3925_v1  ;;  %1817 = vmatprep.mubr.bf16.mxu0 %v3666_v23  ;;  %v3749_v22 = vld [vmem:[%s3993_s30 + $0xac] ss:$20 sps:$4 sm:$0xff]  }
  0x52   : > { %1881 = vmatprep.mubr.bf16.mxu1 %v3668_v24  ;;  %3432 = vmatprep.subr.bf16.mxu1 %v3713_v25  ;;  %v3751_v23 = vld [vmem:[%s3993_s30 + $0x320] ss:$20 sps:$4 sm:$0xff]   ;;  %v3752_v24 = vld [vmem:[%s3993_s30 + $0xa8] ss:$20 sps:$4 sm:$0xff]  }
  0x54   : > { %2069 = vmatpush1.bf16.msra.mxu0 %v3665_v26  ;;  %3433 = vmatpush3.bf16.msra.mxu1 %v3713_v25  ;;  %v3754_v25 = vld [vmem:[%s3993_s30 + $0x34c] ss:$20 sps:$4 sm:$0xff]   ;;  %v3756_v26 = vld [vmem:[%s3993_s30 + $0xd4] ss:$20 sps:$4 sm:$0xff]  }
  0x55   : > { %2070 = vmatprep.subr.bf16.mxu0 %v3925_v1  ;;  %3434 = vmatprep.subr.bf16.mxu1 %v3753_v30 }
  0x57   : > { %1818 = vmatmul.mubr.bf16.gmra.mrb[4].mxu0 %v3670_v27  ;;  %1882 = vmatmul.mubr.bf16.gmra.mrb[4].mxu1 %v3671_v28  ;;  %v3758_v27 = vld [vmem:[%s3993_s30 + $0x348] ss:$20 sps:$4 sm:$0xff]   ;;  %v3759_v28 = vld [vmem:[%s3993_s30 + $0xd0] ss:$20 sps:$4 sm:$0xff]  }
  0x58   : > { %2071 = vmatpush1.bf16.msra.mxu0 %v3672_v29  ;;  %1825 = vmatprep.mubr.bf16.mxu0 %v3674_v31  ;;  %v3760_v29 = vld [vmem:[%s3993_s30 + $0x374] ss:$20 sps:$4 sm:$0xff]   ;;  %v3764_v31 = vld [vmem:[%s3993_s30 + $0x370] ss:$20 sps:$4 sm:$0xff]  }
  0x59   : > { %2072 = vmatprep.subr.bf16.mxu0 %v3925_v1  ;;  %1889 = vmatprep.mubr.bf16.mxu1 %v3676_v32  ;;  %v3765_v32 = vld [vmem:[%s3993_s30 + $0xf8] ss:$20 sps:$4 sm:$0xff]  }
  0x5a   : > { %3435 = vmatpush3.bf16.msra.mxu1 %v3753_v30  ;;  %v3762_v30 = vld [vmem:[%s3993_s30 + $0xfc] ss:$20 sps:$4 sm:$0xff]  }
  0x5b   : > { %3436 = vmatprep.subr.bf16.mxu1 %v3790_v44 }
  0x5c   : > { %2073 = vmatpush1.bf16.msra.mxu0 %v3673_v33  ;;  %v3766_v33 = vld [vmem:[%s3993_s30 + $0x39c] ss:$20 sps:$4 sm:$0xff]  }
  0x5d   : > { %2074 = vmatprep.subr.bf16.mxu0 %v3925_v1 }
  0x5e   : > { %3437 = vmatpush3.bf16.msra.mxu1 %v3790_v44  ;;  %v3783_v44 = vld [vmem:[%s3993_s30 + $0x170] ss:$20 sps:$4 sm:$0xff]  }
  0x5f   : > { %1826 = vmatmul.mubr.bf16.gmra.mrb[8].mxu0 %v3678_v34  ;;  %1890 = vmatmul.mubr.bf16.gmra.mrb[8].mxu1 %v3679_v35  ;;  %v3768_v34 = vld [vmem:[%s3993_s30 + $0x124] ss:$20 sps:$4 sm:$0xff]  }
  0x60   : > { %2075 = vmatpush1.bf16.msra.mxu0 %v3680_v36  ;;  %1833 = vmatprep.mubr.bf16.mxu0 %v3682_v37  ;;  %v3770_v35 = vld [vmem:[%s3993_s30 + $0x398] ss:$20 sps:$4 sm:$0xff]   ;;  %v3771_v36 = vld [vmem:[%s3993_s30 + $0x120] ss:$20 sps:$4 sm:$0xff]  }
  0x61   : > { %2076 = vmatprep.subr.bf16.mxu0 %v3925_v1  ;;  %1897 = vmatprep.mubr.bf16.mxu1 %v3684_v38  ;;  %v3772_v37 = vld [vmem:[%s3993_s30 + $0x3c4] ss:$20 sps:$4 sm:$0xff]   ;;  %v3774_v38 = vld [vmem:[%s3993_s30 + $0x14c] ss:$20 sps:$4 sm:$0xff]  }
  0x64   : > { %2077 = vmatpush1.bf16.msra.mxu0 %v3681_v39  ;;  %v3776_v39 = vld [vmem:[%s3993_s30 + $0x3c0] ss:$20 sps:$4 sm:$0xff]  }
  0x65   : > { %2078 = vmatprep.subr.bf16.mxu0 %v3925_v1 }
  0x67   : > { %1834 = vmatmul.mubr.bf16.gmra.mrb[12].mxu0 %v3686_v40  ;;  %1898 = vmatmul.mubr.bf16.gmra.mrb[12].mxu1 %v3687_v41  ;;  %v3777_v40 = vld [vmem:[%s3993_s30 + $0x148] ss:$20 sps:$4 sm:$0xff]   ;;  %v3778_v41 = vld [vmem:[%s3993_s30 + $0x3ec] ss:$20 sps:$4 sm:$0xff]  }
  0x68   : > { %2079 = vmatpush1.bf16.msra.mxu0 %v3688_v42  ;;  %1841 = vmatprep.mubr.bf16.mxu0 %v3690_v43  ;;  %v3780_v42 = vld [vmem:[%s3993_s30 + $0x174] ss:$20 sps:$4 sm:$0xff]  }
  0x69   : > { %2080 = vmatprep.subr.bf16.mxu0 %v3925_v1  ;;  %1905 = vmatprep.mubr.bf16.mxu1 %v3692_v45  ;;  %v3782_v43 = vld [vmem:[%s3993_s30 + $0x3e8] ss:$20 sps:$4 sm:$0xff]  }
  0x6a   : > { %v3784_v45 = vld [vmem:[%s3993_s30 + $0x414] ss:$20 sps:$4 sm:$0xff]  }
  0x6c   : > { %2081 = vmatpush1.bf16.msra.mxu0 %v3689_v46  ;;  %v3786_v46 = vld [vmem:[%s3993_s30 + $0x19c] ss:$20 sps:$4 sm:$0xff]  }
  0x6d   : > { %2082 = vmatprep.subr.bf16.mxu0 %v3925_v1 }
  0x6f   : > { %1842 = vmatmul.mubr.bf16.gmra.mrb[16].mxu0 %v3694_v47  ;;  %1906 = vmatmul.mubr.bf16.gmra.mrb[16].mxu1 %v3695_v48  ;;  %v3788_v47 = vld [vmem:[%s3993_s30 + $0x410] ss:$20 sps:$4 sm:$0xff]   ;;  %v3789_v48 = vld [vmem:[%s3993_s30 + $0x198] ss:$20 sps:$4 sm:$0xff]  }
  0x70   : > { %2083 = vmatpush1.bf16.msra.mxu0 %v3696_v49  ;;  %1849 = vmatprep.mubr.bf16.mxu0 %v3698_v50  ;;  %v3791_v49 = vld [vmem:[%s3993_s30 + $0x43c] ss:$20 sps:$4 sm:$0xff]   ;;  %v3793_v50 = vld [vmem:[%s3993_s30 + $0x1c4] ss:$20 sps:$4 sm:$0xff]  }
  0x71   : > { %2084 = vmatprep.subr.bf16.mxu0 %v3925_v1  ;;  %1913 = vmatprep.mubr.bf16.mxu1 %v3700_v51  ;;  %v3795_v51 = vld [vmem:[%s3993_s30 + $0x438] ss:$20 sps:$4 sm:$0xff]  }
  0x74   : > { %2085 = vmatpush1.bf16.msra.mxu0 %v3697_v52  ;;  %v3796_v52 = vld [vmem:[%s3993_s30 + $0x1c0] ss:$20 sps:$4 sm:$0xff]  }
  0x75   : > { %2086 = vmatprep.subr.bf16.mxu0 %v3925_v1 }
  0x77   : > { %1850 = vmatmul.mubr.bf16.gmra.mrb[20].mxu0 %v3702_v53  ;;  %1914 = vmatmul.mubr.bf16.gmra.mrb[20].mxu1 %v3703_v54  ;;  %v3797_v53 = vld [vmem:[%s3993_s30 + $0x464] ss:$20 sps:$4 sm:$0xff]   ;;  %v3799_v54 = vld [vmem:[%s3993_s30 + $0x1ec] ss:$20 sps:$4 sm:$0xff]  }
  0x78   : > { %2087 = vmatpush1.bf16.msra.mxu0 %v3704_v55  ;;  %1857 = vmatprep.mubr.bf16.mxu0 %v3706_v56  ;;  %v3801_v55 = vld [vmem:[%s3993_s30 + $0x460] ss:$20 sps:$4 sm:$0xff]   ;;  %v3802_v56 = vld [vmem:[%s3993_s30 + $0x1e8] ss:$20 sps:$4 sm:$0xff]  }
  0x79   : > { %2088 = vmatprep.subr.bf16.mxu0 %v3925_v1  ;;  %1921 = vmatprep.mubr.bf16.mxu1 %v3708_v57  ;;  %v3803_v57 = vld [vmem:[%s3993_s30 + $0x48c] ss:$20 sps:$4 sm:$0xff]  }
  0x7c   : > { %2089 = vmatpush1.bf16.msra.mxu0 %v3705_v58  ;;  %v3805_v58 = vld [vmem:[%s3993_s30 + $0x214] ss:$20 sps:$4 sm:$0xff]  }
  0x7d   : > { %2090 = vmatprep.subr.bf16.mxu0 %v3925_v1 }
  0x7f   : > { %1858 = vmatmul.mubr.bf16.gmra.mrb[24].mxu0 %v3710_v59  ;;  %1922 = vmatmul.mubr.bf16.gmra.mrb[24].mxu1 %v3711_v60  ;;  %v3807_v59 = vld [vmem:[%s3993_s30 + $0x488] ss:$20 sps:$4 sm:$0xff]   ;;  %v3808_v60 = vld [vmem:[%s3993_s30 + $0x210] ss:$20 sps:$4 sm:$0xff]  }
  0x80   : > { %2091 = vmatpush1.bf16.msra.mxu0 %v3712_v61  ;;  %1865 = vmatprep.mubr.bf16.mxu0 %v3715_v62  ;;  %v3809_v61 = vld [vmem:[%s3993_s30 + $0x4b4] ss:$20 sps:$4 sm:$0xff]   ;;  %v3811_v62 = vld [vmem:[%s3993_s30 + $0x23c] ss:$20 sps:$4 sm:$0xff]  }
  0x81   : > { %2092 = vmatprep.subr.bf16.mxu0 %v3925_v1  ;;  %1929 = vmatprep.mubr.bf16.mxu1 %v3717_v63  ;;  %v3813_v63 = vld [vmem:[%s3993_s30 + $0x4b0] ss:$20 sps:$4 sm:$0xff]  }
  0x84   : > { %2093 = vmatpush1.bf16.msra.mxu0 %v3714_v0  ;;  %v3814_v0 = vld [vmem:[%s3993_s30 + $0x238] ss:$20 sps:$4 sm:$0xff]  }
  0x85   : > { %2094 = vmatprep.subr.bf16.mxu0 %v3925_v1 }
  0x87   : > { %1866 = vmatmul.mubr.bf16.gmra.mrb[28].mxu0 %v3719_v2  ;;  %1930 = vmatmul.mubr.bf16.gmra.mrb[28].mxu1 %v3720_v3  ;;  %v3815_v2 = vld [vmem:[%s3993_s30 + $0x4dc] ss:$20 sps:$4 sm:$0xff]   ;;  %v3817_v3 = vld [vmem:[%s3993_s30 + $0x264] ss:$20 sps:$4 sm:$0xff]  }
  0x88   : > { %2095 = vmatpush1.bf16.msra.mxu0 %v3721_v4  ;;  %1937 = vmatprep.mubr.bf16.mxu1 %v3723_v5  ;;  %v3819_v4 = vld [vmem:[%s3993_s30 + $0x4d8] ss:$20 sps:$4 sm:$0xff]   ;;  %v3820_v5 = vld [vmem:[%s3993_s30 + $0x260] ss:$20 sps:$4 sm:$0xff]  }
  0x89   : > { %2096 = vmatprep.subr.bf16.mxu0 %v3925_v1  ;;  %2098 = vmatprep.mubr.bf16.mxu0 %v3727_v6  ;;  %v3737_v1 = vld [vmem:[%s3993_s30 + $0x5c] ss:$20 sps:$4 sm:$0xff]   ;;  %v3821_v6 = vld [vmem:[%s3993_s30 + $0x28c] ss:$20 sps:$4 sm:$0xff]  }
  0x8c   : > { %2097 = vmatpush1.bf16.msra.mxu0 %v3722_v7  ;;  %v3823_v7 = vld [vmem:[%s3993_s30 + $0x10] ss:$20 sps:$4 sm:$0xff]  }
  0x8f   : > { %1938 = vmatmul.mubr.bf16.gmra.mrb[32].mxu1 %v3728_v9  ;;  %2099 = vmatmul.mubr.bf16.vlgmr.msra.gmra.mrb[0].mxu0 %v3725_v8  ;;  %v3824_v8 = vld [vmem:[%s3993_s30 + $0x288] ss:$20 sps:$4 sm:$0xff]   ;;  %v3825_v9 = vld [vmem:[%s3993_s30 + $0x38] ss:$20 sps:$4 sm:$0xff]  }
  0x90   : > { %1945 = vmatprep.mubr.bf16.mxu1 %v3729_v10  ;;  %2106 = vmatprep.mubr.bf16.mxu0 %v3731_v11  ;;  %v3826_v10 = vld [vmem:[%s3993_s30 + $0x2b4] ss:$20 sps:$4 sm:$0xff]  }
  0x91   : > { %v3828_v11 = vld [vmem:[%s3993_s30 + $0x60] ss:$20 sps:$4 sm:$0xff]  }
  0x97   : > { %1946 = vmatmul.mubr.bf16.gmra.mrb[36].mxu1 %v3733_v12  ;;  %2107 = vmatmul.mubr.bf16.gmra.mrb[4].mxu0 %v3734_v13  ;;  %v3829_v12 = vld [vmem:[%s3993_s30 + $0x2b0] ss:$20 sps:$4 sm:$0xff]   ;;  %v3830_v13 = vld [vmem:[%s3993_s30 + $0x88] ss:$20 sps:$4 sm:$0xff]  }
  0x98   : > { %1953 = vmatprep.mubr.bf16.mxu1 %v3735_v14  ;;  %2114 = vmatprep.mubr.bf16.mxu0 %v3737_v1  ;;  %v3831_v14 = vld [vmem:[%s3993_s30 + $0x2dc] ss:$20 sps:$4 sm:$0xff]  }
  0x99   : > { %v3833_v1 = vld [vmem:[%s3993_s30 + $0xb0] ss:$20 sps:$4 sm:$0xff]  }
  0x9f   : > { %1954 = vmatmul.mubr.bf16.gmra.mrb[40].mxu1 %v3739_v15  ;;  %2115 = vmatmul.mubr.bf16.gmra.mrb[8].mxu0 %v3740_v16  ;;  %v3834_v15 = vld [vmem:[%s3993_s30 + $0x2d8] ss:$20 sps:$4 sm:$0xff]  }
  0xa0   : > { %1961 = vmatprep.mubr.bf16.mxu1 %v3741_v17  ;;  %2122 = vmatprep.mubr.bf16.mxu0 %v3743_v18  ;;  %v3835_v16 = vld [vmem:[%s3993_s30 + $0xd8] ss:$20 sps:$4 sm:$0xff]   ;;  %v3838_v18 = vld [vmem:[%s3993_s30 + $0x100] ss:$20 sps:$4 sm:$0xff]  }
  0xa1   : > { %v3836_v17 = vld [vmem:[%s3993_s30 + $0x304] ss:$20 sps:$4 sm:$0xff]  }
  0xa7   : > { %1962 = vmatmul.mubr.bf16.gmra.mrb[44].mxu1 %v3745_v19  ;;  %2123 = vmatmul.mubr.bf16.gmra.mrb[12].mxu0 %v3746_v20 }
  0xa8   : > { %1969 = vmatprep.mubr.bf16.mxu1 %v3747_v21  ;;  %2130 = vmatprep.mubr.bf16.mxu0 %v3749_v22  ;;  %v3839_v21 = vld [vmem:[%s3993_s30 + $0x300] ss:$20 sps:$4 sm:$0xff]   ;;  %v3840_v22 = vld [vmem:[%s3993_s30 + $0x128] ss:$20 sps:$4 sm:$0xff]  }
  0xaf   : > { %1970 = vmatmul.mubr.bf16.gmra.mrb[48].mxu1 %v3751_v23  ;;  %2131 = vmatmul.mubr.bf16.gmra.mrb[16].mxu0 %v3752_v24  ;;  %v3841_v24 = vld [vmem:[%s3993_s30 + $0x32c] ss:$20 sps:$4 sm:$0xff]  }
  0xb0   : > { %1977 = vmatprep.mubr.bf16.mxu1 %v3754_v25  ;;  %2138 = vmatprep.mubr.bf16.mxu0 %v3756_v26  ;;  %v3843_v25 = vld [vmem:[%s3993_s30 + $0x150] ss:$20 sps:$4 sm:$0xff]  }
  0xb7   : > { %1978 = vmatmul.mubr.bf16.gmra.mrb[52].mxu1 %v3758_v27  ;;  %2139 = vmatmul.mubr.bf16.gmra.mrb[20].mxu0 %v3759_v28 }
  0xb8   : > { %1985 = vmatprep.mubr.bf16.mxu1 %v3760_v29  ;;  %2146 = vmatprep.mubr.bf16.mxu0 %v3762_v30  ;;  %v3844_v29 = vld [vmem:[%s3993_s30 + $0x328] ss:$20 sps:$4 sm:$0xff]   ;;  %v3845_v30 = vld [vmem:[%s3993_s30 + $0x178] ss:$20 sps:$4 sm:$0xff]  }
  0xbf   : > { %1986 = vmatmul.mubr.bf16.gmra.mrb[56].mxu1 %v3764_v31  ;;  %2147 = vmatmul.mubr.bf16.gmra.mrb[24].mxu0 %v3765_v32  ;;  %v3846_v32 = vld [vmem:[%s3993_s30 + $0x354] ss:$20 sps:$4 sm:$0xff]  }
  0xc0   : > { %1993 = vmatprep.mubr.bf16.mxu1 %v3766_v33  ;;  %2154 = vmatprep.mubr.bf16.mxu0 %v3768_v34  ;;  %v3848_v33 = vld [vmem:[%s3993_s30 + $0x1a0] ss:$20 sps:$4 sm:$0xff]  }
  0xc7   : > { %1994 = vmatmul.mubr.bf16.gmra.mrb[60].mxu1 %v3770_v35  ;;  %2155 = vmatmul.mubr.bf16.gmra.mrb[28].mxu0 %v3771_v36 }
  0xc8   : > { %2001 = vmatprep.mubr.bf16.mxu1 %v3772_v37  ;;  %2162 = vmatprep.mubr.bf16.mxu0 %v3774_v38  ;;  %v3849_v37 = vld [vmem:[%s3993_s30 + $0x350] ss:$20 sps:$4 sm:$0xff]   ;;  %v3850_v38 = vld [vmem:[%s3993_s30 + $0x1c8] ss:$20 sps:$4 sm:$0xff]  }
  0xcf   : > { %2002 = vmatmul.mubr.bf16.gmra.mrb[64].mxu1 %v3776_v39  ;;  %2163 = vmatmul.mubr.bf16.gmra.mrb[32].mxu0 %v3777_v40  ;;  %v3851_v40 = vld [vmem:[%s3993_s30 + $0x37c] ss:$20 sps:$4 sm:$0xff]  }
  0xd0   : > { %2009 = vmatprep.mubr.bf16.mxu1 %v3778_v41  ;;  %2170 = vmatprep.mubr.bf16.mxu0 %v3780_v42  ;;  %v3853_v41 = vld [vmem:[%s3993_s30 + $0x1f0] ss:$20 sps:$4 sm:$0xff]  }
  0xd7   : > { %2010 = vmatmul.mubr.bf16.gmra.mrb[68].mxu1 %v3782_v43  ;;  %2171 = vmatmul.mubr.bf16.gmra.mrb[36].mxu0 %v3783_v44 }
  0xd8   : > { %2017 = vmatprep.mubr.bf16.mxu1 %v3784_v45  ;;  %2178 = vmatprep.mubr.bf16.mxu0 %v3786_v46  ;;  %v3854_v45 = vld [vmem:[%s3993_s30 + $0x378] ss:$20 sps:$4 sm:$0xff]  }
  0xd9   : > { %v3855_v46 = vld [vmem:[%s3993_s30 + $0x218] ss:$20 sps:$4 sm:$0xff]  }
  0xdf   : > { %2018 = vmatmul.mubr.bf16.gmra.mrb[72].mxu1 %v3788_v47  ;;  %2179 = vmatmul.mubr.bf16.gmra.mrb[40].mxu0 %v3789_v48  ;;  %v3856_v48 = vld [vmem:[%s3993_s30 + $0x3a4] ss:$20 sps:$4 sm:$0xff]  }
  0xe0   : > { %2025 = vmatprep.mubr.bf16.mxu1 %v3791_v49  ;;  %2186 = vmatprep.mubr.bf16.mxu0 %v3793_v50  ;;  %v3858_v49 = vld [vmem:[%s3993_s30 + $0x240] ss:$20 sps:$4 sm:$0xff]  }
  0xe7   : > { %2026 = vmatmul.mubr.bf16.gmra.mrb[76].mxu1 %v3795_v51  ;;  %2187 = vmatmul.mubr.bf16.gmra.mrb[44].mxu0 %v3796_v52 }
  0xe8   : > { %2033 = vmatprep.mubr.bf16.mxu1 %v3797_v53  ;;  %2194 = vmatprep.mubr.bf16.mxu0 %v3799_v54  ;;  %v3859_v53 = vld [vmem:[%s3993_s30 + $0x3a0] ss:$20 sps:$4 sm:$0xff]   ;;  %v3860_v54 = vld [vmem:[%s3993_s30 + $0x268] ss:$20 sps:$4 sm:$0xff]  }
  0xef   : > { %2034 = vmatmul.mubr.bf16.gmra.mrb[80].mxu1 %v3801_v55  ;;  %2195 = vmatmul.mubr.bf16.gmra.mrb[48].mxu0 %v3802_v56  ;;  %v3861_v56 = vld [vmem:[%s3993_s30 + $0x3cc] ss:$20 sps:$4 sm:$0xff]  }
  0xf0   : > { %2041 = vmatprep.mubr.bf16.mxu1 %v3803_v57  ;;  %2202 = vmatprep.mubr.bf16.mxu0 %v3805_v58  ;;  %v3863_v57 = vld [vmem:[%s3993_s30 + $0x290] ss:$20 sps:$4 sm:$0xff]  }
  0xf7   : > { %2042 = vmatmul.mubr.bf16.gmra.mrb[84].mxu1 %v3807_v59  ;;  %2203 = vmatmul.mubr.bf16.gmra.mrb[52].mxu0 %v3808_v60 }
  0xf8   : > { %2049 = vmatprep.mubr.bf16.mxu1 %v3809_v61  ;;  %2210 = vmatprep.mubr.bf16.mxu0 %v3811_v62  ;;  %v3864_v61 = vld [vmem:[%s3993_s30 + $0x3c8] ss:$20 sps:$4 sm:$0xff]   ;;  %v3865_v62 = vld [vmem:[%s3993_s30 + $0x2b8] ss:$20 sps:$4 sm:$0xff]  }
  0xff   : > { %2050 = vmatmul.mubr.bf16.gmra.mrb[88].mxu1 %v3813_v63  ;;  %2211 = vmatmul.mubr.bf16.gmra.mrb[56].mxu0 %v3814_v0  ;;  %v3866_v0 = vld [vmem:[%s3993_s30 + $0x3f4] ss:$20 sps:$4 sm:$0xff]  }
 0x100   : > { %2057 = vmatprep.mubr.bf16.mxu1 %v3815_v2  ;;  %2218 = vmatprep.mubr.bf16.mxu0 %v3817_v3  ;;  %v3868_v2 = vld [vmem:[%s3993_s30 + $0x2e0] ss:$20 sps:$4 sm:$0xff]  }
 0x107   : > { %2058 = vmatmul.mubr.bf16.gmra.mrb[92].mxu1 %v3819_v4  ;;  %2219 = vmatmul.mubr.bf16.gmra.mrb[60].mxu0 %v3820_v5 }
 0x108   : > { %2226 = vmatprep.mubr.bf16.mxu0 %v3821_v6  ;;  %3438 = vmatprep.mubr.msk.bf16.mxu1 %vm1680_vm0, %v3823_v7  ;;  %v3869_v6 = vld [vmem:[%s3993_s30 + $0x3f0] ss:$20 sps:$4 sm:$0xff]   ;;  %v3870_v7 = vld [vmem:[%s3993_s30 + $0x308] ss:$20 sps:$4 sm:$0xff]  }
 0x10f   : > { %2227 = vmatmul.mubr.bf16.gmra.mrb[64].mxu0 %v3824_v8  ;;  %3439 = vmatmul.mubr.msk.bf16.vlgmr.msra.gmra.mrb[96].mxu1 %vm1680_vm0, %v3825_v9  ;;  %v3871_v9 = vld [vmem:[%s3993_s30 + $0x41c] ss:$20 sps:$4 sm:$0xff]  }
 0x110   : > { %2234 = vmatprep.mubr.bf16.mxu0 %v3826_v10  ;;  %3442 = vmatprep.mubr.msk.bf16.mxu1 %vm1680_vm0, %v3828_v11  ;;  %v3873_v10 = vld [vmem:[%s3993_s30 + $0x330] ss:$20 sps:$4 sm:$0xff]  }
 0x117   : > { %2235 = vmatmul.mubr.bf16.gmra.mrb[68].mxu0 %v3829_v12  ;;  %3443 = vmatmul.mubr.msk.bf16.gmra.mrb[100].mxu1 %vm1680_vm0, %v3830_v13 }
 0x118   : > { %2242 = vmatprep.mubr.bf16.mxu0 %v3831_v14  ;;  %3446 = vmatprep.mubr.msk.bf16.mxu1 %vm1680_vm0, %v3833_v1  ;;  %v3874_v14 = vld [vmem:[%s3993_s30 + $0x418] ss:$20 sps:$4 sm:$0xff]  }
 0x119   : > { %v3875_v1 = vld [vmem:[%s3993_s30 + $0x358] ss:$20 sps:$4 sm:$0xff]  }
 0x11f   : > { %2243 = vmatmul.mubr.bf16.gmra.mrb[72].mxu0 %v3834_v15  ;;  %3447 = vmatmul.mubr.msk.bf16.gmra.mrb[104].mxu1 %vm1680_vm0, %v3835_v16  ;;  %v3876_v16 = vld [vmem:[%s3993_s30 + $0x444] ss:$20 sps:$4 sm:$0xff]  }
 0x120   : > { %2250 = vmatprep.mubr.bf16.mxu0 %v3836_v17  ;;  %3450 = vmatprep.mubr.msk.bf16.mxu1 %vm1680_vm0, %v3838_v18  ;;  %v3878_v17 = vld [vmem:[%s3993_s30 + $0x380] ss:$20 sps:$4 sm:$0xff]  }
 0x122   : > { %v4245_v19 = vpop.f32.mrb[0].mxu1 }
 0x123   : > { %v1877_v20 = vpop.f32.mrb[1].mxu1 }
 0x124   : > { %v4249_v23 = vpop.f32.mrb[2].mxu1 }
 0x125   : > { %v1880_v26 = vpop.f32.mrb[3].mxu1 }
 0x126   : > { %v3880_v26 = vld [vmem:[%s3993_s30 + $0x3a8] ss:$20 sps:$4 sm:$0xff]  }
 0x127   : > { %2251 = vmatmul.mubr.bf16.gmra.mrb[76].mxu0 %v3839_v21  ;;  %3451 = vmatmul.mubr.msk.bf16.gmra.mrb[108].mxu1 %vm1680_vm0, %v3840_v22 }
 0x128   : > { %2258 = vmatprep.mubr.bf16.mxu0 %v3841_v24  ;;  %3454 = vmatprep.mubr.msk.bf16.mxu1 %vm1680_vm0, %v3843_v25  ;;  %v3879_v25 = vld [vmem:[%s3993_s30 + $0x440] ss:$20 sps:$4 sm:$0xff]  }
 0x12a   : > { %v4255_v27 = vpop.f32.mrb[4].mxu1 }
 0x12b   : > { %v1885_v28 = vpop.f32.mrb[5].mxu1 }
 0x12c   : > { %v4259_v31 = vpop.f32.mrb[6].mxu1 }
 0x12d   : > { %v1888_v34 = vpop.f32.mrb[7].mxu1 }
 0x12f   : > { %2259 = vmatmul.mubr.bf16.gmra.mrb[80].mxu0 %v3844_v29  ;;  %3455 = vmatmul.mubr.msk.bf16.gmra.mrb[112].mxu1 %vm1680_vm0, %v3845_v30  ;;  %v3881_v30 = vld [vmem:[%s3993_s30 + $0x46c] ss:$20 sps:$4 sm:$0xff]  }
 0x130   : > { %2266 = vmatprep.mubr.bf16.mxu0 %v3846_v32  ;;  %3458 = vmatprep.mubr.msk.bf16.mxu1 %vm1680_vm0, %v3848_v33  ;;  %v3883_v32 = vld [vmem:[%s3993_s30 + $0x3d0] ss:$20 sps:$4 sm:$0xff]  }
 0x132   : > { %v4265_v35 = vpop.f32.mrb[8].mxu1 }
 0x133   : > { %v1893_v36 = vpop.f32.mrb[9].mxu1 }
 0x134   : > { %v4269_v39 = vpop.f32.mrb[10].mxu1 }
 0x135   : > { %v1896_v42 = vpop.f32.mrb[11].mxu1 }
 0x136   : > { %v3885_v42 = vld [vmem:[%s3993_s30 + $0x3f8] ss:$20 sps:$4 sm:$0xff]  }
 0x137   : > { %2267 = vmatmul.mubr.bf16.gmra.mrb[84].mxu0 %v3849_v37  ;;  %3459 = vmatmul.mubr.msk.bf16.gmra.mrb[116].mxu1 %vm1680_vm0, %v3850_v38 }
 0x138   : > { %2274 = vmatprep.mubr.bf16.mxu0 %v3851_v40  ;;  %3462 = vmatprep.mubr.msk.bf16.mxu1 %vm1680_vm0, %v3853_v41  ;;  %v3884_v41 = vld [vmem:[%s3993_s30 + $0x468] ss:$20 sps:$4 sm:$0xff]  }
 0x13a   : > { %v4275_v43 = vpop.f32.mrb[12].mxu1 }
 0x13b   : > { %v1901_v44 = vpop.f32.mrb[13].mxu1 }
 0x13c   : > { %v4279_v47 = vpop.f32.mrb[14].mxu1 }
 0x13d   : > { %v1904_v50 = vpop.f32.mrb[15].mxu1 }
 0x13f   : > { %2275 = vmatmul.mubr.bf16.gmra.mrb[88].mxu0 %v3854_v45  ;;  %3463 = vmatmul.mubr.msk.bf16.gmra.mrb[120].mxu1 %vm1680_vm0, %v3855_v46  ;;  %v3886_v46 = vld [vmem:[%s3993_s30 + $0x494] ss:$20 sps:$4 sm:$0xff]  }
 0x140   : > { %2282 = vmatprep.mubr.bf16.mxu0 %v3856_v48  ;;  %3466 = vmatprep.mubr.msk.bf16.mxu1 %vm1680_vm0, %v3858_v49  ;;  %v3888_v48 = vld [vmem:[%s3993_s30 + $0x420] ss:$20 sps:$4 sm:$0xff]  }
 0x142   : > { %v4285_v51 = vpop.f32.mrb[16].mxu1 }
 0x143   : > { %v1909_v52 = vpop.f32.mrb[17].mxu1 }
 0x144   : > { %v4289_v55 = vpop.f32.mrb[18].mxu1 }
 0x145   : > { %v1912_v58 = vpop.f32.mrb[19].mxu1 }
 0x146   : > { %v3890_v58 = vld [vmem:[%s3993_s30 + $0x448] ss:$20 sps:$4 sm:$0xff]  }
 0x147   : > { %2283 = vmatmul.mubr.bf16.gmra.mrb[92].mxu0 %v3859_v53  ;;  %3467 = vmatmul.mubr.msk.bf16.gmra.mrb[124].mxu1 %vm1680_vm0, %v3860_v54 }
 0x148   : > { %2290 = vmatprep.mubr.bf16.mxu0 %v3861_v56  ;;  %3470 = vmatprep.mubr.msk.bf16.mxu1 %vm1680_vm0, %v3863_v57  ;;  %v3889_v57 = vld [vmem:[%s3993_s30 + $0x490] ss:$20 sps:$4 sm:$0xff]  }
 0x14a   : > { %v4295_v59 = vpop.f32.mrb[20].mxu1 }
 0x14b   : > { %v1917_v60 = vpop.f32.mrb[21].mxu1 }
 0x14c   : > { %v4299_v63 = vpop.f32.mrb[22].mxu1 }
 0x14d   : > { %v1920_v3 = vpop.f32.mrb[23].mxu1 }
 0x14f   : > { %2291 = vmatmul.mubr.bf16.gmra.mrb[96].mxu0 %v3864_v61  ;;  %3471 = vmatmul.mubr.msk.bf16.gmra.mrb[128].mxu1 %vm1680_vm0, %v3865_v62  ;;  %v3891_v62 = vld [vmem:[%s3993_s30 + $0x4bc] ss:$20 sps:$4 sm:$0xff]  }
 0x150   : > { %2298 = vmatprep.mubr.bf16.mxu0 %v3866_v0  ;;  %3474 = vmatprep.mubr.msk.bf16.mxu1 %vm1680_vm0, %v3868_v2  ;;  %v3893_v0 = vld [vmem:[%s3993_s30 + $0x470] ss:$20 sps:$4 sm:$0xff]  }
 0x152   : > { %v4305_v4 = vpop.f32.mrb[24].mxu1 }
 0x153   : > { %v1925_v5 = vpop.f32.mrb[25].mxu1 }
 0x154   : > { %v4309_v8 = vpop.f32.mrb[26].mxu1 }
 0x155   : > { %v1928_v11 = vpop.f32.mrb[27].mxu1 }
 0x156   : > { %v3895_v11 = vld [vmem:[%s3993_s30 + $0x498] ss:$20 sps:$4 sm:$0xff]  }
 0x157   : > { %2299 = vmatmul.mubr.bf16.gmra.mrb[100].mxu0 %v3869_v6  ;;  %3475 = vmatmul.mubr.msk.bf16.gmra.mrb[132].mxu1 %vm1680_vm0, %v3870_v7 }
 0x158   : > { %2306 = vmatprep.mubr.bf16.mxu0 %v3871_v9  ;;  %3478 = vmatprep.mubr.msk.bf16.mxu1 %vm1680_vm0, %v3873_v10  ;;  %v3894_v10 = vld [vmem:[%s3993_s30 + $0x4b8] ss:$20 sps:$4 sm:$0xff]  }
 0x15a   : > { %v4315_v12 = vpop.f32.mrb[28].mxu1 }
 0x15b   : > { %v1933_v13 = vpop.f32.mrb[29].mxu1 }
 0x15c   : > { %v4319_v15 = vpop.f32.mrb[30].mxu1 }
 0x15d   : > { %v1936_v18 = vpop.f32.mrb[31].mxu1 }
 0x15f   : > { %2307 = vmatmul.mubr.bf16.gmra.mrb[104].mxu0 %v3874_v14  ;;  %3479 = vmatmul.mubr.msk.bf16.gmra.mrb[136].mxu1 %vm1680_vm0, %v3875_v1  ;;  %v3896_v1 = vld [vmem:[%s3993_s30 + $0x4e4] ss:$20 sps:$4 sm:$0xff]  }
 0x160   : > { %2314 = vmatprep.mubr.bf16.mxu0 %v3876_v16  ;;  %3482 = vmatprep.mubr.msk.bf16.mxu1 %vm1680_vm0, %v3878_v17  ;;  %v3898_v16 = vld [vmem:[%s3993_s30 + $0x4c0] ss:$20 sps:$4 sm:$0xff]  }
 0x162   : > { %v4325_v20 = vpop.f32.mrb[32].mxu1  ;;  %v4327_v21 = vpop.f32.mrb[0].mxu0 }
 0x163   : > { %v1941_v22 = vpop.f32.mrb[33].mxu1  ;;  %v2102_v24 = vpop.f32.mrb[1].mxu0 }
 0x164   : > { %v4331_v28 = vpop.f32.mrb[34].mxu1  ;;  %v4333_v29 = vpop.f32.mrb[2].mxu0 }
 0x165   : > { %v1944_v33 = vpop.f32.mrb[35].mxu1  ;;  %v2105_v34 = vpop.f32.mrb[3].mxu0 }
 0x167   : > { %2315 = vmatmul.mubr.bf16.gmra.mrb[108].mxu0 %v3879_v25  ;;  %3483 = vmatmul.mubr.msk.bf16.gmra.mrb[140].mxu1 %vm1680_vm0, %v3880_v26 }
 0x168   : > { %2322 = vmatprep.mubr.bf16.mxu0 %v3881_v30  ;;  %3486 = vmatprep.mubr.msk.bf16.mxu1 %vm1680_vm0, %v3883_v32  ;;  %v3899_v30 = vld [vmem:[%s3993_s30 + $0x4e0] ss:$20 sps:$4 sm:$0xff]   ;;  %v3900_v32 = vld [vmem:[%s3993_s30 + $0x4e8] ss:$20 sps:$4 sm:$0xff]  }
 0x16a   : > { %v4339_v36 = vpop.f32.mrb[36].mxu1  ;;  %v4341_v37 = vpop.f32.mrb[4].mxu0 }
 0x16b   : > { %v1949_v38 = vpop.f32.mrb[37].mxu1  ;;  %v2110_v40 = vpop.f32.mrb[5].mxu0 }
 0x16c   : > { %v4345_v44 = vpop.f32.mrb[38].mxu1  ;;  %v4347_v45 = vpop.f32.mrb[6].mxu0 }
 0x16d   : > { %v1952_v49 = vpop.f32.mrb[39].mxu1  ;;  %v2113_v50 = vpop.f32.mrb[7].mxu0 }
 0x16f   : > { %2323 = vmatmul.mubr.bf16.gmra.mrb[112].mxu0 %v3884_v41  ;;  %3487 = vmatmul.mubr.msk.bf16.gmra.mrb[144].mxu1 %vm1680_vm0, %v3885_v42 }
 0x170   : > { %2330 = vmatprep.mubr.bf16.mxu0 %v3886_v46  ;;  %3490 = vmatprep.mubr.msk.bf16.mxu1 %vm1680_vm0, %v3888_v48 }
 0x172   : > { %v4353_v52 = vpop.f32.mrb[40].mxu1  ;;  %v4355_v53 = vpop.f32.mrb[8].mxu0 }
 0x173   : > { %v1957_v54 = vpop.f32.mrb[41].mxu1  ;;  %v2118_v56 = vpop.f32.mrb[9].mxu0 }
 0x174   : > { %v4359_v60 = vpop.f32.mrb[42].mxu1  ;;  %v4361_v61 = vpop.f32.mrb[10].mxu0 }
 0x175   : > { %v1960_v2 = vpop.f32.mrb[43].mxu1  ;;  %v2121_v3 = vpop.f32.mrb[11].mxu0 }
 0x177   : > { %2331 = vmatmul.mubr.bf16.gmra.mrb[116].mxu0 %v3889_v57  ;;  %3491 = vmatmul.mubr.msk.bf16.gmra.mrb[148].mxu1 %vm1680_vm0, %v3890_v58 }
 0x178   : > { %2338 = vmatprep.mubr.bf16.mxu0 %v3891_v62  ;;  %3494 = vmatprep.mubr.msk.bf16.mxu1 %vm1680_vm0, %v3893_v0 }
 0x17a   : > { %v4367_v5 = vpop.f32.mrb[44].mxu1  ;;  %v4369_v6 = vpop.f32.mrb[12].mxu0 }
 0x17b   : > { %v1965_v7 = vpop.f32.mrb[45].mxu1  ;;  %v2126_v9 = vpop.f32.mrb[13].mxu0 }
 0x17c   : > { %v4373_v13 = vpop.f32.mrb[46].mxu1  ;;  %v4375_v14 = vpop.f32.mrb[14].mxu0 }
 0x17d   : > { %v1968_v17 = vpop.f32.mrb[47].mxu1  ;;  %v2129_v18 = vpop.f32.mrb[15].mxu0 }
 0x17f   : > { %2339 = vmatmul.mubr.bf16.gmra.mrb[120].mxu0 %v3894_v10  ;;  %3495 = vmatmul.mubr.msk.bf16.gmra.mrb[152].mxu1 %vm1680_vm0, %v3895_v11 }
 0x180   : > { %2346 = vmatprep.mubr.bf16.mxu0 %v3896_v1  ;;  %3498 = vmatprep.mubr.msk.bf16.mxu1 %vm1680_vm0, %v3898_v16 }
 0x182   : > { %v4381_v22 = vpop.f32.mrb[48].mxu1  ;;  %v4383_v24 = vpop.f32.mrb[16].mxu0 }
 0x183   : > { %v1973_v25 = vpop.f32.mrb[49].mxu1  ;;  %v2134_v26 = vpop.f32.mrb[17].mxu0 }
 0x184   : > { %v4387_v33 = vpop.f32.mrb[50].mxu1  ;;  %v4389_v34 = vpop.f32.mrb[18].mxu0 }
 0x185   : > { %v1976_v38 = vpop.f32.mrb[51].mxu1  ;;  %v2137_v40 = vpop.f32.mrb[19].mxu0 }
 0x187   : > { %2347 = vmatmul.mubr.bf16.gmra.mrb[124].mxu0 %v3899_v30  ;;  %3499 = vmatmul.mubr.msk.bf16.gmra.mrb[156].mxu1 %vm1680_vm0, %v3900_v32 }
 0x18a   : > { %v4392_v41 = vpop.f32.mrb[52].mxu1  ;;  %v4394_v42 = vpop.f32.mrb[20].mxu0 }
 0x18b   : > { %v1981_v46 = vpop.f32.mrb[53].mxu1  ;;  %v2142_v48 = vpop.f32.mrb[21].mxu0 }
 0x18c   : > { %v4396_v49 = vpop.f32.mrb[54].mxu1  ;;  %v4398_v50 = vpop.f32.mrb[22].mxu0 }
 0x18d   : > { %v1984_v54 = vpop.f32.mrb[55].mxu1  ;;  %v2145_v56 = vpop.f32.mrb[23].mxu0 }
 0x192   : > { %v4400_v57 = vpop.f32.mrb[56].mxu1  ;;  %v4402_v58 = vpop.f32.mrb[24].mxu0 }
 0x193   : > { %v1989_v62 = vpop.f32.mrb[57].mxu1  ;;  %v2150_v0 = vpop.f32.mrb[25].mxu0 }
 0x194   : > { %v4404_v2 = vpop.f32.mrb[58].mxu1  ;;  %v4406_v3 = vpop.f32.mrb[26].mxu0 }
 0x195   : > { %v1992_v7 = vpop.f32.mrb[59].mxu1  ;;  %v2153_v9 = vpop.f32.mrb[27].mxu0 }
 0x19a   : > { %v4408_v10 = vpop.f32.mrb[60].mxu1  ;;  %v4410_v11 = vpop.f32.mrb[28].mxu0 }
 0x19b   : > { %v1997_v1 = vpop.f32.mrb[61].mxu1  ;;  %v2158_v16 = vpop.f32.mrb[29].mxu0 }
 0x19c   : > { %v4412_v17 = vpop.f32.mrb[62].mxu1  ;;  %v4414_v18 = vpop.f32.mrb[30].mxu0 }
 0x19d   : > { %v2000_v25 = vpop.f32.mrb[63].mxu1  ;;  %v2161_v26 = vpop.f32.mrb[31].mxu0 }
 0x1a2   : > { %v4416_v30 = vpop.f32.mrb[64].mxu1  ;;  %v2164_v32 = vpop.f32.mrb[32].mxu0 }
 0x1a3   : > { %v4419_v38 = vadd.f32 %v2164_v32, %v4245_v19  ;;  %v2005_v40 = vpop.f32.mrb[65].mxu1  ;;  %v2166_v46 = vpop.f32.mrb[33].mxu0 }
 0x1a4   : > { %v4421_v48 = vpop.f32.mrb[66].mxu1  ;;  %v2167_v54 = vpop.f32.mrb[34].mxu0 }
 0x1a5   : > { %v4424_v56 = vadd.f32 %v2167_v54, %v4249_v23  ;;  %v2008_v62 = vpop.f32.mrb[67].mxu1  ;;  %v2169_v0 = vpop.f32.mrb[35].mxu0 }
 0x1aa   : > { %v4426_v7 = vpop.f32.mrb[68].mxu1  ;;  %v2172_v9 = vpop.f32.mrb[36].mxu0 }
 0x1ab   : > { %4778 = vst [vmem:[#allocation2_spill] sm:$0xff] %v4426_v7  ;;  %v4429_v1 = vadd.f32 %v2172_v9, %v4255_v27  ;;  %v2013_v16 = vpop.f32.mrb[69].mxu1  ;;  %v2174_v25 = vpop.f32.mrb[37].mxu0 }
 0x1ac   : > { %v4431_v19 = vpop.f32.mrb[70].mxu1  ;;  %v2175_v26 = vpop.f32.mrb[38].mxu0 }
 0x1ad   : > { %4779 = vst [vmem:[#allocation3_spill] sm:$0xff] %v4431_v19  ;;  %v4434_v32 = vadd.f32 %v2175_v26, %v4259_v31  ;;  %v2016_v40 = vpop.f32.mrb[71].mxu1  ;;  %v2177_v46 = vpop.f32.mrb[39].mxu0 }
 0x1b2   : > { %v4436_v23 = vpop.f32.mrb[72].mxu1  ;;  %v2180_v54 = vpop.f32.mrb[40].mxu0 }
 0x1b3   : > { %4780 = vst [vmem:[#allocation4_spill] sm:$0xff] %v4436_v23  ;;  %v4439_v62 = vadd.f32 %v2180_v54, %v4265_v35  ;;  %v2021_v0 = vpop.f32.mrb[73].mxu1  ;;  %v2182_v7 = vpop.f32.mrb[41].mxu0 }
 0x1b4   : > { %v4441_v27 = vpop.f32.mrb[74].mxu1  ;;  %v2183_v9 = vpop.f32.mrb[42].mxu0 }
 0x1b5   : > { %4781 = vst [vmem:[#allocation5_spill] sm:$0xff] %v4441_v27  ;;  %v4444_v16 = vadd.f32 %v2183_v9, %v4269_v39  ;;  %v2024_v25 = vpop.f32.mrb[75].mxu1  ;;  %v2185_v19 = vpop.f32.mrb[43].mxu0 }
 0x1ba   : > { %v4446_v31 = vpop.f32.mrb[76].mxu1  ;;  %v2188_v26 = vpop.f32.mrb[44].mxu0 }
 0x1bb   : > { %4782 = vst [vmem:[#allocation6_spill] sm:$0xff] %v4446_v31  ;;  %v4449_v40 = vadd.f32 %v2188_v26, %v4275_v43  ;;  %v2029_v46 = vpop.f32.mrb[77].mxu1  ;;  %v2190_v23 = vpop.f32.mrb[45].mxu0 }
 0x1bc   : > { %v4451_v35 = vpop.f32.mrb[78].mxu1  ;;  %v2191_v54 = vpop.f32.mrb[46].mxu0 }
 0x1bd   : > { %4783 = vst [vmem:[#allocation7_spill] sm:$0xff] %v4451_v35  ;;  %v4454_v7 = vadd.f32 %v2191_v54, %v4279_v47  ;;  %v2032_v0 = vpop.f32.mrb[79].mxu1  ;;  %v2193_v27 = vpop.f32.mrb[47].mxu0 }
 0x1c2   : > { %v4456_v39 = vpop.f32.mrb[80].mxu1  ;;  %v2196_v9 = vpop.f32.mrb[48].mxu0 }
 0x1c3   : > { %4784 = vst [vmem:[#allocation8_spill] sm:$0xff] %v4456_v39  ;;  %v4459_v19 = vadd.f32 %v2196_v9, %v4285_v51  ;;  %v2037_v25 = vpop.f32.mrb[81].mxu1  ;;  %v2198_v31 = vpop.f32.mrb[49].mxu0 }
 0x1c4   : > { %v4461_v43 = vpop.f32.mrb[82].mxu1  ;;  %v2199_v26 = vpop.f32.mrb[50].mxu0 }
 0x1c5   : > { %4785 = vst [vmem:[#allocation9_spill] sm:$0xff] %v4461_v43  ;;  %v4464_v23 = vadd.f32 %v2199_v26, %v4289_v55  ;;  %v2040_v46 = vpop.f32.mrb[83].mxu1  ;;  %v2201_v35 = vpop.f32.mrb[51].mxu0 }
 0x1ca   : > { %v4466_v47 = vpop.f32.mrb[84].mxu1  ;;  %v2204_v54 = vpop.f32.mrb[52].mxu0 }
 0x1cb   : > { %4786 = vst [vmem:[#allocation10_spill] sm:$0xff] %v4466_v47  ;;  %v4469_v27 = vadd.f32 %v2204_v54, %v4295_v59  ;;  %v2045_v0 = vpop.f32.mrb[85].mxu1  ;;  %v2206_v39 = vpop.f32.mrb[53].mxu0 }
 0x1cc   : > { %v4471_v51 = vpop.f32.mrb[86].mxu1  ;;  %v2207_v9 = vpop.f32.mrb[54].mxu0 }
 0x1cd   : > { %4787 = vst [vmem:[#allocation11_spill] sm:$0xff] %v4471_v51  ;;  %v4474_v31 = vadd.f32 %v2207_v9, %v4299_v63  ;;  %v2048_v25 = vpop.f32.mrb[87].mxu1  ;;  %v2209_v43 = vpop.f32.mrb[55].mxu0 }
 0x1d2   : > { %v4476_v55 = vpop.f32.mrb[88].mxu1  ;;  %v2212_v26 = vpop.f32.mrb[56].mxu0 }
 0x1d3   : > { %4788 = vst [vmem:[#allocation12_spill] sm:$0xff] %v4476_v55  ;;  %v4479_v35 = vadd.f32 %v2212_v26, %v4305_v4  ;;  %v2053_v46 = vpop.f32.mrb[89].mxu1  ;;  %v2214_v47 = vpop.f32.mrb[57].mxu0 }
 0x1d4   : > { %v4481_v59 = vpop.f32.mrb[90].mxu1  ;;  %v2215_v54 = vpop.f32.mrb[58].mxu0 }
 0x1d5   : > { %v4484_v39 = vadd.f32 %v2215_v54, %v4309_v8  ;;  %v2056_v0 = vpop.f32.mrb[91].mxu1  ;;  %v2217_v51 = vpop.f32.mrb[59].mxu0 }
 0x1da   : > { %v4486_v63 = vpop.f32.mrb[92].mxu1  ;;  %v2220_v9 = vpop.f32.mrb[60].mxu0 }
 0x1db   : > { %4789 = vst [vmem:[#allocation13_spill] sm:$0xff] %v4486_v63  ;;  %v4489_v43 = vadd.f32 %v2220_v9, %v4315_v12  ;;  %v2061_v25 = vpop.f32.mrb[93].mxu1  ;;  %v2222_v55 = vpop.f32.mrb[61].mxu0 }
 0x1dc   : > { %v4491_v4 = vpop.f32.mrb[94].mxu1  ;;  %v2223_v47 = vpop.f32.mrb[62].mxu0  ;;  %v4503_v55 = vld [vmem:[%s4776_s2] ss:$0 sm:$0xff] }
 0x1dd   : > { %4790 = vst [vmem:[#allocation14_spill] sm:$0xff] %v4491_v4  ;;  %v4494_v26 = vadd.f32 %v2223_v47, %v4319_v15  ;;  %v2064_v46 = vpop.f32.mrb[95].mxu1  ;;  %v2225_v8 = vpop.f32.mrb[63].mxu0 }
 0x1e2   : > { %v2228_v54 = vpop.f32.mrb[64].mxu0  ;;  %v3440_v0 = vpop.f32.mrb[96].mxu1 }
 0x1e3   : > { %v4497_v51 = vadd.f32 %v2228_v54, %v4325_v20  ;;  %v2398_v63 = vadd.f32 %v3440_v0, %v4341_v37  ;;  %v2230_v12 = vpop.f32.mrb[65].mxu0  ;;  %v2389_v9 = vpop.f32.mrb[97].mxu1 }
 0x1e4   : > { %v2390_v25 = vadd.f32 %v2389_v9, %v4327_v21  ;;  %v2231_v15 = vpop.f32.mrb[66].mxu0  ;;  %v3441_v47 = vpop.f32.mrb[98].mxu1 }
 0x1e5   : > { %v4508_v46 = vadd.f32 %v2231_v15, %v4331_v28  ;;  %v2401_v20 = vadd.f32 %v3441_v47, %v4347_v45  ;;  %v2233_v8 = vpop.f32.mrb[67].mxu0  ;;  %v2392_v54 = vpop.f32.mrb[99].mxu1  ;;  %v2848_v0 = vadd.f32 %v4503_v55, %v2398_v63 }
 0x1e6   : > { %v2393_v37 = vadd.f32 %v2392_v54, %v4333_v29  ;;  %v2846_v21 = vadd.f32 %v4503_v55, %v2390_v25 }
 0x1e7   : > { %v2912_v12 = vmax.f32 %v2848_v0, 0.0  ;;  %v2849_v28 = vadd.f32 %v4503_v55, %v2401_v20 }
 0x1e8   : > { %v2910_v45 = vmax.f32 %v2846_v21, 0.0  ;;  %v2847_v9 = vadd.f32 %v4503_v55, %v2393_v37 }
 0x1e9   : > { %2976 = vst [vmem:[%s4516_s4 + $0x10] sm:$0xff] %v2912_v12  ;;  %v2913_v63 = vmax.f32 %v2849_v28, 0.0 }
 0x1ea   : > { %v2236_v15 = vpop.f32.mrb[68].mxu0  ;;  %v3444_v29 = vpop.f32.mrb[100].mxu1  ;;  %2974 = vst [vmem:[%s4516_s4] sm:$0xff] %v2910_v45  ;;  %v2911_v25 = vmax.f32 %v2847_v9, 0.0 }
 0x1eb   : > { %v4523_v47 = vadd.f32 %v2236_v15, %v4339_v36  ;;  %v2414_v8 = vadd.f32 %v3444_v29, %v4369_v6  ;;  %v2238_v54 = vpop.f32.mrb[69].mxu0  ;;  %v2405_v4 = vpop.f32.mrb[101].mxu1  ;;  %2977 = vst [vmem:[%s4516_s4 + $0x18] sm:$0xff] %v2913_v63 }
 0x1ec   : > { %v2406_v20 = vadd.f32 %v2405_v4, %v4355_v53  ;;  %v2239_v0 = vpop.f32.mrb[70].mxu0  ;;  %v3445_v21 = vpop.f32.mrb[102].mxu1  ;;  %2975 = vst [vmem:[%s4516_s4 + $0x8] sm:$0xff] %v2911_v25 }
 0x1ed   : > { %v4530_v37 = vadd.f32 %v2239_v0, %v4345_v44  ;;  %v2417_v12 = vadd.f32 %v3445_v21, %v4375_v14  ;;  %v2241_v28 = vpop.f32.mrb[71].mxu0  ;;  %v2408_v36 = vpop.f32.mrb[103].mxu1  ;;  %v2852_v45 = vadd.f32 %v4503_v55, %v2414_v8 }
 0x1ee   : > { %v2409_v6 = vadd.f32 %v2408_v36, %v4361_v61  ;;  %v2850_v9 = vadd.f32 %v4503_v55, %v2406_v20 }
 0x1ef   : > { %v2916_v53 = vmax.f32 %v2852_v45, 0.0  ;;  %v2853_v4 = vadd.f32 %v4503_v55, %v2417_v12 }
 0x1f0   : > { %v2914_v15 = vmax.f32 %v2850_v9, 0.0  ;;  %v2851_v44 = vadd.f32 %v4503_v55, %v2409_v6 }
 0x1f1   : > { %2980 = vst [vmem:[%s4516_s4 + $0x30] sm:$0xff] %v2916_v53  ;;  %v2917_v14 = vmax.f32 %v2853_v4, 0.0 }
 0x1f2   : > { %v2244_v29 = vpop.f32.mrb[72].mxu0  ;;  %v3448_v63 = vpop.f32.mrb[104].mxu1  ;;  %2978 = vst [vmem:[%s4516_s4 + $0x20] sm:$0xff] %v2914_v15  ;;  %v2915_v20 = vmax.f32 %v2851_v44, 0.0 }
 0x1f3   : > { %v4541_v54 = vadd.f32 %v2244_v29, %v4353_v52  ;;  %v2430_v61 = vadd.f32 %v3448_v63, %v4394_v42  ;;  %v2246_v8 = vpop.f32.mrb[73].mxu0  ;;  %v2421_v25 = vpop.f32.mrb[105].mxu1  ;;  %2981 = vst [vmem:[%s4516_s4 + $0x38] sm:$0xff] %v2917_v14 }
 0x1f4   : > { %v2422_v0 = vadd.f32 %v2421_v25, %v4383_v24  ;;  %v2247_v21 = vpop.f32.mrb[74].mxu0  ;;  %v3449_v12 = vpop.f32.mrb[106].mxu1  ;;  %2979 = vst [vmem:[%s4516_s4 + $0x28] sm:$0xff] %v2915_v20 }
 0x1f5   : > { %v4548_v28 = vadd.f32 %v2247_v21, %v4359_v60  ;;  %v2433_v36 = vadd.f32 %v3449_v12, %v4398_v50  ;;  %v2249_v6 = vpop.f32.mrb[75].mxu0  ;;  %v2424_v52 = vpop.f32.mrb[107].mxu1  ;;  %v2856_v45 = vadd.f32 %v4503_v55, %v2430_v61 }
 0x1f6   : > { %v2425_v42 = vadd.f32 %v2424_v52, %v4389_v34  ;;  %v2854_v9 = vadd.f32 %v4503_v55, %v2422_v0 }
 0x1f7   : > { %v2920_v24 = vmax.f32 %v2856_v45, 0.0  ;;  %v2857_v53 = vadd.f32 %v4503_v55, %v2433_v36 }
 0x1f8   : > { %v2918_v4 = vmax.f32 %v2854_v9, 0.0  ;;  %v2855_v60 = vadd.f32 %v4503_v55, %v2425_v42 }
 0x1f9   : > { %2984 = vst [vmem:[%s4516_s4 + $0x50] sm:$0xff] %v2920_v24  ;;  %v2921_v50 = vmax.f32 %v2857_v53, 0.0 }
 0x1fa   : > { %v2252_v15 = vpop.f32.mrb[76].mxu0  ;;  %v3452_v44 = vpop.f32.mrb[108].mxu1  ;;  %2982 = vst [vmem:[%s4516_s4 + $0x40] sm:$0xff] %v2918_v4  ;;  %v2919_v61 = vmax.f32 %v2855_v60, 0.0 }
 0x1fb   : > { %v4559_v29 = vadd.f32 %v2252_v15, %v4367_v5  ;;  %v2446_v34 = vadd.f32 %v3452_v44, %v4410_v11  ;;  %v2254_v63 = vpop.f32.mrb[77].mxu0  ;;  %v2437_v14 = vpop.f32.mrb[109].mxu1  ;;  %2985 = vst [vmem:[%s4516_s4 + $0x58] sm:$0xff] %v2921_v50 }
 0x1fc   : > { %v2438_v8 = vadd.f32 %v2437_v14, %v4402_v58  ;;  %v2255_v25 = vpop.f32.mrb[78].mxu0  ;;  %v3453_v20 = vpop.f32.mrb[110].mxu1  ;;  %2983 = vst [vmem:[%s4516_s4 + $0x48] sm:$0xff] %v2919_v61 }
 0x1fd   : > { %v4566_v0 = vadd.f32 %v2255_v25, %v4373_v13  ;;  %v2449_v21 = vadd.f32 %v3453_v20, %v4414_v18  ;;  %v2257_v12 = vpop.f32.mrb[79].mxu0  ;;  %v2440_v5 = vpop.f32.mrb[111].mxu1  ;;  %v2860_v36 = vadd.f32 %v4503_v55, %v2446_v34 }
 0x1fe   : > { %v2441_v11 = vadd.f32 %v2440_v5, %v4406_v3  ;;  %v2858_v6 = vadd.f32 %v4503_v55, %v2438_v8 }
 0x1ff   : > { %v2924_v58 = vmax.f32 %v2860_v36, 0.0  ;;  %v2861_v52 = vadd.f32 %v4503_v55, %v2449_v21 }
 0x200   : > { %v2922_v42 = vmax.f32 %v2858_v6, 0.0  ;;  %v2859_v13 = vadd.f32 %v4503_v55, %v2441_v11 }
 0x201   : > { %2988 = vst [vmem:[%s4516_s4 + $0x70] sm:$0xff] %v2924_v58  ;;  %v2925_v18 = vmax.f32 %v2861_v52, 0.0 }
 0x202   : > { %v2260_v45 = vpop.f32.mrb[80].mxu0  ;;  %v3456_v9 = vpop.f32.mrb[112].mxu1  ;;  %2986 = vst [vmem:[%s4516_s4 + $0x60] sm:$0xff] %v2922_v42  ;;  %v2923_v60 = vmax.f32 %v2859_v13, 0.0 }
 0x203   : > { %v4577_v24 = vadd.f32 %v2260_v45, %v4381_v22  ;;  %v2462_v3 = vadd.f32 %v3456_v9, %v4429_v1  ;;  %v2262_v53 = vpop.f32.mrb[81].mxu0  ;;  %v2453_v4 = vpop.f32.mrb[113].mxu1  ;;  %2989 = vst [vmem:[%s4516_s4 + $0x78] sm:$0xff] %v2925_v18 }
 0x204   : > { %v2454_v15 = vadd.f32 %v2453_v4, %v4419_v38  ;;  %v2263_v44 = vpop.f32.mrb[82].mxu0  ;;  %v3457_v50 = vpop.f32.mrb[114].mxu1  ;;  %2987 = vst [vmem:[%s4516_s4 + $0x68] sm:$0xff] %v2923_v60 }
 0x205   : > { %v4584_v34 = vadd.f32 %v2263_v44, %v4387_v33  ;;  %v2465_v63 = vadd.f32 %v3457_v50, %v4434_v32  ;;  %v2265_v14 = vpop.f32.mrb[83].mxu0  ;;  %v2456_v22 = vpop.f32.mrb[115].mxu1  ;;  %v2864_v61 = vadd.f32 %v4503_v55, %v2462_v3 }
 0x206   : > { %v2457_v1 = vadd.f32 %v2456_v22, %v4424_v56  ;;  %v2862_v8 = vadd.f32 %v4503_v55, %v2454_v15 }
 0x207   : > { %v2928_v38 = vmax.f32 %v2864_v61, 0.0  ;;  %v2865_v25 = vadd.f32 %v4503_v55, %v2465_v63 }
 0x208   : > { %v2926_v20 = vmax.f32 %v2862_v8, 0.0  ;;  %v2863_v33 = vadd.f32 %v4503_v55, %v2457_v1 }
 0x209   : > { %2992 = vst [vmem:[%s4516_s4 + $0x90] sm:$0xff] %v2928_v38  ;;  %v2929_v32 = vmax.f32 %v2865_v25, 0.0 }
 0x20a   : > { %v2268_v21 = vpop.f32.mrb[84].mxu0  ;;  %v3460_v12 = vpop.f32.mrb[116].mxu1  ;;  %2990 = vst [vmem:[%s4516_s4 + $0x80] sm:$0xff] %v2926_v20  ;;  %v2927_v6 = vmax.f32 %v2863_v33, 0.0 }
 0x20b   : > { %v4595_v5 = vadd.f32 %v2268_v21, %v4392_v41  ;;  %v2478_v56 = vadd.f32 %v3460_v12, %v4449_v40  ;;  %v2270_v11 = vpop.f32.mrb[85].mxu0  ;;  %v2469_v36 = vpop.f32.mrb[117].mxu1  ;;  %2993 = vst [vmem:[%s4516_s4 + $0x98] sm:$0xff] %v2929_v32 }
 0x20c   : > { %v2470_v58 = vadd.f32 %v2469_v36, %v4439_v62  ;;  %v2271_v52 = vpop.f32.mrb[86].mxu0  ;;  %v3461_v42 = vpop.f32.mrb[118].mxu1  ;;  %2991 = vst [vmem:[%s4516_s4 + $0x88] sm:$0xff] %v2927_v6 }
 0x20d   : > { %v4602_v13 = vadd.f32 %v2271_v52, %v4396_v49  ;;  %v2481_v45 = vadd.f32 %v3461_v42, %v4454_v7  ;;  %v2273_v9 = vpop.f32.mrb[87].mxu0  ;;  %v2472_v41 = vpop.f32.mrb[119].mxu1  ;;  %v2868_v18 = vadd.f32 %v4503_v55, %v2478_v56 }
 0x20e   : > { %v2473_v40 = vadd.f32 %v2472_v41, %v4444_v16  ;;  %v2866_v3 = vadd.f32 %v4503_v55, %v2470_v58 }
 0x20f   : > { %v2932_v62 = vmax.f32 %v2868_v18, 0.0  ;;  %v2869_v53 = vadd.f32 %v4503_v55, %v2481_v45 }
 0x210   : > { %v2930_v4 = vmax.f32 %v2866_v3, 0.0  ;;  %v2867_v49 = vadd.f32 %v4503_v55, %v2473_v40 }
 0x211   : > { %2996 = vst [vmem:[%s4516_s4 + $0xb0] sm:$0xff] %v2932_v62  ;;  %v2933_v7 = vmax.f32 %v2869_v53, 0.0 }
 0x212   : > { %v2276_v60 = vpop.f32.mrb[88].mxu0  ;;  %v3464_v15 = vpop.f32.mrb[120].mxu1  ;;  %2994 = vst [vmem:[%s4516_s4 + $0xa0] sm:$0xff] %v2930_v4  ;;  %v2931_v14 = vmax.f32 %v2867_v49, 0.0 }
 0x213   : > { %v4613_v44 = vadd.f32 %v2276_v60, %v4400_v57  ;;  %v2494_v16 = vadd.f32 %v3464_v15, %v4469_v27  ;;  %v2278_v50 = vpop.f32.mrb[89].mxu0  ;;  %v2485_v63 = vpop.f32.mrb[121].mxu1  ;;  %2997 = vst [vmem:[%s4516_s4 + $0xb8] sm:$0xff] %v2933_v7 }
 0x214   : > { %v2486_v22 = vadd.f32 %v2485_v63, %v4459_v19  ;;  %v2279_v1 = vpop.f32.mrb[90].mxu0  ;;  %v3465_v61 = vpop.f32.mrb[122].mxu1  ;;  %2995 = vst [vmem:[%s4516_s4 + $0xa8] sm:$0xff] %v2931_v14 }
 0x215   : > { %v4620_v8 = vadd.f32 %v2279_v1, %v4404_v2  ;;  %v2497_v38 = vadd.f32 %v3465_v61, %v4474_v31  ;;  %v2281_v25 = vpop.f32.mrb[91].mxu0  ;;  %v2488_v57 = vpop.f32.mrb[123].mxu1  ;;  %v2872_v20 = vadd.f32 %v4503_v55, %v2494_v16 }
 0x216   : > { %v2489_v27 = vadd.f32 %v2488_v57, %v4464_v23  ;;  %v2870_v33 = vadd.f32 %v4503_v55, %v2486_v22 }
 0x217   : > { %v2936_v19 = vmax.f32 %v2872_v20, 0.0  ;;  %v2873_v21 = vadd.f32 %v4503_v55, %v2497_v38 }
 0x218   : > { %v2934_v12 = vmax.f32 %v2870_v33, 0.0  ;;  %v2871_v2 = vadd.f32 %v4503_v55, %v2489_v27 }
 0x219   : > { %3000 = vst [vmem:[%s4516_s4 + $0xd0] sm:$0xff] %v2936_v19  ;;  %v2937_v31 = vmax.f32 %v2873_v21, 0.0  ;;  %v4791_v19 = vld [vmem:[#allocation2_spill] sm:$0xff] }
 0x21a   : > { %v2284_v32 = vpop.f32.mrb[92].mxu0  ;;  %v3468_v56 = vpop.f32.mrb[124].mxu1  ;;  %2998 = vst [vmem:[%s4516_s4 + $0xc0] sm:$0xff] %v2934_v12  ;;  %v2935_v58 = vmax.f32 %v2871_v2, 0.0 }
 0x21b   : > { %v4631_v11 = vadd.f32 %v2284_v32, %v4408_v10  ;;  %v2510_v23 = vadd.f32 %v3468_v56, %v4489_v43  ;;  %v2286_v36 = vpop.f32.mrb[93].mxu0  ;;  %v2501_v6 = vpop.f32.mrb[125].mxu1  ;;  %3001 = vst [vmem:[%s4516_s4 + $0xd8] sm:$0xff] %v2937_v31 }
 0x21c   : > { %v2502_v52 = vadd.f32 %v2501_v6, %v4479_v35  ;;  %v2287_v42 = vpop.f32.mrb[94].mxu0  ;;  %v3469_v45 = vpop.f32.mrb[126].mxu1  ;;  %2999 = vst [vmem:[%s4516_s4 + $0xc8] sm:$0xff] %v2935_v58  ;;  %v4792_v36 = vld [vmem:[#allocation3_spill] sm:$0xff] }
 0x21d   : > { %v4638_v9 = vadd.f32 %v2287_v42, %v4412_v17  ;;  %v2513_v41 = vadd.f32 %v3469_v45, %v4494_v26  ;;  %v2289_v40 = vpop.f32.mrb[95].mxu0  ;;  %v2504_v10 = vpop.f32.mrb[127].mxu1  ;;  %v2876_v18 = vadd.f32 %v4503_v55, %v2510_v23 }
 0x21e   : > { %v2505_v43 = vadd.f32 %v2504_v10, %v4484_v39  ;;  %v2874_v3 = vadd.f32 %v4503_v55, %v2502_v52 }
 0x21f   : > { %v2940_v35 = vmax.f32 %v2876_v18, 0.0  ;;  %v2877_v62 = vadd.f32 %v4503_v55, %v2513_v41 }
 0x220   : > { %v2938_v53 = vmax.f32 %v2874_v3, 0.0  ;;  %v2875_v17 = vadd.f32 %v4503_v55, %v2505_v43 }
 0x221   : > { %3004 = vst [vmem:[%s4516_s4 + $0xf0] sm:$0xff] %v2940_v35  ;;  %v2941_v26 = vmax.f32 %v2877_v62, 0.0  ;;  %v4793_v35 = vld [vmem:[#allocation4_spill] sm:$0xff] }
 0x222   : > { %v2292_v4 = vpop.f32.mrb[96].mxu0  ;;  %v3472_v49 = vpop.f32.mrb[128].mxu1  ;;  %3002 = vst [vmem:[%s4516_s4 + $0xe0] sm:$0xff] %v2938_v53  ;;  %v2939_v16 = vmax.f32 %v2875_v17, 0.0 }
 0x223   : > { %v4649_v60 = vadd.f32 %v2292_v4, %v4416_v30  ;;  %v2526_v39 = vadd.f32 %v3472_v49, %v4523_v47  ;;  %v2294_v15 = vpop.f32.mrb[97].mxu0  ;;  %v2517_v7 = vpop.f32.mrb[129].mxu1  ;;  %3005 = vst [vmem:[%s4516_s4 + $0xf8] sm:$0xff] %v2941_v26 }
 0x224   : > { %v2518_v50 = vadd.f32 %v2517_v7, %v4497_v51  ;;  %v2295_v63 = vpop.f32.mrb[98].mxu0  ;;  %v3473_v14 = vpop.f32.mrb[130].mxu1  ;;  %3003 = vst [vmem:[%s4516_s4 + $0xe8] sm:$0xff] %v2939_v16  ;;  %v4794_v15 = vld [vmem:[#allocation5_spill] sm:$0xff] }
 0x225   : > { %v4656_v22 = vadd.f32 %v2295_v63, %v4421_v48  ;;  %v2529_v1 = vadd.f32 %v3473_v14, %v4530_v37  ;;  %v2297_v61 = vpop.f32.mrb[99].mxu0  ;;  %v2520_v30 = vpop.f32.mrb[131].mxu1  ;;  %v2880_v38 = vadd.f32 %v4503_v55, %v2526_v39 }
 0x226   : > { %v2521_v47 = vadd.f32 %v2520_v30, %v4508_v46  ;;  %v2878_v25 = vadd.f32 %v4503_v55, %v2518_v50 }
 0x227   : > { %v2944_v51 = vmax.f32 %v2880_v38, 0.0  ;;  %v2881_v57 = vadd.f32 %v4503_v55, %v2529_v1 }
 0x228   : > { %v2942_v27 = vmax.f32 %v2878_v25, 0.0  ;;  %v2879_v48 = vadd.f32 %v4503_v55, %v2521_v47 }
 0x229   : > { %3008 = vst [vmem:[%s4516_s4 + $0x110] sm:$0xff] %v2944_v51  ;;  %v2945_v37 = vmax.f32 %v2881_v57, 0.0  ;;  %v4795_v51 = vld [vmem:[#allocation6_spill] sm:$0xff] }
 0x22a   : > { %v2300_v20 = vpop.f32.mrb[100].mxu0  ;;  %v3476_v33 = vpop.f32.mrb[132].mxu1  ;;  %3006 = vst [vmem:[%s4516_s4 + $0x100] sm:$0xff] %v2942_v27  ;;  %v2943_v32 = vmax.f32 %v2879_v48, 0.0 }
 0x22b   : > { %v4667_v21 = vadd.f32 %v2300_v20, %v4791_v19  ;;  %v2542_v46 = vadd.f32 %v3476_v33, %v4559_v29  ;;  %v2302_v12 = vpop.f32.mrb[101].mxu0  ;;  %v2533_v2 = vpop.f32.mrb[133].mxu1  ;;  %3009 = vst [vmem:[%s4516_s4 + $0x118] sm:$0xff] %v2945_v37 }
 0x22c   : > { %v2534_v56 = vadd.f32 %v2533_v2, %v4541_v54  ;;  %v2303_v31 = vpop.f32.mrb[102].mxu0  ;;  %v3477_v23 = vpop.f32.mrb[134].mxu1  ;;  %3007 = vst [vmem:[%s4516_s4 + $0x108] sm:$0xff] %v2943_v32 }
 0x22d   : > { %v4674_v6 = vadd.f32 %v2303_v31, %v4792_v36  ;;  %v2545_v58 = vadd.f32 %v3477_v23, %v4566_v0  ;;  %v2305_v52 = vpop.f32.mrb[103].mxu0  ;;  %v2536_v42 = vpop.f32.mrb[135].mxu1  ;;  %v2884_v45 = vadd.f32 %v4503_v55, %v2542_v46  ;;  %v4796_v46 = vld [vmem:[#allocation7_spill] sm:$0xff] }
 0x22e   : > { %v2537_v29 = vadd.f32 %v2536_v42, %v4548_v28  ;;  %v2882_v41 = vadd.f32 %v4503_v55, %v2534_v56 }
 0x22f   : > { %v2948_v54 = vmax.f32 %v2884_v45, 0.0  ;;  %v2885_v40 = vadd.f32 %v4503_v55, %v2545_v58  ;;  %v4797_v45 = vld [vmem:[#allocation8_spill] sm:$0xff] }
 0x230   : > { %v2946_v10 = vmax.f32 %v2882_v41, 0.0  ;;  %v2883_v43 = vadd.f32 %v4503_v55, %v2537_v29 }
 0x231   : > { %3012 = vst [vmem:[%s4516_s4 + $0x130] sm:$0xff] %v2948_v54  ;;  %v2949_v0 = vmax.f32 %v2885_v40, 0.0 }
 0x232   : > { %v2308_v18 = vpop.f32.mrb[104].mxu0  ;;  %v3480_v3 = vpop.f32.mrb[136].mxu1  ;;  %3010 = vst [vmem:[%s4516_s4 + $0x120] sm:$0xff] %v2946_v10  ;;  %v2947_v4 = vmax.f32 %v2883_v43, 0.0 }
 0x233   : > { %v4685_v62 = vadd.f32 %v2308_v18, %v4793_v35  ;;  %v2558_v28 = vadd.f32 %v3480_v3, %v4595_v5  ;;  %v2310_v53 = vpop.f32.mrb[105].mxu0  ;;  %v2549_v17 = vpop.f32.mrb[137].mxu1  ;;  %3013 = vst [vmem:[%s4516_s4 + $0x138] sm:$0xff] %v2949_v0  ;;  %v4798_v0 = vld [vmem:[#allocation9_spill] sm:$0xff] }
 0x234   : > { %v2550_v49 = vadd.f32 %v2549_v17, %v4577_v24  ;;  %v2311_v26 = vpop.f32.mrb[106].mxu0  ;;  %v3481_v39 = vpop.f32.mrb[138].mxu1  ;;  %3011 = vst [vmem:[%s4516_s4 + $0x128] sm:$0xff] %v2947_v4 }
 0x235   : > { %v4692_v7 = vadd.f32 %v2311_v26, %v4794_v15  ;;  %v2561_v16 = vadd.f32 %v3481_v39, %v4602_v13  ;;  %v2313_v50 = vpop.f32.mrb[107].mxu0  ;;  %v2552_v63 = vpop.f32.mrb[139].mxu1  ;;  %v2888_v14 = vadd.f32 %v4503_v55, %v2558_v28 }
 0x236   : > { %v2553_v5 = vadd.f32 %v2552_v63, %v4584_v34  ;;  %v2886_v1 = vadd.f32 %v4503_v55, %v2550_v49  ;;  %v4799_v63 = vld [vmem:[#allocation10_spill] sm:$0xff] }
 0x237   : > { %v2952_v24 = vmax.f32 %v2888_v14, 0.0  ;;  %v2889_v61 = vadd.f32 %v4503_v55, %v2561_v16 }
 0x238   : > { %v2950_v30 = vmax.f32 %v2886_v1, 0.0  ;;  %v2887_v47 = vadd.f32 %v4503_v55, %v2553_v5 }
 0x239   : > { %3016 = vst [vmem:[%s4516_s4 + $0x150] sm:$0xff] %v2952_v24  ;;  %v2953_v13 = vmax.f32 %v2889_v61, 0.0 }
 0x23a   : > { %v2316_v38 = vpop.f32.mrb[108].mxu0  ;;  %v3484_v25 = vpop.f32.mrb[140].mxu1  ;;  %3014 = vst [vmem:[%s4516_s4 + $0x140] sm:$0xff] %v2950_v30  ;;  %v2951_v20 = vmax.f32 %v2887_v47, 0.0 }
 0x23b   : > { %v2317_v57 = vadd.f32 %v2316_v38, %v4795_v51  ;;  %v2574_v34 = vadd.f32 %v3484_v25, %v4631_v11  ;;  %v2318_v27 = vpop.f32.mrb[109].mxu0  ;;  %v2565_v48 = vpop.f32.mrb[141].mxu1  ;;  %3017 = vst [vmem:[%s4516_s4 + $0x158] sm:$0xff] %v2953_v13  ;;  %v4800_v38 = vld [vmem:[#allocation11_spill] sm:$0xff] }
 0x23c   : > { %v2566_v33 = vadd.f32 %v2565_v48, %v4613_v44  ;;  %v2319_v37 = vpop.f32.mrb[110].mxu0  ;;  %v3485_v19 = vpop.f32.mrb[142].mxu1  ;;  %3015 = vst [vmem:[%s4516_s4 + $0x148] sm:$0xff] %v2951_v20 }
 0x23d   : > { %v2320_v12 = vadd.f32 %v2319_v37, %v4796_v46  ;;  %v2577_v2 = vadd.f32 %v3485_v19, %v4638_v9  ;;  %v2321_v32 = vpop.f32.mrb[111].mxu0  ;;  %v2568_v56 = vpop.f32.mrb[143].mxu1  ;;  %v2892_v31 = vadd.f32 %v4503_v55, %v2574_v34 }
 0x23e   : > { %v2569_v11 = vadd.f32 %v2568_v56, %v4620_v8  ;;  %v2890_v23 = vadd.f32 %v4503_v55, %v2566_v33 }
 0x23f   : > { %v2956_v36 = vmax.f32 %v2892_v31, 0.0  ;;  %v2893_v44 = vadd.f32 %v4503_v55, %v2577_v2  ;;  %v4801_v2 = vld [vmem:[#allocation12_spill] sm:$0xff] }
 0x240   : > { %v2954_v58 = vmax.f32 %v2890_v23, 0.0  ;;  %v2891_v52 = vadd.f32 %v4503_v55, %v2569_v11 }
 0x241   : > { %3020 = vst [vmem:[%s4516_s4 + $0x170] sm:$0xff] %v2956_v36  ;;  %v2957_v9 = vmax.f32 %v2893_v44, 0.0 }
 0x242   : > { %v2324_v42 = vpop.f32.mrb[112].mxu0  ;;  %v3488_v29 = vpop.f32.mrb[144].mxu1  ;;  %3018 = vst [vmem:[%s4516_s4 + $0x160] sm:$0xff] %v2954_v58  ;;  %v2955_v10 = vmax.f32 %v2891_v52, 0.0 }
 0x243   : > { %v2325_v41 = vadd.f32 %v2324_v42, %v4797_v45  ;;  %v2590_v8 = vadd.f32 %v3488_v29, %v4667_v21  ;;  %v2326_v54 = vpop.f32.mrb[113].mxu0  ;;  %v2581_v40 = vpop.f32.mrb[145].mxu1  ;;  %3021 = vst [vmem:[%s4516_s4 + $0x178] sm:$0xff] %v2957_v9 }
 0x244   : > { %v2582_v43 = vadd.f32 %v2581_v40, %v4649_v60  ;;  %v2327_v18 = vpop.f32.mrb[114].mxu0  ;;  %v3489_v3 = vpop.f32.mrb[146].mxu1  ;;  %3019 = vst [vmem:[%s4516_s4 + $0x168] sm:$0xff] %v2955_v10 }
 0x245   : > { %v2328_v35 = vadd.f32 %v2327_v18, %v4798_v0  ;;  %v2593_v28 = vadd.f32 %v3489_v3, %v4674_v6  ;;  %v2329_v53 = vpop.f32.mrb[115].mxu0  ;;  %v2584_v17 = vpop.f32.mrb[147].mxu1  ;;  %v2896_v4 = vadd.f32 %v4503_v55, %v2590_v8  ;;  %v4802_v3 = vld [vmem:[#allocation13_spill] sm:$0xff] }
 0x246   : > { %v2585_v21 = vadd.f32 %v2584_v17, %v4656_v22  ;;  %v2894_v49 = vadd.f32 %v4503_v55, %v2582_v43 }
 0x247   : > { %v2960_v26 = vmax.f32 %v2896_v4, 0.0  ;;  %v2897_v60 = vadd.f32 %v4503_v55, %v2593_v28 }
 0x248   : > { %v2958_v39 = vmax.f32 %v2894_v49, 0.0  ;;  %v2895_v15 = vadd.f32 %v4503_v55, %v2585_v21 }
 0x249   : > { %3024 = vst [vmem:[%s4516_s4 + $0x190] sm:$0xff] %v2960_v26  ;;  %v2961_v6 = vmax.f32 %v2897_v60, 0.0  ;;  %v4803_v26 = vld [vmem:[#allocation14_spill] sm:$0xff] }
 0x24a   : > { %v2332_v16 = vpop.f32.mrb[116].mxu0  ;;  %v3492_v50 = vpop.f32.mrb[148].mxu1  ;;  %3022 = vst [vmem:[%s4516_s4 + $0x180] sm:$0xff] %v2958_v39  ;;  %v2959_v24 = vmax.f32 %v2895_v15, 0.0 }
 0x24b   : > { %v2333_v5 = vadd.f32 %v2332_v16, %v4799_v63  ;;  %v2606_v14 = vadd.f32 %v3492_v50, %v2317_v57  ;;  %v2334_v22 = vpop.f32.mrb[117].mxu0  ;;  %v2597_v1 = vpop.f32.mrb[149].mxu1  ;;  %3025 = vst [vmem:[%s4516_s4 + $0x198] sm:$0xff] %v2961_v6 }
 0x24c   : > { %v2598_v61 = vadd.f32 %v2597_v1, %v4685_v62  ;;  %v2335_v30 = vpop.f32.mrb[118].mxu0  ;;  %v3493_v47 = vpop.f32.mrb[150].mxu1  ;;  %3023 = vst [vmem:[%s4516_s4 + $0x188] sm:$0xff] %v2959_v24 }
 0x24d   : > { %v2336_v25 = vadd.f32 %v2335_v30, %v4800_v38  ;;  %v2609_v13 = vadd.f32 %v3493_v47, %v2320_v12  ;;  %v2337_v51 = vpop.f32.mrb[119].mxu0  ;;  %v2600_v34 = vpop.f32.mrb[151].mxu1  ;;  %v2900_v57 = vadd.f32 %v4503_v55, %v2606_v14 }
 0x24e   : > { %v2601_v27 = vadd.f32 %v2600_v34, %v4692_v7  ;;  %v2898_v48 = vadd.f32 %v4503_v55, %v2598_v61 }
 0x24f   : > { %v2964_v20 = vmax.f32 %v2900_v57, 0.0  ;;  %v2901_v62 = vadd.f32 %v4503_v55, %v2609_v13 }
 0x250   : > { %v2962_v33 = vmax.f32 %v2898_v48, 0.0  ;;  %v2899_v37 = vadd.f32 %v4503_v55, %v2601_v27 }
 0x251   : > { %3028 = vst [vmem:[%s4516_s4 + $0x1b0] sm:$0xff] %v2964_v20  ;;  %v2965_v12 = vmax.f32 %v2901_v62, 0.0 }
 0x252   : > { %v2340_v19 = vpop.f32.mrb[120].mxu0  ;;  %v3496_v46 = vpop.f32.mrb[152].mxu1  ;;  %3026 = vst [vmem:[%s4516_s4 + $0x1a0] sm:$0xff] %v2962_v33  ;;  %v2963_v31 = vmax.f32 %v2899_v37, 0.0 }
 0x253   : > { %v2341_v32 = vadd.f32 %v2340_v19, %v4801_v2  ;;  %v2622_v56 = vadd.f32 %v3496_v46, %v2333_v5  ;;  %v2342_v7 = vpop.f32.mrb[121].mxu0  ;;  %v2613_v11 = vpop.f32.mrb[153].mxu1  ;;  %3029 = vst [vmem:[%s4516_s4 + $0x1b8] sm:$0xff] %v2965_v12 }
 0x254   : > { %v2614_v23 = vadd.f32 %v2613_v11, %v2325_v41  ;;  %v2343_v36 = vpop.f32.mrb[122].mxu0  ;;  %v3497_v44 = vpop.f32.mrb[154].mxu1  ;;  %3027 = vst [vmem:[%s4516_s4 + $0x1a8] sm:$0xff] %v2963_v31 }
 0x255   : > { %v2344_v58 = vadd.f32 %v2343_v36, %v4481_v59  ;;  %v2625_v52 = vadd.f32 %v3497_v44, %v2336_v25  ;;  %v2345_v42 = vpop.f32.mrb[123].mxu0  ;;  %v2616_v29 = vpop.f32.mrb[155].mxu1  ;;  %v2904_v45 = vadd.f32 %v4503_v55, %v2622_v56 }
 0x256   : > { %v2617_v9 = vadd.f32 %v2616_v29, %v2328_v35  ;;  %v2902_v8 = vadd.f32 %v4503_v55, %v2614_v23 }
 0x257   : > { %v2968_v54 = vmax.f32 %v2904_v45, 0.0  ;;  %v2905_v41 = vadd.f32 %v4503_v55, %v2625_v52 }
 0x258   : > { %v2966_v40 = vmax.f32 %v2902_v8, 0.0  ;;  %v2903_v10 = vadd.f32 %v4503_v55, %v2617_v9 }
 0x259   : > { %3032 = vst [vmem:[%s4516_s4 + $0x1d0] sm:$0xff] %v2968_v54  ;;  %v2969_v59 = vmax.f32 %v2905_v41, 0.0 }
 0x25a   : > { %v2348_v43 = vpop.f32.mrb[124].mxu0  ;;  %v3500_v18 = vpop.f32.mrb[156].mxu1  ;;  %3030 = vst [vmem:[%s4516_s4 + $0x1c0] sm:$0xff] %v2966_v40  ;;  %v2967_v53 = vmax.f32 %v2903_v10, 0.0 }
 0x25b   : > { %v2349_v0 = vadd.f32 %v2348_v43, %v4802_v3  ;;  %v2350_v28 = vpop.f32.mrb[125].mxu0  ;;  %v2629_v35 = vpop.f32.mrb[157].mxu1  ;;  %3033 = vst [vmem:[%s4516_s4 + $0x1d8] sm:$0xff] %v2969_v59 }
 0x25c   : > { %v2630_v17 = vadd.f32 %v2629_v35, %v2341_v32  ;;  %v2351_v21 = vpop.f32.mrb[126].mxu0  ;;  %v3501_v4 = vpop.f32.mrb[158].mxu1  ;;  %3031 = vst [vmem:[%s4516_s4 + $0x1c8] sm:$0xff] %v2967_v53 }
 0x25d   : > { %v2638_v49 = vadd.f32 %v3500_v18, %v2349_v0  ;;  %v2352_v60 = vadd.f32 %v2351_v21, %v4803_v26  ;;  %v2353_v39 = vpop.f32.mrb[127].mxu0  ;;  %v2632_v15 = vpop.f32.mrb[159].mxu1 }
 0x25e   : > { %v2633_v16 = vadd.f32 %v2632_v15, %v2344_v58  ;;  %v2906_v6 = vadd.f32 %v4503_v55, %v2630_v17 }
 0x25f   : > { %v2641_v50 = vadd.f32 %v3501_v4, %v2352_v60  ;;  %v2908_v63 = vadd.f32 %v4503_v55, %v2638_v49 }
 0x260   : > { %v2970_v5 = vmax.f32 %v2906_v6, 0.0  ;;  %v2907_v14 = vadd.f32 %v4503_v55, %v2633_v16 }
 0x261   : > { %v2972_v22 = vmax.f32 %v2908_v63, 0.0  ;;  %v2909_v1 = vadd.f32 %v4503_v55, %v2641_v50 }
 0x262   : > { %3034 = vst [vmem:[%s4516_s4 + $0x1e0] sm:$0xff] %v2970_v5  ;;  %v2971_v24 = vmax.f32 %v2907_v14, 0.0 }
 0x263   : > { %3036 = vst [vmem:[%s4516_s4 + $0x1f0] sm:$0xff] %v2972_v22  ;;  %v2973_v61 = vmax.f32 %v2909_v1, 0.0 }
 0x264   : > { %3035 = vst [vmem:[%s4516_s4 + $0x1e8] sm:$0xff] %v2971_v24 }
 0x265   : > { %3037 = vst [vmem:[%s4516_s4 + $0x1f8] sm:$0xff] %v2973_v61 }
 0x266 PF: > { %s13_s14 = sadd.s32 1, %s3923_s14   ;;  %s4804_s12 = smov %s3919_s13 }
 0x267   : > { %p10_p5 = scmp.ge.s32.totalorder %s13_s14, 6   ;;  %s4805_s13 = smov %s4807_s15 }
 0x269   :  { %12 = sbr.rel (!%p10_p5) target bundleno = 2 (0x2), region = 76 }

// kernel: cnn_forward.11
= control target key start
LH: loop header
LB: loop body
LE: loop exit
PB: predicated region body
PF: predicated region fallthrough
CT: control target
= control target key end

     0   :  { %s490_s6 = smov 0   ;;  %s651_s0 = inlined_call_operand.vmem [shape: f32[2,14,2,14,256], index: 0, kind: input, shape index: {}]   ;;  %s652_s1 = inlined_call_operand.vmem [shape: f32[2,14,14,128], index: 1, kind: output, shape index: {}]  }
   0x1 LB: > { %s397_s7 = sadd.s32 4294967295, %s478_s6   ;;  %p401_p0 = scmp.ge.s32.totalorder %s478_s6, 1  ;;  %s478_s6 = sphi %s490_s6, %s11_s6  }
   0x2   : > { %p87_p1 = scmp.lt.s32.totalorder %s478_s6, 3 }
   0x4   : > { %p88_p2 = pnand %p401_p0, %p87_p1 }
   0x5   : > { %p107_p3 = scmp.lt.s32.totalorder (!%p88_p2), %s397_s7, 1 }
   0x6   : > { %91 = sbr.rel (%p88_p2) target bundleno = 64 (0x40), region = 24 }
   0xd   : > { %s654_s7 = smov (!%p107_p3, %s397_s7), 1 }
   0xe   : > { %s462_s8 = smul.u32 896, %s654_s7 }
   0xf   : > { %s463_s12 = smul.u32 224, %s654_s7 }
  0x10   : > { %s501_s11 = scalar_lea.vmem %s651_s0, %s462_s8 }
  0x11   : > { %v117_v0 = vld [vmem:[%s501_s11] sm:$0xff]  ;;  %v118_v1 = vld [vmem:[%s501_s11 + $0x8] sm:$0xff]  ;;  %v119_v5 = vld [vmem:[%s501_s11 + $0x10] sm:$0x3f]  ;;  %s515_s15 = scalar_lea.vmem %s652_s1, %s463_s12 }
  0x12   : > { %v404_v2 = vld [vmem:[%s501_s11 + $0x20] sm:$0xff]  ;;  %v405_v3 = vld [vmem:[%s501_s11 + $0x28] sm:$0xff]  ;;  %v120_v6 = vld [vmem:[%s501_s11 + $0x18] sm:$0x3f] }
  0x13   : > { %v230_v4 = vmax.f32 %v117_v0, %v404_v2  ;;  %v231_v7 = vmax.f32 %v118_v1, %v405_v3  ;;  %v406_v8 = vld [vmem:[%s501_s11 + $0x30] sm:$0x3f]  ;;  %v407_v9 = vld [vmem:[%s501_s11 + $0x38] sm:$0x3f]  ;;  %v121_v10 = vld [vmem:[%s501_s11 + $0x40] sm:$0xff] }
  0x14   : > { %v232_v11 = vmax.f32 %v119_v5, %v406_v8  ;;  %v233_v12 = vmax.f32 %v120_v6, %v407_v9  ;;  %v122_v13 = vld [vmem:[%s501_s11 + $0x48] sm:$0xff]  ;;  %v408_v14 = vld [vmem:[%s501_s11 + $0x60] sm:$0xff]  ;;  %v123_v19 = vld [vmem:[%s501_s11 + $0x50] sm:$0x3f] }
  0x15   : > { %v409_v15 = vld [vmem:[%s501_s11 + $0x68] sm:$0xff]  ;;  %v286_v16 = vmax.f32 %v230_v4, %v231_v7  ;;  %v234_v17 = vmax.f32 %v121_v10, %v408_v14  ;;  %v124_v20 = vld [vmem:[%s501_s11 + $0x58] sm:$0x3f]  ;;  %v410_v21 = vld [vmem:[%s501_s11 + $0x70] sm:$0x3f] }
  0x16   : > { %v235_v18 = vmax.f32 %v122_v13, %v409_v15  ;;  %v287_v22 = vmax.f32 %v232_v11, %v233_v12  ;;  %v411_v23 = vld [vmem:[%s501_s11 + $0x78] sm:$0x3f]  ;;  %v236_v24 = vmax.f32 %v123_v19, %v410_v21  ;;  %v125_v25 = vld [vmem:[%s501_s11 + $0x80] sm:$0xff]  ;;  %v126_v26 = vld [vmem:[%s501_s11 + $0x88] sm:$0xff] }
  0x17   : > { %314 = vst [vmem:[%s515_s15] sm:$0xff] %v286_v16  ;;  %v237_v28 = vmax.f32 %v124_v20, %v411_v23  ;;  %v412_v29 = vld [vmem:[%s501_s11 + $0xa0] sm:$0xff]  ;;  %v413_v30 = vld [vmem:[%s501_s11 + $0xa8] sm:$0xff]  ;;  %v127_v31 = vld [vmem:[%s501_s11 + $0x90] sm:$0x3f] }
  0x18   : > { %v288_v27 = vmax.f32 %v234_v17, %v235_v18  ;;  %315 = vst [vmem:[%s515_s15 + $0x8] sm:$0x3f] %v287_v22  ;;  %v238_v32 = vmax.f32 %v125_v25, %v412_v29  ;;  %v239_v33 = vmax.f32 %v126_v26, %v413_v30  ;;  %v128_v34 = vld [vmem:[%s501_s11 + $0x98] sm:$0x3f]  ;;  %v414_v35 = vld [vmem:[%s501_s11 + $0xb0] sm:$0x3f] }
  0x19   : > { %v415_v36 = vld [vmem:[%s501_s11 + $0xb8] sm:$0x3f]  ;;  %v289_v37 = vmax.f32 %v236_v24, %v237_v28  ;;  %v240_v38 = vmax.f32 %v127_v31, %v414_v35  ;;  %v129_v40 = vld [vmem:[%s501_s11 + $0xc0] sm:$0xff]  ;;  %v130_v41 = vld [vmem:[%s501_s11 + $0xc8] sm:$0xff] }
  0x1a   : > { %316 = vst [vmem:[%s515_s15 + $0x10] sm:$0xff] %v288_v27  ;;  %v241_v39 = vmax.f32 %v128_v34, %v415_v36  ;;  %v416_v42 = vld [vmem:[%s501_s11 + $0xe0] sm:$0xff]  ;;  %v290_v43 = vmax.f32 %v238_v32, %v239_v33  ;;  %v417_v44 = vld [vmem:[%s501_s11 + $0xe8] sm:$0xff]  ;;  %v131_v46 = vld [vmem:[%s501_s11 + $0xd0] sm:$0x3f] }
  0x1b   : > { %v242_v45 = vmax.f32 %v129_v40, %v416_v42  ;;  %v132_v47 = vld [vmem:[%s501_s11 + $0xd8] sm:$0x3f]  ;;  %317 = vst [vmem:[%s515_s15 + $0x18] sm:$0x3f] %v289_v37  ;;  %v243_v49 = vmax.f32 %v130_v41, %v417_v44  ;;  %v418_v50 = vld [vmem:[%s501_s11 + $0xf0] sm:$0x3f] }
  0x1c   : > { %v291_v48 = vmax.f32 %v240_v38, %v241_v39  ;;  %v419_v51 = vld [vmem:[%s501_s11 + $0xf8] sm:$0x3f]  ;;  %v133_v52 = vld [vmem:[%s501_s11 + $0x100] sm:$0xff]  ;;  %318 = vst [vmem:[%s515_s15 + $0x20] sm:$0xff] %v290_v43  ;;  %v244_v53 = vmax.f32 %v131_v46, %v418_v50  ;;  %v134_v55 = vld [vmem:[%s501_s11 + $0x108] sm:$0xff] }
  0x1d   : > { %v245_v54 = vmax.f32 %v132_v47, %v419_v51  ;;  %v420_v56 = vld [vmem:[%s501_s11 + $0x120] sm:$0xff]  ;;  %v421_v57 = vld [vmem:[%s501_s11 + $0x128] sm:$0xff]  ;;  %v292_v58 = vmax.f32 %v242_v45, %v243_v49  ;;  %v135_v61 = vld [vmem:[%s501_s11 + $0x110] sm:$0x3f] }
  0x1e   : > { %319 = vst [vmem:[%s515_s15 + $0x28] sm:$0x3f] %v291_v48  ;;  %v246_v59 = vmax.f32 %v133_v52, %v420_v56  ;;  %v247_v60 = vmax.f32 %v134_v55, %v421_v57  ;;  %v136_v62 = vld [vmem:[%s501_s11 + $0x118] sm:$0x3f]  ;;  %v422_v63 = vld [vmem:[%s501_s11 + $0x130] sm:$0x3f] }
  0x1f   : > { %v293_v0 = vmax.f32 %v244_v53, %v245_v54  ;;  %v423_v1 = vld [vmem:[%s501_s11 + $0x138] sm:$0x3f]  ;;  %v248_v2 = vmax.f32 %v135_v61, %v422_v63  ;;  %v137_v3 = vld [vmem:[%s501_s11 + $0x140] sm:$0xff]  ;;  %v138_v4 = vld [vmem:[%s501_s11 + $0x148] sm:$0xff]  ;;  %320 = vst [vmem:[%s515_s15 + $0x30] sm:$0xff] %v292_v58 }
  0x20   : > { %v294_v5 = vmax.f32 %v246_v59, %v247_v60  ;;  %v249_v6 = vmax.f32 %v136_v62, %v423_v1  ;;  %v424_v7 = vld [vmem:[%s501_s11 + $0x160] sm:$0xff]  ;;  %v425_v8 = vld [vmem:[%s501_s11 + $0x168] sm:$0xff]  ;;  %v139_v9 = vld [vmem:[%s501_s11 + $0x150] sm:$0x3f] }
  0x21   : > { %321 = vst [vmem:[%s515_s15 + $0x38] sm:$0x3f] %v293_v0  ;;  %v250_v10 = vmax.f32 %v137_v3, %v424_v7  ;;  %v251_v11 = vmax.f32 %v138_v4, %v425_v8  ;;  %v140_v12 = vld [vmem:[%s501_s11 + $0x158] sm:$0x3f]  ;;  %v426_v13 = vld [vmem:[%s501_s11 + $0x170] sm:$0x3f] }
  0x22   : > { %v427_v14 = vld [vmem:[%s501_s11 + $0x178] sm:$0x3f]  ;;  %322 = vst [vmem:[%s515_s15 + $0x40] sm:$0xff] %v294_v5  ;;  %v295_v15 = vmax.f32 %v248_v2, %v249_v6  ;;  %v252_v16 = vmax.f32 %v139_v9, %v426_v13  ;;  %v141_v18 = vld [vmem:[%s501_s11 + $0x180] sm:$0xff]  ;;  %v142_v19 = vld [vmem:[%s501_s11 + $0x188] sm:$0xff] }
  0x23   : > { %v253_v17 = vmax.f32 %v140_v12, %v427_v14  ;;  %v428_v20 = vld [vmem:[%s501_s11 + $0x1a0] sm:$0xff]  ;;  %v296_v21 = vmax.f32 %v250_v10, %v251_v11  ;;  %v429_v22 = vld [vmem:[%s501_s11 + $0x1a8] sm:$0xff]  ;;  %v143_v24 = vld [vmem:[%s501_s11 + $0x190] sm:$0x3f] }
  0x24   : > { %v254_v23 = vmax.f32 %v141_v18, %v428_v20  ;;  %v144_v25 = vld [vmem:[%s501_s11 + $0x198] sm:$0x3f]  ;;  %323 = vst [vmem:[%s515_s15 + $0x48] sm:$0x3f] %v295_v15  ;;  %v255_v27 = vmax.f32 %v142_v19, %v429_v22  ;;  %v430_v28 = vld [vmem:[%s501_s11 + $0x1b0] sm:$0x3f] }
  0x25   : > { %v297_v26 = vmax.f32 %v252_v16, %v253_v17  ;;  %v431_v29 = vld [vmem:[%s501_s11 + $0x1b8] sm:$0x3f]  ;;  %v145_v30 = vld [vmem:[%s501_s11 + $0x1c0] sm:$0xff]  ;;  %324 = vst [vmem:[%s515_s15 + $0x50] sm:$0xff] %v296_v21  ;;  %v256_v31 = vmax.f32 %v143_v24, %v430_v28  ;;  %v146_v33 = vld [vmem:[%s501_s11 + $0x1c8] sm:$0xff] }
  0x26   : > { %v257_v32 = vmax.f32 %v144_v25, %v431_v29  ;;  %v432_v34 = vld [vmem:[%s501_s11 + $0x1e0] sm:$0xff]  ;;  %v433_v35 = vld [vmem:[%s501_s11 + $0x1e8] sm:$0xff]  ;;  %v298_v36 = vmax.f32 %v254_v23, %v255_v27  ;;  %v147_v39 = vld [vmem:[%s501_s11 + $0x1d0] sm:$0x3f] }
  0x27   : > { %325 = vst [vmem:[%s515_s15 + $0x58] sm:$0x3f] %v297_v26  ;;  %v258_v37 = vmax.f32 %v145_v30, %v432_v34  ;;  %v259_v38 = vmax.f32 %v146_v33, %v433_v35  ;;  %v148_v40 = vld [vmem:[%s501_s11 + $0x1d8] sm:$0x3f]  ;;  %v434_v41 = vld [vmem:[%s501_s11 + $0x1f0] sm:$0x3f] }
  0x28   : > { %v299_v42 = vmax.f32 %v256_v31, %v257_v32  ;;  %v435_v43 = vld [vmem:[%s501_s11 + $0x1f8] sm:$0x3f]  ;;  %v260_v44 = vmax.f32 %v147_v39, %v434_v41  ;;  %v149_v45 = vld [vmem:[%s501_s11 + $0x200] sm:$0xff]  ;;  %v150_v46 = vld [vmem:[%s501_s11 + $0x208] sm:$0xff]  ;;  %326 = vst [vmem:[%s515_s15 + $0x60] sm:$0xff] %v298_v36 }
  0x29   : > { %v300_v47 = vmax.f32 %v258_v37, %v259_v38  ;;  %v261_v48 = vmax.f32 %v148_v40, %v435_v43  ;;  %v436_v49 = vld [vmem:[%s501_s11 + $0x220] sm:$0xff]  ;;  %v437_v50 = vld [vmem:[%s501_s11 + $0x228] sm:$0xff]  ;;  %v151_v51 = vld [vmem:[%s501_s11 + $0x210] sm:$0x3f] }
  0x2a   : > { %327 = vst [vmem:[%s515_s15 + $0x68] sm:$0x3f] %v299_v42  ;;  %v262_v52 = vmax.f32 %v149_v45, %v436_v49  ;;  %v263_v53 = vmax.f32 %v150_v46, %v437_v50  ;;  %v152_v54 = vld [vmem:[%s501_s11 + $0x218] sm:$0x3f]  ;;  %v438_v55 = vld [vmem:[%s501_s11 + $0x230] sm:$0x3f] }
  0x2b   : > { %v439_v56 = vld [vmem:[%s501_s11 + $0x238] sm:$0x3f]  ;;  %328 = vst [vmem:[%s515_s15 + $0x70] sm:$0xff] %v300_v47  ;;  %v301_v57 = vmax.f32 %v260_v44, %v261_v48  ;;  %v264_v58 = vmax.f32 %v151_v51, %v438_v55  ;;  %v153_v60 = vld [vmem:[%s501_s11 + $0x240] sm:$0xff]  ;;  %v154_v61 = vld [vmem:[%s501_s11 + $0x248] sm:$0xff] }
  0x2c   : > { %v265_v59 = vmax.f32 %v152_v54, %v439_v56  ;;  %v440_v62 = vld [vmem:[%s501_s11 + $0x260] sm:$0xff]  ;;  %v302_v63 = vmax.f32 %v262_v52, %v263_v53  ;;  %v441_v0 = vld [vmem:[%s501_s11 + $0x268] sm:$0xff]  ;;  %v155_v2 = vld [vmem:[%s501_s11 + $0x250] sm:$0x3f] }
  0x2d   : > { %v266_v1 = vmax.f32 %v153_v60, %v440_v62  ;;  %v156_v3 = vld [vmem:[%s501_s11 + $0x258] sm:$0x3f]  ;;  %329 = vst [vmem:[%s515_s15 + $0x78] sm:$0x3f] %v301_v57  ;;  %v267_v5 = vmax.f32 %v154_v61, %v441_v0  ;;  %v442_v6 = vld [vmem:[%s501_s11 + $0x270] sm:$0x3f] }
  0x2e   : > { %v303_v4 = vmax.f32 %v264_v58, %v265_v59  ;;  %v443_v7 = vld [vmem:[%s501_s11 + $0x278] sm:$0x3f]  ;;  %v157_v8 = vld [vmem:[%s501_s11 + $0x280] sm:$0xff]  ;;  %330 = vst [vmem:[%s515_s15 + $0x80] sm:$0xff] %v302_v63  ;;  %v268_v9 = vmax.f32 %v155_v2, %v442_v6  ;;  %v158_v11 = vld [vmem:[%s501_s11 + $0x288] sm:$0xff] }
  0x2f   : > { %v269_v10 = vmax.f32 %v156_v3, %v443_v7  ;;  %v444_v12 = vld [vmem:[%s501_s11 + $0x2a0] sm:$0xff]  ;;  %v445_v13 = vld [vmem:[%s501_s11 + $0x2a8] sm:$0xff]  ;;  %v304_v14 = vmax.f32 %v266_v1, %v267_v5  ;;  %v159_v17 = vld [vmem:[%s501_s11 + $0x290] sm:$0x3f] }
  0x30   : > { %331 = vst [vmem:[%s515_s15 + $0x88] sm:$0x3f] %v303_v4  ;;  %v270_v15 = vmax.f32 %v157_v8, %v444_v12  ;;  %v271_v16 = vmax.f32 %v158_v11, %v445_v13  ;;  %v160_v18 = vld [vmem:[%s501_s11 + $0x298] sm:$0x3f]  ;;  %v446_v19 = vld [vmem:[%s501_s11 + $0x2b0] sm:$0x3f] }
  0x31   : > { %v305_v20 = vmax.f32 %v268_v9, %v269_v10  ;;  %v447_v21 = vld [vmem:[%s501_s11 + $0x2b8] sm:$0x3f]  ;;  %v272_v22 = vmax.f32 %v159_v17, %v446_v19  ;;  %v161_v23 = vld [vmem:[%s501_s11 + $0x2c0] sm:$0xff]  ;;  %v162_v24 = vld [vmem:[%s501_s11 + $0x2c8] sm:$0xff]  ;;  %332 = vst [vmem:[%s515_s15 + $0x90] sm:$0xff] %v304_v14 }
  0x32   : > { %v306_v25 = vmax.f32 %v270_v15, %v271_v16  ;;  %v273_v26 = vmax.f32 %v160_v18, %v447_v21  ;;  %v448_v27 = vld [vmem:[%s501_s11 + $0x2e0] sm:$0xff]  ;;  %v449_v28 = vld [vmem:[%s501_s11 + $0x2e8] sm:$0xff]  ;;  %v163_v29 = vld [vmem:[%s501_s11 + $0x2d0] sm:$0x3f] }
  0x33   : > { %333 = vst [vmem:[%s515_s15 + $0x98] sm:$0x3f] %v305_v20  ;;  %v274_v30 = vmax.f32 %v161_v23, %v448_v27  ;;  %v275_v31 = vmax.f32 %v162_v24, %v449_v28  ;;  %v164_v32 = vld [vmem:[%s501_s11 + $0x2d8] sm:$0x3f]  ;;  %v450_v33 = vld [vmem:[%s501_s11 + $0x2f0] sm:$0x3f] }
  0x34   : > { %v451_v34 = vld [vmem:[%s501_s11 + $0x2f8] sm:$0x3f]  ;;  %334 = vst [vmem:[%s515_s15 + $0xa0] sm:$0xff] %v306_v25  ;;  %v307_v35 = vmax.f32 %v272_v22, %v273_v26  ;;  %v276_v36 = vmax.f32 %v163_v29, %v450_v33  ;;  %v165_v38 = vld [vmem:[%s501_s11 + $0x300] sm:$0xff]  ;;  %v166_v39 = vld [vmem:[%s501_s11 + $0x308] sm:$0xff] }
  0x35   : > { %v277_v37 = vmax.f32 %v164_v32, %v451_v34  ;;  %v452_v40 = vld [vmem:[%s501_s11 + $0x320] sm:$0xff]  ;;  %v308_v41 = vmax.f32 %v274_v30, %v275_v31  ;;  %v453_v42 = vld [vmem:[%s501_s11 + $0x328] sm:$0xff]  ;;  %v167_v44 = vld [vmem:[%s501_s11 + $0x310] sm:$0x3f] }
  0x36   : > { %v278_v43 = vmax.f32 %v165_v38, %v452_v40  ;;  %v168_v45 = vld [vmem:[%s501_s11 + $0x318] sm:$0x3f]  ;;  %335 = vst [vmem:[%s515_s15 + $0xa8] sm:$0x3f] %v307_v35  ;;  %v279_v47 = vmax.f32 %v166_v39, %v453_v42  ;;  %v454_v48 = vld [vmem:[%s501_s11 + $0x330] sm:$0x3f] }
  0x37   : > { %v309_v46 = vmax.f32 %v276_v36, %v277_v37  ;;  %v455_v49 = vld [vmem:[%s501_s11 + $0x338] sm:$0x3f]  ;;  %v169_v50 = vld [vmem:[%s501_s11 + $0x340] sm:$0xff]  ;;  %336 = vst [vmem:[%s515_s15 + $0xb0] sm:$0xff] %v308_v41  ;;  %v280_v51 = vmax.f32 %v167_v44, %v454_v48  ;;  %v170_v53 = vld [vmem:[%s501_s11 + $0x348] sm:$0xff] }
  0x38   : > { %v281_v52 = vmax.f32 %v168_v45, %v455_v49  ;;  %v456_v54 = vld [vmem:[%s501_s11 + $0x360] sm:$0xff]  ;;  %v457_v55 = vld [vmem:[%s501_s11 + $0x368] sm:$0xff]  ;;  %v310_v56 = vmax.f32 %v278_v43, %v279_v47  ;;  %v171_v59 = vld [vmem:[%s501_s11 + $0x350] sm:$0x3f] }
  0x39   : > { %337 = vst [vmem:[%s515_s15 + $0xb8] sm:$0x3f] %v309_v46  ;;  %v282_v57 = vmax.f32 %v169_v50, %v456_v54  ;;  %v283_v58 = vmax.f32 %v170_v53, %v457_v55  ;;  %v172_v60 = vld [vmem:[%s501_s11 + $0x358] sm:$0x3f]  ;;  %v458_v61 = vld [vmem:[%s501_s11 + $0x370] sm:$0x3f] }
  0x3a   : > { %v311_v62 = vmax.f32 %v280_v51, %v281_v52  ;;  %v459_v63 = vld [vmem:[%s501_s11 + $0x378] sm:$0x3f]  ;;  %v284_v0 = vmax.f32 %v171_v59, %v458_v61  ;;  %338 = vst [vmem:[%s515_s15 + $0xc0] sm:$0xff] %v310_v56 }
  0x3b   : > { %v312_v1 = vmax.f32 %v282_v57, %v283_v58  ;;  %v285_v2 = vmax.f32 %v172_v60, %v459_v63 }
  0x3c   : > { %339 = vst [vmem:[%s515_s15 + $0xc8] sm:$0x3f] %v311_v62 }
  0x3d   : > { %340 = vst [vmem:[%s515_s15 + $0xd0] sm:$0xff] %v312_v1  ;;  %v313_v3 = vmax.f32 %v284_v0, %v285_v2 }
  0x3f   : > { %341 = vst [vmem:[%s515_s15 + $0xd8] sm:$0x3f] %v313_v3 }
  0x40 PF: > { %s11_s6 = sadd.s32 1, %s478_s6  }
  0x41   : > { %p8_p4 = scmp.ge.s32.totalorder %s11_s6, 4  }
  0x43   :  { %10 = sbr.rel (!%p8_p4) target bundleno = 1 (0x1), region = 55 }

// kernel: cnn_forward.13
= control target key start
LH: loop header
LB: loop body
LE: loop exit
PB: predicated region body
PF: predicated region fallthrough
CT: control target
= control target key end

     0   :  { %s330_s6 = smov 0   ;;  %s411_s0 = inlined_call_operand.vmem [shape: f32[2,6,2,6,512], index: 0, kind: input, shape index: {}]   ;;  %s412_s1 = inlined_call_operand.vmem [shape: f32[2,6,6,256], index: 1, kind: output, shape index: {}]  }
   0x1 LB: > { %s269_s7 = sadd.s32 4294967295, %s318_s6   ;;  %p273_p0 = scmp.ge.s32.totalorder %s318_s6, 1  ;;  %s318_s6 = sphi %s330_s6, %s11_s6  }
   0x2   : > { %p87_p1 = scmp.lt.s32.totalorder %s318_s6, 3 }
   0x4   : > { %p88_p2 = pnand %p273_p0, %p87_p1 }
   0x5   : > { %p107_p3 = scmp.lt.s32.totalorder (!%p88_p2), %s269_s7, 1 }
   0x6   : > { %91 = sbr.rel (%p88_p2) target bundleno = 41 (0x29), region = 24 }
   0xd   : > { %s414_s7 = smov (!%p107_p3, %s269_s7), 1 }
   0xe   : > { %s302_s8 = smul.u32 384, %s414_s7 }
   0xf   : > { %s303_s12 = smul.u32 96, %s414_s7 }
  0x10   : > { %s341_s11 = scalar_lea.vmem %s411_s0, %s302_s8 }
  0x11   : > { %v117_v0 = vld [vmem:[%s341_s11] sm:$0x3f]  ;;  %v119_v1 = vld [vmem:[%s341_s11 + $0x10] sm:$0x3f]  ;;  %v118_v5 = vld [vmem:[%s341_s11 + $0x8] sm:$0x3f]  ;;  %s355_s15 = scalar_lea.vmem %s412_s1, %s303_s12 }
  0x12   : > { %v276_v2 = vld [vmem:[%s341_s11 + $0x20] sm:$0x3f]  ;;  %v278_v3 = vld [vmem:[%s341_s11 + $0x30] sm:$0x3f]  ;;  %v120_v6 = vld [vmem:[%s341_s11 + $0x18] sm:$0x3f] }
  0x13   : > { %v166_v4 = vmax.f32 %v117_v0, %v276_v2  ;;  %v168_v7 = vmax.f32 %v119_v1, %v278_v3  ;;  %v277_v8 = vld [vmem:[%s341_s11 + $0x28] sm:$0x3f]  ;;  %v279_v9 = vld [vmem:[%s341_s11 + $0x38] sm:$0x3f]  ;;  %v121_v10 = vld [vmem:[%s341_s11 + $0x40] sm:$0x3f] }
  0x14   : > { %v167_v11 = vmax.f32 %v118_v5, %v277_v8  ;;  %v169_v12 = vmax.f32 %v120_v6, %v279_v9  ;;  %v123_v13 = vld [vmem:[%s341_s11 + $0x50] sm:$0x3f]  ;;  %v280_v14 = vld [vmem:[%s341_s11 + $0x60] sm:$0x3f]  ;;  %v122_v19 = vld [vmem:[%s341_s11 + $0x48] sm:$0x3f] }
  0x15   : > { %v282_v15 = vld [vmem:[%s341_s11 + $0x70] sm:$0x3f]  ;;  %v190_v16 = vmax.f32 %v166_v4, %v168_v7  ;;  %v170_v17 = vmax.f32 %v121_v10, %v280_v14  ;;  %v124_v20 = vld [vmem:[%s341_s11 + $0x58] sm:$0x3f]  ;;  %v281_v21 = vld [vmem:[%s341_s11 + $0x68] sm:$0x3f] }
  0x16   : > { %v172_v18 = vmax.f32 %v123_v13, %v282_v15  ;;  %v191_v22 = vmax.f32 %v167_v11, %v169_v12  ;;  %v283_v23 = vld [vmem:[%s341_s11 + $0x78] sm:$0x3f]  ;;  %v171_v24 = vmax.f32 %v122_v19, %v281_v21  ;;  %v125_v25 = vld [vmem:[%s341_s11 + $0x80] sm:$0x3f]  ;;  %v127_v26 = vld [vmem:[%s341_s11 + $0x90] sm:$0x3f] }
  0x17   : > { %202 = vst [vmem:[%s355_s15] sm:$0x3f] %v190_v16  ;;  %v173_v28 = vmax.f32 %v124_v20, %v283_v23  ;;  %v284_v29 = vld [vmem:[%s341_s11 + $0xa0] sm:$0x3f]  ;;  %v286_v30 = vld [vmem:[%s341_s11 + $0xb0] sm:$0x3f] }
  0x18   : > { %v192_v27 = vmax.f32 %v170_v17, %v172_v18  ;;  %v126_v31 = vld [vmem:[%s341_s11 + $0x88] sm:$0x3f]  ;;  %203 = vst [vmem:[%s355_s15 + $0x8] sm:$0x3f] %v191_v22  ;;  %v174_v32 = vmax.f32 %v125_v25, %v284_v29  ;;  %v176_v33 = vmax.f32 %v127_v26, %v286_v30  ;;  %v128_v34 = vld [vmem:[%s341_s11 + $0x98] sm:$0x3f] }
  0x19   : > { %v285_v35 = vld [vmem:[%s341_s11 + $0xa8] sm:$0x3f]  ;;  %v287_v36 = vld [vmem:[%s341_s11 + $0xb8] sm:$0x3f]  ;;  %v193_v37 = vmax.f32 %v171_v24, %v173_v28  ;;  %v129_v40 = vld [vmem:[%s341_s11 + $0xc0] sm:$0x3f] }
  0x1a   : > { %204 = vst [vmem:[%s355_s15 + $0x10] sm:$0x3f] %v192_v27  ;;  %v175_v38 = vmax.f32 %v126_v31, %v285_v35  ;;  %v177_v39 = vmax.f32 %v128_v34, %v287_v36  ;;  %v131_v41 = vld [vmem:[%s341_s11 + $0xd0] sm:$0x3f]  ;;  %v288_v42 = vld [vmem:[%s341_s11 + $0xe0] sm:$0x3f]  ;;  %v194_v43 = vmax.f32 %v174_v32, %v176_v33 }
  0x1b   : > { %v290_v44 = vld [vmem:[%s341_s11 + $0xf0] sm:$0x3f]  ;;  %v178_v45 = vmax.f32 %v129_v40, %v288_v42  ;;  %v130_v46 = vld [vmem:[%s341_s11 + $0xc8] sm:$0x3f]  ;;  %v132_v47 = vld [vmem:[%s341_s11 + $0xd8] sm:$0x3f] }
  0x1c   : > { %205 = vst [vmem:[%s355_s15 + $0x18] sm:$0x3f] %v193_v37  ;;  %v195_v48 = vmax.f32 %v175_v38, %v177_v39  ;;  %v180_v49 = vmax.f32 %v131_v41, %v290_v44  ;;  %v289_v50 = vld [vmem:[%s341_s11 + $0xe8] sm:$0x3f]  ;;  %v291_v51 = vld [vmem:[%s341_s11 + $0xf8] sm:$0x3f] }
  0x1d   : > { %v133_v52 = vld [vmem:[%s341_s11 + $0x100] sm:$0x3f]  ;;  %206 = vst [vmem:[%s355_s15 + $0x20] sm:$0x3f] %v194_v43  ;;  %v179_v53 = vmax.f32 %v130_v46, %v289_v50  ;;  %v181_v54 = vmax.f32 %v132_v47, %v291_v51  ;;  %v135_v55 = vld [vmem:[%s341_s11 + $0x110] sm:$0x3f] }
  0x1e   : > { %v292_v56 = vld [vmem:[%s341_s11 + $0x120] sm:$0x3f]  ;;  %v294_v57 = vld [vmem:[%s341_s11 + $0x130] sm:$0x3f]  ;;  %207 = vst [vmem:[%s355_s15 + $0x28] sm:$0x3f] %v195_v48  ;;  %v196_v58 = vmax.f32 %v178_v45, %v180_v49 }
  0x1f   : > { %v182_v59 = vmax.f32 %v133_v52, %v292_v56  ;;  %v184_v60 = vmax.f32 %v135_v55, %v294_v57  ;;  %v134_v61 = vld [vmem:[%s341_s11 + $0x108] sm:$0x3f]  ;;  %v136_v62 = vld [vmem:[%s341_s11 + $0x118] sm:$0x3f]  ;;  %v197_v0 = vmax.f32 %v179_v53, %v181_v54  ;;  %v137_v3 = vld [vmem:[%s341_s11 + $0x140] sm:$0x3f] }
  0x20   : > { %v293_v63 = vld [vmem:[%s341_s11 + $0x128] sm:$0x3f]  ;;  %v295_v1 = vld [vmem:[%s341_s11 + $0x138] sm:$0x3f]  ;;  %v139_v4 = vld [vmem:[%s341_s11 + $0x150] sm:$0x3f] }
  0x21   : > { %v183_v2 = vmax.f32 %v134_v61, %v293_v63  ;;  %208 = vst [vmem:[%s355_s15 + $0x30] sm:$0x3f] %v196_v58  ;;  %v198_v5 = vmax.f32 %v182_v59, %v184_v60  ;;  %v185_v6 = vmax.f32 %v136_v62, %v295_v1  ;;  %v296_v7 = vld [vmem:[%s341_s11 + $0x160] sm:$0x3f]  ;;  %v298_v8 = vld [vmem:[%s341_s11 + $0x170] sm:$0x3f] }
  0x22   : > { %v138_v9 = vld [vmem:[%s341_s11 + $0x148] sm:$0x3f]  ;;  %209 = vst [vmem:[%s355_s15 + $0x38] sm:$0x3f] %v197_v0  ;;  %v186_v10 = vmax.f32 %v137_v3, %v296_v7  ;;  %v188_v11 = vmax.f32 %v139_v4, %v298_v8  ;;  %v140_v12 = vld [vmem:[%s341_s11 + $0x158] sm:$0x3f] }
  0x23   : > { %v297_v13 = vld [vmem:[%s341_s11 + $0x168] sm:$0x3f]  ;;  %v299_v14 = vld [vmem:[%s341_s11 + $0x178] sm:$0x3f]  ;;  %210 = vst [vmem:[%s355_s15 + $0x40] sm:$0x3f] %v198_v5  ;;  %v199_v15 = vmax.f32 %v183_v2, %v185_v6 }
  0x24   : > { %v187_v16 = vmax.f32 %v138_v9, %v297_v13  ;;  %v189_v17 = vmax.f32 %v140_v12, %v299_v14  ;;  %v200_v18 = vmax.f32 %v186_v10, %v188_v11 }
  0x25   : > { %211 = vst [vmem:[%s355_s15 + $0x48] sm:$0x3f] %v199_v15 }
  0x26   : > { %v201_v19 = vmax.f32 %v187_v16, %v189_v17  ;;  %212 = vst [vmem:[%s355_s15 + $0x50] sm:$0x3f] %v200_v18 }
  0x28   : > { %213 = vst [vmem:[%s355_s15 + $0x58] sm:$0x3f] %v201_v19 }
  0x29 PF: > { %s11_s6 = sadd.s32 1, %s318_s6  }
  0x2a   : > { %p8_p4 = scmp.ge.s32.totalorder %s11_s6, 4  }
  0x2c   :  { %10 = sbr.rel (!%p8_p4) target bundleno = 1 (0x1), region = 55 }

// kernel: cnn_forward.12
= control target key start
LH: loop header
LB: loop body
LE: loop exit
PB: predicated region body
PF: predicated region fallthrough
CT: control target
= control target key end

     0   :  { %s4840_s12 = smov 0   ;;  %s4842_s13 = smov 0   ;;  %s6335_s0 = inlined_call_operand.vmem [shape: bf16[288,1152], index: 0, kind: input, shape index: {}]   ;;  %s6336_s1 = inlined_call_operand.vmem [shape: bf16[1152,256], index: 1, kind: input, shape index: {}]   ;;  %s6337_s2 = inlined_call_operand.vmem [shape: f32[1,256], index: 2, kind: input, shape index: {}]   ;;  %s6338_s3 = inlined_call_operand.vmem [shape: f32[288,256], index: 3, kind: output, shape index: {}]  }
   0x1   :  { %s4844_s14 = smov 0   ;;  %s4846_s15 = smov 0  }
   0x2   :  { %s4848_s16 = smov 0  }
   0x3 LB: > { %s28_s17 = sadd.s32 1, %s4813_s15  ;;  %s3919_s18 = sadd.s32 4294967295, %s4817_s16   ;;  %s4817_s16 = sphi %s4848_s16, %s13_s16   ;;  %s4813_s15 = sphi %s4846_s15, %s6343_s15   ;;  %s4809_s14 = sphi %s4844_s14, %s6342_s14   ;;  %s4805_s13 = sphi %s4842_s13, %s6341_s13   ;;  %s4801_s12 = sphi %s4840_s12, %s6340_s12  }
   0x4   : > { %p30_p0 = scmp.ge.s32.totalorder %s28_s17, 2  ;;  %p76_p1 = scmp.ne.s32.totalorder %s4805_s13, %s4801_s12 }
   0x5   : > { %p77_p2 = scmp.eq.s32.totalorder %s4817_s16, 0  ;;  %p134_p4 = scmp.eq.s32.totalorder %s3919_s18, 1 }
   0x6   : > { %s6345_s17 = smov (%p30_p0, %s28_s17), 0  ;;  %s69_s20 = sadd.s32 1, %s4805_s13 }
   0x7   : > { %p78_p3 = por %p77_p2, %p76_p1  ;;  %s65_s19 = ssub.s32 %s4813_s15, %s6345_s17 }
   0x8   : > { %p67_p5 = scmp.eq.s32.totalorder %s65_s19, 0  ;;  %p4875_p6 = por %p134_p4, %p76_p1 }
   0x9   : > { %p3923_p7 = scmp.ge.s32.totalorder %s4817_s16, 2 }
   0xa   : > { %s4880_s22 = scalar_select %p67_p5, %s4805_s13, %s69_s20  }
   0xb   : > { %171 = sbr.rel (%p3923_p7) target bundleno = 118 (0x76), region = 20 }
  0x12   : > { %174 = sbr.rel (!%p78_p3) target bundleno = 118 (0x76), region = 24  ;;  %s176_s23 = sand.u32 (%p78_p3), 1, %s4805_s13  }
  0x13   : > { %s3924_s24 = sshll.u32 (%p78_p3), %s4813_s15, 2  ;;  %s4428_s25 = smul.u32 (%p78_p3), 576, %s176_s23 }
  0x14   : > { %s4888_s28 = scalar_lea.vmem (%p78_p3), %s6336_s1, %s3924_s24 }
  0x15   : > { %v199_v0 = vld [vmem:[%s4888_s28] sm:$0xf] (%p78_p3)  ;;  %v201_v1 = vld [vmem:[%s4888_s28 + $0x8] sm:$0xf] (%p78_p3)  ;;  %v203_v2 = vld [vmem:[%s4888_s28 + $0x10] sm:$0xf] (%p78_p3) }
  0x16   : > { %v205_v3 = vld [vmem:[%s4888_s28 + $0x18] sm:$0xf] (%p78_p3)  ;;  %v207_v4 = vld [vmem:[%s4888_s28 + $0x20] sm:$0xf] (%p78_p3)  ;;  %s4895_s29 = scalar_lea.vmem (%p78_p3), [#allocation2], %s4428_s25 }
  0x17   : > { %200 = vst [vmem:[%s4895_s29] sm:$0xf] (%p78_p3), %v199_v0  ;;  %202 = vst [vmem:[%s4895_s29 + $0x4] sm:$0xf] (%p78_p3), %v201_v1  ;;  %v209_v5 = vld [vmem:[%s4888_s28 + $0x28] sm:$0xf] (%p78_p3) }
  0x18   : > { %204 = vst [vmem:[%s4895_s29 + $0x8] sm:$0xf] (%p78_p3), %v203_v2  ;;  %206 = vst [vmem:[%s4895_s29 + $0xc] sm:$0xf] (%p78_p3), %v205_v3  ;;  %v211_v6 = vld [vmem:[%s4888_s28 + $0x30] sm:$0xf] (%p78_p3) }
  0x19   : > { %208 = vst [vmem:[%s4895_s29 + $0x10] sm:$0xf] %v207_v4  ;;  %v213_v7 = vld [vmem:[%s4888_s28 + $0x38] sm:$0xf]  ;;  %210 = vst [vmem:[%s4895_s29 + $0x14] sm:$0xf] %v209_v5 }
  0x1a   : > { %212 = vst [vmem:[%s4895_s29 + $0x18] sm:$0xf] %v211_v6  ;;  %214 = vst [vmem:[%s4895_s29 + $0x1c] sm:$0xf] %v213_v7  ;;  %v215_v8 = vld [vmem:[%s4888_s28 + $0x40] sm:$0xf] }
  0x1b   : > { %v217_v9 = vld [vmem:[%s4888_s28 + $0x48] sm:$0xf]  ;;  %v219_v10 = vld [vmem:[%s4888_s28 + $0x50] sm:$0xf]  ;;  %216 = vst [vmem:[%s4895_s29 + $0x20] sm:$0xf] %v215_v8 }
  0x1c   : > { %218 = vst [vmem:[%s4895_s29 + $0x24] sm:$0xf] %v217_v9  ;;  %220 = vst [vmem:[%s4895_s29 + $0x28] sm:$0xf] %v219_v10  ;;  %v221_v11 = vld [vmem:[%s4888_s28 + $0x58] sm:$0xf] }
  0x1d   : > { %v223_v12 = vld [vmem:[%s4888_s28 + $0x60] sm:$0xf]  ;;  %v225_v13 = vld [vmem:[%s4888_s28 + $0x68] sm:$0xf]  ;;  %222 = vst [vmem:[%s4895_s29 + $0x2c] sm:$0xf] %v221_v11 }
  0x1e   : > { %224 = vst [vmem:[%s4895_s29 + $0x30] sm:$0xf] %v223_v12  ;;  %226 = vst [vmem:[%s4895_s29 + $0x34] sm:$0xf] %v225_v13  ;;  %v227_v14 = vld [vmem:[%s4888_s28 + $0x70] sm:$0xf] }
  0x1f   : > { %v229_v15 = vld [vmem:[%s4888_s28 + $0x78] sm:$0xf]  ;;  %v231_v16 = vld [vmem:[%s4888_s28 + $0x80] sm:$0xf]  ;;  %228 = vst [vmem:[%s4895_s29 + $0x38] sm:$0xf] %v227_v14 }
  0x20   : > { %230 = vst [vmem:[%s4895_s29 + $0x3c] sm:$0xf] %v229_v15  ;;  %232 = vst [vmem:[%s4895_s29 + $0x40] sm:$0xf] %v231_v16  ;;  %v233_v17 = vld [vmem:[%s4888_s28 + $0x88] sm:$0xf] }
  0x21   : > { %v235_v18 = vld [vmem:[%s4888_s28 + $0x90] sm:$0xf]  ;;  %v237_v19 = vld [vmem:[%s4888_s28 + $0x98] sm:$0xf]  ;;  %234 = vst [vmem:[%s4895_s29 + $0x44] sm:$0xf] %v233_v17 }
  0x22   : > { %236 = vst [vmem:[%s4895_s29 + $0x48] sm:$0xf] %v235_v18  ;;  %238 = vst [vmem:[%s4895_s29 + $0x4c] sm:$0xf] %v237_v19  ;;  %v239_v20 = vld [vmem:[%s4888_s28 + $0xa0] sm:$0xf] }
  0x23   : > { %v241_v21 = vld [vmem:[%s4888_s28 + $0xa8] sm:$0xf]  ;;  %v243_v22 = vld [vmem:[%s4888_s28 + $0xb0] sm:$0xf]  ;;  %240 = vst [vmem:[%s4895_s29 + $0x50] sm:$0xf] %v239_v20 }
  0x24   : > { %242 = vst [vmem:[%s4895_s29 + $0x54] sm:$0xf] %v241_v21  ;;  %244 = vst [vmem:[%s4895_s29 + $0x58] sm:$0xf] %v243_v22  ;;  %v245_v23 = vld [vmem:[%s4888_s28 + $0xb8] sm:$0xf] }
  0x25   : > { %v247_v24 = vld [vmem:[%s4888_s28 + $0xc0] sm:$0xf]  ;;  %v249_v25 = vld [vmem:[%s4888_s28 + $0xc8] sm:$0xf]  ;;  %246 = vst [vmem:[%s4895_s29 + $0x5c] sm:$0xf] %v245_v23 }
  0x26   : > { %248 = vst [vmem:[%s4895_s29 + $0x60] sm:$0xf] %v247_v24  ;;  %250 = vst [vmem:[%s4895_s29 + $0x64] sm:$0xf] %v249_v25  ;;  %v251_v26 = vld [vmem:[%s4888_s28 + $0xd0] sm:$0xf] }
  0x27   : > { %v253_v27 = vld [vmem:[%s4888_s28 + $0xd8] sm:$0xf]  ;;  %v255_v28 = vld [vmem:[%s4888_s28 + $0xe0] sm:$0xf]  ;;  %252 = vst [vmem:[%s4895_s29 + $0x68] sm:$0xf] %v251_v26 }
  0x28   : > { %254 = vst [vmem:[%s4895_s29 + $0x6c] sm:$0xf] %v253_v27  ;;  %256 = vst [vmem:[%s4895_s29 + $0x70] sm:$0xf] %v255_v28  ;;  %v257_v29 = vld [vmem:[%s4888_s28 + $0xe8] sm:$0xf] }
  0x29   : > { %v259_v30 = vld [vmem:[%s4888_s28 + $0xf0] sm:$0xf]  ;;  %v261_v31 = vld [vmem:[%s4888_s28 + $0xf8] sm:$0xf]  ;;  %258 = vst [vmem:[%s4895_s29 + $0x74] sm:$0xf] %v257_v29 }
  0x2a   : > { %260 = vst [vmem:[%s4895_s29 + $0x78] sm:$0xf] %v259_v30  ;;  %262 = vst [vmem:[%s4895_s29 + $0x7c] sm:$0xf] %v261_v31  ;;  %v263_v32 = vld [vmem:[%s4888_s28 + $0x100] sm:$0xf] }
  0x2b   : > { %v265_v33 = vld [vmem:[%s4888_s28 + $0x108] sm:$0xf]  ;;  %v267_v34 = vld [vmem:[%s4888_s28 + $0x110] sm:$0xf]  ;;  %264 = vst [vmem:[%s4895_s29 + $0x80] sm:$0xf] %v263_v32 }
  0x2c   : > { %266 = vst [vmem:[%s4895_s29 + $0x84] sm:$0xf] %v265_v33  ;;  %268 = vst [vmem:[%s4895_s29 + $0x88] sm:$0xf] %v267_v34  ;;  %v269_v35 = vld [vmem:[%s4888_s28 + $0x118] sm:$0xf] }
  0x2d   : > { %v271_v36 = vld [vmem:[%s4888_s28 + $0x120] sm:$0xf]  ;;  %v273_v37 = vld [vmem:[%s4888_s28 + $0x128] sm:$0xf]  ;;  %270 = vst [vmem:[%s4895_s29 + $0x8c] sm:$0xf] %v269_v35 }
  0x2e   : > { %272 = vst [vmem:[%s4895_s29 + $0x90] sm:$0xf] %v271_v36  ;;  %274 = vst [vmem:[%s4895_s29 + $0x94] sm:$0xf] %v273_v37  ;;  %v275_v38 = vld [vmem:[%s4888_s28 + $0x130] sm:$0xf] }
  0x2f   : > { %v277_v39 = vld [vmem:[%s4888_s28 + $0x138] sm:$0xf]  ;;  %v279_v40 = vld [vmem:[%s4888_s28 + $0x140] sm:$0xf]  ;;  %276 = vst [vmem:[%s4895_s29 + $0x98] sm:$0xf] %v275_v38 }
  0x30   : > { %278 = vst [vmem:[%s4895_s29 + $0x9c] sm:$0xf] %v277_v39  ;;  %280 = vst [vmem:[%s4895_s29 + $0xa0] sm:$0xf] %v279_v40  ;;  %v281_v41 = vld [vmem:[%s4888_s28 + $0x148] sm:$0xf] }
  0x31   : > { %v283_v42 = vld [vmem:[%s4888_s28 + $0x150] sm:$0xf]  ;;  %v285_v43 = vld [vmem:[%s4888_s28 + $0x158] sm:$0xf]  ;;  %282 = vst [vmem:[%s4895_s29 + $0xa4] sm:$0xf] %v281_v41 }
  0x32   : > { %284 = vst [vmem:[%s4895_s29 + $0xa8] sm:$0xf] %v283_v42  ;;  %286 = vst [vmem:[%s4895_s29 + $0xac] sm:$0xf] %v285_v43  ;;  %v287_v44 = vld [vmem:[%s4888_s28 + $0x160] sm:$0xf] }
  0x33   : > { %v289_v45 = vld [vmem:[%s4888_s28 + $0x168] sm:$0xf]  ;;  %v291_v46 = vld [vmem:[%s4888_s28 + $0x170] sm:$0xf]  ;;  %288 = vst [vmem:[%s4895_s29 + $0xb0] sm:$0xf] %v287_v44 }
  0x34   : > { %290 = vst [vmem:[%s4895_s29 + $0xb4] sm:$0xf] %v289_v45  ;;  %292 = vst [vmem:[%s4895_s29 + $0xb8] sm:$0xf] %v291_v46  ;;  %v293_v47 = vld [vmem:[%s4888_s28 + $0x178] sm:$0xf] }
  0x35   : > { %v295_v48 = vld [vmem:[%s4888_s28 + $0x180] sm:$0xf]  ;;  %v297_v49 = vld [vmem:[%s4888_s28 + $0x188] sm:$0xf]  ;;  %294 = vst [vmem:[%s4895_s29 + $0xbc] sm:$0xf] %v293_v47 }
  0x36   : > { %296 = vst [vmem:[%s4895_s29 + $0xc0] sm:$0xf] %v295_v48  ;;  %298 = vst [vmem:[%s4895_s29 + $0xc4] sm:$0xf] %v297_v49  ;;  %v299_v50 = vld [vmem:[%s4888_s28 + $0x190] sm:$0xf] }
  0x37   : > { %v301_v51 = vld [vmem:[%s4888_s28 + $0x198] sm:$0xf]  ;;  %v303_v52 = vld [vmem:[%s4888_s28 + $0x1a0] sm:$0xf]  ;;  %300 = vst [vmem:[%s4895_s29 + $0xc8] sm:$0xf] %v299_v50 }
  0x38   : > { %302 = vst [vmem:[%s4895_s29 + $0xcc] sm:$0xf] %v301_v51  ;;  %304 = vst [vmem:[%s4895_s29 + $0xd0] sm:$0xf] %v303_v52  ;;  %v305_v53 = vld [vmem:[%s4888_s28 + $0x1a8] sm:$0xf] }
  0x39   : > { %v307_v54 = vld [vmem:[%s4888_s28 + $0x1b0] sm:$0xf]  ;;  %v309_v55 = vld [vmem:[%s4888_s28 + $0x1b8] sm:$0xf]  ;;  %306 = vst [vmem:[%s4895_s29 + $0xd4] sm:$0xf] %v305_v53 }
  0x3a   : > { %308 = vst [vmem:[%s4895_s29 + $0xd8] sm:$0xf] %v307_v54  ;;  %310 = vst [vmem:[%s4895_s29 + $0xdc] sm:$0xf] %v309_v55  ;;  %v311_v56 = vld [vmem:[%s4888_s28 + $0x1c0] sm:$0xf] }
  0x3b   : > { %v313_v57 = vld [vmem:[%s4888_s28 + $0x1c8] sm:$0xf]  ;;  %v315_v58 = vld [vmem:[%s4888_s28 + $0x1d0] sm:$0xf]  ;;  %312 = vst [vmem:[%s4895_s29 + $0xe0] sm:$0xf] %v311_v56 }
  0x3c   : > { %314 = vst [vmem:[%s4895_s29 + $0xe4] sm:$0xf] %v313_v57  ;;  %316 = vst [vmem:[%s4895_s29 + $0xe8] sm:$0xf] %v315_v58  ;;  %v317_v59 = vld [vmem:[%s4888_s28 + $0x1d8] sm:$0xf] }
  0x3d   : > { %v319_v60 = vld [vmem:[%s4888_s28 + $0x1e0] sm:$0xf]  ;;  %v321_v61 = vld [vmem:[%s4888_s28 + $0x1e8] sm:$0xf]  ;;  %318 = vst [vmem:[%s4895_s29 + $0xec] sm:$0xf] %v317_v59 }
  0x3e   : > { %320 = vst [vmem:[%s4895_s29 + $0xf0] sm:$0xf] %v319_v60  ;;  %322 = vst [vmem:[%s4895_s29 + $0xf4] sm:$0xf] %v321_v61  ;;  %v323_v62 = vld [vmem:[%s4888_s28 + $0x1f0] sm:$0xf] }
  0x3f   : > { %v325_v63 = vld [vmem:[%s4888_s28 + $0x1f8] sm:$0xf]  ;;  %v327_v0 = vld [vmem:[%s4888_s28 + $0x200] sm:$0xf]  ;;  %324 = vst [vmem:[%s4895_s29 + $0xf8] sm:$0xf] %v323_v62 }
  0x40   : > { %326 = vst [vmem:[%s4895_s29 + $0xfc] sm:$0xf] %v325_v63  ;;  %328 = vst [vmem:[%s4895_s29 + $0x100] sm:$0xf] %v327_v0  ;;  %v329_v1 = vld [vmem:[%s4888_s28 + $0x208] sm:$0xf] }
  0x41   : > { %v331_v2 = vld [vmem:[%s4888_s28 + $0x210] sm:$0xf]  ;;  %v333_v3 = vld [vmem:[%s4888_s28 + $0x218] sm:$0xf]  ;;  %330 = vst [vmem:[%s4895_s29 + $0x104] sm:$0xf] %v329_v1 }
  0x42   : > { %332 = vst [vmem:[%s4895_s29 + $0x108] sm:$0xf] %v331_v2  ;;  %334 = vst [vmem:[%s4895_s29 + $0x10c] sm:$0xf] %v333_v3  ;;  %v335_v4 = vld [vmem:[%s4888_s28 + $0x220] sm:$0xf] }
  0x43   : > { %v337_v5 = vld [vmem:[%s4888_s28 + $0x228] sm:$0xf]  ;;  %v339_v6 = vld [vmem:[%s4888_s28 + $0x230] sm:$0xf]  ;;  %336 = vst [vmem:[%s4895_s29 + $0x110] sm:$0xf] %v335_v4 }
  0x44   : > { %338 = vst [vmem:[%s4895_s29 + $0x114] sm:$0xf] %v337_v5  ;;  %340 = vst [vmem:[%s4895_s29 + $0x118] sm:$0xf] %v339_v6  ;;  %v341_v7 = vld [vmem:[%s4888_s28 + $0x238] sm:$0xf] }
  0x45   : > { %v343_v8 = vld [vmem:[%s4888_s28 + $0x240] sm:$0xf]  ;;  %v345_v9 = vld [vmem:[%s4888_s28 + $0x248] sm:$0xf]  ;;  %342 = vst [vmem:[%s4895_s29 + $0x11c] sm:$0xf] %v341_v7 }
  0x46   : > { %344 = vst [vmem:[%s4895_s29 + $0x120] sm:$0xf] %v343_v8  ;;  %346 = vst [vmem:[%s4895_s29 + $0x124] sm:$0xf] %v345_v9  ;;  %v347_v10 = vld [vmem:[%s4888_s28 + $0x250] sm:$0xf] }
  0x47   : > { %v349_v11 = vld [vmem:[%s4888_s28 + $0x258] sm:$0xf]  ;;  %v351_v12 = vld [vmem:[%s4888_s28 + $0x260] sm:$0xf]  ;;  %348 = vst [vmem:[%s4895_s29 + $0x128] sm:$0xf] %v347_v10 }
  0x48   : > { %350 = vst [vmem:[%s4895_s29 + $0x12c] sm:$0xf] %v349_v11  ;;  %352 = vst [vmem:[%s4895_s29 + $0x130] sm:$0xf] %v351_v12  ;;  %v353_v13 = vld [vmem:[%s4888_s28 + $0x268] sm:$0xf] }
  0x49   : > { %v355_v14 = vld [vmem:[%s4888_s28 + $0x270] sm:$0xf]  ;;  %v357_v15 = vld [vmem:[%s4888_s28 + $0x278] sm:$0xf]  ;;  %354 = vst [vmem:[%s4895_s29 + $0x134] sm:$0xf] %v353_v13 }
  0x4a   : > { %356 = vst [vmem:[%s4895_s29 + $0x138] sm:$0xf] %v355_v14  ;;  %358 = vst [vmem:[%s4895_s29 + $0x13c] sm:$0xf] %v357_v15  ;;  %v359_v16 = vld [vmem:[%s4888_s28 + $0x280] sm:$0xf] }
  0x4b   : > { %v361_v17 = vld [vmem:[%s4888_s28 + $0x288] sm:$0xf]  ;;  %v363_v18 = vld [vmem:[%s4888_s28 + $0x290] sm:$0xf]  ;;  %360 = vst [vmem:[%s4895_s29 + $0x140] sm:$0xf] %v359_v16 }
  0x4c   : > { %362 = vst [vmem:[%s4895_s29 + $0x144] sm:$0xf] %v361_v17  ;;  %364 = vst [vmem:[%s4895_s29 + $0x148] sm:$0xf] %v363_v18  ;;  %v365_v19 = vld [vmem:[%s4888_s28 + $0x298] sm:$0xf] }
  0x4d   : > { %v367_v20 = vld [vmem:[%s4888_s28 + $0x2a0] sm:$0xf]  ;;  %v369_v21 = vld [vmem:[%s4888_s28 + $0x2a8] sm:$0xf]  ;;  %366 = vst [vmem:[%s4895_s29 + $0x14c] sm:$0xf] %v365_v19 }
  0x4e   : > { %368 = vst [vmem:[%s4895_s29 + $0x150] sm:$0xf] %v367_v20  ;;  %370 = vst [vmem:[%s4895_s29 + $0x154] sm:$0xf] %v369_v21  ;;  %v371_v22 = vld [vmem:[%s4888_s28 + $0x2b0] sm:$0xf] }
  0x4f   : > { %v373_v23 = vld [vmem:[%s4888_s28 + $0x2b8] sm:$0xf]  ;;  %v375_v24 = vld [vmem:[%s4888_s28 + $0x2c0] sm:$0xf]  ;;  %372 = vst [vmem:[%s4895_s29 + $0x158] sm:$0xf] %v371_v22 }
  0x50   : > { %374 = vst [vmem:[%s4895_s29 + $0x15c] sm:$0xf] %v373_v23  ;;  %376 = vst [vmem:[%s4895_s29 + $0x160] sm:$0xf] %v375_v24  ;;  %v377_v25 = vld [vmem:[%s4888_s28 + $0x2c8] sm:$0xf] }
  0x51   : > { %v379_v26 = vld [vmem:[%s4888_s28 + $0x2d0] sm:$0xf]  ;;  %v381_v27 = vld [vmem:[%s4888_s28 + $0x2d8] sm:$0xf]  ;;  %378 = vst [vmem:[%s4895_s29 + $0x164] sm:$0xf] %v377_v25 }
  0x52   : > { %380 = vst [vmem:[%s4895_s29 + $0x168] sm:$0xf] %v379_v26  ;;  %382 = vst [vmem:[%s4895_s29 + $0x16c] sm:$0xf] %v381_v27  ;;  %v383_v28 = vld [vmem:[%s4888_s28 + $0x2e0] sm:$0xf] }
  0x53   : > { %v385_v29 = vld [vmem:[%s4888_s28 + $0x2e8] sm:$0xf]  ;;  %v387_v30 = vld [vmem:[%s4888_s28 + $0x2f0] sm:$0xf]  ;;  %384 = vst [vmem:[%s4895_s29 + $0x170] sm:$0xf] %v383_v28 }
  0x54   : > { %386 = vst [vmem:[%s4895_s29 + $0x174] sm:$0xf] %v385_v29  ;;  %388 = vst [vmem:[%s4895_s29 + $0x178] sm:$0xf] %v387_v30  ;;  %v389_v31 = vld [vmem:[%s4888_s28 + $0x2f8] sm:$0xf] }
  0x55   : > { %v391_v32 = vld [vmem:[%s4888_s28 + $0x300] sm:$0xf]  ;;  %v393_v33 = vld [vmem:[%s4888_s28 + $0x308] sm:$0xf]  ;;  %390 = vst [vmem:[%s4895_s29 + $0x17c] sm:$0xf] %v389_v31 }
  0x56   : > { %392 = vst [vmem:[%s4895_s29 + $0x180] sm:$0xf] %v391_v32  ;;  %394 = vst [vmem:[%s4895_s29 + $0x184] sm:$0xf] %v393_v33  ;;  %v395_v34 = vld [vmem:[%s4888_s28 + $0x310] sm:$0xf] }
  0x57   : > { %v397_v35 = vld [vmem:[%s4888_s28 + $0x318] sm:$0xf]  ;;  %v399_v36 = vld [vmem:[%s4888_s28 + $0x320] sm:$0xf]  ;;  %396 = vst [vmem:[%s4895_s29 + $0x188] sm:$0xf] %v395_v34 }
  0x58   : > { %398 = vst [vmem:[%s4895_s29 + $0x18c] sm:$0xf] %v397_v35  ;;  %400 = vst [vmem:[%s4895_s29 + $0x190] sm:$0xf] %v399_v36  ;;  %v401_v37 = vld [vmem:[%s4888_s28 + $0x328] sm:$0xf] }
  0x59   : > { %v403_v38 = vld [vmem:[%s4888_s28 + $0x330] sm:$0xf]  ;;  %v405_v39 = vld [vmem:[%s4888_s28 + $0x338] sm:$0xf]  ;;  %402 = vst [vmem:[%s4895_s29 + $0x194] sm:$0xf] %v401_v37 }
  0x5a   : > { %404 = vst [vmem:[%s4895_s29 + $0x198] sm:$0xf] %v403_v38  ;;  %406 = vst [vmem:[%s4895_s29 + $0x19c] sm:$0xf] %v405_v39  ;;  %v407_v40 = vld [vmem:[%s4888_s28 + $0x340] sm:$0xf] }
  0x5b   : > { %v409_v41 = vld [vmem:[%s4888_s28 + $0x348] sm:$0xf]  ;;  %v411_v42 = vld [vmem:[%s4888_s28 + $0x350] sm:$0xf]  ;;  %408 = vst [vmem:[%s4895_s29 + $0x1a0] sm:$0xf] %v407_v40 }
  0x5c   : > { %410 = vst [vmem:[%s4895_s29 + $0x1a4] sm:$0xf] %v409_v41  ;;  %412 = vst [vmem:[%s4895_s29 + $0x1a8] sm:$0xf] %v411_v42  ;;  %v413_v43 = vld [vmem:[%s4888_s28 + $0x358] sm:$0xf] }
  0x5d   : > { %v415_v44 = vld [vmem:[%s4888_s28 + $0x360] sm:$0xf]  ;;  %v417_v45 = vld [vmem:[%s4888_s28 + $0x368] sm:$0xf]  ;;  %414 = vst [vmem:[%s4895_s29 + $0x1ac] sm:$0xf] %v413_v43 }
  0x5e   : > { %416 = vst [vmem:[%s4895_s29 + $0x1b0] sm:$0xf] %v415_v44  ;;  %418 = vst [vmem:[%s4895_s29 + $0x1b4] sm:$0xf] %v417_v45  ;;  %v419_v46 = vld [vmem:[%s4888_s28 + $0x370] sm:$0xf] }
  0x5f   : > { %v421_v47 = vld [vmem:[%s4888_s28 + $0x378] sm:$0xf]  ;;  %v423_v48 = vld [vmem:[%s4888_s28 + $0x380] sm:$0xf]  ;;  %420 = vst [vmem:[%s4895_s29 + $0x1b8] sm:$0xf] %v419_v46 }
  0x60   : > { %422 = vst [vmem:[%s4895_s29 + $0x1bc] sm:$0xf] %v421_v47  ;;  %424 = vst [vmem:[%s4895_s29 + $0x1c0] sm:$0xf] %v423_v48  ;;  %v425_v49 = vld [vmem:[%s4888_s28 + $0x388] sm:$0xf] }
  0x61   : > { %v427_v50 = vld [vmem:[%s4888_s28 + $0x390] sm:$0xf]  ;;  %v429_v51 = vld [vmem:[%s4888_s28 + $0x398] sm:$0xf]  ;;  %426 = vst [vmem:[%s4895_s29 + $0x1c4] sm:$0xf] %v425_v49 }
  0x62   : > { %428 = vst [vmem:[%s4895_s29 + $0x1c8] sm:$0xf] %v427_v50  ;;  %430 = vst [vmem:[%s4895_s29 + $0x1cc] sm:$0xf] %v429_v51  ;;  %v431_v52 = vld [vmem:[%s4888_s28 + $0x3a0] sm:$0xf] }
  0x63   : > { %v433_v53 = vld [vmem:[%s4888_s28 + $0x3a8] sm:$0xf]  ;;  %v435_v54 = vld [vmem:[%s4888_s28 + $0x3b0] sm:$0xf]  ;;  %432 = vst [vmem:[%s4895_s29 + $0x1d0] sm:$0xf] %v431_v52 }
  0x64   : > { %434 = vst [vmem:[%s4895_s29 + $0x1d4] sm:$0xf] %v433_v53  ;;  %436 = vst [vmem:[%s4895_s29 + $0x1d8] sm:$0xf] %v435_v54  ;;  %v437_v55 = vld [vmem:[%s4888_s28 + $0x3b8] sm:$0xf] }
  0x65   : > { %v439_v56 = vld [vmem:[%s4888_s28 + $0x3c0] sm:$0xf]  ;;  %v441_v57 = vld [vmem:[%s4888_s28 + $0x3c8] sm:$0xf]  ;;  %438 = vst [vmem:[%s4895_s29 + $0x1dc] sm:$0xf] %v437_v55 }
  0x66   : > { %440 = vst [vmem:[%s4895_s29 + $0x1e0] sm:$0xf] %v439_v56  ;;  %442 = vst [vmem:[%s4895_s29 + $0x1e4] sm:$0xf] %v441_v57  ;;  %v443_v58 = vld [vmem:[%s4888_s28 + $0x3d0] sm:$0xf] }
  0x67   : > { %v445_v59 = vld [vmem:[%s4888_s28 + $0x3d8] sm:$0xf]  ;;  %v447_v60 = vld [vmem:[%s4888_s28 + $0x3e0] sm:$0xf]  ;;  %444 = vst [vmem:[%s4895_s29 + $0x1e8] sm:$0xf] %v443_v58 }
  0x68   : > { %446 = vst [vmem:[%s4895_s29 + $0x1ec] sm:$0xf] %v445_v59  ;;  %448 = vst [vmem:[%s4895_s29 + $0x1f0] sm:$0xf] %v447_v60  ;;  %v449_v61 = vld [vmem:[%s4888_s28 + $0x3e8] sm:$0xf] }
  0x69   : > { %v451_v62 = vld [vmem:[%s4888_s28 + $0x3f0] sm:$0xf]  ;;  %v453_v63 = vld [vmem:[%s4888_s28 + $0x3f8] sm:$0xf]  ;;  %450 = vst [vmem:[%s4895_s29 + $0x1f4] sm:$0xf] %v449_v61 }
  0x6a   : > { %452 = vst [vmem:[%s4895_s29 + $0x1f8] sm:$0xf] %v451_v62  ;;  %454 = vst [vmem:[%s4895_s29 + $0x1fc] sm:$0xf] %v453_v63  ;;  %v455_v0 = vld [vmem:[%s4888_s28 + $0x400] sm:$0xf] }
  0x6b   : > { %v457_v1 = vld [vmem:[%s4888_s28 + $0x408] sm:$0xf]  ;;  %v459_v2 = vld [vmem:[%s4888_s28 + $0x410] sm:$0xf]  ;;  %456 = vst [vmem:[%s4895_s29 + $0x200] sm:$0xf] %v455_v0 }
  0x6c   : > { %458 = vst [vmem:[%s4895_s29 + $0x204] sm:$0xf] %v457_v1  ;;  %460 = vst [vmem:[%s4895_s29 + $0x208] sm:$0xf] %v459_v2  ;;  %v461_v3 = vld [vmem:[%s4888_s28 + $0x418] sm:$0xf] }
  0x6d   : > { %v463_v4 = vld [vmem:[%s4888_s28 + $0x420] sm:$0xf]  ;;  %v465_v5 = vld [vmem:[%s4888_s28 + $0x428] sm:$0xf]  ;;  %462 = vst [vmem:[%s4895_s29 + $0x20c] sm:$0xf] %v461_v3 }
  0x6e   : > { %464 = vst [vmem:[%s4895_s29 + $0x210] sm:$0xf] %v463_v4  ;;  %466 = vst [vmem:[%s4895_s29 + $0x214] sm:$0xf] %v465_v5  ;;  %v467_v6 = vld [vmem:[%s4888_s28 + $0x430] sm:$0xf] }
  0x6f   : > { %v469_v7 = vld [vmem:[%s4888_s28 + $0x438] sm:$0xf]  ;;  %v471_v8 = vld [vmem:[%s4888_s28 + $0x440] sm:$0xf]  ;;  %468 = vst [vmem:[%s4895_s29 + $0x218] sm:$0xf] %v467_v6 }
  0x70   : > { %470 = vst [vmem:[%s4895_s29 + $0x21c] sm:$0xf] %v469_v7  ;;  %472 = vst [vmem:[%s4895_s29 + $0x220] sm:$0xf] %v471_v8  ;;  %v473_v9 = vld [vmem:[%s4888_s28 + $0x448] sm:$0xf] }
  0x71   : > { %v475_v10 = vld [vmem:[%s4888_s28 + $0x450] sm:$0xf]  ;;  %v477_v11 = vld [vmem:[%s4888_s28 + $0x458] sm:$0xf]  ;;  %474 = vst [vmem:[%s4895_s29 + $0x224] sm:$0xf] %v473_v9 }
  0x72   : > { %476 = vst [vmem:[%s4895_s29 + $0x228] sm:$0xf] %v475_v10  ;;  %478 = vst [vmem:[%s4895_s29 + $0x22c] sm:$0xf] %v477_v11  ;;  %v479_v12 = vld [vmem:[%s4888_s28 + $0x460] sm:$0xf] }
  0x73   : > { %v481_v13 = vld [vmem:[%s4888_s28 + $0x468] sm:$0xf]  ;;  %v483_v14 = vld [vmem:[%s4888_s28 + $0x470] sm:$0xf]  ;;  %480 = vst [vmem:[%s4895_s29 + $0x230] sm:$0xf] %v479_v12 }
  0x74   : > { %482 = vst [vmem:[%s4895_s29 + $0x234] sm:$0xf] %v481_v13  ;;  %484 = vst [vmem:[%s4895_s29 + $0x238] sm:$0xf] %v483_v14  ;;  %v485_v15 = vld [vmem:[%s4888_s28 + $0x478] sm:$0xf] }
  0x75   : > { %486 = vst [vmem:[%s4895_s29 + $0x23c] sm:$0xf] %v485_v15 }
  0x76 PF: > { %p3925_p8 = scmp.ge.s32.totalorder %s4817_s16, 1  ;;  %p802_p9 = scmp.lt.s32.totalorder %s4817_s16, 3 }
  0x78   : > { %p803_p10 = pnand %p3925_p8, %p802_p9 }
  0x79   : > { %s809_s30 = sand.u32 (!%p803_p10), 1, %s4801_s12   ;;  %v4819_v16 = vmov (!%p803_p10), 0   ;;  %v4507_v17 = vld [vmem:[%s6335_s0 + $0x4] ss:$36 sps:$4 sm:$0xff] (!%p803_p10)   ;;  %v4510_v18 = vld [vmem:[%s6335_s0 + $0xc] ss:$36 sps:$4 sm:$0xff] (!%p803_p10)  }
  0x7a   : > { %806 = sbr.rel (%p803_p10) target bundleno = 742 (0x2e6), region = 69  ;;  %2522 = vmatprep.subr.bf16.mxu1 (!%p803_p10), %v4819_v16  ;;  %2699 = vmatprep.subr.bf16.mxu0 (!%p803_p10), %v4819_v16  ;;  %v4505_v51 = vld [vmem:[%s6335_s0] ss:$36 sps:$4 sm:$0xff] (!%p803_p10)   ;;  %v4508_v52 = vld [vmem:[%s6335_s0 + $0x8] ss:$36 sps:$4 sm:$0xff] (!%p803_p10)   ;;  %p857_p11 = scmp.lt.s32.totalorder (!%p803_p10), %s4809_s14, 1 }
  0x7b   : > { %s4429_s4 = smul.u32 (!%p803_p10), 576, %s809_s30  ;;  %2554 = vmatprep.mubr.bf16.mxu1 (!%p803_p10), %v4507_v17  ;;  %2731 = vmatprep.mubr.bf16.mxu0 (!%p803_p10), %v4510_v18  ;;  %v4512_v53 = vld [vmem:[%s6335_s0 + $0x4c] ss:$36 sps:$4 sm:$0xff] (!%p803_p10)   ;;  %v4514_v55 = vld [vmem:[%s6335_s0 + $0x54] ss:$36 sps:$4 sm:$0xff] (!%p803_p10)  }
  0x7c   : > { %v4516_v57 = vld [vmem:[%s6335_s0 + $0x48] ss:$36 sps:$4 sm:$0xff] (!%p803_p10)   ;;  %v4517_v60 = vld [vmem:[%s6335_s0 + $0x50] ss:$36 sps:$4 sm:$0xff] (!%p803_p10)   ;;  %v4522_v62 = vld [vmem:[%s6335_s0 + $0x9c] ss:$36 sps:$4 sm:$0xff] (!%p803_p10)  }
  0x7d   : > { %s5193_s9 = scalar_lea.vmem (!%p803_p10), [#allocation2], %s4429_s4  ;;  %v4520_v61 = vld [vmem:[%s6335_s0 + $0x94] ss:$36 sps:$4 sm:$0xff] (!%p803_p10)   ;;  %v4528_v5 = vld [vmem:[%s6335_s0 + $0xdc] ss:$36 sps:$4 sm:$0xff] (!%p803_p10)   ;;  %s4430_s28 = smul.u32 (!%p803_p10), 288, %s809_s30 }
  0x7e   : > { %v4473_v19 = vld [vmem:[%s5193_s9] sm:$0xff] (!%p803_p10)   ;;  %v4475_v21 = vld [vmem:[%s5193_s9 + $0x8] sm:$0xff] (!%p803_p10)   ;;  %v4477_v23 = vld [vmem:[%s5193_s9 + $0x10] sm:$0xff] (!%p803_p10)  }
  0x7f   : > { %v4474_v20 = vld [vmem:[%s5193_s9 + $0x80] sm:$0xff] (!%p803_p10)   ;;  %2523 = vmatpush1.bf16.msra.mxu1 (!%p803_p10), %v4473_v19  ;;  %v4476_v22 = vld [vmem:[%s5193_s9 + $0x88] sm:$0xff] (!%p803_p10)   ;;  %v4478_v24 = vld [vmem:[%s5193_s9 + $0x90] sm:$0xff] (!%p803_p10)   ;;  %s6108_s12 = scalar_lea.vmem (!%p803_p10), [#allocation3], %s4430_s28 }
  0x80   : > { %2700 = vmatpush1.bf16.msra.mxu0 (!%p803_p10), %v4474_v20  ;;  %2524 = vmatprep.subr.bf16.mxu1 (!%p803_p10), %v4819_v16  ;;  %v4479_v25 = vld [vmem:[%s5193_s9 + $0x18] sm:$0xff] (!%p803_p10)   ;;  %v4481_v27 = vld [vmem:[%s5193_s9 + $0x20] sm:$0xff] (!%p803_p10)   ;;  %v4483_v29 = vld [vmem:[%s5193_s9 + $0x28] sm:$0xff] (!%p803_p10)  }
  0x81   : > { %2701 = vmatprep.subr.bf16.mxu0 %v4819_v16  ;;  %v4480_v26 = vld [vmem:[%s5193_s9 + $0x98] sm:$0xff]   ;;  %v4482_v28 = vld [vmem:[%s5193_s9 + $0xa0] sm:$0xff]   ;;  %v4484_v30 = vld [vmem:[%s5193_s9 + $0xa8] sm:$0xff]   ;;  %s858_s24 = scalar_select %p857_p11, %s4809_s14, 1 }
  0x82   : > { %v4485_v31 = vld [vmem:[%s5193_s9 + $0x30] sm:$0xff]   ;;  %v4487_v33 = vld [vmem:[%s5193_s9 + $0x38] sm:$0xff]   ;;  %v4489_v35 = vld [vmem:[%s5193_s9 + $0x40] sm:$0xff]   ;;  %s4161_s30 = sshll.u32 (%p4875_p6), %s4809_s14, 3 }
  0x83   : > { %2525 = vmatpush1.bf16.msra.mxu1 %v4475_v21  ;;  %v4486_v32 = vld [vmem:[%s5193_s9 + $0xb0] sm:$0xff]   ;;  %v4488_v34 = vld [vmem:[%s5193_s9 + $0xb8] sm:$0xff]   ;;  %v4490_v36 = vld [vmem:[%s5193_s9 + $0xc0] sm:$0xff]   ;;  %s859_s27 = scalar_lea.vmem %s6337_s2, %s858_s24  ;;  %s6249_s4 = scalar_lea.vmem (%p4875_p6), %s6338_s3, %s4161_s30 }
  0x84   : > { %2702 = vmatpush1.bf16.msra.mxu0 %v4476_v22  ;;  %2526 = vmatprep.subr.bf16.mxu1 %v4819_v16  ;;  %v4491_v37 = vld [vmem:[%s5193_s9 + $0x48] sm:$0xff]   ;;  %v4493_v39 = vld [vmem:[%s5193_s9 + $0x50] sm:$0xff]   ;;  %v4495_v41 = vld [vmem:[%s5193_s9 + $0x58] sm:$0xff]  }
  0x85   : > { %2703 = vmatprep.subr.bf16.mxu0 %v4819_v16  ;;  %v4492_v38 = vld [vmem:[%s5193_s9 + $0xc8] sm:$0xff]   ;;  %v4494_v40 = vld [vmem:[%s5193_s9 + $0xd0] sm:$0xff]   ;;  %v4496_v42 = vld [vmem:[%s5193_s9 + $0xd8] sm:$0xff]  }
  0x86   : > { %v4497_v43 = vld [vmem:[%s5193_s9 + $0x60] sm:$0xff]   ;;  %v4499_v45 = vld [vmem:[%s5193_s9 + $0x68] sm:$0xff]   ;;  %v4501_v47 = vld [vmem:[%s5193_s9 + $0x70] sm:$0xff]  }
  0x87   : > { %2527 = vmatpush1.bf16.msra.mxu1 %v4477_v23  ;;  %v4498_v44 = vld [vmem:[%s5193_s9 + $0xe0] sm:$0xff]   ;;  %v4500_v46 = vld [vmem:[%s5193_s9 + $0xe8] sm:$0xff]   ;;  %v4502_v48 = vld [vmem:[%s5193_s9 + $0xf0] sm:$0xff]  }
  0x88   : > { %2704 = vmatpush1.bf16.msra.mxu0 %v4478_v24  ;;  %2528 = vmatprep.subr.bf16.mxu1 %v4819_v16  ;;  %v4503_v49 = vld [vmem:[%s5193_s9 + $0x78] sm:$0xff]   ;;  %v4511_v54 = vld [vmem:[%s5193_s9 + $0x100] sm:$0xff]   ;;  %v4518_v58 = vld [vmem:[%s5193_s9 + $0x108] sm:$0xff]  }
  0x89   : > { %2705 = vmatprep.subr.bf16.mxu0 %v4819_v16  ;;  %v4504_v50 = vld [vmem:[%s5193_s9 + $0xf8] sm:$0xff]   ;;  %v5273_v56 = vld [vmem:[%s5193_s9 + $0x180] sm:$0xff]   ;;  %v5282_v59 = vld [vmem:[%s5193_s9 + $0x188] sm:$0xff]  }
  0x8a   : > { %v4526_v63 = vld [vmem:[%s5193_s9 + $0x110] sm:$0xff]   ;;  %v4534_v1 = vld [vmem:[%s5193_s9 + $0x118] sm:$0xff]   ;;  %v4530_v6 = vld [vmem:[%s6335_s0 + $0xe4] ss:$36 sps:$4 sm:$0xff]  }
  0x8b   : > { %2529 = vmatpush1.bf16.msra.mxu1 %v4479_v25  ;;  %v5298_v0 = vld [vmem:[%s5193_s9 + $0x190] sm:$0xff]   ;;  %v5305_v2 = vld [vmem:[%s5193_s9 + $0x198] sm:$0xff]   ;;  %v4542_v7 = vld [vmem:[%s5193_s9 + $0x120] sm:$0xff]  }
  0x8c   : > { %2706 = vmatpush1.bf16.msra.mxu0 %v4480_v26  ;;  %2530 = vmatprep.subr.bf16.mxu1 %v4819_v16  ;;  %v4524_v3 = vld [vmem:[%s6335_s0 + $0x90] ss:$36 sps:$4 sm:$0xff]   ;;  %v4525_v4 = vld [vmem:[%s6335_s0 + $0x98] ss:$36 sps:$4 sm:$0xff]   ;;  %v5324_v8 = vld [vmem:[%s5193_s9 + $0x1a0] sm:$0xff]  }
  0x8d   : > { %2707 = vmatprep.subr.bf16.mxu0 %v4819_v16  ;;  %v4532_v9 = vld [vmem:[%s6335_s0 + $0xd8] ss:$36 sps:$4 sm:$0xff]   ;;  %v4550_v10 = vld [vmem:[%s5193_s9 + $0x128] sm:$0xff]   ;;  %v4533_v12 = vld [vmem:[%s6335_s0 + $0xe0] ss:$36 sps:$4 sm:$0xff]  }
  0x8e   : > { %v5334_v11 = vld [vmem:[%s5193_s9 + $0x1a8] sm:$0xff]   ;;  %v4562_v15 = vld [vmem:[%s5193_s9 + $0x130] sm:$0xff]   ;;  %v4572_v18 = vld [vmem:[%s5193_s9 + $0x138] sm:$0xff]  }
  0x8f   : > { %2531 = vmatpush1.bf16.msra.mxu1 %v4481_v27  ;;  %v4536_v13 = vld [vmem:[%s6335_s0 + $0x124] ss:$36 sps:$4 sm:$0xff]   ;;  %v4538_v14 = vld [vmem:[%s6335_s0 + $0x12c] ss:$36 sps:$4 sm:$0xff]   ;;  %v5363_v21 = vld [vmem:[%s5193_s9 + $0x1b8] sm:$0xff]  }
  0x90   : > { %2708 = vmatpush1.bf16.msra.mxu0 %v4482_v28  ;;  %2532 = vmatprep.subr.bf16.mxu1 %v4819_v16  ;;  %v5350_v17 = vld [vmem:[%s5193_s9 + $0x1b0] sm:$0xff]   ;;  %v4540_v19 = vld [vmem:[%s6335_s0 + $0x120] ss:$36 sps:$4 sm:$0xff]   ;;  %v4541_v20 = vld [vmem:[%s6335_s0 + $0x128] ss:$36 sps:$4 sm:$0xff]  }
  0x91   : > { %2709 = vmatprep.subr.bf16.mxu0 %v4819_v16  ;;  %v4544_v22 = vld [vmem:[%s6335_s0 + $0x16c] ss:$36 sps:$4 sm:$0xff]   ;;  %v4546_v23 = vld [vmem:[%s6335_s0 + $0x174] ss:$36 sps:$4 sm:$0xff]   ;;  %v4580_v24 = vld [vmem:[%s5193_s9 + $0x140] sm:$0xff]  }
  0x92   : > { %v5376_v25 = vld [vmem:[%s5193_s9 + $0x1c0] sm:$0xff]   ;;  %v4548_v26 = vld [vmem:[%s6335_s0 + $0x168] ss:$36 sps:$4 sm:$0xff]  }
  0x93   : > { %2533 = vmatpush1.bf16.msra.mxu1 %v4483_v29  ;;  %v4588_v27 = vld [vmem:[%s5193_s9 + $0x148] sm:$0xff]   ;;  %v4549_v29 = vld [vmem:[%s6335_s0 + $0x170] ss:$36 sps:$4 sm:$0xff]  }
  0x94   : > { %2710 = vmatpush1.bf16.msra.mxu0 %v4484_v30  ;;  %2534 = vmatprep.subr.bf16.mxu1 %v4819_v16  ;;  %v5386_v28 = vld [vmem:[%s5193_s9 + $0x1c8] sm:$0xff]   ;;  %v4552_v30 = vld [vmem:[%s6335_s0 + $0x1b4] ss:$36 sps:$4 sm:$0xff]  }
  0x95   : > { %2711 = vmatprep.subr.bf16.mxu0 %v4819_v16 }
  0x97   : > { %2535 = vmatpush1.bf16.msra.mxu1 %v4485_v31  ;;  %v4554_v31 = vld [vmem:[%s6335_s0 + $0x1bc] ss:$36 sps:$4 sm:$0xff]  }
  0x98   : > { %2712 = vmatpush1.bf16.msra.mxu0 %v4486_v32  ;;  %2536 = vmatprep.subr.bf16.mxu1 %v4819_v16  ;;  %v4596_v32 = vld [vmem:[%s5193_s9 + $0x150] sm:$0xff]  }
  0x99   : > { %2713 = vmatprep.subr.bf16.mxu0 %v4819_v16 }
  0x9b   : > { %2537 = vmatpush1.bf16.msra.mxu1 %v4487_v33  ;;  %v5402_v33 = vld [vmem:[%s5193_s9 + $0x1d0] sm:$0xff]  }
  0x9c   : > { %2714 = vmatpush1.bf16.msra.mxu0 %v4488_v34  ;;  %2538 = vmatprep.subr.bf16.mxu1 %v4819_v16  ;;  %v4556_v34 = vld [vmem:[%s6335_s0 + $0x1b0] ss:$36 sps:$4 sm:$0xff]  }
  0x9d   : > { %2715 = vmatprep.subr.bf16.mxu0 %v4819_v16 }
  0x9f   : > { %2539 = vmatpush1.bf16.msra.mxu1 %v4489_v35  ;;  %v4604_v35 = vld [vmem:[%s5193_s9 + $0x158] sm:$0xff]  }
  0xa0   : > { %2716 = vmatpush1.bf16.msra.mxu0 %v4490_v36  ;;  %2540 = vmatprep.subr.bf16.mxu1 %v4819_v16  ;;  %v5412_v36 = vld [vmem:[%s5193_s9 + $0x1d8] sm:$0xff]  }
  0xa1   : > { %2717 = vmatprep.subr.bf16.mxu0 %v4819_v16 }
  0xa3   : > { %2541 = vmatpush1.bf16.msra.mxu1 %v4491_v37  ;;  %v4557_v37 = vld [vmem:[%s6335_s0 + $0x1b8] ss:$36 sps:$4 sm:$0xff]  }
  0xa4   : > { %2718 = vmatpush1.bf16.msra.mxu0 %v4492_v38  ;;  %2542 = vmatprep.subr.bf16.mxu1 %v4819_v16  ;;  %v4558_v38 = vld [vmem:[%s6335_s0 + $0x1fc] ss:$36 sps:$4 sm:$0xff]  }
  0xa5   : > { %2719 = vmatprep.subr.bf16.mxu0 %v4819_v16 }
  0xa7   : > { %2543 = vmatpush1.bf16.msra.mxu1 %v4493_v39  ;;  %v4560_v39 = vld [vmem:[%s6335_s0 + $0x204] ss:$36 sps:$4 sm:$0xff]  }
  0xa8   : > { %2720 = vmatpush1.bf16.msra.mxu0 %v4494_v40  ;;  %2544 = vmatprep.subr.bf16.mxu1 %v4819_v16  ;;  %v4612_v40 = vld [vmem:[%s5193_s9 + $0x160] sm:$0xff]  }
  0xa9   : > { %2721 = vmatprep.subr.bf16.mxu0 %v4819_v16 }
  0xab   : > { %2545 = vmatpush1.bf16.msra.mxu1 %v4495_v41  ;;  %v5428_v41 = vld [vmem:[%s5193_s9 + $0x1e0] sm:$0xff]  }
  0xac   : > { %2722 = vmatpush1.bf16.msra.mxu0 %v4496_v42  ;;  %2546 = vmatprep.subr.bf16.mxu1 %v4819_v16  ;;  %v4620_v42 = vld [vmem:[%s5193_s9 + $0x168] sm:$0xff]  }
  0xad   : > { %2723 = vmatprep.subr.bf16.mxu0 %v4819_v16 }
  0xaf   : > { %2547 = vmatpush1.bf16.msra.mxu1 %v4497_v43  ;;  %v4564_v43 = vld [vmem:[%s6335_s0 + $0x1f8] ss:$36 sps:$4 sm:$0xff]  }
  0xb0   : > { %2724 = vmatpush1.bf16.msra.mxu0 %v4498_v44  ;;  %2548 = vmatprep.subr.bf16.mxu1 %v4819_v16  ;;  %v4565_v44 = vld [vmem:[%s6335_s0 + $0x200] ss:$36 sps:$4 sm:$0xff]  }
  0xb1   : > { %2725 = vmatprep.subr.bf16.mxu0 %v4819_v16 }
  0xb3   : > { %2549 = vmatpush1.bf16.msra.mxu1 %v4499_v45  ;;  %v5441_v45 = vld [vmem:[%s5193_s9 + $0x1e8] sm:$0xff]  }
  0xb4   : > { %2726 = vmatpush1.bf16.msra.mxu0 %v4500_v46  ;;  %2550 = vmatprep.subr.bf16.mxu1 %v4819_v16  ;;  %v4566_v46 = vld [vmem:[%s6335_s0 + $0x244] ss:$36 sps:$4 sm:$0xff]  }
  0xb5   : > { %2727 = vmatprep.subr.bf16.mxu0 %v4819_v16 }
  0xb7   : > { %2551 = vmatpush1.bf16.msra.mxu1 %v4501_v47  ;;  %v4568_v47 = vld [vmem:[%s6335_s0 + $0x24c] ss:$36 sps:$4 sm:$0xff]  }
  0xb8   : > { %2728 = vmatpush1.bf16.msra.mxu0 %v4502_v48  ;;  %2552 = vmatprep.subr.bf16.mxu1 %v4819_v16  ;;  %v4632_v48 = vld [vmem:[%s5193_s9 + $0x170] sm:$0xff]  }
  0xb9   : > { %2729 = vmatprep.subr.bf16.mxu0 %v4819_v16 }
  0xbb   : > { %2553 = vmatpush1.bf16.msra.mxu1 %v4503_v49  ;;  %v5454_v49 = vld [vmem:[%s5193_s9 + $0x1f0] sm:$0xff]  }
  0xbc   : > { %2730 = vmatpush1.bf16.msra.mxu0 %v4504_v50  ;;  %4242 = vmatprep.subr.bf16.mxu1 %v4819_v16  ;;  %v4570_v50 = vld [vmem:[%s6335_s0 + $0x240] ss:$36 sps:$4 sm:$0xff]  }
  0xbd   : > { %2876 = vmatprep.subr.bf16.mxu0 %v4819_v16 }
  0xbe   : > { %2555 = vmatmul.mubr.bf16.vlgmr.msra.gmra.mrb[0].mxu1 %v4505_v51  ;;  %v4642_v51 = vld [vmem:[%s5193_s9 + $0x178] sm:$0xff]  }
  0xbf   : > { %2732 = vmatmul.mubr.bf16.vlgmr.msra.gmra.mrb[0].mxu0 %v4508_v52  ;;  %2562 = vmatprep.mubr.bf16.mxu1 %v4512_v53  ;;  %v5464_v52 = vld [vmem:[%s5193_s9 + $0x1f8] sm:$0xff]   ;;  %v5468_v53 = vld [vmem:[%s5193_s9 + $0x200] sm:$0xff]  }
  0xc0   : > { %2877 = vmatpush1.bf16.msra.mxu0 %v4511_v54  ;;  %2739 = vmatprep.mubr.bf16.mxu0 %v4514_v55  ;;  %v4571_v54 = vld [vmem:[%s6335_s0 + $0x248] ss:$36 sps:$4 sm:$0xff]  }
  0xc1   : > { %2878 = vmatprep.subr.bf16.mxu0 %v4819_v16  ;;  %4258 = vmatpush1.bf16.msra.mxu1 %v5273_v56  ;;  %v4574_v55 = vld [vmem:[%s6335_s0 + $0x28c] ss:$36 sps:$4 sm:$0xff]  }
  0xc2   : > { %4243 = vmatprep.subr.bf16.mxu1 %v4819_v16 }
  0xc4   : > { %2879 = vmatpush1.bf16.msra.mxu0 %v4518_v58  ;;  %v4578_v58 = vld [vmem:[%s6335_s0 + $0x288] ss:$36 sps:$4 sm:$0xff]  }
  0xc5   : > { %2880 = vmatprep.subr.bf16.mxu0 %v4819_v16  ;;  %4259 = vmatpush1.bf16.msra.mxu1 %v5282_v59 }
  0xc6   : > { %2563 = vmatmul.mubr.bf16.gmra.mrb[4].mxu1 %v4516_v57  ;;  %4244 = vmatprep.subr.bf16.mxu1 %v4819_v16  ;;  %v4576_v57 = vld [vmem:[%s6335_s0 + $0x294] ss:$36 sps:$4 sm:$0xff]  }
  0xc7   : > { %2740 = vmatmul.mubr.bf16.gmra.mrb[4].mxu0 %v4517_v60  ;;  %2570 = vmatprep.mubr.bf16.mxu1 %v4520_v61  ;;  %v4579_v60 = vld [vmem:[%s6335_s0 + $0x290] ss:$36 sps:$4 sm:$0xff]  }
  0xc8   : > { %2747 = vmatprep.mubr.bf16.mxu0 %v4522_v62  ;;  %2881 = vmatpush1.bf16.msra.mxu0 %v4526_v63  ;;  %v4582_v61 = vld [vmem:[%s6335_s0 + $0x2d4] ss:$36 sps:$4 sm:$0xff]   ;;  %v4584_v62 = vld [vmem:[%s6335_s0 + $0x2dc] ss:$36 sps:$4 sm:$0xff]  }
  0xc9   : > { %2882 = vmatprep.subr.bf16.mxu0 %v4819_v16  ;;  %4260 = vmatpush1.bf16.msra.mxu1 %v5298_v0  ;;  %v4586_v63 = vld [vmem:[%s6335_s0 + $0x2d0] ss:$36 sps:$4 sm:$0xff]  }
  0xca   : > { %4245 = vmatprep.subr.bf16.mxu1 %v4819_v16 }
  0xcc   : > { %2883 = vmatpush1.bf16.msra.mxu0 %v4534_v1  ;;  %v4587_v1 = vld [vmem:[%s6335_s0 + $0x2d8] ss:$36 sps:$4 sm:$0xff]  }
  0xcd   : > { %2884 = vmatprep.subr.bf16.mxu0 %v4819_v16  ;;  %4261 = vmatpush1.bf16.msra.mxu1 %v5305_v2 }
  0xce   : > { %2571 = vmatmul.mubr.bf16.gmra.mrb[8].mxu1 %v4524_v3  ;;  %4246 = vmatprep.subr.bf16.mxu1 %v4819_v16  ;;  %v4590_v3 = vld [vmem:[%s6335_s0 + $0x31c] ss:$36 sps:$4 sm:$0xff]  }
  0xcf   : > { %2748 = vmatmul.mubr.bf16.gmra.mrb[8].mxu0 %v4525_v4  ;;  %2578 = vmatprep.mubr.bf16.mxu1 %v4528_v5  ;;  %v4592_v4 = vld [vmem:[%s6335_s0 + $0x324] ss:$36 sps:$4 sm:$0xff]   ;;  %v4594_v5 = vld [vmem:[%s6335_s0 + $0x318] ss:$36 sps:$4 sm:$0xff]  }
  0xd0   : > { %2755 = vmatprep.mubr.bf16.mxu0 %v4530_v6  ;;  %2885 = vmatpush1.bf16.msra.mxu0 %v4542_v7  ;;  %v4595_v6 = vld [vmem:[%s6335_s0 + $0x320] ss:$36 sps:$4 sm:$0xff]  }
  0xd1   : > { %2886 = vmatprep.subr.bf16.mxu0 %v4819_v16  ;;  %4262 = vmatpush1.bf16.msra.mxu1 %v5324_v8  ;;  %v4598_v7 = vld [vmem:[%s6335_s0 + $0x364] ss:$36 sps:$4 sm:$0xff]  }
  0xd2   : > { %4247 = vmatprep.subr.bf16.mxu1 %v4819_v16 }
  0xd4   : > { %2887 = vmatpush1.bf16.msra.mxu0 %v4550_v10  ;;  %v4602_v10 = vld [vmem:[%s6335_s0 + $0x360] ss:$36 sps:$4 sm:$0xff]  }
  0xd5   : > { %2888 = vmatprep.subr.bf16.mxu0 %v4819_v16  ;;  %4263 = vmatpush1.bf16.msra.mxu1 %v5334_v11 }
  0xd6   : > { %2579 = vmatmul.mubr.bf16.gmra.mrb[12].mxu1 %v4532_v9  ;;  %4248 = vmatprep.subr.bf16.mxu1 %v4819_v16  ;;  %v4600_v9 = vld [vmem:[%s6335_s0 + $0x36c] ss:$36 sps:$4 sm:$0xff]  }
  0xd7   : > { %2756 = vmatmul.mubr.bf16.gmra.mrb[12].mxu0 %v4533_v12  ;;  %2586 = vmatprep.mubr.bf16.mxu1 %v4536_v13  ;;  %v4603_v12 = vld [vmem:[%s6335_s0 + $0x368] ss:$36 sps:$4 sm:$0xff]  }
  0xd8   : > { %2763 = vmatprep.mubr.bf16.mxu0 %v4538_v14  ;;  %2889 = vmatpush1.bf16.msra.mxu0 %v4562_v15  ;;  %v4606_v13 = vld [vmem:[%s6335_s0 + $0x3ac] ss:$36 sps:$4 sm:$0xff]   ;;  %v4608_v14 = vld [vmem:[%s6335_s0 + $0x3b4] ss:$36 sps:$4 sm:$0xff]  }
  0xd9   : > { %2890 = vmatprep.subr.bf16.mxu0 %v4819_v16  ;;  %4264 = vmatpush1.bf16.msra.mxu1 %v5350_v17  ;;  %v4610_v15 = vld [vmem:[%s6335_s0 + $0x3a8] ss:$36 sps:$4 sm:$0xff]  }
  0xda   : > { %4249 = vmatprep.subr.bf16.mxu1 %v4819_v16 }
  0xdc   : > { %2891 = vmatpush1.bf16.msra.mxu0 %v4572_v18  ;;  %v4611_v18 = vld [vmem:[%s6335_s0 + $0x3b0] ss:$36 sps:$4 sm:$0xff]  }
  0xdd   : > { %2892 = vmatprep.subr.bf16.mxu0 %v4819_v16  ;;  %4265 = vmatpush1.bf16.msra.mxu1 %v5363_v21 }
  0xde   : > { %2587 = vmatmul.mubr.bf16.gmra.mrb[16].mxu1 %v4540_v19  ;;  %4250 = vmatprep.subr.bf16.mxu1 %v4819_v16  ;;  %v4614_v19 = vld [vmem:[%s6335_s0 + $0x3f4] ss:$36 sps:$4 sm:$0xff]  }
  0xdf   : > { %2764 = vmatmul.mubr.bf16.gmra.mrb[16].mxu0 %v4541_v20  ;;  %2594 = vmatprep.mubr.bf16.mxu1 %v4544_v22  ;;  %v4616_v20 = vld [vmem:[%s6335_s0 + $0x3fc] ss:$36 sps:$4 sm:$0xff]   ;;  %v4618_v22 = vld [vmem:[%s6335_s0 + $0x3f0] ss:$36 sps:$4 sm:$0xff]  }
  0xe0   : > { %2771 = vmatprep.mubr.bf16.mxu0 %v4546_v23  ;;  %2893 = vmatpush1.bf16.msra.mxu0 %v4580_v24  ;;  %v4619_v23 = vld [vmem:[%s6335_s0 + $0x3f8] ss:$36 sps:$4 sm:$0xff]  }
  0xe1   : > { %2894 = vmatprep.subr.bf16.mxu0 %v4819_v16  ;;  %4266 = vmatpush1.bf16.msra.mxu1 %v5376_v25  ;;  %v4622_v24 = vld [vmem:[%s6335_s0 + $0x43c] ss:$36 sps:$4 sm:$0xff]  }
  0xe2   : > { %4251 = vmatprep.subr.bf16.mxu1 %v4819_v16 }
  0xe4   : > { %2895 = vmatpush1.bf16.msra.mxu0 %v4588_v27  ;;  %v4626_v27 = vld [vmem:[%s6335_s0 + $0x438] ss:$36 sps:$4 sm:$0xff]  }
  0xe5   : > { %2896 = vmatprep.subr.bf16.mxu0 %v4819_v16  ;;  %4267 = vmatpush1.bf16.msra.mxu1 %v5386_v28 }
  0xe6   : > { %2595 = vmatmul.mubr.bf16.gmra.mrb[20].mxu1 %v4548_v26  ;;  %4252 = vmatprep.subr.bf16.mxu1 %v4819_v16  ;;  %v4624_v26 = vld [vmem:[%s6335_s0 + $0x444] ss:$36 sps:$4 sm:$0xff]  }
  0xe7   : > { %2772 = vmatmul.mubr.bf16.gmra.mrb[20].mxu0 %v4549_v29  ;;  %2602 = vmatprep.mubr.bf16.mxu1 %v4552_v30  ;;  %v4627_v29 = vld [vmem:[%s6335_s0 + $0x440] ss:$36 sps:$4 sm:$0xff]  }
  0xe8   : > { %2779 = vmatprep.mubr.bf16.mxu0 %v4554_v31  ;;  %2897 = vmatpush1.bf16.msra.mxu0 %v4596_v32  ;;  %v4628_v30 = vld [vmem:[%s6335_s0 + $0x484] ss:$36 sps:$4 sm:$0xff]   ;;  %v4630_v31 = vld [vmem:[%s6335_s0 + $0x48c] ss:$36 sps:$4 sm:$0xff]  }
  0xe9   : > { %2898 = vmatprep.subr.bf16.mxu0 %v4819_v16  ;;  %4268 = vmatpush1.bf16.msra.mxu1 %v5402_v33  ;;  %v4634_v32 = vld [vmem:[%s6335_s0 + $0x480] ss:$36 sps:$4 sm:$0xff]  }
  0xea   : > { %4253 = vmatprep.subr.bf16.mxu1 %v4819_v16 }
  0xec   : > { %2899 = vmatpush1.bf16.msra.mxu0 %v4604_v35  ;;  %v4636_v35 = vld [vmem:[%s6335_s0 + $0x4cc] ss:$36 sps:$4 sm:$0xff]  }
  0xed   : > { %2900 = vmatprep.subr.bf16.mxu0 %v4819_v16  ;;  %4269 = vmatpush1.bf16.msra.mxu1 %v5412_v36 }
  0xee   : > { %2603 = vmatmul.mubr.bf16.gmra.mrb[24].mxu1 %v4556_v34  ;;  %4254 = vmatprep.subr.bf16.mxu1 %v4819_v16  ;;  %v4635_v34 = vld [vmem:[%s6335_s0 + $0x488] ss:$36 sps:$4 sm:$0xff]  }
  0xef   : > { %2780 = vmatmul.mubr.bf16.gmra.mrb[24].mxu0 %v4557_v37  ;;  %2610 = vmatprep.mubr.bf16.mxu1 %v4558_v38  ;;  %v4638_v37 = vld [vmem:[%s6335_s0 + $0x4d4] ss:$36 sps:$4 sm:$0xff]   ;;  %v4640_v38 = vld [vmem:[%s6335_s0 + $0x4c8] ss:$36 sps:$4 sm:$0xff]  }
  0xf0   : > { %2787 = vmatprep.mubr.bf16.mxu0 %v4560_v39  ;;  %2901 = vmatpush1.bf16.msra.mxu0 %v4612_v40  ;;  %v4641_v39 = vld [vmem:[%s6335_s0 + $0x4d0] ss:$36 sps:$4 sm:$0xff]   ;;  %v4650_v40 = vld [vmem:[%s6335_s0 + $0x184] ss:$36 sps:$4 sm:$0xff]  }
  0xf1   : > { %2902 = vmatprep.subr.bf16.mxu0 %v4819_v16  ;;  %4270 = vmatpush1.bf16.msra.mxu1 %v5428_v41 }
  0xf2   : > { %4255 = vmatprep.subr.bf16.mxu1 %v4819_v16 }
  0xf4   : > { %2903 = vmatpush1.bf16.msra.mxu0 %v4620_v42  ;;  %v4647_v42 = vld [vmem:[%s6335_s0 + $0x14] ss:$36 sps:$4 sm:$0xff]  }
  0xf5   : > { %2904 = vmatprep.subr.bf16.mxu0 %v4819_v16  ;;  %4271 = vmatpush1.bf16.msra.mxu1 %v5441_v45 }
  0xf6   : > { %2611 = vmatmul.mubr.bf16.gmra.mrb[28].mxu1 %v4564_v43  ;;  %4256 = vmatprep.subr.bf16.mxu1 %v4819_v16  ;;  %v4648_v43 = vld [vmem:[%s6335_s0 + $0x180] ss:$36 sps:$4 sm:$0xff]  }
  0xf7   : > { %2788 = vmatmul.mubr.bf16.gmra.mrb[28].mxu0 %v4565_v44  ;;  %2618 = vmatprep.mubr.bf16.mxu1 %v4566_v46  ;;  %v4645_v44 = vld [vmem:[%s6335_s0 + $0x10] ss:$36 sps:$4 sm:$0xff]  }
  0xf8   : > { %2795 = vmatprep.mubr.bf16.mxu0 %v4568_v47  ;;  %2905 = vmatpush1.bf16.msra.mxu0 %v4632_v48  ;;  %v4653_v46 = vld [vmem:[%s6335_s0 + $0x1cc] ss:$36 sps:$4 sm:$0xff]   ;;  %v4651_v47 = vld [vmem:[%s6335_s0 + $0x5c] ss:$36 sps:$4 sm:$0xff]  }
  0xf9   : > { %2906 = vmatprep.subr.bf16.mxu0 %v4819_v16  ;;  %4272 = vmatpush1.bf16.msra.mxu1 %v5454_v49  ;;  %v4664_v48 = vld [vmem:[%s5193_s9 + $0x208] sm:$0xff]  }
  0xfa   : > { %4257 = vmatprep.subr.bf16.mxu1 %v4819_v16 }
  0xfc   : > { %2907 = vmatpush1.bf16.msra.mxu0 %v4642_v51  ;;  %v4677_v51 = vld [vmem:[%s5193_s9 + $0x210] sm:$0xff]  }
  0xfd   : > { %4273 = vmatpush1.bf16.msra.mxu1 %v5464_v52  ;;  %3053 = vmatprep.subr.bf16.mxu0 %v4819_v16 }
  0xfe   : > { %2619 = vmatmul.mubr.bf16.gmra.mrb[32].mxu1 %v4570_v50  ;;  %4190 = vmatprep.subr.bf16.mxu1 %v5468_v53  ;;  %v4656_v50 = vld [vmem:[%s6335_s0 + $0x1c8] ss:$36 sps:$4 sm:$0xff]  }
  0xff   : > { %2796 = vmatmul.mubr.bf16.gmra.mrb[32].mxu0 %v4571_v54  ;;  %2626 = vmatprep.mubr.bf16.mxu1 %v4574_v55  ;;  %v4655_v54 = vld [vmem:[%s6335_s0 + $0x58] ss:$36 sps:$4 sm:$0xff]  }
 0x100   : > { %2803 = vmatprep.mubr.bf16.mxu0 %v4576_v57  ;;  %v4660_v55 = vld [vmem:[%s6335_s0 + $0x214] ss:$36 sps:$4 sm:$0xff]   ;;  %v4697_v57 = vld [vmem:[%s5193_s9 + $0x220] sm:$0xff]  }
 0x106   : > { %2627 = vmatmul.mubr.bf16.gmra.mrb[36].mxu1 %v4578_v58  ;;  %v4662_v58 = vld [vmem:[%s6335_s0 + $0xa0] ss:$36 sps:$4 sm:$0xff]  }
 0x107   : > { %2804 = vmatmul.mubr.bf16.gmra.mrb[36].mxu0 %v4579_v60  ;;  %2634 = vmatprep.mubr.bf16.mxu1 %v4582_v61  ;;  %v4667_v60 = vld [vmem:[%s6335_s0 + $0x25c] ss:$36 sps:$4 sm:$0xff]   ;;  %v4710_v61 = vld [vmem:[%s5193_s9 + $0x228] sm:$0xff]  }
 0x108   : > { %2811 = vmatprep.mubr.bf16.mxu0 %v4584_v62  ;;  %v4670_v62 = vld [vmem:[%s6335_s0 + $0x258] ss:$36 sps:$4 sm:$0xff]  }
 0x10e   : > { %2635 = vmatmul.mubr.bf16.gmra.mrb[40].mxu1 %v4586_v63  ;;  %v4669_v63 = vld [vmem:[%s6335_s0 + $0xe8] ss:$36 sps:$4 sm:$0xff]  }
 0x10f   : > { %2812 = vmatmul.mubr.bf16.gmra.mrb[40].mxu0 %v4587_v1  ;;  %2642 = vmatprep.mubr.bf16.mxu1 %v4590_v3  ;;  %v4673_v1 = vld [vmem:[%s6335_s0 + $0x2a4] ss:$36 sps:$4 sm:$0xff]   ;;  %v4730_v3 = vld [vmem:[%s5193_s9 + $0x238] sm:$0xff]  }
 0x110   : > { %2819 = vmatprep.mubr.bf16.mxu0 %v4592_v4  ;;  %v4676_v4 = vld [vmem:[%s6335_s0 + $0x2a0] ss:$36 sps:$4 sm:$0xff]  }
 0x116   : > { %2643 = vmatmul.mubr.bf16.gmra.mrb[44].mxu1 %v4594_v5  ;;  %v4680_v5 = vld [vmem:[%s6335_s0 + $0x2ec] ss:$36 sps:$4 sm:$0xff]  }
 0x117   : > { %2820 = vmatmul.mubr.bf16.gmra.mrb[44].mxu0 %v4595_v6  ;;  %2650 = vmatprep.mubr.bf16.mxu1 %v4598_v7  ;;  %v4683_v6 = vld [vmem:[%s6335_s0 + $0x2e8] ss:$36 sps:$4 sm:$0xff]   ;;  %v4682_v7 = vld [vmem:[%s6335_s0 + $0x178] ss:$36 sps:$4 sm:$0xff]  }
 0x118   : > { %2827 = vmatprep.mubr.bf16.mxu0 %v4600_v9  ;;  %v4684_v9 = vld [vmem:[%s6335_s0 + $0x1c4] ss:$36 sps:$4 sm:$0xff]  }
 0x11e   : > { %2651 = vmatmul.mubr.bf16.gmra.mrb[48].mxu1 %v4602_v10  ;;  %v4688_v10 = vld [vmem:[%s6335_s0 + $0x1c0] ss:$36 sps:$4 sm:$0xff]  }
 0x11f   : > { %2828 = vmatmul.mubr.bf16.gmra.mrb[48].mxu0 %v4603_v12  ;;  %2658 = vmatprep.mubr.bf16.mxu1 %v4606_v13  ;;  %v4691_v12 = vld [vmem:[%s6335_s0 + $0x20c] ss:$36 sps:$4 sm:$0xff]  }
 0x120   : > { %2835 = vmatprep.mubr.bf16.mxu0 %v4608_v14  ;;  %v4695_v13 = vld [vmem:[%s6335_s0 + $0x208] ss:$36 sps:$4 sm:$0xff]   ;;  %v4698_v14 = vld [vmem:[%s6335_s0 + $0x254] ss:$36 sps:$4 sm:$0xff]  }
 0x126   : > { %2659 = vmatmul.mubr.bf16.gmra.mrb[52].mxu1 %v4610_v15  ;;  %v4702_v15 = vld [vmem:[%s6335_s0 + $0x250] ss:$36 sps:$4 sm:$0xff]  }
 0x127   : > { %2836 = vmatmul.mubr.bf16.gmra.mrb[52].mxu0 %v4611_v18  ;;  %2666 = vmatprep.mubr.bf16.mxu1 %v4614_v19  ;;  %v4704_v18 = vld [vmem:[%s6335_s0 + $0x29c] ss:$36 sps:$4 sm:$0xff]  }
 0x128   : > { %2843 = vmatprep.mubr.bf16.mxu0 %v4616_v20  ;;  %v4708_v20 = vld [vmem:[%s6335_s0 + $0x298] ss:$36 sps:$4 sm:$0xff]  }
 0x12e   : > { %2667 = vmatmul.mubr.bf16.gmra.mrb[56].mxu1 %v4618_v22 }
 0x12f   : > { %2844 = vmatmul.mubr.bf16.gmra.mrb[56].mxu0 %v4619_v23  ;;  %2674 = vmatprep.mubr.bf16.mxu1 %v4622_v24  ;;  %v4711_v24 = vld [vmem:[%s6335_s0 + $0x2e4] ss:$36 sps:$4 sm:$0xff]  }
 0x130   : > { %2851 = vmatprep.mubr.bf16.mxu0 %v4624_v26 }
 0x136   : > { %2675 = vmatmul.mubr.bf16.gmra.mrb[60].mxu1 %v4626_v27  ;;  %v4716_v27 = vld [vmem:[%s6335_s0 + $0x450] ss:$36 sps:$4 sm:$0xff]  }
 0x137   : > { %2852 = vmatmul.mubr.bf16.gmra.mrb[60].mxu0 %v4627_v29  ;;  %2682 = vmatprep.mubr.bf16.mxu1 %v4628_v30  ;;  %v4715_v30 = vld [vmem:[%s6335_s0 + $0x2e0] ss:$36 sps:$4 sm:$0xff]  }
 0x138   : > { %2859 = vmatprep.mubr.bf16.mxu0 %v4630_v31 }
 0x13e   : > { %2683 = vmatmul.mubr.bf16.gmra.mrb[64].mxu1 %v4634_v32  ;;  %v4719_v32 = vld [vmem:[%s6335_s0 + $0x49c] ss:$36 sps:$4 sm:$0xff]  }
 0x13f   : > { %2860 = vmatmul.mubr.bf16.gmra.mrb[64].mxu0 %v4635_v34  ;;  %2690 = vmatprep.mubr.bf16.mxu1 %v4636_v35  ;;  %v4717_v35 = vld [vmem:[%s6335_s0 + $0x32c] ss:$36 sps:$4 sm:$0xff]  }
 0x140   : > { %2867 = vmatprep.mubr.bf16.mxu0 %v4638_v37 }
 0x146   : > { %2691 = vmatmul.mubr.bf16.gmra.mrb[68].mxu1 %v4640_v38  ;;  %v4723_v38 = vld [vmem:[%s6335_s0 + $0x498] ss:$36 sps:$4 sm:$0xff]  }
 0x147   : > { %2868 = vmatmul.mubr.bf16.gmra.mrb[68].mxu0 %v4641_v39  ;;  %3125 = vmatprep.mubr.bf16.mxu1 %v4650_v40  ;;  %v4722_v40 = vld [vmem:[%s6335_s0 + $0x328] ss:$36 sps:$4 sm:$0xff]  }
 0x148   : > { %2908 = vmatprep.mubr.bf16.mxu0 %v4647_v42 }
 0x14e   : > { %3126 = vmatmul.mubr.bf16.vlgmr.msra.gmra.mrb[72].mxu1 %v4648_v43  ;;  %v4726_v43 = vld [vmem:[%s6335_s0 + $0x4e4] ss:$36 sps:$4 sm:$0xff]  }
 0x14f   : > { %2909 = vmatmul.mubr.bf16.vlgmr.msra.gmra.mrb[0].mxu0 %v4645_v44  ;;  %3133 = vmatprep.mubr.bf16.mxu1 %v4653_v46  ;;  %v4724_v46 = vld [vmem:[%s6335_s0 + $0x374] ss:$36 sps:$4 sm:$0xff]  }
 0x150   : > { %3054 = vmatpush1.bf16.msra.mxu0 %v5273_v56  ;;  %2916 = vmatprep.mubr.bf16.mxu0 %v4651_v47  ;;  %v4658_v56 = vld [vmem:[%s6335_s0 + $0xa4] ss:$36 sps:$4 sm:$0xff]  }
 0x151   : > { %3055 = vmatprep.subr.bf16.mxu0 %v4819_v16  ;;  %4191 = vmatpush3.bf16.msra.mxu1 %v5468_v53  ;;  %v4690_v53 = vld [vmem:[%s5193_s9 + $0x218] sm:$0xff]  }
 0x152   : > { %4192 = vmatprep.subr.bf16.mxu1 %v4664_v48 }
 0x154   : > { %3056 = vmatpush1.bf16.msra.mxu0 %v5282_v59  ;;  %v4663_v59 = vld [vmem:[%s6335_s0 + $0x210] ss:$36 sps:$4 sm:$0xff]  }
 0x155   : > { %3057 = vmatprep.subr.bf16.mxu0 %v4819_v16  ;;  %4193 = vmatpush3.bf16.msra.mxu1 %v4664_v48  ;;  %v4729_v48 = vld [vmem:[%s6335_s0 + $0x4e0] ss:$36 sps:$4 sm:$0xff]  }
 0x156   : > { %3134 = vmatmul.mubr.bf16.gmra.mrb[76].mxu1 %v4656_v50  ;;  %4194 = vmatprep.subr.bf16.mxu1 %v4677_v51 }
 0x157   : > { %2917 = vmatmul.mubr.bf16.gmra.mrb[4].mxu0 %v4655_v54  ;;  %3141 = vmatprep.mubr.bf16.mxu1 %v4660_v55  ;;  %v4733_v55 = vld [vmem:[%s6335_s0 + $0x20] ss:$36 sps:$4 sm:$0xff]  }
 0x158   : > { %2924 = vmatprep.mubr.bf16.mxu0 %v4658_v56  ;;  %3058 = vmatpush1.bf16.msra.mxu0 %v5298_v0  ;;  %v4665_v0 = vld [vmem:[%s6335_s0 + $0xec] ss:$36 sps:$4 sm:$0xff]  }
 0x159   : > { %3059 = vmatprep.subr.bf16.mxu0 %v4819_v16  ;;  %4195 = vmatpush3.bf16.msra.mxu1 %v4677_v51  ;;  %v4728_v51 = vld [vmem:[%s6335_s0 + $0x370] ss:$36 sps:$4 sm:$0xff]  }
 0x15a   : > { %4196 = vmatprep.subr.bf16.mxu1 %v4690_v53 }
 0x15c   : > { %3060 = vmatpush1.bf16.msra.mxu0 %v5305_v2  ;;  %v4721_v2 = vld [vmem:[%s5193_s9 + $0x230] sm:$0xff]  }
 0x15d   : > { %3061 = vmatprep.subr.bf16.mxu0 %v4819_v16  ;;  %4197 = vmatpush3.bf16.msra.mxu1 %v4690_v53  ;;  %v4731_v53 = vld [vmem:[%s6335_s0 + $0x3bc] ss:$36 sps:$4 sm:$0xff]  }
 0x15e   : > { %3142 = vmatmul.mubr.bf16.gmra.mrb[80].mxu1 %v4663_v59  ;;  %4198 = vmatprep.subr.bf16.mxu1 %v4697_v57 }
 0x15f   : > { %2925 = vmatmul.mubr.bf16.gmra.mrb[8].mxu0 %v4662_v58  ;;  %3149 = vmatprep.mubr.bf16.mxu1 %v4667_v60  ;;  %v4734_v60 = vld [vmem:[%s6335_s0 + $0x3b8] ss:$36 sps:$4 sm:$0xff]  }
 0x160   : > { %2932 = vmatprep.mubr.bf16.mxu0 %v4665_v0  ;;  %3062 = vmatpush1.bf16.msra.mxu0 %v5324_v8  ;;  %v4671_v8 = vld [vmem:[%s6335_s0 + $0x134] ss:$36 sps:$4 sm:$0xff]  }
 0x161   : > { %3063 = vmatprep.subr.bf16.mxu0 %v4819_v16  ;;  %4199 = vmatpush3.bf16.msra.mxu1 %v4697_v57  ;;  %v4735_v57 = vld [vmem:[%s6335_s0 + $0x68] ss:$36 sps:$4 sm:$0xff]  }
 0x162   : > { %4200 = vmatprep.subr.bf16.mxu1 %v4710_v61 }
 0x164   : > { %3064 = vmatpush1.bf16.msra.mxu0 %v5334_v11  ;;  %v4675_v11 = vld [vmem:[%s6335_s0 + $0x130] ss:$36 sps:$4 sm:$0xff]  }
 0x165   : > { %3065 = vmatprep.subr.bf16.mxu0 %v4819_v16  ;;  %4201 = vmatpush3.bf16.msra.mxu1 %v4710_v61  ;;  %v4738_v61 = vld [vmem:[%s6335_s0 + $0xb0] ss:$36 sps:$4 sm:$0xff]  }
 0x166   : > { %3150 = vmatmul.mubr.bf16.gmra.mrb[84].mxu1 %v4670_v62  ;;  %4202 = vmatprep.subr.bf16.mxu1 %v4721_v2 }
 0x167   : > { %2933 = vmatmul.mubr.bf16.gmra.mrb[12].mxu0 %v4669_v63  ;;  %3157 = vmatprep.mubr.bf16.mxu1 %v4673_v1  ;;  %v4740_v1 = vld [vmem:[%s6335_s0 + $0xf8] ss:$36 sps:$4 sm:$0xff]  }
 0x168   : > { %2940 = vmatprep.mubr.bf16.mxu0 %v4671_v8  ;;  %3066 = vmatpush1.bf16.msra.mxu0 %v5350_v17  ;;  %v4678_v17 = vld [vmem:[%s6335_s0 + $0x17c] ss:$36 sps:$4 sm:$0xff]  }
 0x169   : > { %3067 = vmatprep.subr.bf16.mxu0 %v4819_v16  ;;  %4203 = vmatpush3.bf16.msra.mxu1 %v4721_v2  ;;  %v4736_v2 = vld [vmem:[%s6335_s0 + $0x404] ss:$36 sps:$4 sm:$0xff]  }
 0x16a   : > { %4204 = vmatprep.subr.bf16.mxu1 %v4730_v3 }
 0x16c   : > { %3068 = vmatpush1.bf16.msra.mxu0 %v5363_v21  ;;  %v4686_v21 = vld [vmem:[%s6335_s0 + $0x334] ss:$36 sps:$4 sm:$0xff]  }
 0x16d   : > { %3069 = vmatprep.subr.bf16.mxu0 %v4819_v16  ;;  %4205 = vmatpush3.bf16.msra.mxu1 %v4730_v3  ;;  %v4739_v3 = vld [vmem:[%s6335_s0 + $0x400] ss:$36 sps:$4 sm:$0xff]  }
 0x16e   : > { %3158 = vmatmul.mubr.bf16.gmra.mrb[88].mxu1 %v4676_v4 }
 0x16f   : > { %2941 = vmatmul.mubr.bf16.gmra.mrb[16].mxu0 %v4675_v11  ;;  %3165 = vmatprep.mubr.bf16.mxu1 %v4680_v5  ;;  %v4743_v11 = vld [vmem:[%s6335_s0 + $0x140] ss:$36 sps:$4 sm:$0xff]  }
 0x170   : > { %2948 = vmatprep.mubr.bf16.mxu0 %v4678_v17  ;;  %3070 = vmatpush1.bf16.msra.mxu0 %v5376_v25  ;;  %v4689_v25 = vld [vmem:[%s6335_s0 + $0x330] ss:$36 sps:$4 sm:$0xff]  }
 0x171   : > { %3071 = vmatprep.subr.bf16.mxu0 %v4819_v16  ;;  %v4741_v17 = vld [vmem:[%s6335_s0 + $0x44c] ss:$36 sps:$4 sm:$0xff]  }
 0x174   : > { %3072 = vmatpush1.bf16.msra.mxu0 %v5386_v28  ;;  %v4693_v28 = vld [vmem:[%s6335_s0 + $0x37c] ss:$36 sps:$4 sm:$0xff]  }
 0x175   : > { %3073 = vmatprep.subr.bf16.mxu0 %v4819_v16 }
 0x176   : > { %3166 = vmatmul.mubr.bf16.gmra.mrb[92].mxu1 %v4683_v6 }
 0x177   : > { %2949 = vmatmul.mubr.bf16.gmra.mrb[20].mxu0 %v4682_v7  ;;  %3173 = vmatprep.mubr.bf16.mxu1 %v4686_v21  ;;  %v4745_v7 = vld [vmem:[%s6335_s0 + $0x188] ss:$36 sps:$4 sm:$0xff]  }
 0x178   : > { %2956 = vmatprep.mubr.bf16.mxu0 %v4684_v9  ;;  %3074 = vmatpush1.bf16.msra.mxu0 %v5402_v33  ;;  %v4696_v33 = vld [vmem:[%s6335_s0 + $0x378] ss:$36 sps:$4 sm:$0xff]   ;;  %v4744_v9 = vld [vmem:[%s6335_s0 + $0x448] ss:$36 sps:$4 sm:$0xff]  }
 0x179   : > { %3075 = vmatprep.subr.bf16.mxu0 %v4819_v16 }
 0x17c   : > { %3076 = vmatpush1.bf16.msra.mxu0 %v5412_v36  ;;  %v4700_v36 = vld [vmem:[%s6335_s0 + $0x3c4] ss:$36 sps:$4 sm:$0xff]  }
 0x17d   : > { %3077 = vmatprep.subr.bf16.mxu0 %v4819_v16 }
 0x17e   : > { %3174 = vmatmul.mubr.bf16.gmra.mrb[96].mxu1 %v4689_v25 }
 0x17f   : > { %2957 = vmatmul.mubr.bf16.gmra.mrb[24].mxu0 %v4688_v10  ;;  %3181 = vmatprep.mubr.bf16.mxu1 %v4693_v28  ;;  %v4748_v10 = vld [vmem:[%s6335_s0 + $0x1d0] ss:$36 sps:$4 sm:$0xff]  }
 0x180   : > { %2964 = vmatprep.mubr.bf16.mxu0 %v4691_v12  ;;  %3078 = vmatpush1.bf16.msra.mxu0 %v5428_v41  ;;  %v4703_v41 = vld [vmem:[%s6335_s0 + $0x3c0] ss:$36 sps:$4 sm:$0xff]   ;;  %v4746_v12 = vld [vmem:[%s6335_s0 + $0x494] ss:$36 sps:$4 sm:$0xff]  }
 0x181   : > { %3079 = vmatprep.subr.bf16.mxu0 %v4819_v16 }
 0x184   : > { %3080 = vmatpush1.bf16.msra.mxu0 %v5441_v45  ;;  %v4706_v45 = vld [vmem:[%s6335_s0 + $0x40c] ss:$36 sps:$4 sm:$0xff]  }
 0x185   : > { %3081 = vmatprep.subr.bf16.mxu0 %v4819_v16 }
 0x186   : > { %3182 = vmatmul.mubr.bf16.gmra.mrb[100].mxu1 %v4696_v33 }
 0x187   : > { %2965 = vmatmul.mubr.bf16.gmra.mrb[28].mxu0 %v4695_v13  ;;  %3189 = vmatprep.mubr.bf16.mxu1 %v4700_v36  ;;  %v4750_v13 = vld [vmem:[%s6335_s0 + $0x218] ss:$36 sps:$4 sm:$0xff]  }
 0x188   : > { %2972 = vmatprep.mubr.bf16.mxu0 %v4698_v14  ;;  %3082 = vmatpush1.bf16.msra.mxu0 %v5454_v49  ;;  %v4709_v49 = vld [vmem:[%s6335_s0 + $0x408] ss:$36 sps:$4 sm:$0xff]   ;;  %v4749_v14 = vld [vmem:[%s6335_s0 + $0x490] ss:$36 sps:$4 sm:$0xff]  }
 0x189   : > { %3083 = vmatprep.subr.bf16.mxu0 %v4819_v16 }
 0x18c   : > { %3084 = vmatpush1.bf16.msra.mxu0 %v5464_v52  ;;  %v4713_v52 = vld [vmem:[%s6335_s0 + $0x454] ss:$36 sps:$4 sm:$0xff]  }
 0x18e   : > { %3190 = vmatmul.mubr.bf16.gmra.mrb[104].mxu1 %v4703_v41 }
 0x18f   : > { %2973 = vmatmul.mubr.bf16.gmra.mrb[32].mxu0 %v4702_v15  ;;  %3197 = vmatprep.mubr.bf16.mxu1 %v4706_v45  ;;  %v4753_v15 = vld [vmem:[%s6335_s0 + $0x260] ss:$36 sps:$4 sm:$0xff]  }
 0x190   : > { %2980 = vmatprep.mubr.bf16.mxu0 %v4704_v18  ;;  %v4751_v18 = vld [vmem:[%s6335_s0 + $0x4dc] ss:$36 sps:$4 sm:$0xff]  }
 0x191   : > { %v5737_v16 = vpop.f32.mrb[0].mxu1 }
 0x192   : > { %v2558_v19 = vpop.f32.mrb[1].mxu1 }
 0x193   : > { %v5745_v22 = vpop.f32.mrb[2].mxu1  ;;  %v4755_v19 = vld [vmem:[%s6335_s0 + $0x2a8] ss:$36 sps:$4 sm:$0xff]  }
 0x194   : > { %v2561_v23 = vpop.f32.mrb[3].mxu1 }
 0x196   : > { %3198 = vmatmul.mubr.bf16.gmra.mrb[108].mxu1 %v4709_v49 }
 0x197   : > { %2981 = vmatmul.mubr.bf16.gmra.mrb[36].mxu0 %v4708_v20  ;;  %3205 = vmatprep.mubr.bf16.mxu1 %v4713_v52  ;;  %v4754_v52 = vld [vmem:[%s6335_s0 + $0x4d8] ss:$36 sps:$4 sm:$0xff]  }
 0x198   : > { %2988 = vmatprep.mubr.bf16.mxu0 %v4711_v24  ;;  %v4759_v24 = vld [vmem:[%s6335_s0 + $0x2f0] ss:$36 sps:$4 sm:$0xff]  }
 0x199   : > { %v5753_v26 = vpop.f32.mrb[4].mxu1 }
 0x19a   : > { %v2566_v29 = vpop.f32.mrb[5].mxu1 }
 0x19b   : > { %v5761_v31 = vpop.f32.mrb[6].mxu1  ;;  %v4758_v29 = vld [vmem:[%s6335_s0 + $0x1c] ss:$36 sps:$4 sm:$0xff]  }
 0x19c   : > { %v2569_v34 = vpop.f32.mrb[7].mxu1 }
 0x19e   : > { %3206 = vmatmul.mubr.bf16.gmra.mrb[112].mxu1 %v4716_v27 }
 0x19f   : > { %2989 = vmatmul.mubr.bf16.gmra.mrb[40].mxu0 %v4715_v30  ;;  %3213 = vmatprep.mubr.bf16.mxu1 %v4719_v32  ;;  %v4760_v32 = vld [vmem:[%s6335_s0 + $0x338] ss:$36 sps:$4 sm:$0xff]  }
 0x1a0   : > { %2996 = vmatprep.mubr.bf16.mxu0 %v4717_v35  ;;  %v4756_v35 = vld [vmem:[%s6335_s0 + $0x18] ss:$36 sps:$4 sm:$0xff]  }
 0x1a1   : > { %v5769_v37 = vpop.f32.mrb[8].mxu1 }
 0x1a2   : > { %v2574_v39 = vpop.f32.mrb[9].mxu1 }
 0x1a3   : > { %v5777_v42 = vpop.f32.mrb[10].mxu1  ;;  %v4763_v39 = vld [vmem:[%s6335_s0 + $0x380] ss:$36 sps:$4 sm:$0xff]  }
 0x1a4   : > { %v2577_v44 = vpop.f32.mrb[11].mxu1 }
 0x1a6   : > { %3214 = vmatmul.mubr.bf16.gmra.mrb[116].mxu1 %v4723_v38 }
 0x1a7   : > { %2997 = vmatmul.mubr.bf16.gmra.mrb[44].mxu0 %v4722_v40  ;;  %3221 = vmatprep.mubr.bf16.mxu1 %v4726_v43  ;;  %v4761_v43 = vld [vmem:[%s6335_s0 + $0x64] ss:$36 sps:$4 sm:$0xff]  }
 0x1a8   : > { %3004 = vmatprep.mubr.bf16.mxu0 %v4724_v46  ;;  %v4765_v46 = vld [vmem:[%s6335_s0 + $0x3c8] ss:$36 sps:$4 sm:$0xff]  }
 0x1a9   : > { %v5785_v47 = vpop.f32.mrb[12].mxu1 }
 0x1aa   : > { %v2582_v50 = vpop.f32.mrb[13].mxu1 }
 0x1ab   : > { %v5793_v54 = vpop.f32.mrb[14].mxu1  ;;  %v4764_v50 = vld [vmem:[%s6335_s0 + $0x60] ss:$36 sps:$4 sm:$0xff]  }
 0x1ac   : > { %v2585_v56 = vpop.f32.mrb[15].mxu1 }
 0x1ae   : > { %3222 = vmatmul.mubr.bf16.gmra.mrb[120].mxu1 %v4729_v48 }
 0x1af   : > { %3005 = vmatmul.mubr.bf16.gmra.mrb[48].mxu0 %v4728_v51  ;;  %4206 = vmatprep.mubr.bf16.mxu1 %v4733_v55  ;;  %v4768_v55 = vld [vmem:[%s6335_s0 + $0x410] ss:$36 sps:$4 sm:$0xff]  }
 0x1b0   : > { %3012 = vmatprep.mubr.bf16.mxu0 %v4731_v53  ;;  %v4766_v53 = vld [vmem:[%s6335_s0 + $0xac] ss:$36 sps:$4 sm:$0xff]  }
 0x1b1   : > { %v5801_v59 = vpop.f32.mrb[16].mxu1 }
 0x1b2   : > { %v2590_v58 = vpop.f32.mrb[17].mxu1 }
 0x1b3   : > { %v5809_v0 = vpop.f32.mrb[18].mxu1  ;;  %v4770_v58 = vld [vmem:[%s6335_s0 + $0x458] ss:$36 sps:$4 sm:$0xff]  }
 0x1b4   : > { %v2593_v62 = vpop.f32.mrb[19].mxu1 }
 0x1b6   : > { %4207 = vmatmul.mubr.bf16.vlgmr.msra.gmra.mrb[124].mxu1 %v4735_v57 }
 0x1b7   : > { %3013 = vmatmul.mubr.bf16.gmra.mrb[52].mxu0 %v4734_v60  ;;  %4210 = vmatprep.mubr.bf16.mxu1 %v4738_v61  ;;  %v4769_v61 = vld [vmem:[%s6335_s0 + $0xa8] ss:$36 sps:$4 sm:$0xff]  }
 0x1b8   : > { %3020 = vmatprep.mubr.bf16.mxu0 %v4736_v2  ;;  %v4773_v2 = vld [vmem:[%s6335_s0 + $0x4a0] ss:$36 sps:$4 sm:$0xff]  }
 0x1b9   : > { %v5817_v63 = vpop.f32.mrb[20].mxu1 }
 0x1ba   : > { %v2598_v8 = vpop.f32.mrb[21].mxu1 }
 0x1bb   : > { %v5825_v4 = vpop.f32.mrb[22].mxu1  ;;  %v4771_v8 = vld [vmem:[%s6335_s0 + $0xf4] ss:$36 sps:$4 sm:$0xff]  }
 0x1bc   : > { %v2601_v5 = vpop.f32.mrb[23].mxu1 }
 0x1be   : > { %4211 = vmatmul.mubr.bf16.gmra.mrb[128].mxu1 %v4740_v1 }
 0x1bf   : > { %3021 = vmatmul.mubr.bf16.gmra.mrb[56].mxu0 %v4739_v3  ;;  %4214 = vmatprep.mubr.bf16.mxu1 %v4743_v11  ;;  %v4775_v11 = vld [vmem:[%s6335_s0 + $0x4e8] ss:$36 sps:$4 sm:$0xff]  }
 0x1c0   : > { %3028 = vmatprep.mubr.bf16.mxu0 %v4741_v17  ;;  %v4774_v17 = vld [vmem:[%s6335_s0 + $0xf0] ss:$36 sps:$4 sm:$0xff]  }
 0x1c1   : > { %v5833_v6 = vpop.f32.mrb[24].mxu1 }
 0x1c2   : > { %v2606_v21 = vpop.f32.mrb[25].mxu1 }
 0x1c3   : > { %v5841_v25 = vpop.f32.mrb[26].mxu1 }
 0x1c4   : > { %v2609_v28 = vpop.f32.mrb[27].mxu1 }
 0x1c6   : > { %4215 = vmatmul.mubr.bf16.gmra.mrb[132].mxu1 %v4745_v7 }
 0x1c7   : > { %3029 = vmatmul.mubr.bf16.gmra.mrb[60].mxu0 %v4744_v9  ;;  %4218 = vmatprep.mubr.bf16.mxu1 %v4748_v10  ;;  %v4776_v9 = vld [vmem:[%s6335_s0 + $0x13c] ss:$36 sps:$4 sm:$0xff]  }
 0x1c8   : > { %3036 = vmatprep.mubr.bf16.mxu0 %v4746_v12  ;;  %v4778_v12 = vld [vmem:[%s6335_s0 + $0x138] ss:$36 sps:$4 sm:$0xff]  }
 0x1c9   : > { %v5849_v33 = vpop.f32.mrb[28].mxu1 }
 0x1ca   : > { %v2614_v36 = vpop.f32.mrb[29].mxu1 }
 0x1cb   : > { %v5857_v41 = vpop.f32.mrb[30].mxu1 }
 0x1cc   : > { %v2617_v45 = vpop.f32.mrb[31].mxu1 }
 0x1ce   : > { %4219 = vmatmul.mubr.bf16.gmra.mrb[136].mxu1 %v4750_v13 }
 0x1cf   : > { %3037 = vmatmul.mubr.bf16.gmra.mrb[64].mxu0 %v4749_v14  ;;  %4222 = vmatprep.mubr.bf16.mxu1 %v4753_v15 }
 0x1d0   : > { %3044 = vmatprep.mubr.bf16.mxu0 %v4751_v18 }
 0x1d1   : > { %v5865_v49 = vpop.f32.mrb[32].mxu1 }
 0x1d2   : > { %v2622_v20 = vpop.f32.mrb[33].mxu1 }
 0x1d3   : > { %v5873_v23 = vpop.f32.mrb[34].mxu1 }
 0x1d4   : > { %v2625_v27 = vpop.f32.mrb[35].mxu1 }
 0x1d6   : > { %4223 = vmatmul.mubr.bf16.gmra.mrb[140].mxu1 %v4755_v19 }
 0x1d7   : > { %3045 = vmatmul.mubr.bf16.gmra.mrb[68].mxu0 %v4754_v52  ;;  %4226 = vmatprep.mubr.bf16.mxu1 %v4759_v24 }
 0x1d8   : > { %3085 = vmatprep.mubr.bf16.mxu0 %v4758_v29 }
 0x1d9   : > { %v5881_v30 = vpop.f32.mrb[36].mxu1 }
 0x1da   : > { %v2630_v34 = vpop.f32.mrb[37].mxu1 }
 0x1db   : > { %v5889_v38 = vpop.f32.mrb[38].mxu1 }
 0x1dc   : > { %v2633_v40 = vpop.f32.mrb[39].mxu1 }
 0x1de   : > { %4227 = vmatmul.mubr.bf16.gmra.mrb[144].mxu1 %v4760_v32 }
 0x1df   : > { %3086 = vmatmul.mubr.bf16.vlgmr.msra.gmra.mrb[0].mxu0 %v4756_v35  ;;  %4230 = vmatprep.mubr.bf16.mxu1 %v4763_v39 }
 0x1e0   : > { %3093 = vmatprep.mubr.bf16.mxu0 %v4761_v43 }
 0x1e1   : > { %v5897_v44 = vpop.f32.mrb[40].mxu1 }
 0x1e2   : > { %v2638_v48 = vpop.f32.mrb[41].mxu1 }
 0x1e3   : > { %v5905_v51 = vpop.f32.mrb[42].mxu1 }
 0x1e4   : > { %v2641_v56 = vpop.f32.mrb[43].mxu1 }
 0x1e6   : > { %4231 = vmatmul.mubr.bf16.gmra.mrb[148].mxu1 %v4765_v46 }
 0x1e7   : > { %3094 = vmatmul.mubr.bf16.gmra.mrb[4].mxu0 %v4764_v50  ;;  %4234 = vmatprep.mubr.bf16.mxu1 %v4768_v55 }
 0x1e8   : > { %3101 = vmatprep.mubr.bf16.mxu0 %v4766_v53 }
 0x1e9   : > { %v5913_v57 = vpop.f32.mrb[44].mxu1 }
 0x1ea   : > { %v2646_v60 = vpop.f32.mrb[45].mxu1 }
 0x1eb   : > { %v5921_v62 = vpop.f32.mrb[46].mxu1 }
 0x1ec   : > { %v2649_v1 = vpop.f32.mrb[47].mxu1 }
 0x1ee   : > { %4235 = vmatmul.mubr.bf16.gmra.mrb[152].mxu1 %v4770_v58 }
 0x1ef   : > { %3102 = vmatmul.mubr.bf16.gmra.mrb[8].mxu0 %v4769_v61  ;;  %4238 = vmatprep.mubr.bf16.mxu1 %v4773_v2 }
 0x1f0   : > { %3109 = vmatprep.mubr.bf16.mxu0 %v4771_v8 }
 0x1f1   : > { %v5929_v3 = vpop.f32.mrb[48].mxu1 }
 0x1f2   : > { %v2654_v5 = vpop.f32.mrb[49].mxu1 }
 0x1f3   : > { %v5937_v7 = vpop.f32.mrb[50].mxu1 }
 0x1f4   : > { %v2657_v21 = vpop.f32.mrb[51].mxu1 }
 0x1f6   : > { %4239 = vmatmul.mubr.bf16.gmra.mrb[156].mxu1 %v4775_v11 }
 0x1f7   : > { %3110 = vmatmul.mubr.bf16.gmra.mrb[12].mxu0 %v4774_v17 }
 0x1f8   : > { %3117 = vmatprep.mubr.bf16.mxu0 %v4776_v9 }
 0x1f9   : > { %v5942_v10 = vpop.f32.mrb[52].mxu1 }
 0x1fa   : > { %v2662_v28 = vpop.f32.mrb[53].mxu1 }
 0x1fb   : > { %v5947_v13 = vpop.f32.mrb[54].mxu1 }
 0x1fc   : > { %v2665_v36 = vpop.f32.mrb[55].mxu1 }
 0x1ff   : > { %3118 = vmatmul.mubr.bf16.gmra.mrb[16].mxu0 %v4778_v12 }
 0x201   : > { %v5949_v14 = vpop.f32.mrb[56].mxu1 }
 0x202   : > { %v2670_v15 = vpop.f32.mrb[57].mxu1 }
 0x203   : > { %v5951_v45 = vpop.f32.mrb[58].mxu1 }
 0x204   : > { %v2673_v18 = vpop.f32.mrb[59].mxu1 }
 0x209   : > { %v5953_v19 = vpop.f32.mrb[60].mxu1 }
 0x20a   : > { %v2678_v20 = vpop.f32.mrb[61].mxu1 }
 0x20b   : > { %v5955_v52 = vpop.f32.mrb[62].mxu1 }
 0x20c   : > { %v2681_v24 = vpop.f32.mrb[63].mxu1 }
 0x211   : > { %v5957_v27 = vpop.f32.mrb[64].mxu1 }
 0x212   : > { %v2686_v29 = vpop.f32.mrb[65].mxu1 }
 0x213   : > { %v5959_v32 = vpop.f32.mrb[66].mxu1 }
 0x214   : > { %v2689_v34 = vpop.f32.mrb[67].mxu1 }
 0x219   : > { %v5961_v35 = vpop.f32.mrb[68].mxu1 }
 0x21a   : > { %v2694_v39 = vpop.f32.mrb[69].mxu1 }
 0x21b   : > { %v5963_v40 = vpop.f32.mrb[70].mxu1 }
 0x21c   : > { %v2697_v43 = vpop.f32.mrb[71].mxu1 }
 0x221   : > { %v3127_v46 = vpop.f32.mrb[72].mxu1 }
 0x222   : > { %v3129_v48 = vpop.f32.mrb[73].mxu1 }
 0x223   : > { %v3130_v50 = vpop.f32.mrb[74].mxu1 }
 0x224   : > { %v3132_v55 = vpop.f32.mrb[75].mxu1 }
 0x229   : > { %v3135_v56 = vpop.f32.mrb[76].mxu1 }
 0x22a   : > { %v3137_v53 = vpop.f32.mrb[77].mxu1 }
 0x22b   : > { %v3138_v58 = vpop.f32.mrb[78].mxu1 }
 0x22c   : > { %v3140_v60 = vpop.f32.mrb[79].mxu1 }
 0x231   : > { %v3143_v61 = vpop.f32.mrb[80].mxu1 }
 0x232   : > { %v3145_v2 = vpop.f32.mrb[81].mxu1 }
 0x233   : > { %v3146_v1 = vpop.f32.mrb[82].mxu1 }
 0x234   : > { %v3148_v8 = vpop.f32.mrb[83].mxu1 }
 0x239   : > { %v3151_v11 = vpop.f32.mrb[84].mxu1 }
 0x23a   : > { %v3153_v5 = vpop.f32.mrb[85].mxu1 }
 0x23b   : > { %v3154_v17 = vpop.f32.mrb[86].mxu1 }
 0x23c   : > { %v3156_v21 = vpop.f32.mrb[87].mxu1 }
 0x241   : > { %v3159_v9 = vpop.f32.mrb[88].mxu1 }
 0x242   : > { %v3161_v28 = vpop.f32.mrb[89].mxu1 }
 0x243   : > { %v3162_v12 = vpop.f32.mrb[90].mxu1 }
 0x244   : > { %v3164_v36 = vpop.f32.mrb[91].mxu1 }
 0x249   : > { %v5965_v15 = vpop.f32.mrb[92].mxu1 }
 0x24a   : > { %v2950_v18 = vpop.f32.mrb[20].mxu0  ;;  %v3169_v20 = vpop.f32.mrb[93].mxu1 }
 0x24b   : > { %v4284_v24 = vadd.f32 %v2950_v18, %v5817_v63  ;;  %v2952_v29 = vpop.f32.mrb[21].mxu0  ;;  %v5968_v34 = vpop.f32.mrb[94].mxu1 }
 0x24c   : > { %v2953_v39 = vpop.f32.mrb[22].mxu0  ;;  %v3172_v43 = vpop.f32.mrb[95].mxu1 }
 0x24d   : > { %v4286_v48 = vadd.f32 %v2953_v39, %v5825_v4  ;;  %v2955_v55 = vpop.f32.mrb[23].mxu0  ;;  %v5971_v53 = vadd.f32 %v4284_v24, %v3127_v46 }
 0x24f   : > { %v5973_v60 = vadd.f32 %v4286_v48, %v3130_v50 }
 0x251   : > { %v5975_v2 = vpop.f32.mrb[96].mxu1 }
 0x252   : > { %v2958_v8 = vpop.f32.mrb[24].mxu0  ;;  %v3177_v5 = vpop.f32.mrb[97].mxu1 }
 0x253   : > { %v4288_v21 = vadd.f32 %v2958_v8, %v5833_v6  ;;  %v2960_v28 = vpop.f32.mrb[25].mxu0  ;;  %v5978_v63 = vpop.f32.mrb[98].mxu1 }
 0x254   : > { %v2961_v36 = vpop.f32.mrb[26].mxu0  ;;  %v3180_v18 = vpop.f32.mrb[99].mxu1 }
 0x255   : > { %v4290_v20 = vadd.f32 %v2961_v36, %v5841_v25  ;;  %v2963_v29 = vpop.f32.mrb[27].mxu0  ;;  %v5981_v4 = vadd.f32 %v4288_v21, %v3135_v56 }
 0x257   : > { %v5983_v46 = vadd.f32 %v4290_v20, %v3138_v58 }
 0x259   : > { %v5985_v50 = vpop.f32.mrb[100].mxu1 }
 0x25a   : > { %v2966_v24 = vpop.f32.mrb[28].mxu0  ;;  %v3185_v39 = vpop.f32.mrb[101].mxu1 }
 0x25b   : > { %v4292_v43 = vadd.f32 %v2966_v24, %v5849_v33  ;;  %v2968_v48 = vpop.f32.mrb[29].mxu0  ;;  %v5988_v6 = vpop.f32.mrb[102].mxu1 }
 0x25c   : > { %v2969_v55 = vpop.f32.mrb[30].mxu0  ;;  %v3188_v8 = vpop.f32.mrb[103].mxu1 }
 0x25d   : > { %v4294_v5 = vadd.f32 %v2969_v55, %v5857_v41  ;;  %v2971_v28 = vpop.f32.mrb[31].mxu0  ;;  %v5991_v25 = vadd.f32 %v4292_v43, %v3143_v61 }
 0x25f   : > { %v5993_v56 = vadd.f32 %v4294_v5, %v3146_v1 }
 0x261   : > { %v5995_v58 = vpop.f32.mrb[104].mxu1 }
 0x262   : > { %v2974_v21 = vpop.f32.mrb[32].mxu0  ;;  %v3193_v36 = vpop.f32.mrb[105].mxu1 }
 0x263   : > { %v4296_v18 = vadd.f32 %v2974_v21, %v5865_v49  ;;  %v2976_v20 = vpop.f32.mrb[33].mxu0  ;;  %v5998_v33 = vpop.f32.mrb[106].mxu1 }
 0x264   : > { %v2977_v29 = vpop.f32.mrb[34].mxu0  ;;  %v3196_v24 = vpop.f32.mrb[107].mxu1 }
 0x265   : > { %v4298_v39 = vadd.f32 %v2977_v29, %v5873_v23  ;;  %v2979_v48 = vpop.f32.mrb[35].mxu0  ;;  %v6001_v41 = vadd.f32 %v4296_v18, %v3151_v11 }
 0x267   : > { %v6003_v61 = vadd.f32 %v4298_v39, %v3154_v17 }
 0x269   : > { %v6005_v1 = vpop.f32.mrb[108].mxu1 }
 0x26a   : > { %v2982_v43 = vpop.f32.mrb[36].mxu0  ;;  %v3201_v55 = vpop.f32.mrb[109].mxu1 }
 0x26b   : > { %v4300_v8 = vadd.f32 %v2982_v43, %v5881_v30  ;;  %v2984_v5 = vpop.f32.mrb[37].mxu0  ;;  %v6008_v49 = vpop.f32.mrb[110].mxu1 }
 0x26c   : > { %v2985_v28 = vpop.f32.mrb[38].mxu0  ;;  %v3204_v21 = vpop.f32.mrb[111].mxu1 }
 0x26d   : > { %v4302_v36 = vadd.f32 %v2985_v28, %v5889_v38  ;;  %v2987_v20 = vpop.f32.mrb[39].mxu0  ;;  %v6011_v23 = vadd.f32 %v4300_v8, %v3159_v9 }
 0x26f   : > { %v6013_v11 = vadd.f32 %v4302_v36, %v3162_v12 }
 0x271   : > { %v6015_v17 = vpop.f32.mrb[112].mxu1 }
 0x272   : > { %v2990_v18 = vpop.f32.mrb[40].mxu0  ;;  %v3209_v29 = vpop.f32.mrb[113].mxu1 }
 0x273   : > { %v4304_v24 = vadd.f32 %v2990_v18, %v5897_v44  ;;  %v2992_v39 = vpop.f32.mrb[41].mxu0  ;;  %v6018_v30 = vpop.f32.mrb[114].mxu1 }
 0x274   : > { %v2993_v48 = vpop.f32.mrb[42].mxu0  ;;  %v3212_v43 = vpop.f32.mrb[115].mxu1 }
 0x275   : > { %v4306_v55 = vadd.f32 %v2993_v48, %v5905_v51  ;;  %v2995_v5 = vpop.f32.mrb[43].mxu0  ;;  %v6022_v38 = vadd.f32 %v4304_v24, %v5965_v15 }
 0x277   : > { %v6025_v9 = vadd.f32 %v4306_v55, %v5968_v34 }
 0x279   : > { %v6027_v12 = vpop.f32.mrb[116].mxu1 }
 0x27a   : > { %v2998_v8 = vpop.f32.mrb[44].mxu0  ;;  %v3217_v28 = vpop.f32.mrb[117].mxu1 }
 0x27b   : > { %v4308_v44 = vadd.f32 %v2998_v8, %v5913_v57  ;;  %v3000_v21 = vpop.f32.mrb[45].mxu0  ;;  %v6030_v36 = vpop.f32.mrb[118].mxu1 }
 0x27c   : > { %v3001_v20 = vpop.f32.mrb[46].mxu0  ;;  %v3220_v18 = vpop.f32.mrb[119].mxu1 }
 0x27d   : > { %v4310_v51 = vadd.f32 %v3001_v20, %v5921_v62  ;;  %v3003_v29 = vpop.f32.mrb[47].mxu0  ;;  %v6034_v15 = vadd.f32 %v4308_v44, %v5975_v2 }
 0x27f   : > { %v6037_v34 = vadd.f32 %v4310_v51, %v5978_v63 }
 0x281   : > { %v6039_v24 = vpop.f32.mrb[120].mxu1 }
 0x282   : > { %v3006_v39 = vpop.f32.mrb[48].mxu0  ;;  %v3225_v48 = vpop.f32.mrb[121].mxu1 }
 0x283   : > { %v4312_v57 = vadd.f32 %v3006_v39, %v5929_v3  ;;  %v3008_v43 = vpop.f32.mrb[49].mxu0  ;;  %v6042_v55 = vpop.f32.mrb[122].mxu1 }
 0x284   : > { %v3009_v5 = vpop.f32.mrb[50].mxu0  ;;  %v3228_v8 = vpop.f32.mrb[123].mxu1 }
 0x285   : > { %v4314_v62 = vadd.f32 %v3009_v5, %v5937_v7  ;;  %v3011_v28 = vpop.f32.mrb[51].mxu0  ;;  %v6046_v2 = vadd.f32 %v4312_v57, %v5985_v50 }
 0x287   : > { %v6049_v63 = vadd.f32 %v4314_v62, %v5988_v6 }
 0x289   : > { %v6051_v44 = vpop.f32.mrb[124].mxu1 }
 0x28a   : > { %v3014_v21 = vpop.f32.mrb[52].mxu0  ;;  %v6053_v20 = vpop.f32.mrb[125].mxu1 }
 0x28b   : > { %v4316_v3 = vadd.f32 %v3014_v21, %v5942_v10  ;;  %v3016_v18 = vpop.f32.mrb[53].mxu0  ;;  %v6056_v51 = vpop.f32.mrb[126].mxu1 }
 0x28c   : > { %v3017_v7 = vpop.f32.mrb[54].mxu0  ;;  %v6058_v29 = vpop.f32.mrb[127].mxu1 }
 0x28d   : > { %v4318_v50 = vadd.f32 %v3017_v7, %v5947_v13  ;;  %v3019_v39 = vpop.f32.mrb[55].mxu0  ;;  %v6062_v6 = vadd.f32 %v4316_v3, %v5995_v58 }
 0x28e   : > { %v6094_v39 = vld [vmem:[%s859_s27] ss:$0 sm:$0xff] }
 0x28f   : > { %v6065_v48 = vadd.f32 %v4318_v50, %v5998_v33 }
 0x291   : > { %v6068_v57 = vpop.f32.mrb[128].mxu1 }
 0x292   : > { %v3022_v10 = vpop.f32.mrb[56].mxu0  ;;  %v6070_v43 = vpop.f32.mrb[129].mxu1 }
 0x293   : > { %v4320_v5 = vadd.f32 %v3022_v10, %v5949_v14  ;;  %v3024_v8 = vpop.f32.mrb[57].mxu0  ;;  %v6073_v62 = vpop.f32.mrb[130].mxu1 }
 0x294   : > { %v3025_v13 = vpop.f32.mrb[58].mxu0  ;;  %v6075_v28 = vpop.f32.mrb[131].mxu1 }
 0x295   : > { %v4322_v58 = vadd.f32 %v3025_v13, %v5951_v45  ;;  %v3027_v33 = vpop.f32.mrb[59].mxu0  ;;  %v6080_v21 = vadd.f32 %v4320_v5, %v6005_v1 }
 0x297   : > { %v6083_v3 = vadd.f32 %v4322_v58, %v6008_v49 }
 0x299   : > { %v4216_v14 = vpop.f32.mrb[132].mxu1 }
 0x29a   : > { %v3030_v18 = vpop.f32.mrb[60].mxu0  ;;  %v3305_v7 = vadd.f32 %v5971_v53, %v4216_v14  ;;  %v6089_v50 = vpop.f32.mrb[133].mxu1 }
 0x29b   : > { %v4324_v45 = vadd.f32 %v3030_v18, %v5953_v19  ;;  %v3032_v1 = vpop.f32.mrb[61].mxu0  ;;  %v4217_v10 = vpop.f32.mrb[134].mxu1 }
 0x29c   : > { %v3033_v49 = vpop.f32.mrb[62].mxu0  ;;  %v3308_v5 = vadd.f32 %v5973_v60, %v4217_v10  ;;  %v6097_v8 = vpop.f32.mrb[135].mxu1  ;;  %v3535_v33 = vadd.f32 %v6094_v39, %v3305_v7 }
 0x29d   : > { %v4326_v13 = vadd.f32 %v3033_v49, %v5955_v52  ;;  %v3035_v58 = vpop.f32.mrb[63].mxu0  ;;  %v6101_v53 = vadd.f32 %v4324_v45, %v6015_v17 }
 0x29e   : > { %v3571_v19 = vmax.f32 %v3535_v33, 0.0  ;;  %v3536_v18 = vadd.f32 %v6094_v39, %v3308_v5 }
 0x29f   : > { %v6105_v14 = vadd.f32 %v4326_v13, %v6018_v30 }
 0x2a0   : > { %3607 = vst [vmem:[%s6108_s12 + $0x50] sm:$0xff] %v3571_v19  ;;  %v3572_v60 = vmax.f32 %v3536_v18, 0.0 }
 0x2a1   : > { %v4220_v1 = vpop.f32.mrb[136].mxu1 }
 0x2a2   : > { %v3038_v52 = vpop.f32.mrb[64].mxu0  ;;  %v3321_v10 = vadd.f32 %v5991_v25, %v4220_v1  ;;  %v3312_v17 = vpop.f32.mrb[137].mxu1  ;;  %3608 = vst [vmem:[%s6108_s12 + $0x58] sm:$0xff] %v3572_v60 }
 0x2a3   : > { %v4328_v45 = vadd.f32 %v3038_v52, %v5957_v27  ;;  %v3040_v7 = vpop.f32.mrb[65].mxu0  ;;  %v3313_v30 = vadd.f32 %v5981_v4, %v3312_v17  ;;  %v4221_v49 = vpop.f32.mrb[138].mxu1 }
 0x2a4   : > { %v3041_v5 = vpop.f32.mrb[66].mxu0  ;;  %v3324_v13 = vadd.f32 %v5993_v56, %v4221_v49  ;;  %v3315_v58 = vpop.f32.mrb[139].mxu1  ;;  %v3539_v27 = vadd.f32 %v6094_v39, %v3321_v10 }
 0x2a5   : > { %v4330_v33 = vadd.f32 %v3041_v5, %v5959_v32  ;;  %v3043_v19 = vpop.f32.mrb[67].mxu0  ;;  %v3316_v18 = vadd.f32 %v5983_v46, %v3315_v58  ;;  %v6119_v25 = vadd.f32 %v4328_v45, %v6027_v12  ;;  %v3537_v4 = vadd.f32 %v6094_v39, %v3313_v30 }
 0x2a6   : > { %v3575_v60 = vmax.f32 %v3539_v27, 0.0  ;;  %v3540_v56 = vadd.f32 %v6094_v39, %v3324_v13 }
 0x2a7   : > { %v6124_v1 = vadd.f32 %v4330_v33, %v6030_v36  ;;  %v3573_v52 = vmax.f32 %v3537_v4, 0.0  ;;  %v3538_v32 = vadd.f32 %v6094_v39, %v3316_v18 }
 0x2a8   : > { %3611 = vst [vmem:[%s6108_s12 + $0x70] sm:$0xff] %v3575_v60  ;;  %v3576_v46 = vmax.f32 %v3540_v56, 0.0 }
 0x2a9   : > { %v4224_v17 = vpop.f32.mrb[140].mxu1  ;;  %3609 = vst [vmem:[%s6108_s12 + $0x60] sm:$0xff] %v3573_v52  ;;  %v3574_v7 = vmax.f32 %v3538_v32, 0.0 }
 0x2aa   : > { %v3046_v12 = vpop.f32.mrb[68].mxu0  ;;  %v3337_v45 = vadd.f32 %v6011_v23, %v4224_v17  ;;  %v3328_v10 = vpop.f32.mrb[141].mxu1  ;;  %3612 = vst [vmem:[%s6108_s12 + $0x78] sm:$0xff] %v3576_v46 }
 0x2ab   : > { %v4332_v36 = vadd.f32 %v3046_v12, %v5961_v35  ;;  %v3048_v30 = vpop.f32.mrb[69].mxu0  ;;  %v3329_v49 = vadd.f32 %v6001_v41, %v3328_v10  ;;  %v4225_v5 = vpop.f32.mrb[142].mxu1  ;;  %3610 = vst [vmem:[%s6108_s12 + $0x68] sm:$0xff] %v3574_v7 }
 0x2ac   : > { %v3049_v13 = vpop.f32.mrb[70].mxu0  ;;  %v3340_v58 = vadd.f32 %v6013_v11, %v4225_v5  ;;  %v3331_v33 = vpop.f32.mrb[143].mxu1  ;;  %v3543_v35 = vadd.f32 %v6094_v39, %v3337_v45 }
 0x2ad   : > { %v4334_v19 = vadd.f32 %v3049_v13, %v5963_v40  ;;  %v3051_v18 = vpop.f32.mrb[71].mxu0  ;;  %v3332_v23 = vadd.f32 %v6003_v61, %v3331_v33  ;;  %v6139_v27 = vadd.f32 %v4332_v36, %v6039_v24  ;;  %v3541_v41 = vadd.f32 %v6094_v39, %v3329_v49 }
 0x2ae   : > { %v3579_v60 = vmax.f32 %v3543_v35, 0.0  ;;  %v3544_v11 = vadd.f32 %v6094_v39, %v3340_v58 }
 0x2af   : > { %v6144_v4 = vadd.f32 %v4334_v19, %v6042_v55  ;;  %v3577_v56 = vmax.f32 %v3541_v41, 0.0  ;;  %v3542_v40 = vadd.f32 %v6094_v39, %v3332_v23 }
 0x2b0   : > { %3615 = vst [vmem:[%s6108_s12 + $0x90] sm:$0xff] %v3579_v60  ;;  %v3580_v61 = vmax.f32 %v3544_v11, 0.0 }
 0x2b1   : > { %v4228_v52 = vpop.f32.mrb[144].mxu1  ;;  %3613 = vst [vmem:[%s6108_s12 + $0x80] sm:$0xff] %v3577_v56  ;;  %v3578_v46 = vmax.f32 %v3542_v40, 0.0 }
 0x2b2   : > { %v3087_v24 = vpop.f32.mrb[0].mxu0  ;;  %v3353_v32 = vadd.f32 %v6034_v15, %v4228_v52  ;;  %v3344_v17 = vpop.f32.mrb[145].mxu1  ;;  %3616 = vst [vmem:[%s6108_s12 + $0x98] sm:$0xff] %v3580_v61 }
 0x2b3   : > { %v4274_v55 = vadd.f32 %v3087_v24, %v5737_v16  ;;  %v3089_v12 = vpop.f32.mrb[1].mxu0  ;;  %v3345_v45 = vadd.f32 %v6022_v38, %v3344_v17  ;;  %v4229_v10 = vpop.f32.mrb[146].mxu1  ;;  %3614 = vst [vmem:[%s6108_s12 + $0x88] sm:$0xff] %v3578_v46 }
 0x2b4   : > { %v3090_v7 = vpop.f32.mrb[2].mxu0  ;;  %v3356_v36 = vadd.f32 %v6037_v34, %v4229_v10  ;;  %v3347_v30 = vpop.f32.mrb[147].mxu1  ;;  %v3547_v16 = vadd.f32 %v6094_v39, %v3353_v32 }
 0x2b5   : > { %v3265_v49 = vadd.f32 %v4274_v55, %v6053_v20  ;;  %v4275_v15 = vadd.f32 %v3090_v7, %v5745_v22  ;;  %v3092_v5 = vpop.f32.mrb[3].mxu0  ;;  %v3348_v13 = vadd.f32 %v6025_v9, %v3347_v30  ;;  %v3545_v38 = vadd.f32 %v6094_v39, %v3345_v45 }
 0x2b6   : > { %v3583_v33 = vmax.f32 %v3547_v16, 0.0  ;;  %v3548_v34 = vadd.f32 %v6094_v39, %v3356_v36 }
 0x2b7   : > { %v3268_v58 = vadd.f32 %v4275_v15, %v6058_v29  ;;  %v3525_v19 = vadd.f32 %v6094_v39, %v3265_v49  ;;  %v3581_v18 = vmax.f32 %v3545_v38, 0.0  ;;  %v3546_v20 = vadd.f32 %v6094_v39, %v3348_v13 }
 0x2b8   : > { %3619 = vst [vmem:[%s6108_s12 + $0xb0] sm:$0xff] %v3583_v33  ;;  %v3584_v23 = vmax.f32 %v3548_v34, 0.0 }
 0x2b9   : > { %v4232_v22 = vpop.f32.mrb[148].mxu1  ;;  %v3561_v60 = vmax.f32 %v3525_v19, 0.0  ;;  %3617 = vst [vmem:[%s6108_s12 + $0xa0] sm:$0xff] %v3581_v18  ;;  %v3526_v29 = vadd.f32 %v6094_v39, %v3268_v58  ;;  %v3582_v11 = vmax.f32 %v3546_v20, 0.0 }
 0x2ba   : > { %v3095_v9 = vpop.f32.mrb[4].mxu0  ;;  %v3369_v35 = vadd.f32 %v6062_v6, %v4232_v22  ;;  %v3360_v41 = vpop.f32.mrb[149].mxu1  ;;  %3620 = vst [vmem:[%s6108_s12 + $0xb8] sm:$0xff] %v3584_v23 }
 0x2bb   : > { %v4276_v56 = vadd.f32 %v3095_v9, %v5753_v26  ;;  %v3097_v40 = vpop.f32.mrb[5].mxu0  ;;  %v4233_v52 = vpop.f32.mrb[150].mxu1  ;;  %v3361_v61 = vadd.f32 %v6046_v2, %v3360_v41  ;;  %3597 = vst [vmem:[%s6108_s12] sm:$0xff] %v3561_v60  ;;  %v3562_v6 = vmax.f32 %v3526_v29, 0.0  ;;  %3618 = vst [vmem:[%s6108_s12 + $0xa8] sm:$0xff] %v3582_v11 }
 0x2bc   : > { %v3098_v24 = vpop.f32.mrb[6].mxu0  ;;  %v3372_v32 = vadd.f32 %v6065_v48, %v4233_v52  ;;  %v3363_v17 = vpop.f32.mrb[151].mxu1  ;;  %v3551_v45 = vadd.f32 %v6094_v39, %v3369_v35 }
 0x2bd   : > { %v3273_v46 = vadd.f32 %v4276_v56, %v6051_v44  ;;  %v4277_v55 = vadd.f32 %v3098_v24, %v5761_v31  ;;  %v3100_v12 = vpop.f32.mrb[7].mxu0  ;;  %v3364_v26 = vadd.f32 %v6049_v63, %v3363_v17  ;;  %3598 = vst [vmem:[%s6108_s12 + $0x8] sm:$0xff] %v3562_v6  ;;  %v3549_v48 = vadd.f32 %v6094_v39, %v3361_v61 }
 0x2be   : > { %v3587_v10 = vmax.f32 %v3551_v45, 0.0  ;;  %v3552_v7 = vadd.f32 %v6094_v39, %v3372_v32 }
 0x2bf   : > { %v3276_v2 = vadd.f32 %v4277_v55, %v6056_v51  ;;  %v3527_v36 = vadd.f32 %v6094_v39, %v3273_v46  ;;  %v3550_v44 = vadd.f32 %v6094_v39, %v3364_v26  ;;  %v3585_v30 = vmax.f32 %v3549_v48, 0.0 }
 0x2c0   : > { %3623 = vst [vmem:[%s6108_s12 + $0xd0] sm:$0xff] %v3587_v10  ;;  %v3588_v63 = vmax.f32 %v3552_v7, 0.0 }
 0x2c1   : > { %v4236_v31 = vpop.f32.mrb[152].mxu1  ;;  %v3563_v5 = vmax.f32 %v3527_v36, 0.0  ;;  %v3528_v13 = vadd.f32 %v6094_v39, %v3276_v2  ;;  %v3586_v16 = vmax.f32 %v3550_v44, 0.0  ;;  %3621 = vst [vmem:[%s6108_s12 + $0xc0] sm:$0xff] %v3585_v30 }
 0x2c2   : > { %v3103_v49 = vpop.f32.mrb[8].mxu0  ;;  %v3385_v15 = vadd.f32 %v6101_v53, %v4236_v31  ;;  %v3376_v51 = vpop.f32.mrb[153].mxu1  ;;  %3624 = vst [vmem:[%s6108_s12 + $0xd8] sm:$0xff] %v3588_v63 }
 0x2c3   : > { %v4278_v38 = vadd.f32 %v3103_v49, %v5769_v37  ;;  %v3105_v58 = vpop.f32.mrb[9].mxu0  ;;  %v4237_v33 = vpop.f32.mrb[154].mxu1  ;;  %v3377_v34 = vadd.f32 %v6080_v21, %v3376_v51  ;;  %3599 = vst [vmem:[%s6108_s12 + $0x10] sm:$0xff] %v3563_v5  ;;  %v3564_v53 = vmax.f32 %v3528_v13, 0.0  ;;  %3622 = vst [vmem:[%s6108_s12 + $0xc8] sm:$0xff] %v3586_v16 }
 0x2c4   : > { %v3106_v19 = vpop.f32.mrb[10].mxu0  ;;  %v3388_v18 = vadd.f32 %v6105_v14, %v4237_v33  ;;  %v3379_v20 = vpop.f32.mrb[155].mxu1  ;;  %v3555_v35 = vadd.f32 %v6094_v39, %v3385_v15 }
 0x2c5   : > { %v3281_v22 = vadd.f32 %v4278_v38, %v6070_v43  ;;  %v4279_v23 = vadd.f32 %v3106_v19, %v5777_v42  ;;  %v3108_v37 = vpop.f32.mrb[11].mxu0  ;;  %v3380_v9 = vadd.f32 %v6083_v3, %v3379_v20  ;;  %3600 = vst [vmem:[%s6108_s12 + $0x18] sm:$0xff] %v3564_v53  ;;  %v3553_v14 = vadd.f32 %v6094_v39, %v3377_v34 }
 0x2c6   : > { %v3591_v41 = vmax.f32 %v3555_v35, 0.0  ;;  %v3556_v60 = vadd.f32 %v6094_v39, %v3388_v18  ;;  %v3764_v35 = vld [vmem:[%s6108_s12 + $0x58] sm:$0xff] (%p4875_p6) }
 0x2c7   : > { %v3284_v21 = vadd.f32 %v4279_v23, %v6075_v28  ;;  %v3529_v29 = vadd.f32 %v6094_v39, %v3281_v22  ;;  %v3554_v43 = vadd.f32 %v6094_v39, %v3380_v9  ;;  %v3589_v11 = vmax.f32 %v3553_v14, 0.0  ;;  %v3762_v9 = vld [vmem:[%s6108_s12 + $0x50] sm:$0xff] (%p4875_p6)  ;;  %3765 = vst [vmem:[%s6249_s4 + $0xb0] sm:$0xff] (%p4875_p6), %v3764_v35 }
 0x2c8   : > { %3627 = vst [vmem:[%s6108_s12 + $0xf0] sm:$0xff] %v3591_v41  ;;  %v3592_v3 = vmax.f32 %v3556_v60, 0.0  ;;  %3763 = vst [vmem:[%s6249_s4 + $0xa0] sm:$0xff] (%p4875_p6), %v3762_v9  ;;  %v3768_v41 = vld [vmem:[%s6108_s12 + $0x68] sm:$0xff] (%p4875_p6)  ;;  %v3770_v14 = vld [vmem:[%s6108_s12 + $0x70] sm:$0xff] (%p4875_p6) }
 0x2c9   : > { %v4240_v42 = vpop.f32.mrb[156].mxu1  ;;  %v3565_v52 = vmax.f32 %v3529_v29, 0.0  ;;  %v3530_v61 = vadd.f32 %v6094_v39, %v3284_v21  ;;  %v3590_v24 = vmax.f32 %v3554_v43, 0.0  ;;  %3625 = vst [vmem:[%s6108_s12 + $0xe0] sm:$0xff] %v3589_v11  ;;  %v3766_v21 = vld [vmem:[%s6108_s12 + $0x60] sm:$0xff] (%p4875_p6)  ;;  %3769 = vst [vmem:[%s6249_s4 + $0xd0] sm:$0xff] (%p4875_p6), %v3768_v41 }
 0x2ca   : > { %v3111_v56 = vpop.f32.mrb[12].mxu0  ;;  %v3401_v40 = vadd.f32 %v6139_v27, %v4240_v42  ;;  %v3392_v28 = vpop.f32.mrb[157].mxu1  ;;  %3628 = vst [vmem:[%s6108_s12 + $0xf8] sm:$0xff] %v3592_v3  ;;  %3767 = vst [vmem:[%s6249_s4 + $0xc0] sm:$0xff] (%p4875_p6), %v3766_v21  ;;  %v3772_v60 = vld [vmem:[%s6108_s12 + $0x78] sm:$0xff] (%p4875_p6)  ;;  %v3774_v29 = vld [vmem:[%s6108_s12 + $0x80] sm:$0xff] (%p4875_p6) }
 0x2cb   : > { %v4280_v32 = vadd.f32 %v3111_v56, %v5785_v47  ;;  %v3113_v17 = vpop.f32.mrb[13].mxu0  ;;  %v4241_v6 = vpop.f32.mrb[158].mxu1  ;;  %v3393_v46 = vadd.f32 %v6119_v25, %v3392_v28  ;;  %3601 = vst [vmem:[%s6108_s12 + $0x20] sm:$0xff] %v3565_v52  ;;  %v3566_v27 = vmax.f32 %v3530_v61, 0.0  ;;  %3626 = vst [vmem:[%s6108_s12 + $0xe8] sm:$0xff] %v3590_v24  ;;  %v3776_v43 = vld [vmem:[%s6108_s12 + $0x88] sm:$0xff] (%p4875_p6) }
 0x2cc   : > { %v3114_v55 = vpop.f32.mrb[14].mxu0  ;;  %v3404_v12 = vadd.f32 %v6144_v4, %v4241_v6  ;;  %v3395_v26 = vpop.f32.mrb[159].mxu1  ;;  %v3559_v48 = vadd.f32 %v6094_v39, %v3401_v40  ;;  %3771 = vst [vmem:[%s6249_s4 + $0xe0] sm:$0xff] (%p4875_p6), %v3770_v14  ;;  %3773 = vst [vmem:[%s6249_s4 + $0xf0] sm:$0xff] (%p4875_p6), %v3772_v60  ;;  %v3778_v42 = vld [vmem:[%s6108_s12 + $0x90] sm:$0xff] (%p4875_p6)  ;;  %v3780_v11 = vld [vmem:[%s6108_s12 + $0x98] sm:$0xff] (%p4875_p6) }
 0x2cd   : > { %v3289_v45 = vadd.f32 %v4280_v32, %v6068_v57  ;;  %v4281_v2 = vadd.f32 %v3114_v55, %v5793_v54  ;;  %v3116_v47 = vpop.f32.mrb[15].mxu0  ;;  %v3396_v10 = vadd.f32 %v6124_v1, %v3395_v26  ;;  %3602 = vst [vmem:[%s6108_s12 + $0x28] sm:$0xff] %v3566_v27  ;;  %v3557_v7 = vadd.f32 %v6094_v39, %v3393_v46  ;;  %v3782_v3 = vld [vmem:[%s6108_s12 + $0xa0] sm:$0xff] (%p4875_p6)  ;;  %v3784_v56 = vld [vmem:[%s6108_s12 + $0xa8] sm:$0xff] (%p4875_p6)  ;;  %v3786_v40 = vld [vmem:[%s6108_s12 + $0xb0] sm:$0xff] (%p4875_p6) }
 0x2ce   : > { %v3595_v4 = vmax.f32 %v3559_v48, 0.0  ;;  %v3560_v36 = vadd.f32 %v6094_v39, %v3404_v12  ;;  %3775 = vst [vmem:[%s6249_s4 + $0x100] sm:$0xff] (%p4875_p6), %v3774_v29  ;;  %3777 = vst [vmem:[%s6249_s4 + $0x110] sm:$0xff] (%p4875_p6), %v3776_v43  ;;  %v3788_v28 = vld [vmem:[%s6108_s12 + $0xb8] sm:$0xff] (%p4875_p6)  ;;  %v3790_v52 = vld [vmem:[%s6108_s12 + $0xc0] sm:$0xff] (%p4875_p6) }
 0x2cf   : > { %v3292_v25 = vadd.f32 %v4281_v2, %v6073_v62  ;;  %v3531_v57 = vadd.f32 %v6094_v39, %v3289_v45  ;;  %v3558_v54 = vadd.f32 %v6094_v39, %v3396_v10  ;;  %v3593_v1 = vmax.f32 %v3557_v7, 0.0  ;;  %3779 = vst [vmem:[%s6249_s4 + $0x120] sm:$0xff] (%p4875_p6), %v3778_v42  ;;  %3781 = vst [vmem:[%s6249_s4 + $0x130] sm:$0xff] (%p4875_p6), %v3780_v11  ;;  %v3792_v61 = vld [vmem:[%s6108_s12 + $0xc8] sm:$0xff] (%p4875_p6)  ;;  %v3794_v24 = vld [vmem:[%s6108_s12 + $0xd0] sm:$0xff] (%p4875_p6) }
 0x2d0   : > { %3631 = vst [vmem:[%s6108_s12 + $0x110] sm:$0xff] %v3595_v4  ;;  %v3596_v44 = vmax.f32 %v3560_v36, 0.0  ;;  %3783 = vst [vmem:[%s6249_s4 + $0x140] sm:$0xff] (%p4875_p6), %v3782_v3  ;;  %v3796_v32 = vld [vmem:[%s6108_s12 + $0xd8] sm:$0xff] (%p4875_p6)  ;;  %v3798_v17 = vld [vmem:[%s6108_s12 + $0xe0] sm:$0xff] (%p4875_p6) }
 0x2d1   : > { %v3567_v30 = vmax.f32 %v3531_v57, 0.0  ;;  %v3532_v62 = vadd.f32 %v6094_v39, %v3292_v25  ;;  %v3594_v63 = vmax.f32 %v3558_v54, 0.0  ;;  %3629 = vst [vmem:[%s6108_s12 + $0x100] sm:$0xff] %v3593_v1  ;;  %3785 = vst [vmem:[%s6249_s4 + $0x150] sm:$0xff] (%p4875_p6), %v3784_v56  ;;  %v3802_v46 = vld [vmem:[%s6108_s12 + $0xf0] sm:$0xff] (%p4875_p6)  ;;  %v3804_v55 = vld [vmem:[%s6108_s12 + $0xf8] sm:$0xff] (%p4875_p6) }
 0x2d2   : > { %v3119_v31 = vpop.f32.mrb[16].mxu0  ;;  %3632 = vst [vmem:[%s6108_s12 + $0x118] sm:$0xff] %v3596_v44  ;;  %v3750_v18 = vld [vmem:[%s6108_s12 + $0x20] sm:$0xff] (%p4875_p6)  ;;  %3787 = vst [vmem:[%s6249_s4 + $0x160] sm:$0xff] (%p4875_p6), %v3786_v40  ;;  %v3800_v6 = vld [vmem:[%s6108_s12 + $0xe8] sm:$0xff] (%p4875_p6) }
 0x2d3   : > { %v4282_v49 = vadd.f32 %v3119_v31, %v5801_v59  ;;  %v3121_v15 = vpop.f32.mrb[17].mxu0  ;;  %3603 = vst [vmem:[%s6108_s12 + $0x30] sm:$0xff] %v3567_v30  ;;  %v3568_v5 = vmax.f32 %v3532_v62, 0.0  ;;  %3630 = vst [vmem:[%s6108_s12 + $0x108] sm:$0xff] %v3594_v63 }
 0x2d4   : > { %v3122_v51 = vpop.f32.mrb[18].mxu0  ;;  %v3752_v20 = vld [vmem:[%s6108_s12 + $0x28] sm:$0xff] (%p4875_p6)  ;;  %3751 = vst [vmem:[%s6249_s4 + $0x40] sm:$0xff] (%p4875_p6), %v3750_v18  ;;  %3789 = vst [vmem:[%s6249_s4 + $0x170] sm:$0xff] (%p4875_p6), %v3788_v28 }
 0x2d5   : > { %v3297_v13 = vadd.f32 %v4282_v49, %v6089_v50  ;;  %v4283_v16 = vadd.f32 %v3122_v51, %v5809_v0  ;;  %v3124_v38 = vpop.f32.mrb[19].mxu0  ;;  %3604 = vst [vmem:[%s6108_s12 + $0x38] sm:$0xff] %v3568_v5  ;;  %v3742_v0 = vld [vmem:[%s6108_s12] sm:$0xff] (%p4875_p6)  ;;  %v3744_v50 = vld [vmem:[%s6108_s12 + $0x8] sm:$0xff] (%p4875_p6)  ;;  %3753 = vst [vmem:[%s6249_s4 + $0x50] sm:$0xff] (%p4875_p6), %v3752_v20 }
 0x2d6   : > { %3743 = vst [vmem:[%s6249_s4] sm:$0xff] (%p4875_p6), %v3742_v0  ;;  %3745 = vst [vmem:[%s6249_s4 + $0x10] sm:$0xff] (%p4875_p6), %v3744_v50 }
 0x2d7   : > { %v3300_v58 = vadd.f32 %v4283_v16, %v6097_v8  ;;  %v3533_v33 = vadd.f32 %v6094_v39, %v3297_v13  ;;  %3639 = sbr.rel (!%p4875_p6) target bundleno = 742 (0x2e6), region = 85  ;;  %v3748_v8 = vld [vmem:[%s6108_s12 + $0x18] sm:$0xff] (%p4875_p6)  ;;  %3791 = vst [vmem:[%s6249_s4 + $0x180] sm:$0xff] (%p4875_p6), %v3790_v52  ;;  %3793 = vst [vmem:[%s6249_s4 + $0x190] sm:$0xff] (%p4875_p6), %v3792_v61  ;;  %v3810_v27 = vld [vmem:[%s6108_s12 + $0x110] sm:$0xff] (%p4875_p6) }
 0x2d8   : > { %3749 = vst [vmem:[%s6249_s4 + $0x30] sm:$0xff] (%p4875_p6), %v3748_v8  ;;  %3795 = vst [vmem:[%s6249_s4 + $0x1a0] sm:$0xff] (%p4875_p6), %v3794_v24  ;;  %v3806_v12 = vld [vmem:[%s6108_s12 + $0x100] sm:$0xff] (%p4875_p6) }
 0x2d9   : > { %v3569_v59 = vmax.f32 %v3533_v33, 0.0  ;;  %v3534_v34 = vadd.f32 %v6094_v39, %v3300_v58  ;;  %v3746_v39 = vld [vmem:[%s6108_s12 + $0x10] sm:$0xff] (%p4875_p6)  ;;  %3797 = vst [vmem:[%s6249_s4 + $0x1b0] sm:$0xff] (%p4875_p6), %v3796_v32  ;;  %3799 = vst [vmem:[%s6249_s4 + $0x1c0] sm:$0xff] (%p4875_p6), %v3798_v17  ;;  %v3812_v45 = vld [vmem:[%s6108_s12 + $0x118] sm:$0xff] (%p4875_p6) }
 0x2da   : > { %3747 = vst [vmem:[%s6249_s4 + $0x20] sm:$0xff] (%p4875_p6), %v3746_v39  ;;  %v3754_v53 = vld [vmem:[%s6108_s12 + $0x30] sm:$0xff] (%p4875_p6)  ;;  %3801 = vst [vmem:[%s6249_s4 + $0x1d0] sm:$0xff] (%p4875_p6), %v3800_v6  ;;  %v3808_v26 = vld [vmem:[%s6108_s12 + $0x108] sm:$0xff] (%p4875_p6) }
 0x2db   : > { %3605 = vst [vmem:[%s6108_s12 + $0x40] sm:$0xff] %v3569_v59  ;;  %v3570_v19 = vmax.f32 %v3534_v34, 0.0  ;;  %3755 = vst [vmem:[%s6249_s4 + $0x60] sm:$0xff] (%p4875_p6), %v3754_v53 }
 0x2dc   : > { %v3756_v22 = vld [vmem:[%s6108_s12 + $0x38] sm:$0xff] (%p4875_p6)  ;;  %3803 = vst [vmem:[%s6249_s4 + $0x1e0] sm:$0xff] (%p4875_p6), %v3802_v46  ;;  %3805 = vst [vmem:[%s6249_s4 + $0x1f0] sm:$0xff] (%p4875_p6), %v3804_v55 }
 0x2dd   : > { %3606 = vst [vmem:[%s6108_s12 + $0x48] sm:$0xff] %v3570_v19  ;;  %3757 = vst [vmem:[%s6249_s4 + $0x70] sm:$0xff] (%p4875_p6), %v3756_v22 }
 0x2de   : > { %3807 = vst [vmem:[%s6249_s4 + $0x200] sm:$0xff] %v3806_v12  ;;  %3809 = vst [vmem:[%s6249_s4 + $0x210] sm:$0xff] %v3808_v26 }
 0x2df   : > { %3811 = vst [vmem:[%s6249_s4 + $0x220] sm:$0xff] %v3810_v27  ;;  %3813 = vst [vmem:[%s6249_s4 + $0x230] sm:$0xff] %v3812_v45 }
 0x2e2   : > { %v3758_v23 = vld [vmem:[%s6108_s12 + $0x40] sm:$0xff] }
 0x2e3   : > { %3759 = vst [vmem:[%s6249_s4 + $0x80] sm:$0xff] %v3758_v23 }
 0x2e4   : > { %v3760_v37 = vld [vmem:[%s6108_s12 + $0x48] sm:$0xff] }
 0x2e5   : > { %3761 = vst [vmem:[%s6249_s4 + $0x90] sm:$0xff] %v3760_v37 }
 0x2e6 PF: > { %s13_s16 = sadd.s32 1, %s4817_s16   ;;  %s6340_s12 = smov %s4805_s13 }
 0x2e7   : > { %p10_p12 = scmp.ge.s32.totalorder %s13_s16, 4   ;;  %s6341_s13 = smov %s4880_s22 }
 0x2e8   : > { %s6342_s14 = smov %s4813_s15  ;;  %s6343_s15 = smov %s6345_s17 }
 0x2e9   :  { %12 = sbr.rel (!%p10_p12) target bundleno = 3 (0x3), region = 160 }

// kernel: cnn_forward.14
= control target key start
LH: loop header
LB: loop body
LE: loop exit
PB: predicated region body
PF: predicated region fallthrough
CT: control target
= control target key end

     0   :  { %s2770_s12 = smov 0   ;;  %s2772_s13 = smov 0   ;;  %s3389_s0 = inlined_call_operand.vmem [shape: bf16[2,9216], index: 0, kind: input, shape index: {}]   ;;  %s3390_s1 = inlined_call_operand.vmem [shape: bf16[9216,512], index: 1, kind: input, shape index: {}]   ;;  %s3391_s2 = inlined_call_operand.vmem [shape: f32[1,512], index: 2, kind: input, shape index: {}]   ;;  %s3392_s3 = inlined_call_operand.vmem [shape: f32[2,512], index: 3, kind: output, shape index: {}]  }
   0x1   :  { %s2774_s14 = smov 0   ;;  %s2776_s15 = smov 0  }
   0x2   :  { %s2778_s16 = smov 0   ;;  %s2780_s17 = smov 0  }
   0x3   :  { %s2782_s18 = smov 0  }
   0x4 LB: > { %s25_s19 = sadd.s32 1, %s2738_s16  ;;  %s28_s20 = sadd.s32 1, %s2742_s17  ;;  %s2746_s18 = sphi %s2782_s18, %s13_s18   ;;  %s2742_s17 = sphi %s2780_s17, %s3398_s17   ;;  %s2738_s16 = sphi %s2778_s16, %s3397_s16   ;;  %s2734_s15 = sphi %s2776_s15, %s3396_s15   ;;  %s2730_s14 = sphi %s2774_s14, %s3395_s14   ;;  %s2726_s13 = sphi %s2772_s13, %s3394_s13   ;;  %s2722_s12 = sphi %s2770_s12, %s3393_s12  }
   0x5   : > { %p26_p0 = scmp.ge.s32.totalorder %s25_s19, 6  ;;  %p76_p1 = scmp.ne.s32.totalorder %s2726_s13, %s2722_s12 }
   0x6   : > { %p77_p2 = scmp.eq.s32.totalorder %s2746_s18, 0  ;;  %s69_s24 = sadd.s32 1, %s2726_s13 }
   0x7   : > { %s3400_s19 = smov (%p26_p0, %s25_s19), 0  ;;  %s3402_s20 = smov (!%p26_p0, %s28_s20), %s2742_s17 }
   0x8   : > { %p78_p3 = por %p77_p2, %p76_p1  ;;  %p30_p4 = scmp.ge.s32.totalorder %s3402_s20, 4 }
   0x9   : > { %s64_s21 = ssub.s32 %s2738_s16, %s3400_s19  ;;  %p2295_p6 = scmp.ge.s32.totalorder %s2746_s18, 24 }
   0xa   : > { %s3404_s20 = smov (%p30_p4, %s3402_s20), 0 }
   0xb   : > { %s65_s22 = ssub.s32 %s2742_s17, %s3404_s20  ;;  %156 = sbr.rel (%p2295_p6) target bundleno = 153 (0x99), region = 16 }
   0xc   : > { %s66_s23 = sor.u32 %s65_s22, %s64_s21 }
   0xd   : > { %p67_p5 = scmp.eq.s32.totalorder %s66_s23, 0 }
   0xf   : > { %s2821_s25 = scalar_select %p67_p5, %s2726_s13, %s69_s24  }
  0x12   : > { %171 = sbr.rel (!%p78_p3) target bundleno = 153 (0x99), region = 24  ;;  %s173_s26 = sand.u32 (%p78_p3), 1, %s2726_s13  }
  0x13   : > { %s2402_s27 = smul.u32 (%p78_p3), 768, %s2738_s16 }
  0x14   : > { %s2535_s28 = smul.u32 (%p78_p3), 768, %s173_s26 }
  0x15   : > { %s178_s29 = sadd.s32 (%p78_p3), %s2742_s17, %s2402_s27 }
  0x16   : > { %s2297_s30 = sshll.u32 (%p78_p3), %s178_s29, 2  ;;  %s2835_s7 = scalar_lea.vmem (%p78_p3), [#allocation2], %s2535_s28 }
  0x17   : > { %s2830_s6 = scalar_lea.vmem (%p78_p3), %s3390_s1, %s2297_s30 }
  0x18   : > { %v196_v0 = vld [vmem:[%s2830_s6] sm:$0xf] (%p78_p3)  ;;  %v198_v1 = vld [vmem:[%s2830_s6 + $0x10] sm:$0xf] (%p78_p3) }
  0x19   : > { %v200_v2 = vld [vmem:[%s2830_s6 + $0x20] sm:$0xf]  ;;  %197 = vst [vmem:[%s2835_s7] sm:$0xf] %v196_v0  ;;  %199 = vst [vmem:[%s2835_s7 + $0x4] sm:$0xf] %v198_v1 }
  0x1a   : > { %201 = vst [vmem:[%s2835_s7 + $0x8] sm:$0xf] %v200_v2  ;;  %v202_v3 = vld [vmem:[%s2830_s6 + $0x30] sm:$0xf]  ;;  %v204_v4 = vld [vmem:[%s2830_s6 + $0x40] sm:$0xf] }
  0x1b   : > { %v206_v5 = vld [vmem:[%s2830_s6 + $0x50] sm:$0xf]  ;;  %203 = vst [vmem:[%s2835_s7 + $0xc] sm:$0xf] %v202_v3  ;;  %205 = vst [vmem:[%s2835_s7 + $0x10] sm:$0xf] %v204_v4 }
  0x1c   : > { %207 = vst [vmem:[%s2835_s7 + $0x14] sm:$0xf] %v206_v5  ;;  %v208_v6 = vld [vmem:[%s2830_s6 + $0x60] sm:$0xf]  ;;  %v210_v7 = vld [vmem:[%s2830_s6 + $0x70] sm:$0xf] }
  0x1d   : > { %v212_v8 = vld [vmem:[%s2830_s6 + $0x80] sm:$0xf]  ;;  %209 = vst [vmem:[%s2835_s7 + $0x18] sm:$0xf] %v208_v6  ;;  %211 = vst [vmem:[%s2835_s7 + $0x1c] sm:$0xf] %v210_v7 }
  0x1e   : > { %213 = vst [vmem:[%s2835_s7 + $0x20] sm:$0xf] %v212_v8  ;;  %v214_v9 = vld [vmem:[%s2830_s6 + $0x90] sm:$0xf]  ;;  %v216_v10 = vld [vmem:[%s2830_s6 + $0xa0] sm:$0xf] }
  0x1f   : > { %v218_v11 = vld [vmem:[%s2830_s6 + $0xb0] sm:$0xf]  ;;  %215 = vst [vmem:[%s2835_s7 + $0x24] sm:$0xf] %v214_v9  ;;  %217 = vst [vmem:[%s2835_s7 + $0x28] sm:$0xf] %v216_v10 }
  0x20   : > { %219 = vst [vmem:[%s2835_s7 + $0x2c] sm:$0xf] %v218_v11  ;;  %v220_v12 = vld [vmem:[%s2830_s6 + $0xc0] sm:$0xf]  ;;  %v222_v13 = vld [vmem:[%s2830_s6 + $0xd0] sm:$0xf] }
  0x21   : > { %v224_v14 = vld [vmem:[%s2830_s6 + $0xe0] sm:$0xf]  ;;  %221 = vst [vmem:[%s2835_s7 + $0x30] sm:$0xf] %v220_v12  ;;  %223 = vst [vmem:[%s2835_s7 + $0x34] sm:$0xf] %v222_v13 }
  0x22   : > { %225 = vst [vmem:[%s2835_s7 + $0x38] sm:$0xf] %v224_v14  ;;  %v226_v15 = vld [vmem:[%s2830_s6 + $0xf0] sm:$0xf]  ;;  %v228_v16 = vld [vmem:[%s2830_s6 + $0x100] sm:$0xf] }
  0x23   : > { %v230_v17 = vld [vmem:[%s2830_s6 + $0x110] sm:$0xf]  ;;  %227 = vst [vmem:[%s2835_s7 + $0x3c] sm:$0xf] %v226_v15  ;;  %229 = vst [vmem:[%s2835_s7 + $0x40] sm:$0xf] %v228_v16 }
  0x24   : > { %231 = vst [vmem:[%s2835_s7 + $0x44] sm:$0xf] %v230_v17  ;;  %v232_v18 = vld [vmem:[%s2830_s6 + $0x120] sm:$0xf]  ;;  %v234_v19 = vld [vmem:[%s2830_s6 + $0x130] sm:$0xf] }
  0x25   : > { %v236_v20 = vld [vmem:[%s2830_s6 + $0x140] sm:$0xf]  ;;  %233 = vst [vmem:[%s2835_s7 + $0x48] sm:$0xf] %v232_v18  ;;  %235 = vst [vmem:[%s2835_s7 + $0x4c] sm:$0xf] %v234_v19 }
  0x26   : > { %237 = vst [vmem:[%s2835_s7 + $0x50] sm:$0xf] %v236_v20  ;;  %v238_v21 = vld [vmem:[%s2830_s6 + $0x150] sm:$0xf]  ;;  %v240_v22 = vld [vmem:[%s2830_s6 + $0x160] sm:$0xf] }
  0x27   : > { %v242_v23 = vld [vmem:[%s2830_s6 + $0x170] sm:$0xf]  ;;  %239 = vst [vmem:[%s2835_s7 + $0x54] sm:$0xf] %v238_v21  ;;  %241 = vst [vmem:[%s2835_s7 + $0x58] sm:$0xf] %v240_v22 }
  0x28   : > { %243 = vst [vmem:[%s2835_s7 + $0x5c] sm:$0xf] %v242_v23  ;;  %v244_v24 = vld [vmem:[%s2830_s6 + $0x180] sm:$0xf]  ;;  %v246_v25 = vld [vmem:[%s2830_s6 + $0x190] sm:$0xf] }
  0x29   : > { %v248_v26 = vld [vmem:[%s2830_s6 + $0x1a0] sm:$0xf]  ;;  %245 = vst [vmem:[%s2835_s7 + $0x60] sm:$0xf] %v244_v24  ;;  %247 = vst [vmem:[%s2835_s7 + $0x64] sm:$0xf] %v246_v25 }
  0x2a   : > { %249 = vst [vmem:[%s2835_s7 + $0x68] sm:$0xf] %v248_v26  ;;  %v250_v27 = vld [vmem:[%s2830_s6 + $0x1b0] sm:$0xf]  ;;  %v252_v28 = vld [vmem:[%s2830_s6 + $0x1c0] sm:$0xf] }
  0x2b   : > { %v254_v29 = vld [vmem:[%s2830_s6 + $0x1d0] sm:$0xf]  ;;  %251 = vst [vmem:[%s2835_s7 + $0x6c] sm:$0xf] %v250_v27  ;;  %253 = vst [vmem:[%s2835_s7 + $0x70] sm:$0xf] %v252_v28 }
  0x2c   : > { %255 = vst [vmem:[%s2835_s7 + $0x74] sm:$0xf] %v254_v29  ;;  %v256_v30 = vld [vmem:[%s2830_s6 + $0x1e0] sm:$0xf]  ;;  %v258_v31 = vld [vmem:[%s2830_s6 + $0x1f0] sm:$0xf] }
  0x2d   : > { %v260_v32 = vld [vmem:[%s2830_s6 + $0x200] sm:$0xf]  ;;  %257 = vst [vmem:[%s2835_s7 + $0x78] sm:$0xf] %v256_v30  ;;  %259 = vst [vmem:[%s2835_s7 + $0x7c] sm:$0xf] %v258_v31 }
  0x2e   : > { %261 = vst [vmem:[%s2835_s7 + $0x80] sm:$0xf] %v260_v32  ;;  %v262_v33 = vld [vmem:[%s2830_s6 + $0x210] sm:$0xf]  ;;  %v264_v34 = vld [vmem:[%s2830_s6 + $0x220] sm:$0xf] }
  0x2f   : > { %v266_v35 = vld [vmem:[%s2830_s6 + $0x230] sm:$0xf]  ;;  %263 = vst [vmem:[%s2835_s7 + $0x84] sm:$0xf] %v262_v33  ;;  %265 = vst [vmem:[%s2835_s7 + $0x88] sm:$0xf] %v264_v34 }
  0x30   : > { %267 = vst [vmem:[%s2835_s7 + $0x8c] sm:$0xf] %v266_v35  ;;  %v268_v36 = vld [vmem:[%s2830_s6 + $0x240] sm:$0xf]  ;;  %v270_v37 = vld [vmem:[%s2830_s6 + $0x250] sm:$0xf] }
  0x31   : > { %v272_v38 = vld [vmem:[%s2830_s6 + $0x260] sm:$0xf]  ;;  %269 = vst [vmem:[%s2835_s7 + $0x90] sm:$0xf] %v268_v36  ;;  %271 = vst [vmem:[%s2835_s7 + $0x94] sm:$0xf] %v270_v37 }
  0x32   : > { %273 = vst [vmem:[%s2835_s7 + $0x98] sm:$0xf] %v272_v38  ;;  %v274_v39 = vld [vmem:[%s2830_s6 + $0x270] sm:$0xf]  ;;  %v276_v40 = vld [vmem:[%s2830_s6 + $0x280] sm:$0xf] }
  0x33   : > { %v278_v41 = vld [vmem:[%s2830_s6 + $0x290] sm:$0xf]  ;;  %275 = vst [vmem:[%s2835_s7 + $0x9c] sm:$0xf] %v274_v39  ;;  %277 = vst [vmem:[%s2835_s7 + $0xa0] sm:$0xf] %v276_v40 }
  0x34   : > { %279 = vst [vmem:[%s2835_s7 + $0xa4] sm:$0xf] %v278_v41  ;;  %v280_v42 = vld [vmem:[%s2830_s6 + $0x2a0] sm:$0xf]  ;;  %v282_v43 = vld [vmem:[%s2830_s6 + $0x2b0] sm:$0xf] }
  0x35   : > { %v284_v44 = vld [vmem:[%s2830_s6 + $0x2c0] sm:$0xf]  ;;  %281 = vst [vmem:[%s2835_s7 + $0xa8] sm:$0xf] %v280_v42  ;;  %283 = vst [vmem:[%s2835_s7 + $0xac] sm:$0xf] %v282_v43 }
  0x36   : > { %285 = vst [vmem:[%s2835_s7 + $0xb0] sm:$0xf] %v284_v44  ;;  %v286_v45 = vld [vmem:[%s2830_s6 + $0x2d0] sm:$0xf]  ;;  %v288_v46 = vld [vmem:[%s2830_s6 + $0x2e0] sm:$0xf] }
  0x37   : > { %v290_v47 = vld [vmem:[%s2830_s6 + $0x2f0] sm:$0xf]  ;;  %287 = vst [vmem:[%s2835_s7 + $0xb4] sm:$0xf] %v286_v45  ;;  %289 = vst [vmem:[%s2835_s7 + $0xb8] sm:$0xf] %v288_v46 }
  0x38   : > { %291 = vst [vmem:[%s2835_s7 + $0xbc] sm:$0xf] %v290_v47  ;;  %v292_v48 = vld [vmem:[%s2830_s6 + $0x300] sm:$0xf]  ;;  %v294_v49 = vld [vmem:[%s2830_s6 + $0x310] sm:$0xf] }
  0x39   : > { %v296_v50 = vld [vmem:[%s2830_s6 + $0x320] sm:$0xf]  ;;  %293 = vst [vmem:[%s2835_s7 + $0xc0] sm:$0xf] %v292_v48  ;;  %295 = vst [vmem:[%s2835_s7 + $0xc4] sm:$0xf] %v294_v49 }
  0x3a   : > { %297 = vst [vmem:[%s2835_s7 + $0xc8] sm:$0xf] %v296_v50  ;;  %v298_v51 = vld [vmem:[%s2830_s6 + $0x330] sm:$0xf]  ;;  %v300_v52 = vld [vmem:[%s2830_s6 + $0x340] sm:$0xf] }
  0x3b   : > { %v302_v53 = vld [vmem:[%s2830_s6 + $0x350] sm:$0xf]  ;;  %299 = vst [vmem:[%s2835_s7 + $0xcc] sm:$0xf] %v298_v51  ;;  %301 = vst [vmem:[%s2835_s7 + $0xd0] sm:$0xf] %v300_v52 }
  0x3c   : > { %303 = vst [vmem:[%s2835_s7 + $0xd4] sm:$0xf] %v302_v53  ;;  %v304_v54 = vld [vmem:[%s2830_s6 + $0x360] sm:$0xf]  ;;  %v306_v55 = vld [vmem:[%s2830_s6 + $0x370] sm:$0xf] }
  0x3d   : > { %v308_v56 = vld [vmem:[%s2830_s6 + $0x380] sm:$0xf]  ;;  %305 = vst [vmem:[%s2835_s7 + $0xd8] sm:$0xf] %v304_v54  ;;  %307 = vst [vmem:[%s2835_s7 + $0xdc] sm:$0xf] %v306_v55 }
  0x3e   : > { %309 = vst [vmem:[%s2835_s7 + $0xe0] sm:$0xf] %v308_v56  ;;  %v310_v57 = vld [vmem:[%s2830_s6 + $0x390] sm:$0xf]  ;;  %v312_v58 = vld [vmem:[%s2830_s6 + $0x3a0] sm:$0xf] }
  0x3f   : > { %v314_v59 = vld [vmem:[%s2830_s6 + $0x3b0] sm:$0xf]  ;;  %311 = vst [vmem:[%s2835_s7 + $0xe4] sm:$0xf] %v310_v57  ;;  %313 = vst [vmem:[%s2835_s7 + $0xe8] sm:$0xf] %v312_v58 }
  0x40   : > { %315 = vst [vmem:[%s2835_s7 + $0xec] sm:$0xf] %v314_v59  ;;  %v316_v60 = vld [vmem:[%s2830_s6 + $0x3c0] sm:$0xf]  ;;  %v318_v61 = vld [vmem:[%s2830_s6 + $0x3d0] sm:$0xf] }
  0x41   : > { %v320_v62 = vld [vmem:[%s2830_s6 + $0x3e0] sm:$0xf]  ;;  %317 = vst [vmem:[%s2835_s7 + $0xf0] sm:$0xf] %v316_v60  ;;  %319 = vst [vmem:[%s2835_s7 + $0xf4] sm:$0xf] %v318_v61 }
  0x42   : > { %321 = vst [vmem:[%s2835_s7 + $0xf8] sm:$0xf] %v320_v62  ;;  %v322_v63 = vld [vmem:[%s2830_s6 + $0x3f0] sm:$0xf]  ;;  %v324_v0 = vld [vmem:[%s2830_s6 + $0x400] sm:$0xf] }
  0x43   : > { %v326_v1 = vld [vmem:[%s2830_s6 + $0x410] sm:$0xf]  ;;  %323 = vst [vmem:[%s2835_s7 + $0xfc] sm:$0xf] %v322_v63  ;;  %325 = vst [vmem:[%s2835_s7 + $0x100] sm:$0xf] %v324_v0 }
  0x44   : > { %327 = vst [vmem:[%s2835_s7 + $0x104] sm:$0xf] %v326_v1  ;;  %v328_v2 = vld [vmem:[%s2830_s6 + $0x420] sm:$0xf]  ;;  %v330_v3 = vld [vmem:[%s2830_s6 + $0x430] sm:$0xf] }
  0x45   : > { %v332_v4 = vld [vmem:[%s2830_s6 + $0x440] sm:$0xf]  ;;  %329 = vst [vmem:[%s2835_s7 + $0x108] sm:$0xf] %v328_v2  ;;  %331 = vst [vmem:[%s2835_s7 + $0x10c] sm:$0xf] %v330_v3 }
  0x46   : > { %333 = vst [vmem:[%s2835_s7 + $0x110] sm:$0xf] %v332_v4  ;;  %v334_v5 = vld [vmem:[%s2830_s6 + $0x450] sm:$0xf]  ;;  %v336_v6 = vld [vmem:[%s2830_s6 + $0x460] sm:$0xf] }
  0x47   : > { %v338_v7 = vld [vmem:[%s2830_s6 + $0x470] sm:$0xf]  ;;  %335 = vst [vmem:[%s2835_s7 + $0x114] sm:$0xf] %v334_v5  ;;  %337 = vst [vmem:[%s2835_s7 + $0x118] sm:$0xf] %v336_v6 }
  0x48   : > { %339 = vst [vmem:[%s2835_s7 + $0x11c] sm:$0xf] %v338_v7  ;;  %v340_v8 = vld [vmem:[%s2830_s6 + $0x480] sm:$0xf]  ;;  %v342_v9 = vld [vmem:[%s2830_s6 + $0x490] sm:$0xf] }
  0x49   : > { %v344_v10 = vld [vmem:[%s2830_s6 + $0x4a0] sm:$0xf]  ;;  %341 = vst [vmem:[%s2835_s7 + $0x120] sm:$0xf] %v340_v8  ;;  %343 = vst [vmem:[%s2835_s7 + $0x124] sm:$0xf] %v342_v9 }
  0x4a   : > { %345 = vst [vmem:[%s2835_s7 + $0x128] sm:$0xf] %v344_v10  ;;  %v346_v11 = vld [vmem:[%s2830_s6 + $0x4b0] sm:$0xf]  ;;  %v348_v12 = vld [vmem:[%s2830_s6 + $0x4c0] sm:$0xf] }
  0x4b   : > { %v350_v13 = vld [vmem:[%s2830_s6 + $0x4d0] sm:$0xf]  ;;  %347 = vst [vmem:[%s2835_s7 + $0x12c] sm:$0xf] %v346_v11  ;;  %349 = vst [vmem:[%s2835_s7 + $0x130] sm:$0xf] %v348_v12 }
  0x4c   : > { %351 = vst [vmem:[%s2835_s7 + $0x134] sm:$0xf] %v350_v13  ;;  %v352_v14 = vld [vmem:[%s2830_s6 + $0x4e0] sm:$0xf]  ;;  %v354_v15 = vld [vmem:[%s2830_s6 + $0x4f0] sm:$0xf] }
  0x4d   : > { %v356_v16 = vld [vmem:[%s2830_s6 + $0x500] sm:$0xf]  ;;  %353 = vst [vmem:[%s2835_s7 + $0x138] sm:$0xf] %v352_v14  ;;  %355 = vst [vmem:[%s2835_s7 + $0x13c] sm:$0xf] %v354_v15 }
  0x4e   : > { %357 = vst [vmem:[%s2835_s7 + $0x140] sm:$0xf] %v356_v16  ;;  %v358_v17 = vld [vmem:[%s2830_s6 + $0x510] sm:$0xf]  ;;  %v360_v18 = vld [vmem:[%s2830_s6 + $0x520] sm:$0xf] }
  0x4f   : > { %v362_v19 = vld [vmem:[%s2830_s6 + $0x530] sm:$0xf]  ;;  %359 = vst [vmem:[%s2835_s7 + $0x144] sm:$0xf] %v358_v17  ;;  %361 = vst [vmem:[%s2835_s7 + $0x148] sm:$0xf] %v360_v18 }
  0x50   : > { %363 = vst [vmem:[%s2835_s7 + $0x14c] sm:$0xf] %v362_v19  ;;  %v364_v20 = vld [vmem:[%s2830_s6 + $0x540] sm:$0xf]  ;;  %v366_v21 = vld [vmem:[%s2830_s6 + $0x550] sm:$0xf] }
  0x51   : > { %v368_v22 = vld [vmem:[%s2830_s6 + $0x560] sm:$0xf]  ;;  %365 = vst [vmem:[%s2835_s7 + $0x150] sm:$0xf] %v364_v20  ;;  %367 = vst [vmem:[%s2835_s7 + $0x154] sm:$0xf] %v366_v21 }
  0x52   : > { %369 = vst [vmem:[%s2835_s7 + $0x158] sm:$0xf] %v368_v22  ;;  %v370_v23 = vld [vmem:[%s2830_s6 + $0x570] sm:$0xf]  ;;  %v372_v24 = vld [vmem:[%s2830_s6 + $0x580] sm:$0xf] }
  0x53   : > { %v374_v25 = vld [vmem:[%s2830_s6 + $0x590] sm:$0xf]  ;;  %371 = vst [vmem:[%s2835_s7 + $0x15c] sm:$0xf] %v370_v23  ;;  %373 = vst [vmem:[%s2835_s7 + $0x160] sm:$0xf] %v372_v24 }
  0x54   : > { %375 = vst [vmem:[%s2835_s7 + $0x164] sm:$0xf] %v374_v25  ;;  %v376_v26 = vld [vmem:[%s2830_s6 + $0x5a0] sm:$0xf]  ;;  %v378_v27 = vld [vmem:[%s2830_s6 + $0x5b0] sm:$0xf] }
  0x55   : > { %v380_v28 = vld [vmem:[%s2830_s6 + $0x5c0] sm:$0xf]  ;;  %377 = vst [vmem:[%s2835_s7 + $0x168] sm:$0xf] %v376_v26  ;;  %379 = vst [vmem:[%s2835_s7 + $0x16c] sm:$0xf] %v378_v27 }
  0x56   : > { %381 = vst [vmem:[%s2835_s7 + $0x170] sm:$0xf] %v380_v28  ;;  %v382_v29 = vld [vmem:[%s2830_s6 + $0x5d0] sm:$0xf]  ;;  %v384_v30 = vld [vmem:[%s2830_s6 + $0x5e0] sm:$0xf] }
  0x57   : > { %v386_v31 = vld [vmem:[%s2830_s6 + $0x5f0] sm:$0xf]  ;;  %383 = vst [vmem:[%s2835_s7 + $0x174] sm:$0xf] %v382_v29  ;;  %385 = vst [vmem:[%s2835_s7 + $0x178] sm:$0xf] %v384_v30 }
  0x58   : > { %387 = vst [vmem:[%s2835_s7 + $0x17c] sm:$0xf] %v386_v31  ;;  %v388_v32 = vld [vmem:[%s2830_s6 + $0x600] sm:$0xf]  ;;  %v390_v33 = vld [vmem:[%s2830_s6 + $0x610] sm:$0xf] }
  0x59   : > { %v392_v34 = vld [vmem:[%s2830_s6 + $0x620] sm:$0xf]  ;;  %389 = vst [vmem:[%s2835_s7 + $0x180] sm:$0xf] %v388_v32  ;;  %391 = vst [vmem:[%s2835_s7 + $0x184] sm:$0xf] %v390_v33 }
  0x5a   : > { %393 = vst [vmem:[%s2835_s7 + $0x188] sm:$0xf] %v392_v34  ;;  %v394_v35 = vld [vmem:[%s2830_s6 + $0x630] sm:$0xf]  ;;  %v396_v36 = vld [vmem:[%s2830_s6 + $0x640] sm:$0xf] }
  0x5b   : > { %v398_v37 = vld [vmem:[%s2830_s6 + $0x650] sm:$0xf]  ;;  %395 = vst [vmem:[%s2835_s7 + $0x18c] sm:$0xf] %v394_v35  ;;  %397 = vst [vmem:[%s2835_s7 + $0x190] sm:$0xf] %v396_v36 }
  0x5c   : > { %399 = vst [vmem:[%s2835_s7 + $0x194] sm:$0xf] %v398_v37  ;;  %v400_v38 = vld [vmem:[%s2830_s6 + $0x660] sm:$0xf]  ;;  %v402_v39 = vld [vmem:[%s2830_s6 + $0x670] sm:$0xf] }
  0x5d   : > { %v404_v40 = vld [vmem:[%s2830_s6 + $0x680] sm:$0xf]  ;;  %401 = vst [vmem:[%s2835_s7 + $0x198] sm:$0xf] %v400_v38  ;;  %403 = vst [vmem:[%s2835_s7 + $0x19c] sm:$0xf] %v402_v39 }
  0x5e   : > { %405 = vst [vmem:[%s2835_s7 + $0x1a0] sm:$0xf] %v404_v40  ;;  %v406_v41 = vld [vmem:[%s2830_s6 + $0x690] sm:$0xf]  ;;  %v408_v42 = vld [vmem:[%s2830_s6 + $0x6a0] sm:$0xf] }
  0x5f   : > { %v410_v43 = vld [vmem:[%s2830_s6 + $0x6b0] sm:$0xf]  ;;  %407 = vst [vmem:[%s2835_s7 + $0x1a4] sm:$0xf] %v406_v41  ;;  %409 = vst [vmem:[%s2835_s7 + $0x1a8] sm:$0xf] %v408_v42 }
  0x60   : > { %411 = vst [vmem:[%s2835_s7 + $0x1ac] sm:$0xf] %v410_v43  ;;  %v412_v44 = vld [vmem:[%s2830_s6 + $0x6c0] sm:$0xf]  ;;  %v414_v45 = vld [vmem:[%s2830_s6 + $0x6d0] sm:$0xf] }
  0x61   : > { %v416_v46 = vld [vmem:[%s2830_s6 + $0x6e0] sm:$0xf]  ;;  %413 = vst [vmem:[%s2835_s7 + $0x1b0] sm:$0xf] %v412_v44  ;;  %415 = vst [vmem:[%s2835_s7 + $0x1b4] sm:$0xf] %v414_v45 }
  0x62   : > { %417 = vst [vmem:[%s2835_s7 + $0x1b8] sm:$0xf] %v416_v46  ;;  %v418_v47 = vld [vmem:[%s2830_s6 + $0x6f0] sm:$0xf]  ;;  %v420_v48 = vld [vmem:[%s2830_s6 + $0x700] sm:$0xf] }
  0x63   : > { %v422_v49 = vld [vmem:[%s2830_s6 + $0x710] sm:$0xf]  ;;  %419 = vst [vmem:[%s2835_s7 + $0x1bc] sm:$0xf] %v418_v47  ;;  %421 = vst [vmem:[%s2835_s7 + $0x1c0] sm:$0xf] %v420_v48 }
  0x64   : > { %423 = vst [vmem:[%s2835_s7 + $0x1c4] sm:$0xf] %v422_v49  ;;  %v424_v50 = vld [vmem:[%s2830_s6 + $0x720] sm:$0xf]  ;;  %v426_v51 = vld [vmem:[%s2830_s6 + $0x730] sm:$0xf] }
  0x65   : > { %v428_v52 = vld [vmem:[%s2830_s6 + $0x740] sm:$0xf]  ;;  %425 = vst [vmem:[%s2835_s7 + $0x1c8] sm:$0xf] %v424_v50  ;;  %427 = vst [vmem:[%s2835_s7 + $0x1cc] sm:$0xf] %v426_v51 }
  0x66   : > { %429 = vst [vmem:[%s2835_s7 + $0x1d0] sm:$0xf] %v428_v52  ;;  %v430_v53 = vld [vmem:[%s2830_s6 + $0x750] sm:$0xf]  ;;  %v432_v54 = vld [vmem:[%s2830_s6 + $0x760] sm:$0xf] }
  0x67   : > { %v434_v55 = vld [vmem:[%s2830_s6 + $0x770] sm:$0xf]  ;;  %431 = vst [vmem:[%s2835_s7 + $0x1d4] sm:$0xf] %v430_v53  ;;  %433 = vst [vmem:[%s2835_s7 + $0x1d8] sm:$0xf] %v432_v54 }
  0x68   : > { %435 = vst [vmem:[%s2835_s7 + $0x1dc] sm:$0xf] %v434_v55  ;;  %v436_v56 = vld [vmem:[%s2830_s6 + $0x780] sm:$0xf]  ;;  %v438_v57 = vld [vmem:[%s2830_s6 + $0x790] sm:$0xf] }
  0x69   : > { %v440_v58 = vld [vmem:[%s2830_s6 + $0x7a0] sm:$0xf]  ;;  %437 = vst [vmem:[%s2835_s7 + $0x1e0] sm:$0xf] %v436_v56  ;;  %439 = vst [vmem:[%s2835_s7 + $0x1e4] sm:$0xf] %v438_v57 }
  0x6a   : > { %441 = vst [vmem:[%s2835_s7 + $0x1e8] sm:$0xf] %v440_v58  ;;  %v442_v59 = vld [vmem:[%s2830_s6 + $0x7b0] sm:$0xf]  ;;  %v444_v60 = vld [vmem:[%s2830_s6 + $0x7c0] sm:$0xf] }
  0x6b   : > { %v446_v61 = vld [vmem:[%s2830_s6 + $0x7d0] sm:$0xf]  ;;  %443 = vst [vmem:[%s2835_s7 + $0x1ec] sm:$0xf] %v442_v59  ;;  %445 = vst [vmem:[%s2835_s7 + $0x1f0] sm:$0xf] %v444_v60 }
  0x6c   : > { %447 = vst [vmem:[%s2835_s7 + $0x1f4] sm:$0xf] %v446_v61  ;;  %v448_v62 = vld [vmem:[%s2830_s6 + $0x7e0] sm:$0xf]  ;;  %v450_v63 = vld [vmem:[%s2830_s6 + $0x7f0] sm:$0xf] }
  0x6d   : > { %v452_v0 = vld [vmem:[%s2830_s6 + $0x800] sm:$0xf]  ;;  %449 = vst [vmem:[%s2835_s7 + $0x1f8] sm:$0xf] %v448_v62  ;;  %451 = vst [vmem:[%s2835_s7 + $0x1fc] sm:$0xf] %v450_v63 }
  0x6e   : > { %453 = vst [vmem:[%s2835_s7 + $0x200] sm:$0xf] %v452_v0  ;;  %v454_v1 = vld [vmem:[%s2830_s6 + $0x810] sm:$0xf]  ;;  %v456_v2 = vld [vmem:[%s2830_s6 + $0x820] sm:$0xf] }
  0x6f   : > { %v458_v3 = vld [vmem:[%s2830_s6 + $0x830] sm:$0xf]  ;;  %455 = vst [vmem:[%s2835_s7 + $0x204] sm:$0xf] %v454_v1  ;;  %457 = vst [vmem:[%s2835_s7 + $0x208] sm:$0xf] %v456_v2 }
  0x70   : > { %459 = vst [vmem:[%s2835_s7 + $0x20c] sm:$0xf] %v458_v3  ;;  %v460_v4 = vld [vmem:[%s2830_s6 + $0x840] sm:$0xf]  ;;  %v462_v5 = vld [vmem:[%s2830_s6 + $0x850] sm:$0xf] }
  0x71   : > { %v464_v6 = vld [vmem:[%s2830_s6 + $0x860] sm:$0xf]  ;;  %461 = vst [vmem:[%s2835_s7 + $0x210] sm:$0xf] %v460_v4  ;;  %463 = vst [vmem:[%s2835_s7 + $0x214] sm:$0xf] %v462_v5 }
  0x72   : > { %465 = vst [vmem:[%s2835_s7 + $0x218] sm:$0xf] %v464_v6  ;;  %v466_v7 = vld [vmem:[%s2830_s6 + $0x870] sm:$0xf]  ;;  %v468_v8 = vld [vmem:[%s2830_s6 + $0x880] sm:$0xf] }
  0x73   : > { %v470_v9 = vld [vmem:[%s2830_s6 + $0x890] sm:$0xf]  ;;  %467 = vst [vmem:[%s2835_s7 + $0x21c] sm:$0xf] %v466_v7  ;;  %469 = vst [vmem:[%s2835_s7 + $0x220] sm:$0xf] %v468_v8 }
  0x74   : > { %471 = vst [vmem:[%s2835_s7 + $0x224] sm:$0xf] %v470_v9  ;;  %v472_v10 = vld [vmem:[%s2830_s6 + $0x8a0] sm:$0xf]  ;;  %v474_v11 = vld [vmem:[%s2830_s6 + $0x8b0] sm:$0xf] }
  0x75   : > { %v476_v12 = vld [vmem:[%s2830_s6 + $0x8c0] sm:$0xf]  ;;  %473 = vst [vmem:[%s2835_s7 + $0x228] sm:$0xf] %v472_v10  ;;  %475 = vst [vmem:[%s2835_s7 + $0x22c] sm:$0xf] %v474_v11 }
  0x76   : > { %477 = vst [vmem:[%s2835_s7 + $0x230] sm:$0xf] %v476_v12  ;;  %v478_v13 = vld [vmem:[%s2830_s6 + $0x8d0] sm:$0xf]  ;;  %v480_v14 = vld [vmem:[%s2830_s6 + $0x8e0] sm:$0xf] }
  0x77   : > { %v482_v15 = vld [vmem:[%s2830_s6 + $0x8f0] sm:$0xf]  ;;  %479 = vst [vmem:[%s2835_s7 + $0x234] sm:$0xf] %v478_v13  ;;  %481 = vst [vmem:[%s2835_s7 + $0x238] sm:$0xf] %v480_v14 }
  0x78   : > { %483 = vst [vmem:[%s2835_s7 + $0x23c] sm:$0xf] %v482_v15  ;;  %v484_v16 = vld [vmem:[%s2830_s6 + $0x900] sm:$0xf]  ;;  %v486_v17 = vld [vmem:[%s2830_s6 + $0x910] sm:$0xf] }
  0x79   : > { %v488_v18 = vld [vmem:[%s2830_s6 + $0x920] sm:$0xf]  ;;  %485 = vst [vmem:[%s2835_s7 + $0x240] sm:$0xf] %v484_v16  ;;  %487 = vst [vmem:[%s2835_s7 + $0x244] sm:$0xf] %v486_v17 }
  0x7a   : > { %489 = vst [vmem:[%s2835_s7 + $0x248] sm:$0xf] %v488_v18  ;;  %v490_v19 = vld [vmem:[%s2830_s6 + $0x930] sm:$0xf]  ;;  %v492_v20 = vld [vmem:[%s2830_s6 + $0x940] sm:$0xf] }
  0x7b   : > { %v494_v21 = vld [vmem:[%s2830_s6 + $0x950] sm:$0xf]  ;;  %491 = vst [vmem:[%s2835_s7 + $0x24c] sm:$0xf] %v490_v19  ;;  %493 = vst [vmem:[%s2835_s7 + $0x250] sm:$0xf] %v492_v20 }
  0x7c   : > { %495 = vst [vmem:[%s2835_s7 + $0x254] sm:$0xf] %v494_v21  ;;  %v496_v22 = vld [vmem:[%s2830_s6 + $0x960] sm:$0xf]  ;;  %v498_v23 = vld [vmem:[%s2830_s6 + $0x970] sm:$0xf] }
  0x7d   : > { %v500_v24 = vld [vmem:[%s2830_s6 + $0x980] sm:$0xf]  ;;  %497 = vst [vmem:[%s2835_s7 + $0x258] sm:$0xf] %v496_v22  ;;  %499 = vst [vmem:[%s2835_s7 + $0x25c] sm:$0xf] %v498_v23 }
  0x7e   : > { %501 = vst [vmem:[%s2835_s7 + $0x260] sm:$0xf] %v500_v24  ;;  %v502_v25 = vld [vmem:[%s2830_s6 + $0x990] sm:$0xf]  ;;  %v504_v26 = vld [vmem:[%s2830_s6 + $0x9a0] sm:$0xf] }
  0x7f   : > { %v506_v27 = vld [vmem:[%s2830_s6 + $0x9b0] sm:$0xf]  ;;  %503 = vst [vmem:[%s2835_s7 + $0x264] sm:$0xf] %v502_v25  ;;  %505 = vst [vmem:[%s2835_s7 + $0x268] sm:$0xf] %v504_v26 }
  0x80   : > { %507 = vst [vmem:[%s2835_s7 + $0x26c] sm:$0xf] %v506_v27  ;;  %v508_v28 = vld [vmem:[%s2830_s6 + $0x9c0] sm:$0xf]  ;;  %v510_v29 = vld [vmem:[%s2830_s6 + $0x9d0] sm:$0xf] }
  0x81   : > { %v512_v30 = vld [vmem:[%s2830_s6 + $0x9e0] sm:$0xf]  ;;  %509 = vst [vmem:[%s2835_s7 + $0x270] sm:$0xf] %v508_v28  ;;  %511 = vst [vmem:[%s2835_s7 + $0x274] sm:$0xf] %v510_v29 }
  0x82   : > { %513 = vst [vmem:[%s2835_s7 + $0x278] sm:$0xf] %v512_v30  ;;  %v514_v31 = vld [vmem:[%s2830_s6 + $0x9f0] sm:$0xf]  ;;  %v516_v32 = vld [vmem:[%s2830_s6 + $0xa00] sm:$0xf] }
  0x83   : > { %v518_v33 = vld [vmem:[%s2830_s6 + $0xa10] sm:$0xf]  ;;  %515 = vst [vmem:[%s2835_s7 + $0x27c] sm:$0xf] %v514_v31  ;;  %517 = vst [vmem:[%s2835_s7 + $0x280] sm:$0xf] %v516_v32 }
  0x84   : > { %519 = vst [vmem:[%s2835_s7 + $0x284] sm:$0xf] %v518_v33  ;;  %v520_v34 = vld [vmem:[%s2830_s6 + $0xa20] sm:$0xf]  ;;  %v522_v35 = vld [vmem:[%s2830_s6 + $0xa30] sm:$0xf] }
  0x85   : > { %v524_v36 = vld [vmem:[%s2830_s6 + $0xa40] sm:$0xf]  ;;  %521 = vst [vmem:[%s2835_s7 + $0x288] sm:$0xf] %v520_v34  ;;  %523 = vst [vmem:[%s2835_s7 + $0x28c] sm:$0xf] %v522_v35 }
  0x86   : > { %525 = vst [vmem:[%s2835_s7 + $0x290] sm:$0xf] %v524_v36  ;;  %v526_v37 = vld [vmem:[%s2830_s6 + $0xa50] sm:$0xf]  ;;  %v528_v38 = vld [vmem:[%s2830_s6 + $0xa60] sm:$0xf] }
  0x87   : > { %v530_v39 = vld [vmem:[%s2830_s6 + $0xa70] sm:$0xf]  ;;  %527 = vst [vmem:[%s2835_s7 + $0x294] sm:$0xf] %v526_v37  ;;  %529 = vst [vmem:[%s2835_s7 + $0x298] sm:$0xf] %v528_v38 }
  0x88   : > { %531 = vst [vmem:[%s2835_s7 + $0x29c] sm:$0xf] %v530_v39  ;;  %v532_v40 = vld [vmem:[%s2830_s6 + $0xa80] sm:$0xf]  ;;  %v534_v41 = vld [vmem:[%s2830_s6 + $0xa90] sm:$0xf] }
  0x89   : > { %v536_v42 = vld [vmem:[%s2830_s6 + $0xaa0] sm:$0xf]  ;;  %533 = vst [vmem:[%s2835_s7 + $0x2a0] sm:$0xf] %v532_v40  ;;  %535 = vst [vmem:[%s2835_s7 + $0x2a4] sm:$0xf] %v534_v41 }
  0x8a   : > { %537 = vst [vmem:[%s2835_s7 + $0x2a8] sm:$0xf] %v536_v42  ;;  %v538_v43 = vld [vmem:[%s2830_s6 + $0xab0] sm:$0xf]  ;;  %v540_v44 = vld [vmem:[%s2830_s6 + $0xac0] sm:$0xf] }
  0x8b   : > { %v542_v45 = vld [vmem:[%s2830_s6 + $0xad0] sm:$0xf]  ;;  %539 = vst [vmem:[%s2835_s7 + $0x2ac] sm:$0xf] %v538_v43  ;;  %541 = vst [vmem:[%s2835_s7 + $0x2b0] sm:$0xf] %v540_v44 }
  0x8c   : > { %543 = vst [vmem:[%s2835_s7 + $0x2b4] sm:$0xf] %v542_v45  ;;  %v544_v46 = vld [vmem:[%s2830_s6 + $0xae0] sm:$0xf]  ;;  %v546_v47 = vld [vmem:[%s2830_s6 + $0xaf0] sm:$0xf] }
  0x8d   : > { %v548_v48 = vld [vmem:[%s2830_s6 + $0xb00] sm:$0xf]  ;;  %545 = vst [vmem:[%s2835_s7 + $0x2b8] sm:$0xf] %v544_v46  ;;  %547 = vst [vmem:[%s2835_s7 + $0x2bc] sm:$0xf] %v546_v47 }
  0x8e   : > { %549 = vst [vmem:[%s2835_s7 + $0x2c0] sm:$0xf] %v548_v48  ;;  %v550_v49 = vld [vmem:[%s2830_s6 + $0xb10] sm:$0xf]  ;;  %v552_v50 = vld [vmem:[%s2830_s6 + $0xb20] sm:$0xf] }
  0x8f   : > { %v554_v51 = vld [vmem:[%s2830_s6 + $0xb30] sm:$0xf]  ;;  %551 = vst [vmem:[%s2835_s7 + $0x2c4] sm:$0xf] %v550_v49  ;;  %553 = vst [vmem:[%s2835_s7 + $0x2c8] sm:$0xf] %v552_v50 }
  0x90   : > { %555 = vst [vmem:[%s2835_s7 + $0x2cc] sm:$0xf] %v554_v51  ;;  %v556_v52 = vld [vmem:[%s2830_s6 + $0xb40] sm:$0xf]  ;;  %v558_v53 = vld [vmem:[%s2830_s6 + $0xb50] sm:$0xf] }
  0x91   : > { %v560_v54 = vld [vmem:[%s2830_s6 + $0xb60] sm:$0xf]  ;;  %557 = vst [vmem:[%s2835_s7 + $0x2d0] sm:$0xf] %v556_v52  ;;  %559 = vst [vmem:[%s2835_s7 + $0x2d4] sm:$0xf] %v558_v53 }
  0x92   : > { %561 = vst [vmem:[%s2835_s7 + $0x2d8] sm:$0xf] %v560_v54  ;;  %v562_v55 = vld [vmem:[%s2830_s6 + $0xb70] sm:$0xf]  ;;  %v564_v56 = vld [vmem:[%s2830_s6 + $0xb80] sm:$0xf] }
  0x93   : > { %v566_v57 = vld [vmem:[%s2830_s6 + $0xb90] sm:$0xf]  ;;  %563 = vst [vmem:[%s2835_s7 + $0x2dc] sm:$0xf] %v562_v55  ;;  %565 = vst [vmem:[%s2835_s7 + $0x2e0] sm:$0xf] %v564_v56 }
  0x94   : > { %567 = vst [vmem:[%s2835_s7 + $0x2e4] sm:$0xf] %v566_v57  ;;  %v568_v58 = vld [vmem:[%s2830_s6 + $0xba0] sm:$0xf]  ;;  %v570_v59 = vld [vmem:[%s2830_s6 + $0xbb0] sm:$0xf] }
  0x95   : > { %v572_v60 = vld [vmem:[%s2830_s6 + $0xbc0] sm:$0xf]  ;;  %569 = vst [vmem:[%s2835_s7 + $0x2e8] sm:$0xf] %v568_v58  ;;  %571 = vst [vmem:[%s2835_s7 + $0x2ec] sm:$0xf] %v570_v59 }
  0x96   : > { %573 = vst [vmem:[%s2835_s7 + $0x2f0] sm:$0xf] %v572_v60  ;;  %v574_v61 = vld [vmem:[%s2830_s6 + $0xbd0] sm:$0xf]  ;;  %v576_v62 = vld [vmem:[%s2830_s6 + $0xbe0] sm:$0xf] }
  0x97   : > { %v578_v63 = vld [vmem:[%s2830_s6 + $0xbf0] sm:$0xf]  ;;  %575 = vst [vmem:[%s2835_s7 + $0x2f4] sm:$0xf] %v574_v61  ;;  %577 = vst [vmem:[%s2835_s7 + $0x2f8] sm:$0xf] %v576_v62 }
  0x98   : > { %579 = vst [vmem:[%s2835_s7 + $0x2fc] sm:$0xf] %v578_v63 }
  0x99 PF: > { %p2298_p7 = scmp.ge.s32.totalorder %s2746_s18, 1  ;;  %p991_p8 = scmp.lt.s32.totalorder %s2746_s18, 25 }
  0x9b   : > { %p992_p9 = pnand %p2298_p7, %p991_p8 }
  0x9c   : > { %s998_s8 = sand.u32 (!%p992_p9), 1, %s2722_s12   ;;  %s1035_s9 = smul.u32 (!%p992_p9), 12, %s2730_s14 }
  0x9d   : > { %995 = sbr.rel (%p992_p9) target bundleno = 505 (0x1f9), region = 69  ;;  %p1045_p10 = scmp.lt.s32.totalorder (!%p992_p9), %s2734_s15, 3 }
  0x9e   : > { %s2536_s10 = smul.u32 (!%p992_p9), 768, %s998_s8  ;;  %p1038_p11 = scmp.lt.s32.totalorder (!%p992_p9), %s1035_s9, 71 }
  0x9f   : > { %p2300_p12 = scmp.ne.s32.totalorder (!%p992_p9), %s2730_s14, 0 }
  0xa0   : > { %s3241_s30 = scalar_lea.vmem (!%p992_p9), [#allocation2], %s2536_s10 }
  0xa4   : > { %s3406_s9 = smov (!%p1038_p11, %s1035_s9), 71  ;;  %s3408_s15 = smov (!%p1045_p10, %s2734_s15), 3 }
  0xa5   : > { %s3229_s22 = scalar_lea.vmem %s3389_s0, %s3406_s9  ;;  %s1047_s26 = scalar_lea.vmem %s3391_s2, %s3408_s15  ;;  %v2748_v0 = vmov (!%p2300_p12), 0.0  }
  0xa6   : > { %s2299_s27 = sshll.u32 %s3408_s15, 1  ;;  %1060 = sbr.rel (%p2300_p12) target bundleno = 173 (0xad), region = 77 }
  0xa7   : > { %s3239_s29 = scalar_lea.vmem %s3392_s3, %s2299_s27 }
  0xa8   : > { %1061 = vst [vmem:[%s3239_s29] sm:$0x3] (!%p2300_p12), %v2748_v0 }
  0xad PF: > { %v2595_v1 = vld [vmem:[%s3241_s30 + $0x40] sm:$0xff]   ;;  %v2599_v5 = vld [vmem:[%s3241_s30 + $0x48] sm:$0xff]   ;;  %v2603_v9 = vld [vmem:[%s3241_s30 + $0x50] sm:$0xff]   ;;  %v1263_v29 = vlaneseq  ;;  %v2749_v37 = vmov 1966171168   ;;  %p2398_p13 = scmp.ne.s32.totalorder %s2730_s14, 5 }
  0xae   : > { %v2596_v2 = vld [vmem:[%s3241_s30 + $0xc0] sm:$0xff]   ;;  %2403 = vmatprep.subr.bf16.mxu0 %v2595_v1  ;;  %v2600_v6 = vld [vmem:[%s3241_s30 + $0xc8] sm:$0xff]   ;;  %v2604_v10 = vld [vmem:[%s3241_s30 + $0xd0] sm:$0xff]   ;;  %v1261_v38 = vunpack.c.l.s4 %v2749_v37 }
  0xaf   : > { %v2597_v3 = vld [vmem:[%s3241_s30] sm:$0xff]   ;;  %2425 = vmatprep.subr.bf16.mxu1 %v2596_v2  ;;  %v2601_v7 = vld [vmem:[%s3241_s30 + $0x8] sm:$0xff]   ;;  %v2605_v11 = vld [vmem:[%s3241_s30 + $0x10] sm:$0xff]   ;;  %v1264_v34 = vshrl.u32 %v1263_v29, 7 }
  0xb0   : > { %v2598_v4 = vld [vmem:[%s3241_s30 + $0x80] sm:$0xff]   ;;  %2404 = vmatpush3.bf16.msra.mxu0 %v2597_v3  ;;  %v2602_v8 = vld [vmem:[%s3241_s30 + $0x88] sm:$0xff]   ;;  %v2606_v12 = vld [vmem:[%s3241_s30 + $0x90] sm:$0xff]   ;;  %v1262_v41 = vunpack.c.0.s8 %v1261_v38 }
  0xb1   : > { %2426 = vmatpush3.bf16.msra.mxu1 %v2598_v4  ;;  %2405 = vmatprep.subr.bf16.mxu0 %v2599_v5  ;;  %v2607_v13 = vld [vmem:[%s3241_s30 + $0x58] sm:$0xff]   ;;  %v2611_v17 = vld [vmem:[%s3241_s30 + $0x60] sm:$0xff]   ;;  %v2615_v21 = vld [vmem:[%s3241_s30 + $0x68] sm:$0xff]  }
  0xb2   : > { %2427 = vmatprep.subr.bf16.mxu1 %v2600_v6  ;;  %v2608_v14 = vld [vmem:[%s3241_s30 + $0xd8] sm:$0xff]   ;;  %v2612_v18 = vld [vmem:[%s3241_s30 + $0xe0] sm:$0xff]   ;;  %v2616_v22 = vld [vmem:[%s3241_s30 + $0xe8] sm:$0xff]   ;;  %v3280_v42 = vsub.s32 %v1262_v41, %v1264_v34 }
  0xb3   : > { %v2609_v15 = vld [vmem:[%s3241_s30 + $0x18] sm:$0xff]   ;;  %v2613_v19 = vld [vmem:[%s3241_s30 + $0x20] sm:$0xff]   ;;  %v2617_v23 = vld [vmem:[%s3241_s30 + $0x28] sm:$0xff]  }
  0xb4   : > { %2406 = vmatpush3.bf16.msra.mxu0 %v2601_v7  ;;  %v2610_v16 = vld [vmem:[%s3241_s30 + $0x98] sm:$0xff]   ;;  %v2614_v20 = vld [vmem:[%s3241_s30 + $0xa0] sm:$0xff]   ;;  %v2618_v24 = vld [vmem:[%s3241_s30 + $0xa8] sm:$0xff]  }
  0xb5   : > { %2428 = vmatpush3.bf16.msra.mxu1 %v2602_v8  ;;  %2407 = vmatprep.subr.bf16.mxu0 %v2603_v9  ;;  %v2619_v25 = vld [vmem:[%s3241_s30 + $0x70] sm:$0xff]   ;;  %v2623_v30 = vld [vmem:[%s3241_s30 + $0x78] sm:$0xff]   ;;  %v1063_v35 = vld [vmem:[%s3229_s22] sm:$0xff] }
  0xb6   : > { %2429 = vmatprep.subr.bf16.mxu1 %v2604_v10  ;;  %v2620_v26 = vld [vmem:[%s3241_s30 + $0xf0] sm:$0xff]   ;;  %v2624_v31 = vld [vmem:[%s3241_s30 + $0xf8] sm:$0xff]   ;;  %v2628_v36 = vld [vmem:[%s3241_s30 + $0x140] sm:$0xff]   ;;  %v1259_v40 = vcombine.high %v1063_v35, %v1063_v35  ;;  %v1266_v43 = vrot.slane %v1063_v35, %v3280_v42 }
  0xb7   : > { %v2621_v27 = vld [vmem:[%s3241_s30 + $0x30] sm:$0xff]   ;;  %v2625_v32 = vld [vmem:[%s3241_s30 + $0x38] sm:$0xff]   ;;  %v2629_v39 = vld [vmem:[%s3241_s30 + $0x1c0] sm:$0xff]  }
  0xb8   : > { %2408 = vmatpush3.bf16.msra.mxu0 %v2605_v11  ;;  %v2622_v28 = vld [vmem:[%s3241_s30 + $0xb0] sm:$0xff]   ;;  %v2626_v33 = vld [vmem:[%s3241_s30 + $0xb8] sm:$0xff]   ;;  %v3284_v44 = vrot.slane %v1259_v40, %v3280_v42  ;;  %v1274_v45 = vcombine.high %v1266_v43, %v1266_v43  ;;  %v1282_v46 = vrot.slane %v1266_v43, %v3280_v42  ;;  %v2630_v49 = vld [vmem:[%s3241_s30 + $0x100] sm:$0xff]  }
  0xb9   : > { %2430 = vmatpush3.bf16.msra.mxu1 %v2606_v12  ;;  %2409 = vmatprep.subr.bf16.mxu0 %v2607_v13  ;;  %v2632_v52 = vld [vmem:[%s3241_s30 + $0x148] sm:$0xff]   ;;  %v2631_v54 = vld [vmem:[%s3241_s30 + $0x180] sm:$0xff]   ;;  %v2636_v58 = vld [vmem:[%s3241_s30 + $0x150] sm:$0xff]  }
  0xba   : > { %2431 = vmatprep.subr.bf16.mxu1 %v2608_v14  ;;  %v1275_v47 = vcombine.high %v3284_v44, %v3284_v44  ;;  %v1296_v48 = vrot.slane %v1274_v45, %v3280_v42  ;;  %v1304_v51 = vcombine.high %v1282_v46, %v1282_v46  ;;  %v2633_v55 = vld [vmem:[%s3241_s30 + $0x1c8] sm:$0xff]   ;;  %v2637_v60 = vld [vmem:[%s3241_s30 + $0x1d0] sm:$0xff]   ;;  %v2640_v62 = vld [vmem:[%s3241_s30 + $0x158] sm:$0xff]  }
  0xbb   : > { %v2634_v57 = vld [vmem:[%s3241_s30 + $0x108] sm:$0xff]   ;;  %v2638_v61 = vld [vmem:[%s3241_s30 + $0x110] sm:$0xff]   ;;  %v2641_v0 = vld [vmem:[%s3241_s30 + $0x1d8] sm:$0xff]  }
  0xbc   : > { %2410 = vmatpush3.bf16.msra.mxu0 %v2609_v15  ;;  %v1303_v50 = vrot.slane %v1275_v47, %v3280_v42  ;;  %1952 = vmatprep.mubr.bf16.mxu0 %v1296_v48  ;;  %v1306_v53 = vcombine.high %v1296_v48, %v1296_v48  ;;  %v2635_v59 = vld [vmem:[%s3241_s30 + $0x188] sm:$0xff]   ;;  %v2639_v63 = vld [vmem:[%s3241_s30 + $0x190] sm:$0xff]   ;;  %v2642_v1 = vld [vmem:[%s3241_s30 + $0x118] sm:$0xff]  }
  0xbd   : > { %2432 = vmatpush3.bf16.msra.mxu1 %v2610_v16  ;;  %2411 = vmatprep.subr.bf16.mxu0 %v2611_v17  ;;  %v2644_v2 = vld [vmem:[%s3241_s30 + $0x160] sm:$0xff]   ;;  %v2643_v3 = vld [vmem:[%s3241_s30 + $0x198] sm:$0xff]   ;;  %v2648_v6 = vld [vmem:[%s3241_s30 + $0x168] sm:$0xff]  }
  0xbe   : > { %2433 = vmatprep.subr.bf16.mxu1 %v2612_v18  ;;  %v1307_v56 = vcombine.high %v1303_v50, %v1303_v50  ;;  %1992 = vmatprep.mubr.bf16.mxu1 %v1306_v53  ;;  %v2645_v4 = vld [vmem:[%s3241_s30 + $0x1e0] sm:$0xff]   ;;  %v2649_v8 = vld [vmem:[%s3241_s30 + $0x1e8] sm:$0xff]   ;;  %v2652_v10 = vld [vmem:[%s3241_s30 + $0x170] sm:$0xff]   ;;  %v1289_v18 = vrot.slane %v3284_v44, %v3280_v42 }
  0xbf   : > { %v2646_v5 = vld [vmem:[%s3241_s30 + $0x120] sm:$0xff]   ;;  %v2650_v9 = vld [vmem:[%s3241_s30 + $0x128] sm:$0xff]   ;;  %v2653_v12 = vld [vmem:[%s3241_s30 + $0x1f0] sm:$0xff]  }
  0xc0   : > { %2412 = vmatpush3.bf16.msra.mxu0 %v2613_v19  ;;  %v2647_v7 = vld [vmem:[%s3241_s30 + $0x1a0] sm:$0xff]   ;;  %v2651_v11 = vld [vmem:[%s3241_s30 + $0x1a8] sm:$0xff]   ;;  %v2654_v13 = vld [vmem:[%s3241_s30 + $0x130] sm:$0xff]  }
  0xc1   : > { %2434 = vmatpush3.bf16.msra.mxu1 %v2614_v20  ;;  %2413 = vmatprep.subr.bf16.mxu0 %v2615_v21  ;;  %v2656_v14 = vld [vmem:[%s3241_s30 + $0x178] sm:$0xff]   ;;  %v2655_v15 = vld [vmem:[%s3241_s30 + $0x1b0] sm:$0xff]   ;;  %v2660_v19 = vld [vmem:[%s3241_s30 + $0x240] sm:$0xff]  }
  0xc2   : > { %2435 = vmatprep.subr.bf16.mxu1 %v2616_v22  ;;  %v2657_v16 = vld [vmem:[%s3241_s30 + $0x1f8] sm:$0xff]   ;;  %v2661_v21 = vld [vmem:[%s3241_s30 + $0x2c0] sm:$0xff]   ;;  %v2667_v29 = vld [vmem:[%s3241_s30 + $0x288] sm:$0xff]  }
  0xc3   : > { %v2658_v17 = vld [vmem:[%s3241_s30 + $0x138] sm:$0xff]   ;;  %v2662_v22 = vld [vmem:[%s3241_s30 + $0x200] sm:$0xff]   ;;  %v2680_v40 = vld [vmem:[%s3241_s30 + $0x268] sm:$0xff]  }
  0xc4   : > { %2414 = vmatpush3.bf16.msra.mxu0 %v2617_v23  ;;  %v2659_v20 = vld [vmem:[%s3241_s30 + $0x1b8] sm:$0xff]   ;;  %v1305_v23 = vcombine.high %v1289_v18, %v1289_v18  ;;  %v2677_v38 = vld [vmem:[%s3241_s30 + $0x2e0] sm:$0xff]   ;;  %v2681_v43 = vld [vmem:[%s3241_s30 + $0x2e8] sm:$0xff]  }
  0xc5   : > { %2436 = vmatpush3.bf16.msra.mxu1 %v2618_v24  ;;  %2415 = vmatprep.subr.bf16.mxu0 %v2619_v25  ;;  %v2664_v24 = vld [vmem:[%s3241_s30 + $0x248] sm:$0xff]   ;;  %v2663_v25 = vld [vmem:[%s3241_s30 + $0x280] sm:$0xff]   ;;  %v2673_v34 = vld [vmem:[%s3241_s30 + $0x2d8] sm:$0xff]  }
  0xc6   : > { %2437 = vmatprep.subr.bf16.mxu1 %v2620_v26  ;;  %v2665_v26 = vld [vmem:[%s3241_s30 + $0x2c8] sm:$0xff]   ;;  %v2674_v35 = vld [vmem:[%s3241_s30 + $0x218] sm:$0xff]   ;;  %v2679_v41 = vld [vmem:[%s3241_s30 + $0x2a0] sm:$0xff]  }
  0xc7   : > { %v2675_v37 = vld [vmem:[%s3241_s30 + $0x298] sm:$0xff]   ;;  %v2682_v44 = vld [vmem:[%s3241_s30 + $0x228] sm:$0xff]   ;;  %v2684_v45 = vld [vmem:[%s3241_s30 + $0x270] sm:$0xff]  }
  0xc8   : > { %2416 = vmatpush3.bf16.msra.mxu0 %v2621_v27  ;;  %v2666_v27 = vld [vmem:[%s3241_s30 + $0x208] sm:$0xff]   ;;  %v2687_v53 = vld [vmem:[%s3241_s30 + $0x2b0] sm:$0xff]  }
  0xc9   : > { %2438 = vmatpush3.bf16.msra.mxu1 %v2622_v28  ;;  %2417 = vmatprep.subr.bf16.mxu0 %v2623_v30  ;;  %v2668_v28 = vld [vmem:[%s3241_s30 + $0x250] sm:$0xff]   ;;  %v2683_v47 = vld [vmem:[%s3241_s30 + $0x2a8] sm:$0xff]  }
  0xca   : > { %2439 = vmatprep.subr.bf16.mxu1 %v2624_v31  ;;  %v2669_v30 = vld [vmem:[%s3241_s30 + $0x2d0] sm:$0xff]  }
  0xcb   : > { %v2670_v31 = vld [vmem:[%s3241_s30 + $0x210] sm:$0xff]  }
  0xcc   : > { %2418 = vmatpush3.bf16.msra.mxu0 %v2625_v32  ;;  %v2672_v32 = vld [vmem:[%s3241_s30 + $0x258] sm:$0xff]  }
  0xcd   : > { %2440 = vmatpush3.bf16.msra.mxu1 %v2626_v33  ;;  %2447 = vmatprep.subr.bf16.mxu0 %v2628_v36  ;;  %v2671_v33 = vld [vmem:[%s3241_s30 + $0x290] sm:$0xff]   ;;  %v2676_v36 = vld [vmem:[%s3241_s30 + $0x260] sm:$0xff]  }
  0xce   : > { %2469 = vmatprep.subr.bf16.mxu1 %v2629_v39  ;;  %v2678_v39 = vld [vmem:[%s3241_s30 + $0x220] sm:$0xff]  }
  0xcf   : > { %1953 = vmatmul.mubr.bf16.vlgmr.msra.gmra.mrb[0].mxu0 %v1282_v46  ;;  %v2301_v46 = vld.sshfl [vmem:[%s3229_s22 + $0x8] sm:$0x33 pattern:$0x75316420] }
  0xd0   : > { %2448 = vmatpush3.bf16.msra.mxu0 %v2630_v49  ;;  %1993 = vmatmul.mubr.bf16.vlgmr.msra.gmra.mrb[0].mxu1 %v1304_v51  ;;  %v1315_v48 = vcombine.high %v2301_v46, %v2301_v46  ;;  %v2685_v49 = vld [vmem:[%s3241_s30 + $0x2f0] sm:$0xff]  }
  0xd1   : > { %2449 = vmatprep.subr.bf16.mxu0 %v2632_v52  ;;  %2470 = vmatpush3.bf16.msra.mxu1 %v2631_v54  ;;  %v2688_v52 = vld [vmem:[%s3241_s30 + $0x278] sm:$0xff]  }
  0xd2   : > { %2032 = vmatprep.mubr.bf16.mxu0 %v1303_v50  ;;  %2471 = vmatprep.subr.bf16.mxu1 %v2633_v55  ;;  %v2686_v50 = vld [vmem:[%s3241_s30 + $0x230] sm:$0xff]   ;;  %v1329_v51 = vrot.slane %v1315_v48, %v3280_v42  ;;  %v2689_v55 = vld [vmem:[%s3241_s30 + $0x2f8] sm:$0xff]  }
  0xd3   : > { %2072 = vmatprep.mubr.bf16.mxu1 %v1307_v56  ;;  %v2690_v56 = vld [vmem:[%s3241_s30 + $0x238] sm:$0xff]  }
  0xd4   : > { %2450 = vmatpush3.bf16.msra.mxu0 %v2634_v57  ;;  %v1331_v54 = vcombine.high %v1329_v51, %v1329_v51  ;;  %v1322_v57 = vrot.slane %v2301_v46, %v3280_v42 }
  0xd5   : > { %2451 = vmatprep.subr.bf16.mxu0 %v2636_v58  ;;  %2472 = vmatpush3.bf16.msra.mxu1 %v2635_v59  ;;  %v2691_v58 = vld [vmem:[%s3241_s30 + $0x2b8] sm:$0xff]  }
  0xd6   : > { %2473 = vmatprep.subr.bf16.mxu1 %v2637_v60  ;;  %v1330_v59 = vcombine.high %v1322_v57, %v1322_v57 }
  0xd8   : > { %2452 = vmatpush3.bf16.msra.mxu0 %v2638_v61 }
  0xd9   : > { %2453 = vmatprep.subr.bf16.mxu0 %v2640_v62  ;;  %2474 = vmatpush3.bf16.msra.mxu1 %v2639_v63 }
  0xda   : > { %2475 = vmatprep.subr.bf16.mxu1 %v2641_v0 }
  0xdc   : > { %2454 = vmatpush3.bf16.msra.mxu0 %v2642_v1 }
  0xdd   : > { %2455 = vmatprep.subr.bf16.mxu0 %v2644_v2  ;;  %2476 = vmatpush3.bf16.msra.mxu1 %v2643_v3 }
  0xde   : > { %2477 = vmatprep.subr.bf16.mxu1 %v2645_v4 }
  0xe0   : > { %2456 = vmatpush3.bf16.msra.mxu0 %v2646_v5 }
  0xe1   : > { %2457 = vmatprep.subr.bf16.mxu0 %v2648_v6  ;;  %2478 = vmatpush3.bf16.msra.mxu1 %v2647_v7 }
  0xe2   : > { %2479 = vmatprep.subr.bf16.mxu1 %v2649_v8 }
  0xe4   : > { %2458 = vmatpush3.bf16.msra.mxu0 %v2650_v9 }
  0xe5   : > { %2459 = vmatprep.subr.bf16.mxu0 %v2652_v10  ;;  %2480 = vmatpush3.bf16.msra.mxu1 %v2651_v11 }
  0xe6   : > { %2481 = vmatprep.subr.bf16.mxu1 %v2653_v12 }
  0xe8   : > { %2460 = vmatpush3.bf16.msra.mxu0 %v2654_v13 }
  0xe9   : > { %2461 = vmatprep.subr.bf16.mxu0 %v2656_v14  ;;  %2482 = vmatpush3.bf16.msra.mxu1 %v2655_v15 }
  0xea   : > { %2483 = vmatprep.subr.bf16.mxu1 %v2657_v16 }
  0xec   : > { %2462 = vmatpush3.bf16.msra.mxu0 %v2658_v17 }
  0xed   : > { %2491 = vmatprep.subr.bf16.mxu0 %v2660_v19  ;;  %2484 = vmatpush3.bf16.msra.mxu1 %v2659_v20 }
  0xee   : > { %2513 = vmatprep.subr.bf16.mxu1 %v2661_v21 }
  0xef   : > { %2033 = vmatmul.mubr.bf16.vlgmr.msra.gmra.mrb[4].mxu0 %v1289_v18 }
  0xf0   : > { %2492 = vmatpush3.bf16.msra.mxu0 %v2662_v22  ;;  %2073 = vmatmul.mubr.bf16.vlgmr.msra.gmra.mrb[4].mxu1 %v1305_v23 }
  0xf1   : > { %2493 = vmatprep.subr.bf16.mxu0 %v2664_v24  ;;  %2514 = vmatpush3.bf16.msra.mxu1 %v2663_v25 }
  0xf2   : > { %2515 = vmatprep.subr.bf16.mxu1 %v2665_v26  ;;  %2112 = vmatprep.mubr.bf16.mxu0 %v1329_v51 }
  0xf3   : > { %2152 = vmatprep.mubr.bf16.mxu1 %v1331_v54 }
  0xf4   : > { %2494 = vmatpush3.bf16.msra.mxu0 %v2666_v27 }
  0xf5   : > { %2495 = vmatprep.subr.bf16.mxu0 %v2668_v28  ;;  %2516 = vmatpush3.bf16.msra.mxu1 %v2667_v29  ;;  %v1062_v28 = vld [vmem:[%s3239_s29] sm:$0x3] }
  0xf6   : > { %2517 = vmatprep.subr.bf16.mxu1 %v2669_v30 }
  0xf8   : > { %2496 = vmatpush3.bf16.msra.mxu0 %v2670_v31 }
  0xf9   : > { %2497 = vmatprep.subr.bf16.mxu0 %v2672_v32  ;;  %2518 = vmatpush3.bf16.msra.mxu1 %v2671_v33  ;;  %v2399_v33 = vld [vmem:[%s1047_s26] ss:$0 sm:$0xff] (!%p2398_p13) }
  0xfa   : > { %2519 = vmatprep.subr.bf16.mxu1 %v2673_v34 }
  0xfc   : > { %2498 = vmatpush3.bf16.msra.mxu0 %v2674_v35 }
  0xfd   : > { %2499 = vmatprep.subr.bf16.mxu0 %v2676_v36  ;;  %2520 = vmatpush3.bf16.msra.mxu1 %v2675_v37 }
  0xfe   : > { %2521 = vmatprep.subr.bf16.mxu1 %v2677_v38 }
 0x100   : > { %2500 = vmatpush3.bf16.msra.mxu0 %v2678_v39 }
 0x101   : > { %2501 = vmatprep.subr.bf16.mxu0 %v2680_v40  ;;  %2522 = vmatpush3.bf16.msra.mxu1 %v2679_v41 }
 0x102   : > { %2523 = vmatprep.subr.bf16.mxu1 %v2681_v43 }
 0x104   : > { %2502 = vmatpush3.bf16.msra.mxu0 %v2682_v44 }
 0x105   : > { %2503 = vmatprep.subr.bf16.mxu0 %v2684_v45  ;;  %2524 = vmatpush3.bf16.msra.mxu1 %v2683_v47 }
 0x106   : > { %2525 = vmatprep.subr.bf16.mxu1 %v2685_v49 }
 0x108   : > { %2504 = vmatpush3.bf16.msra.mxu0 %v2686_v50 }
 0x109   : > { %2505 = vmatprep.subr.bf16.mxu0 %v2688_v52  ;;  %2526 = vmatpush3.bf16.msra.mxu1 %v2687_v53 }
 0x10a   : > { %2527 = vmatprep.subr.bf16.mxu1 %v2689_v55 }
 0x10c   : > { %2506 = vmatpush3.bf16.msra.mxu0 %v2690_v56 }
 0x10d   : > { %2528 = vmatpush3.bf16.msra.mxu1 %v2691_v58 }
 0x10f   : > { %2113 = vmatmul.mubr.bf16.vlgmr.msra.gmra.mrb[8].mxu0 %v1322_v57 }
 0x110   : > { %2153 = vmatmul.mubr.bf16.vlgmr.msra.gmra.mrb[8].mxu1 %v1330_v59 }
 0x1a2   : > { %v2419_v60 = vpop.f32.mrb[0].mxu0 }
 0x1a3   : > { %v2420_v61 = vpop.f32.mrb[1].mxu0  ;;  %v2441_v62 = vpop.f32.mrb[0].mxu1 }
 0x1a4   : > { %v2421_v63 = vadd.f32 %v2420_v61, %v2419_v60  ;;  %v2422_v0 = vpop.f32.mrb[2].mxu0  ;;  %v2442_v1 = vpop.f32.mrb[1].mxu1 }
 0x1a5   : > { %v2423_v2 = vpop.f32.mrb[3].mxu0  ;;  %v2443_v3 = vadd.f32 %v2442_v1, %v2441_v62  ;;  %v2444_v4 = vpop.f32.mrb[2].mxu1 }
 0x1a6   : > { %v2445_v5 = vpop.f32.mrb[3].mxu1 }
 0x1a7   : > { %v1995_v6 = vadd.f32 %v2443_v3, %v2421_v63 }
 0x1c2   : > { %v2463_v42 = vpop.f32.mrb[4].mxu0 }
 0x1c3   : > { %v2464_v7 = vpop.f32.mrb[5].mxu0  ;;  %v2485_v8 = vpop.f32.mrb[4].mxu1 }
 0x1c4   : > { %v2465_v9 = vadd.f32 %v2464_v7, %v2463_v42  ;;  %v2466_v10 = vpop.f32.mrb[6].mxu0  ;;  %v2486_v11 = vpop.f32.mrb[5].mxu1 }
 0x1c5   : > { %v2467_v12 = vpop.f32.mrb[7].mxu0  ;;  %v2487_v14 = vadd.f32 %v2486_v11, %v2485_v8  ;;  %v2488_v15 = vpop.f32.mrb[6].mxu1 }
 0x1c6   : > { %v2035_v13 = vadd.f32 %v2465_v9, %v1995_v6  ;;  %v2489_v16 = vpop.f32.mrb[7].mxu1 }
 0x1c8   : > { %v2075_v17 = vadd.f32 %v2487_v14, %v2035_v13 }
 0x1e2   : > { %v2507_v18 = vpop.f32.mrb[8].mxu0 }
 0x1e3   : > { %v2508_v19 = vpop.f32.mrb[9].mxu0  ;;  %v2529_v20 = vpop.f32.mrb[8].mxu1 }
 0x1e4   : > { %v2509_v21 = vadd.f32 %v2508_v19, %v2507_v18  ;;  %v2510_v22 = vpop.f32.mrb[10].mxu0  ;;  %v2530_v23 = vpop.f32.mrb[9].mxu1 }
 0x1e5   : > { %v2511_v24 = vpop.f32.mrb[11].mxu0  ;;  %v2531_v26 = vadd.f32 %v2530_v23, %v2529_v20  ;;  %v2532_v27 = vpop.f32.mrb[10].mxu1 }
 0x1e6   : > { %v2115_v25 = vadd.f32 %v2509_v21, %v2075_v17  ;;  %v2533_v29 = vpop.f32.mrb[11].mxu1  ;;  %2165 = sbr.rel (%p2398_p13) target bundleno = 505 (0x1f9), region = 81 }
 0x1e8   : > { %v2155_v30 = vadd.f32 %v2531_v26, %v2115_v25 }
 0x1ea   : > { %v2160_v31 = vadd.f32 %v2155_v30, %v1062_v28 }
 0x1ec   : > { %2161 = vst [vmem:[%s3239_s29] sm:$0x3] %v2160_v31 }
 0x1f3   : > { %v2166_v32 = vld [vmem:[%s3239_s29] sm:$0x3] }
 0x1f4   : > { %v2174_v34 = vadd.f32 %v2399_v33, %v2166_v32 }
 0x1f6   : > { %v2175_v35 = vmax.f32 %v2174_v34, 0.0 }
 0x1f8   : > { %2176 = vst [vmem:[%s3239_s29] sm:$0x3] %v2175_v35 }
 0x1f9 PF: > { %s13_s18 = sadd.s32 1, %s2746_s18   ;;  %s3393_s12 = smov %s2726_s13 }
 0x1fa   : > { %p10_p0 = scmp.ge.s32.totalorder %s13_s18, 26   ;;  %s3394_s13 = smov %s2821_s25 }
 0x1fb   : > { %s3395_s14 = smov %s2738_s16  ;;  %s3396_s15 = smov %s2742_s17 }
 0x1fc   : > { %s3397_s16 = smov %s3400_s19  ;;  %s3398_s17 = smov %s3404_s20 }
 0x1fd   :  { %12 = sbr.rel (!%p10_p0) target bundleno = 4 (0x4), region = 122 }

// kernel: cnn_forward.15
= control target key start
LH: loop header
LB: loop body
LE: loop exit
PB: predicated region body
PF: predicated region fallthrough
CT: control target
= control target key end

     0   :  { %v89_v38 = vlaneseq  ;;  %v987_v39 = vmov 1966171168   ;;  %s1288_s0 = inlined_call_operand.vmem [shape: bf16[2,512], index: 0, kind: input, shape index: {}]   ;;  %s1289_s1 = inlined_call_operand.vmem [shape: bf16[512,256], index: 1, kind: input, shape index: {}]   ;;  %s1290_s2 = inlined_call_operand.vmem [shape: f32[1,256], index: 2, kind: input, shape index: {}]   ;;  %s1291_s3 = inlined_call_operand.vmem [shape: bf16[256,10], index: 3, kind: input, shape index: {}]   ;;  %s1292_s4 = inlined_call_operand.vmem [shape: f32[1,10], index: 4, kind: input, shape index: {}]   ;;  %s1293_s5 = inlined_call_operand.hbm [shape: f32[2,10], index: 5, kind: output, shape index: {}]  }
   0x1   :  { %v847_v0 = vld [vmem:[%s1289_s1 + $0x4] ss:$8 sps:$4 sm:$0xff]   ;;  %v851_v2 = vld [vmem:[%s1289_s1] ss:$8 sps:$4 sm:$0xff]   ;;  %v853_v4 = vld [vmem:[%s1289_s1 + $0x14] ss:$8 sps:$4 sm:$0xff]   ;;  %v109_v40 = vunpack.c.l.s4 %v987_v39 }
   0x2   :  { %v849_v1 = vld [vmem:[%s1289_s1 + $0x104] ss:$8 sps:$4 sm:$0xff]   ;;  %448 = vmatprep.subr.bf16.mxu1 %v847_v0  ;;  %v852_v3 = vld [vmem:[%s1289_s1 + $0x100] ss:$8 sps:$4 sm:$0xff]   ;;  %v855_v5 = vld [vmem:[%s1289_s1 + $0x114] ss:$8 sps:$4 sm:$0xff]  }
   0x3   :  { %489 = vmatprep.subr.bf16.mxu0 %v849_v1  ;;  %449 = vmatpush1.bf16.msra.mxu1 %v851_v2  ;;  %v857_v6 = vld [vmem:[%s1289_s1 + $0x10] ss:$8 sps:$4 sm:$0xff]   ;;  %v859_v8 = vld [vmem:[%s1289_s1 + $0x24] ss:$8 sps:$4 sm:$0xff]   ;;  %v863_v10 = vld [vmem:[%s1289_s1 + $0x20] ss:$8 sps:$4 sm:$0xff]   ;;  %v110_v46 = vunpack.c.0.s8 %v109_v40 }
   0x4   :  { %490 = vmatpush1.bf16.msra.mxu0 %v852_v3  ;;  %450 = vmatprep.subr.bf16.mxu1 %v853_v4  ;;  %v858_v7 = vld [vmem:[%s1289_s1 + $0x110] ss:$8 sps:$4 sm:$0xff]   ;;  %v861_v9 = vld [vmem:[%s1289_s1 + $0x124] ss:$8 sps:$4 sm:$0xff]   ;;  %v864_v11 = vld [vmem:[%s1289_s1 + $0x120] ss:$8 sps:$4 sm:$0xff]  }
   0x5   :  { %491 = vmatprep.subr.bf16.mxu0 %v855_v5  ;;  %v865_v12 = vld [vmem:[%s1289_s1 + $0x34] ss:$8 sps:$4 sm:$0xff]   ;;  %v869_v14 = vld [vmem:[%s1289_s1 + $0x30] ss:$8 sps:$4 sm:$0xff]   ;;  %v871_v16 = vld [vmem:[%s1289_s1 + $0x44] ss:$8 sps:$4 sm:$0xff]  }
   0x6   :  { %v867_v13 = vld [vmem:[%s1289_s1 + $0x134] ss:$8 sps:$4 sm:$0xff]   ;;  %v870_v15 = vld [vmem:[%s1289_s1 + $0x130] ss:$8 sps:$4 sm:$0xff]   ;;  %v873_v17 = vld [vmem:[%s1289_s1 + $0x144] ss:$8 sps:$4 sm:$0xff]  }
   0x7   :  { %451 = vmatpush1.bf16.msra.mxu1 %v857_v6  ;;  %v875_v18 = vld [vmem:[%s1289_s1 + $0x40] ss:$8 sps:$4 sm:$0xff]   ;;  %v877_v20 = vld [vmem:[%s1289_s1 + $0x54] ss:$8 sps:$4 sm:$0xff]   ;;  %v881_v22 = vld [vmem:[%s1289_s1 + $0x50] ss:$8 sps:$4 sm:$0xff]  }
   0x8   :  { %492 = vmatpush1.bf16.msra.mxu0 %v858_v7  ;;  %452 = vmatprep.subr.bf16.mxu1 %v859_v8  ;;  %v876_v19 = vld [vmem:[%s1289_s1 + $0x140] ss:$8 sps:$4 sm:$0xff]   ;;  %v879_v21 = vld [vmem:[%s1289_s1 + $0x154] ss:$8 sps:$4 sm:$0xff]   ;;  %v882_v23 = vld [vmem:[%s1289_s1 + $0x150] ss:$8 sps:$4 sm:$0xff]  }
   0x9   :  { %493 = vmatprep.subr.bf16.mxu0 %v861_v9  ;;  %v883_v24 = vld [vmem:[%s1289_s1 + $0x64] ss:$8 sps:$4 sm:$0xff]   ;;  %v887_v26 = vld [vmem:[%s1289_s1 + $0x60] ss:$8 sps:$4 sm:$0xff]   ;;  %v889_v28 = vld [vmem:[%s1289_s1 + $0x74] ss:$8 sps:$4 sm:$0xff]  }
   0xa   :  { %v885_v25 = vld [vmem:[%s1289_s1 + $0x164] ss:$8 sps:$4 sm:$0xff]   ;;  %v888_v27 = vld [vmem:[%s1289_s1 + $0x160] ss:$8 sps:$4 sm:$0xff]   ;;  %v891_v29 = vld [vmem:[%s1289_s1 + $0x174] ss:$8 sps:$4 sm:$0xff]  }
   0xb   :  { %453 = vmatpush1.bf16.msra.mxu1 %v863_v10  ;;  %v893_v30 = vld [vmem:[%s1289_s1 + $0x70] ss:$8 sps:$4 sm:$0xff]   ;;  %v895_v32 = vld [vmem:[%s1289_s1 + $0x84] ss:$8 sps:$4 sm:$0xff]   ;;  %v899_v34 = vld [vmem:[%s1289_s1 + $0x80] ss:$8 sps:$4 sm:$0xff]  }
   0xc   :  { %494 = vmatpush1.bf16.msra.mxu0 %v864_v11  ;;  %454 = vmatprep.subr.bf16.mxu1 %v865_v12  ;;  %v894_v31 = vld [vmem:[%s1289_s1 + $0x170] ss:$8 sps:$4 sm:$0xff]   ;;  %v897_v33 = vld [vmem:[%s1289_s1 + $0x184] ss:$8 sps:$4 sm:$0xff]   ;;  %v900_v35 = vld [vmem:[%s1289_s1 + $0x180] ss:$8 sps:$4 sm:$0xff]  }
   0xd   :  { %495 = vmatprep.subr.bf16.mxu0 %v867_v13  ;;  %v901_v36 = vld [vmem:[%s1289_s1 + $0x94] ss:$8 sps:$4 sm:$0xff]   ;;  %v905_v41 = vld [vmem:[%s1289_s1 + $0x90] ss:$8 sps:$4 sm:$0xff]   ;;  %v907_v43 = vld [vmem:[%s1289_s1 + $0xa4] ss:$8 sps:$4 sm:$0xff]  }
   0xe   :  { %v903_v37 = vld [vmem:[%s1289_s1 + $0x194] ss:$8 sps:$4 sm:$0xff]   ;;  %v906_v42 = vld [vmem:[%s1289_s1 + $0x190] ss:$8 sps:$4 sm:$0xff]   ;;  %v909_v44 = vld [vmem:[%s1289_s1 + $0x1a4] ss:$8 sps:$4 sm:$0xff]  }
   0xf   :  { %455 = vmatpush1.bf16.msra.mxu1 %v869_v14  ;;  %v1145_v45 = vshrl.u32 %v89_v38, 7  ;;  %v911_v47 = vld [vmem:[%s1289_s1 + $0xa0] ss:$8 sps:$4 sm:$0xff]   ;;  %v913_v49 = vld [vmem:[%s1289_s1 + $0xb4] ss:$8 sps:$4 sm:$0xff]  }
  0x10   :  { %496 = vmatpush1.bf16.msra.mxu0 %v870_v15  ;;  %456 = vmatprep.subr.bf16.mxu1 %v871_v16  ;;  %v912_v48 = vld [vmem:[%s1289_s1 + $0x1a0] ss:$8 sps:$4 sm:$0xff]   ;;  %v915_v50 = vld [vmem:[%s1289_s1 + $0x1b4] ss:$8 sps:$4 sm:$0xff]   ;;  %v917_v51 = vld [vmem:[%s1289_s1 + $0xb0] ss:$8 sps:$4 sm:$0xff]  }
  0x11   :  { %497 = vmatprep.subr.bf16.mxu0 %v873_v17  ;;  %v918_v52 = vld [vmem:[%s1289_s1 + $0x1b0] ss:$8 sps:$4 sm:$0xff]   ;;  %v113_v53 = vsub.s32 %v110_v46, %v1145_v45  ;;  %v737_v54 = vld.sshfl [vmem:[%s1288_s0] sm:$0x33 pattern:$0x75316420] }
  0x12   :  { %v919_v55 = vld [vmem:[%s1289_s1 + $0xc4] ss:$8 sps:$4 sm:$0xff]   ;;  %v107_v56 = vcombine.high %v737_v54, %v737_v54  ;;  %v923_v58 = vld [vmem:[%s1289_s1 + $0xc0] ss:$8 sps:$4 sm:$0xff]   ;;  %v925_v61 = vld [vmem:[%s1289_s1 + $0xd4] ss:$8 sps:$4 sm:$0xff]  }
  0x13   :  { %457 = vmatpush1.bf16.msra.mxu1 %v875_v18  ;;  %v921_v57 = vld [vmem:[%s1289_s1 + $0x1c4] ss:$8 sps:$4 sm:$0xff]   ;;  %v924_v60 = vld [vmem:[%s1289_s1 + $0x1c0] ss:$8 sps:$4 sm:$0xff]   ;;  %v927_v63 = vld [vmem:[%s1289_s1 + $0x1d4] ss:$8 sps:$4 sm:$0xff]  }
  0x14   :  { %498 = vmatpush1.bf16.msra.mxu0 %v876_v19  ;;  %458 = vmatprep.subr.bf16.mxu1 %v877_v20  ;;  %v121_v59 = vrot.slane %v107_v56, %v113_v53  ;;  %v929_v0 = vld [vmem:[%s1289_s1 + $0xd0] ss:$8 sps:$4 sm:$0xff]   ;;  %v931_v2 = vld [vmem:[%s1289_s1 + $0xe4] ss:$8 sps:$4 sm:$0xff]   ;;  %v935_v4 = vld [vmem:[%s1289_s1 + $0xe0] ss:$8 sps:$4 sm:$0xff]  }
  0x15   :  { %499 = vmatprep.subr.bf16.mxu0 %v879_v21  ;;  %v930_v1 = vld [vmem:[%s1289_s1 + $0x1d0] ss:$8 sps:$4 sm:$0xff]   ;;  %v933_v3 = vld [vmem:[%s1289_s1 + $0x1e4] ss:$8 sps:$4 sm:$0xff]   ;;  %v936_v5 = vld [vmem:[%s1289_s1 + $0x1e0] ss:$8 sps:$4 sm:$0xff]  }
  0x16   :  { %v123_v62 = vcombine.high %v121_v59, %v121_v59  ;;  %480 = vmatprep.mubr.bf16.mxu1 %v121_v59  ;;  %v937_v6 = vld [vmem:[%s1289_s1 + $0xf4] ss:$8 sps:$4 sm:$0xff]  }
  0x17   :  { %459 = vmatpush1.bf16.msra.mxu1 %v881_v22  ;;  %v939_v7 = vld [vmem:[%s1289_s1 + $0x1f4] ss:$8 sps:$4 sm:$0xff]  }
  0x18   :  { %500 = vmatpush1.bf16.msra.mxu0 %v882_v23  ;;  %460 = vmatprep.subr.bf16.mxu1 %v883_v24 }
  0x19   :  { %501 = vmatprep.subr.bf16.mxu0 %v885_v25  ;;  %521 = vmatprep.mubr.bf16.mxu0 %v123_v62 }
  0x1b   :  { %461 = vmatpush1.bf16.msra.mxu1 %v887_v26 }
  0x1c   :  { %502 = vmatpush1.bf16.msra.mxu0 %v888_v27  ;;  %462 = vmatprep.subr.bf16.mxu1 %v889_v28 }
  0x1d   :  { %503 = vmatprep.subr.bf16.mxu0 %v891_v29 }
  0x1f   :  { %463 = vmatpush1.bf16.msra.mxu1 %v893_v30 }
  0x20   :  { %504 = vmatpush1.bf16.msra.mxu0 %v894_v31  ;;  %464 = vmatprep.subr.bf16.mxu1 %v895_v32 }
  0x21   :  { %505 = vmatprep.subr.bf16.mxu0 %v897_v33 }
  0x23   :  { %465 = vmatpush1.bf16.msra.mxu1 %v899_v34 }
  0x24   :  { %506 = vmatpush1.bf16.msra.mxu0 %v900_v35  ;;  %466 = vmatprep.subr.bf16.mxu1 %v901_v36 }
  0x25   :  { %507 = vmatprep.subr.bf16.mxu0 %v903_v37 }
  0x27   :  { %467 = vmatpush1.bf16.msra.mxu1 %v905_v41 }
  0x28   :  { %508 = vmatpush1.bf16.msra.mxu0 %v906_v42  ;;  %468 = vmatprep.subr.bf16.mxu1 %v907_v43 }
  0x29   :  { %509 = vmatprep.subr.bf16.mxu0 %v909_v44 }
  0x2b   :  { %469 = vmatpush1.bf16.msra.mxu1 %v911_v47 }
  0x2c   :  { %510 = vmatpush1.bf16.msra.mxu0 %v912_v48  ;;  %470 = vmatprep.subr.bf16.mxu1 %v913_v49 }
  0x2d   :  { %511 = vmatprep.subr.bf16.mxu0 %v915_v50 }
  0x2f   :  { %471 = vmatpush1.bf16.msra.mxu1 %v917_v51 }
  0x30   :  { %512 = vmatpush1.bf16.msra.mxu0 %v918_v52  ;;  %472 = vmatprep.subr.bf16.mxu1 %v919_v55 }
  0x31   :  { %513 = vmatprep.subr.bf16.mxu0 %v921_v57 }
  0x33   :  { %473 = vmatpush1.bf16.msra.mxu1 %v923_v58 }
  0x34   :  { %514 = vmatpush1.bf16.msra.mxu0 %v924_v60  ;;  %474 = vmatprep.subr.bf16.mxu1 %v925_v61 }
  0x35   :  { %515 = vmatprep.subr.bf16.mxu0 %v927_v63 }
  0x37   :  { %475 = vmatpush1.bf16.msra.mxu1 %v929_v0 }
  0x38   :  { %516 = vmatpush1.bf16.msra.mxu0 %v930_v1  ;;  %476 = vmatprep.subr.bf16.mxu1 %v931_v2 }
  0x39   :  { %517 = vmatprep.subr.bf16.mxu0 %v933_v3 }
  0x3a   :  { %10 = vsyncpa [#allocation3], 0  ;;  %v114_v8 = vrot.slane %v737_v54, %v113_v53  ;;  %v941_v9 = vld [vmem:[%s1289_s1 + $0xf0] ss:$8 sps:$4 sm:$0xff]   ;;  %v943_v11 = vld [vmem:[%s1291_s3 + $0x40] sm:$0xff]   ;;  %v91_v28 = vsub.s32 0, %v1145_v45 }
  0x3b   :  { %477 = vmatpush1.bf16.msra.mxu1 %v935_v4  ;;  %v942_v10 = vld [vmem:[%s1289_s1 + $0x1f0] ss:$8 sps:$4 sm:$0xff]   ;;  %v944_v13 = vld [vmem:[%s1291_s3] sm:$0xff]   ;;  %v945_v14 = vld [vmem:[%s1291_s3 + $0x48] sm:$0xff]   ;;  %v95_v30 = vsub.s32 1, %v1145_v45  ;;  %vm709_vm0 = vcmask 74752  }
  0x3c   :  { %518 = vmatpush1.bf16.msra.mxu0 %v936_v5  ;;  %478 = vmatprep.subr.bf16.mxu1 %v937_v6  ;;  %v122_v12 = vcombine.high %v114_v8, %v114_v8  ;;  %v946_v15 = vld [vmem:[%s1291_s3 + $0x8] sm:$0xff]   ;;  %v947_v16 = vld [vmem:[%s1291_s3 + $0x50] sm:$0xff]   ;;  %v949_v18 = vld [vmem:[%s1291_s3 + $0x58] sm:$0xff]  }
  0x3d   :  { %519 = vmatprep.subr.bf16.mxu0 %v939_v7  ;;  %v948_v17 = vld [vmem:[%s1291_s3 + $0x10] sm:$0xff]   ;;  %v950_v19 = vld [vmem:[%s1291_s3 + $0x18] sm:$0xff]   ;;  %v951_v20 = vld [vmem:[%s1291_s3 + $0x60] sm:$0xff]  }
  0x3e   :  { %v952_v21 = vld [vmem:[%s1291_s3 + $0x20] sm:$0xff]   ;;  %v953_v22 = vld [vmem:[%s1291_s3 + $0x68] sm:$0xff]   ;;  %v955_v24 = vld [vmem:[%s1291_s3 + $0x70] sm:$0xff]  }
  0x3f   :  { %479 = vmatpush1.bf16.msra.mxu1 %v941_v9  ;;  %v954_v23 = vld [vmem:[%s1291_s3 + $0x28] sm:$0xff]   ;;  %v956_v25 = vld [vmem:[%s1291_s3 + $0x30] sm:$0xff]   ;;  %v957_v26 = vld [vmem:[%s1291_s3 + $0x78] sm:$0xff]  }
  0x40   :  { %520 = vmatpush1.bf16.msra.mxu0 %v942_v10  ;;  %819 = vmatprep.subr.bf16.mxu1 %v943_v11  ;;  %v958_v27 = vld [vmem:[%s1291_s3 + $0x38] sm:$0xff]   ;;  %v87_v29 = vld [vmem:[%s1290_s2] sm:$0x3] }
  0x41   :  { %v92_v31 = vrot.slane %v87_v29, %v91_v28  ;;  %v96_v32 = vrot.slane %v87_v29, %v95_v30  ;;  %v802_v51 = vld [vmem:[%s1292_s4] ss:$0 sm:$0xff]  ;;  %s988_s4 = smov [#allocation2]  }
  0x42   :  { %481 = vmatmul.mubr.bf16.vlgmr.msra.gmra.mrb[0].mxu1 %v114_v8  ;;  %s729_s27 = sshll.u32 %s988_s4, 4  ;;  %s730_s27 = int_to_ptr.vmem [resolvable:$true] %s729_s27 }
  0x43   :  { %522 = vmatmul.mubr.bf16.vlgmr.msra.gmra.mrb[0].mxu0 %v122_v12  ;;  %820 = vmatpush3.bf16.msra.mxu1 %v944_v13  ;;  %s963_s28 = scalar_lea.vmem %s730_s27, 32  ;;  %p968_p1 = scmp.lt.s32.totalorder %s730_s27, %s730_s27 }
  0x44   :  { %821 = vmatprep.subr.bf16.mxu1 %v945_v14  ;;  %p964_p0 = scmp.ne.s32.totalorder %s730_s27, %s963_s28  ;;  %p969_p2 = scmp.lt.s32.totalorder %s963_s28, %s963_s28 }
  0x46   :  { %p970_p3 = por %p969_p2, %p968_p1 }
  0x47   :  { %822 = vmatpush3.bf16.msra.mxu1 %v946_v15 }
  0x48   :  { %823 = vmatprep.subr.bf16.mxu1 %v947_v16  ;;  %p971_p4 = pnand %p970_p3, %p964_p0 }
  0x4b   :  { %824 = vmatpush3.bf16.msra.mxu1 %v948_v17 }
  0x4c   :  { %825 = vmatprep.subr.bf16.mxu1 %v949_v18 }
  0x4f   :  { %826 = vmatpush3.bf16.msra.mxu1 %v950_v19 }
  0x50   :  { %827 = vmatprep.subr.bf16.mxu1 %v951_v20 }
  0x53   :  { %828 = vmatpush3.bf16.msra.mxu1 %v952_v21 }
  0x54   :  { %829 = vmatprep.subr.bf16.mxu1 %v953_v22 }
  0x57   :  { %830 = vmatpush3.bf16.msra.mxu1 %v954_v23 }
  0x58   :  { %831 = vmatprep.subr.bf16.mxu1 %v955_v24 }
  0x5b   :  { %832 = vmatpush3.bf16.msra.mxu1 %v956_v25 }
  0x5c   :  { %833 = vmatprep.subr.bf16.mxu1 %v957_v26 }
  0x5f   :  { %834 = vmatpush3.bf16.msra.mxu1 %v958_v27 }
 0x115   :  { %v482_v33 = vpop.f32.mrb[0].mxu1 }
 0x116   :  { %v523_v34 = vpop.f32.mrb[0].mxu0  ;;  %v483_v35 = vadd.f32 %v482_v33, %v92_v31  ;;  %v484_v36 = vpop.f32.mrb[1].mxu1 }
 0x117   :  { %v525_v37 = vpop.f32.mrb[1].mxu0  ;;  %v485_v38 = vadd.f32 %v484_v36, %v96_v32  ;;  %v486_v39 = vpop.f32.mrb[2].mxu1 }
 0x118   :  { %v527_v40 = vpop.f32.mrb[2].mxu0  ;;  %v524_v41 = vadd.f32 %v523_v34, %v483_v35  ;;  %v487_v42 = vpop.f32.mrb[3].mxu1 }
 0x119   :  { %v528_v43 = vpop.f32.mrb[3].mxu0  ;;  %v526_v44 = vadd.f32 %v525_v37, %v485_v38 }
 0x11a   :  { %v530_v46 = vmax.f32 %v524_v41, 0.0 }
 0x11b   :  { %v531_v47 = vmax.f32 %v526_v44, 0.0 }
 0x11c   :  { %v532_v49 = vpack.c.bf16 %v530_v46, %v530_v46 }
 0x11d   :  { %v533_v48 = vpack.c.bf16 %v531_v47, %v531_v47 }
 0x11f   :  { %701 = vmatprep.mubr.bf16.mxu1 %v533_v48 }
 0x120   :  { %702 = vmatmul.mubr.bf16.vlgmr.msra.gmra.mrb[4].mxu1 %v532_v49 }
 0x1f3   :  { %v835_v45 = vpop.f32.mrb[4].mxu1 }
 0x1f4   :  { %v836_v50 = vpop.f32.mrb[5].mxu1 }
 0x1f5   :  { %v837_v52 = vadd.f32 %v836_v50, %v835_v45  ;;  %v838_v53 = vpop.f32.mrb[6].mxu1 }
 0x1f6   :  { %v839_v54 = vpop.f32.mrb[7].mxu1 }
 0x1f7   :  { %v704_v55 = vadd.f32 %v837_v52, %v802_v51 }
 0x1f9   :  { %v710_v56 = vsel %vm709_vm0, %v704_v55, -inf }
 0x1fa   :  { %711 = vmax.xlane.f32.xlu0 %v710_v56 }
 0x287   :  { %v712_v57 = vpop.xlane.xlu0 %711 }
 0x288   :  { %v713_v58 = vsub.f32 %v704_v55, %v712_v57 }
 0x28a   :  { %v714_v59 = vmul.f32 1.442695, %v713_v58 }
 0x28c   :  { %959 = vpow2.f32 %v714_v59 }
 0x296   :  { %v960_v60 = vpop.eup %959 }
 0x297   :  { %v716_v61 = vsel %vm709_vm0, %v960_v60, 0.0 }
 0x298   :  { %717 = vadd.xlane.f32.xlu0 %v716_v61 }
 0x325   :  { %v718_v62 = vpop.xlane.xlu0 %717 }
 0x326   :  { %961 = vlog2.f32 %v718_v62 }
 0x330   :  { %v962_v63 = vpop.eup %961 }
 0x331   :  { %v720_v0 = vmul.f32 0.6931472, %v962_v63 }
 0x333   :  { %v721_v1 = vsub.f32 %v713_v58, %v720_v0 }
 0x335   :  { %722 = vst.msk [vmem:[#allocation2] sm:$0x3] %vm709_vm0, %v721_v1 }
 0x336   :  { %974 = shalt.err (!%p971_p4)
}
 0x337   :  { %s975_s6 = scalar_lea.hbm %s1293_s5, 32 }
 0x338   :  { %p976_p5 = scmp.ne.s32.totalorder %s1293_s5, %s975_s6  ;;  %p979_p6 = scmp.lt.u32.totalorder %s975_s6, %s1293_s5 }
 0x33a   :  { %p981_p7 = pnand %p979_p6, %p976_p5 }
 0x33c   :  { %984 = shalt.err (!%p981_p7)
}
 0x33d   :  { %732 = dma.vmem_to_hbm [thread:$0]  %s730_s27, 32, %s1293_s5, [#allocation3]  }
 0x33e   :  { %985 = dma.done.wait [#allocation3], 32  }
 0x33f   :  { %986 = vsyncadd [#allocation3], 4294967264 }
 0x340   :  { %736 = vsyncpa [#allocation3], 1 }

</bundles_post_ra>
